<compile_context>
chip_gen: v5e
topology: v5e:2x2
jax: 0.10.0
libtpu: 0.0.40
codegen_flags: <defaults>
</compile_context>

<pallas_src>
import jax
import jax.numpy as jnp
from jax.experimental import pallas as pl
from jax.experimental.pallas import tpu as pltpu

EPS = 1e-5  # PyTorch InstanceNorm2d default


# --------------------------------- kernel ----------------------------------

def residual_block_kernel(x_ref, w1_ref, b1_ref, g1_ref, be1_ref,
                          w2_ref, b2_ref, g2_ref, be2_ref, out_ref, pad_ref):
    """Nb samples per grid step. pad_ref: (Nb, H+2, W+2, Cp) VMEM scratch."""
    Nb, H, W, C = x_ref.shape
    Cp = pad_ref.shape[-1]
    HW = H * W

    x = x_ref[...]  # (Nb, H, W, C) residual, stays live in VMEM

    def write_reflect_pad(interior_cp):
        """interior_cp: (Nb, H, W, Cp). Interior store + explicit 1-px halo
        writes (rows then columns; columns fill the corners). Every element
        the 9 taps read is (re)written here, so no scratch zeroing is needed
        and the padded lanes C..Cp stay exactly zero."""
        pad_ref[:, 1:H + 1, 1:W + 1, :] = interior_cp
        pad_ref[:, 0:1, 1:W + 1, :] = pad_ref[:, 2:3, 1:W + 1, :]
        pad_ref[:, H + 1:H + 2, 1:W + 1, :] = pad_ref[:, H - 1:H, 1:W + 1, :]
        pad_ref[:, :, 0:1, :] = pad_ref[:, :, 2:3, :]
        pad_ref[:, :, W + 1:W + 2, :] = pad_ref[:, :, W - 1:W, :]

    def conv3x3(w_ref, b_row):
        """9 accumulated tap matmuls; no materialized (HW, 9*Cp) im2col."""
        acc = jnp.zeros((Nb * HW, Cp), jnp.float32)
        for dy in range(3):
            for dx in range(3):
                patch = pad_ref[:, dy:dy + H, dx:dx + W, :]      # (Nb,H,W,Cp)
                acc = acc + jnp.dot(patch.reshape(Nb * HW, Cp),
                                    w_ref[dy * 3 + dx],
                                    preferred_element_type=jnp.float32)
        return acc + b_row

    def instance_norm(y, g_row, be_row):
        """Per-sample two-pass InstanceNorm over the HW axis."""
        ys = y.reshape(Nb, HW, Cp)
        mean = jnp.mean(ys, axis=1, keepdims=True)
        d = ys - mean
        var = jnp.mean(d * d, axis=1, keepdims=True)
        out = d * jax.lax.rsqrt(var + EPS) * g_row.reshape(1, 1, Cp) \
            + be_row.reshape(1, 1, Cp)
        return out.reshape(Nb * HW, Cp)

    # Lane-pad the input sample to Cp only inside VMEM (keeps the interior
    # store lane-dense; padded lanes are zero so they stay zero through both
    # convs since their weights/bias/gamma/beta are zero).
    if C == Cp:
        x_cp = x
    else:
        x_cp = jnp.concatenate(
            [x, jnp.zeros((Nb, H, W, Cp - C), jnp.float32)], axis=-1)

    # conv1 -> IN1 -> ReLU   (intermediate never leaves VMEM)
    write_reflect_pad(x_cp)
    y1 = conv3x3(w1_ref, b1_ref[...])
    y1 = jnp.maximum(instance_norm(y1, g1_ref[...], be1_ref[...]), 0.0)

    # conv2 -> IN2 -> + residual
    write_reflect_pad(y1.reshape(Nb, H, W, Cp))
    y2 = conv3x3(w2_ref, b2_ref[...])
    y2 = instance_norm(y2, g2_ref[...], be2_ref[...])

    out_ref[...] = y2.reshape(Nb, H, W, Cp)[..., :C] + x


# -------------------------------- wrapper -----------------------------------

def _vmem_limit_bytes():
    """Per-generation VMEM budget (v7x: 64 MiB/TC, v5e/v6e: 128 MiB)."""
    try:
        cap = int(pltpu.get_tpu_info().vmem_capacity_bytes)
    except Exception:  # be conservative if the query is unavailable
        cap = 64 << 20
    return min(cap * 3 // 4, 100 << 20)


def _pick_samples_per_step(N, H, W, C, Cp, vmem_limit):
    """Largest sample-block that fits VMEM while keeping >=2 grid steps."""
    per_sample = 4 * ((H + 2) * (W + 2) * Cp   # padded scratch
                      + 4 * H * W * Cp         # conv/IN temporaries
                      + 4 * H * W * C)         # double-buffered in/out blocks
    budget = max(vmem_limit // 2, per_sample)
    min_steps = 2 if N >= 2 else 1             # keep both v7x TensorCores busy
    nb = 1
    for cand in range(1, N + 1):
        if N % cand or N // cand < min_steps or cand * per_sample > budget:
            continue
        nb = cand
    return nb


def residual_block_forward(x_nchw, params):
    """params: conv weights in PyTorch OIHW layout, biases/gamma/beta as (C,)."""
    x = jnp.transpose(x_nchw, (0, 2, 3, 1)).astype(jnp.float32)  # NCHW -> NHWC
    N, H, W, C = x.shape

    # Lane-pad channels to Cp ONLY for the VMEM-resident matmul operands.
    # Activations keep their real C in HBM (no 32x traffic inflation at C=4).
    Cp = max(128, ((C + 127) // 128) * 128)
    pad_c = Cp - C

    def prep_w(w_oihw):  # (Cout, Cin, 3, 3) -> (9, Cp, Cp), tap-major
        w = jnp.transpose(w_oihw, (2, 3, 1, 0)).astype(jnp.float32)  # (3,3,Ci,Co)
        w = jnp.pad(w, ((0, 0), (0, 0), (0, pad_c), (0, pad_c)))
        return w.reshape(9, Cp, Cp)

    def prep_v(v):  # (C,) -> (1, Cp); padded lanes are zero
        return jnp.pad(v.astype(jnp.float32), (0, pad_c)).reshape(1, Cp)

    w1, w2 = prep_w(params["w1"]), prep_w(params["w2"])
    b1, b2 = prep_v(params["b1"]), prep_v(params["b2"])
    g1, g2 = prep_v(params["g1"]), prep_v(params["g2"])
    be1, be2 = prep_v(params["be1"]), prep_v(params["be2"])

    vmem_limit = _vmem_limit_bytes()
    nb = _pick_samples_per_step(N, H, W, C, Cp, vmem_limit)
    grid = (N // nb,)

    x_spec = pl.BlockSpec((nb, H, W, C), lambda n: (n, 0, 0, 0))
    # NOTE: pipeline_mode=pl.Buffered(1) on the grid-invariant operand specs
    # would reclaim ~1.2 MiB of VMEM; skipped here (negligible at these
    # shapes) to stay on the plain, widely-supported BlockSpec signature.
    w_spec = pl.BlockSpec((9, Cp, Cp), lambda n: (0, 0, 0))
    vec_spec = pl.BlockSpec((1, Cp), lambda n: (0, 0))

    out = pl.pallas_call(
        residual_block_kernel,
        out_shape=jax.ShapeDtypeStruct((N, H, W, C), jnp.float32),
        grid_spec=pltpu.PrefetchScalarGridSpec(
            num_scalar_prefetch=0,
            grid=grid,
            in_specs=[x_spec,
                      w_spec, vec_spec, vec_spec, vec_spec,
                      w_spec, vec_spec, vec_spec, vec_spec],
            out_specs=pl.BlockSpec((nb, H, W, C), lambda n: (n, 0, 0, 0)),
            scratch_shapes=[pltpu.VMEM((nb, H + 2, W + 2, Cp), jnp.float32)],
        ),
        compiler_params=pltpu.CompilerParams(
            dimension_semantics=("parallel",),
            vmem_limit_bytes=vmem_limit),
    )(x, w1, b1, g1, be1, w2, b2, g2, be2)

    return jnp.transpose(out, (0, 3, 1, 2))  # NHWC -> NCHW


# ------------------------------- reference ----------------------------------

def reference_forward(x, params):
    """Pure-JAX reference matching the PyTorch module (NCHW)."""
    def conv(v, w, b):
        vpad = jnp.pad(v, ((0, 0), (0, 0), (1, 1), (1, 1)), mode="reflect")
        y = jax.lax.conv_general_dilated(
            vpad, w, (1, 1), "VALID",
            dimension_numbers=("NCHW", "OIHW", "NCHW"))
        return y + b[None, :, None, None]

    def inorm(y, g, be):
        mean = y.mean(axis=(2, 3), keepdims=True)
        var = ((y - mean) ** 2).mean(axis=(2, 3), keepdims=True)
        return ((y - mean) / jnp.sqrt(var + EPS)) * g[None, :, None, None] \
            + be[None, :, None, None]

    out = jax.nn.relu(inorm(conv(x, params["w1"], params["b1"]),
                            params["g1"], params["be1"]))
    out = inorm(conv(out, params["w2"], params["b2"]),
                params["g2"], params["be2"])
    return out + x


if __name__ == "__main__":
    N, C, H, W = 2, 4, 16, 16
    key = jax.random.PRNGKey(0)
    ks = jax.random.split(key, 9)

    x = jax.random.normal(ks[0], (N, C, H, W), jnp.float32)
    params = {
        "w1": 0.2 * jax.random.normal(ks[1], (C, C, 3, 3), jnp.float32),
        "b1": 0.1 * jax.random.normal(ks[2], (C,), jnp.float32),
        "g1": 1.0 + 0.1 * jax.random.normal(ks[3], (C,), jnp.float32),
        "be1": 0.1 * jax.random.normal(ks[4], (C,), jnp.float32),
        "w2": 0.2 * jax.random.normal(ks[5], (C, C, 3, 3), jnp.float32),
        "b2": 0.1 * jax.random.normal(ks[6], (C,), jnp.float32),
        "g2": 1.0 + 0.1 * jax.random.normal(ks[7], (C,), jnp.float32),
        "be2": 0.1 * jax.random.normal(ks[8], (C,), jnp.float32),
    }

    out = residual_block_forward(x, params)
    out = jax.block_until_ready(out)

    ref = jax.block_until_ready(reference_forward(x, params))
    assert out.shape == (N, C, H, W)
    assert jnp.allclose(out, ref, atol=1e-4, rtol=1e-4), \
        f"max abs err {jnp.max(jnp.abs(out - ref))}"

    print("KERNEL_OK")
</pallas_src>

<mosaic_0001>
module attributes {stable_mosaic.version = 11 : i64} {
  func.func @residual_block_kernel(%arg0: i32, %arg1: memref<1x16x16x4xf32, #tpu.memory_space<vmem>>, %arg2: memref<9x128x128xf32, #tpu.memory_space<vmem>>, %arg3: memref<1x128xf32, #tpu.memory_space<vmem>>, %arg4: memref<1x128xf32, #tpu.memory_space<vmem>>, %arg5: memref<1x128xf32, #tpu.memory_space<vmem>>, %arg6: memref<9x128x128xf32, #tpu.memory_space<vmem>>, %arg7: memref<1x128xf32, #tpu.memory_space<vmem>>, %arg8: memref<1x128xf32, #tpu.memory_space<vmem>>, %arg9: memref<1x128xf32, #tpu.memory_space<vmem>>, %arg10: memref<1x16x16x4xf32, #tpu.memory_space<vmem>>, %arg11: memref<1x18x18x128xf32, #tpu.memory_space<vmem>>) attributes {dimension_semantics = [#tpu.dimension_semantics<parallel>], iteration_bounds = array<i64: 2>, scalar_prefetch = 0 : i64, scratch_operands = 1 : i64, tpu.core_type = #tpu.core_type<tc>, window_params = [{transform_indices = @transform_0, window_bounds = array<i64: 1, 16, 16, 4>}, {pipeline_mode = #tpu.pipeline_mode<synchronous>, transform_indices = @transform_1, window_bounds = array<i64: 9, 128, 128>}, {pipeline_mode = #tpu.pipeline_mode<synchronous>, transform_indices = @transform_2, window_bounds = array<i64: 1, 128>}, {pipeline_mode = #tpu.pipeline_mode<synchronous>, transform_indices = @transform_3, window_bounds = array<i64: 1, 128>}, {pipeline_mode = #tpu.pipeline_mode<synchronous>, transform_indices = @transform_4, window_bounds = array<i64: 1, 128>}, {pipeline_mode = #tpu.pipeline_mode<synchronous>, transform_indices = @transform_5, window_bounds = array<i64: 9, 128, 128>}, {pipeline_mode = #tpu.pipeline_mode<synchronous>, transform_indices = @transform_6, window_bounds = array<i64: 1, 128>}, {pipeline_mode = #tpu.pipeline_mode<synchronous>, transform_indices = @transform_7, window_bounds = array<i64: 1, 128>}, {pipeline_mode = #tpu.pipeline_mode<synchronous>, transform_indices = @transform_8, window_bounds = array<i64: 1, 128>}, {transform_indices = @transform_9, window_bounds = array<i64: 1, 16, 16, 4>}]} {
    %c0 = arith.constant 0 : index
    %c0_0 = arith.constant 0 : index
    %c0_1 = arith.constant 0 : index
    %c0_2 = arith.constant 0 : index
    %0 = vector.load %arg1[%c0, %c0_0, %c0_1, %c0_2] : memref<1x16x16x4xf32, #tpu.memory_space<vmem>>, vector<1x16x16x4xf32>
    %cst = arith.constant 0.000000e+00 : f32
    %1 = vector.broadcast %cst : f32 to vector<1x16x16x124xf32>
    %2 = tpu.concatenate %0, %1 in 3 : vector<1x16x16x4xf32>, vector<1x16x16x124xf32> -> vector<1x16x16x128xf32>
    %c0_3 = arith.constant 0 : index
    %c1 = arith.constant 1 : index
    %c1_4 = arith.constant 1 : index
    %c0_5 = arith.constant 0 : index
    %3 = vector.load %arg11[%c0_3, %c1, %c1_4, %c0_5] : memref<1x18x18x128xf32, #tpu.memory_space<vmem>>, vector<1x16x16x128xf32>
    tpu.vector_store %arg11[%c0_3, %c1, %c1_4, %c0_5], %2 {strides = array<i32>} : memref<1x18x18x128xf32, #tpu.memory_space<vmem>>, vector<1x16x16x128xf32>,
    %c0_6 = arith.constant 0 : index
    %c2 = arith.constant 2 : index
    %c1_7 = arith.constant 1 : index
    %c0_8 = arith.constant 0 : index
    %4 = vector.load %arg11[%c0_6, %c2, %c1_7, %c0_8] : memref<1x18x18x128xf32, #tpu.memory_space<vmem>>, vector<1x1x16x128xf32>
    %c0_9 = arith.constant 0 : index
    %c0_10 = arith.constant 0 : index
    %c1_11 = arith.constant 1 : index
    %c0_12 = arith.constant 0 : index
    %5 = vector.load %arg11[%c0_9, %c0_10, %c1_11, %c0_12] : memref<1x18x18x128xf32, #tpu.memory_space<vmem>>, vector<1x1x16x128xf32>
    tpu.vector_store %arg11[%c0_9, %c0_10, %c1_11, %c0_12], %4 {strides = array<i32>} : memref<1x18x18x128xf32, #tpu.memory_space<vmem>>, vector<1x1x16x128xf32>,
    %c0_13 = arith.constant 0 : index
    %c15 = arith.constant 15 : index
    %c1_14 = arith.constant 1 : index
    %c0_15 = arith.constant 0 : index
    %6 = vector.load %arg11[%c0_13, %c15, %c1_14, %c0_15] : memref<1x18x18x128xf32, #tpu.memory_space<vmem>>, vector<1x1x16x128xf32>
    %c0_16 = arith.constant 0 : index
    %c17 = arith.constant 17 : index
    %c1_17 = arith.constant 1 : index
    %c0_18 = arith.constant 0 : index
    %7 = vector.load %arg11[%c0_16, %c17, %c1_17, %c0_18] : memref<1x18x18x128xf32, #tpu.memory_space<vmem>>, vector<1x1x16x128xf32>
    tpu.vector_store %arg11[%c0_16, %c17, %c1_17, %c0_18], %6 {strides = array<i32>} : memref<1x18x18x128xf32, #tpu.memory_space<vmem>>, vector<1x1x16x128xf32>,
    %c0_19 = arith.constant 0 : index
    %c0_20 = arith.constant 0 : index
    %c2_21 = arith.constant 2 : index
    %c0_22 = arith.constant 0 : index
    %8 = vector.load %arg11[%c0_19, %c0_20, %c2_21, %c0_22] : memref<1x18x18x128xf32, #tpu.memory_space<vmem>>, vector<1x18x1x128xf32>
    %c0_23 = arith.constant 0 : index
    %c0_24 = arith.constant 0 : index
    %c0_25 = arith.constant 0 : index
    %c0_26 = arith.constant 0 : index
    %9 = vector.load %arg11[%c0_23, %c0_24, %c0_25, %c0_26] : memref<1x18x18x128xf32, #tpu.memory_space<vmem>>, vector<1x18x1x128xf32>
    tpu.vector_store %arg11[%c0_23, %c0_24, %c0_25, %c0_26], %8 {strides = array<i32>} : memref<1x18x18x128xf32, #tpu.memory_space<vmem>>, vector<1x18x1x128xf32>,
    %c0_27 = arith.constant 0 : index
    %c0_28 = arith.constant 0 : index
    %c15_29 = arith.constant 15 : index
    %c0_30 = arith.constant 0 : index
    %10 = vector.load %arg11[%c0_27, %c0_28, %c15_29, %c0_30] : memref<1x18x18x128xf32, #tpu.memory_space<vmem>>, vector<1x18x1x128xf32>
    %c0_31 = arith.constant 0 : index
    %c0_32 = arith.constant 0 : index
    %c17_33 = arith.constant 17 : index
    %c0_34 = arith.constant 0 : index
    %11 = vector.load %arg11[%c0_31, %c0_32, %c17_33, %c0_34] : memref<1x18x18x128xf32, #tpu.memory_space<vmem>>, vector<1x18x1x128xf32>
    tpu.vector_store %arg11[%c0_31, %c0_32, %c17_33, %c0_34], %10 {strides = array<i32>} : memref<1x18x18x128xf32, #tpu.memory_space<vmem>>, vector<1x18x1x128xf32>,
    %c0_35 = arith.constant 0 : index
    %c0_36 = arith.constant 0 : index
    %12 = vector.load %arg3[%c0_35, %c0_36] : memref<1x128xf32, #tpu.memory_space<vmem>>, vector<1x128xf32>
    %cst_37 = arith.constant 0.000000e+00 : f32
    %13 = vector.broadcast %cst_37 : f32 to vector<256x128xf32>
    %c0_38 = arith.constant 0 : index
    %c0_39 = arith.constant 0 : index
    %c0_40 = arith.constant 0 : index
    %c0_41 = arith.constant 0 : index
    %14 = vector.load %arg11[%c0_38, %c0_39, %c0_40, %c0_41] : memref<1x18x18x128xf32, #tpu.memory_space<vmem>>, vector<1x16x16x128xf32>
    %15 = vector.shape_cast %14 : vector<1x16x16x128xf32> to vector<256x128xf32>
    %c0_42 = arith.constant 0 : index
    %c0_43 = arith.constant 0 : index
    %c0_44 = arith.constant 0 : index
    %16 = vector.load %arg2[%c0_42, %c0_43, %c0_44] : memref<9x128x128xf32, #tpu.memory_space<vmem>>, vector<1x128x128xf32>
    %17 = vector.shape_cast %16 : vector<1x128x128xf32> to vector<128x128xf32>
    %cst_45 = arith.constant dense<0.000000e+00> : vector<256x128xf32>
    %18 = tpu.matmul %15, %17, %cst_45 {dimension_numbers = #tpu.dot_dimension_numbers<[1], [0], [0], [1], [0, 0, 1, 1], [], []>} : vector<256x128xf32>, vector<128x128xf32>, vector<256x128xf32> -> vector<256x128xf32>
    %19 = arith.addf %13, %18 : vector<256x128xf32>
    %c0_46 = arith.constant 0 : index
    %c0_47 = arith.constant 0 : index
    %c1_48 = arith.constant 1 : index
    %c0_49 = arith.constant 0 : index
    %20 = vector.load %arg11[%c0_46, %c0_47, %c1_48, %c0_49] : memref<1x18x18x128xf32, #tpu.memory_space<vmem>>, vector<1x16x16x128xf32>
    %21 = vector.shape_cast %20 : vector<1x16x16x128xf32> to vector<256x128xf32>
    %c1_50 = arith.constant 1 : index
    %c0_51 = arith.constant 0 : index
    %c0_52 = arith.constant 0 : index
    %22 = vector.load %arg2[%c1_50, %c0_51, %c0_52] : memref<9x128x128xf32, #tpu.memory_space<vmem>>, vector<1x128x128xf32>
    %23 = vector.shape_cast %22 : vector<1x128x128xf32> to vector<128x128xf32>
    %cst_53 = arith.constant dense<0.000000e+00> : vector<256x128xf32>
    %24 = tpu.matmul %21, %23, %cst_53 {dimension_numbers = #tpu.dot_dimension_numbers<[1], [0], [0], [1], [0, 0, 1, 1], [], []>} : vector<256x128xf32>, vector<128x128xf32>, vector<256x128xf32> -> vector<256x128xf32>
    %25 = arith.addf %19, %24 : vector<256x128xf32>
    %c0_54 = arith.constant 0 : index
    %c0_55 = arith.constant 0 : index
    %c2_56 = arith.constant 2 : index
    %c0_57 = arith.constant 0 : index
    %26 = vector.load %arg11[%c0_54, %c0_55, %c2_56, %c0_57] : memref<1x18x18x128xf32, #tpu.memory_space<vmem>>, vector<1x16x16x128xf32>
    %27 = vector.shape_cast %26 : vector<1x16x16x128xf32> to vector<256x128xf32>
    %c2_58 = arith.constant 2 : index
    %c0_59 = arith.constant 0 : index
    %c0_60 = arith.constant 0 : index
    %28 = vector.load %arg2[%c2_58, %c0_59, %c0_60] : memref<9x128x128xf32, #tpu.memory_space<vmem>>, vector<1x128x128xf32>
    %29 = vector.shape_cast %28 : vector<1x128x128xf32> to vector<128x128xf32>
    %cst_61 = arith.constant dense<0.000000e+00> : vector<256x128xf32>
    %30 = tpu.matmul %27, %29, %cst_61 {dimension_numbers = #tpu.dot_dimension_numbers<[1], [0], [0], [1], [0, 0, 1, 1], [], []>} : vector<256x128xf32>, vector<128x128xf32>, vector<256x128xf32> -> vector<256x128xf32>
    %31 = arith.addf %25, %30 : vector<256x128xf32>
    %c0_62 = arith.constant 0 : index
    %c1_63 = arith.constant 1 : index
    %c0_64 = arith.constant 0 : index
    %c0_65 = arith.constant 0 : index
    %32 = vector.load %arg11[%c0_62, %c1_63, %c0_64, %c0_65] : memref<1x18x18x128xf32, #tpu.memory_space<vmem>>, vector<1x16x16x128xf32>
    %33 = vector.shape_cast %32 : vector<1x16x16x128xf32> to vector<256x128xf32>
    %c3 = arith.constant 3 : index
    %c0_66 = arith.constant 0 : index
    %c0_67 = arith.constant 0 : index
    %34 = vector.load %arg2[%c3, %c0_66, %c0_67] : memref<9x128x128xf32, #tpu.memory_space<vmem>>, vector<1x128x128xf32>
    %35 = vector.shape_cast %34 : vector<1x128x128xf32> to vector<128x128xf32>
    %cst_68 = arith.constant dense<0.000000e+00> : vector<256x128xf32>
    %36 = tpu.matmul %33, %35, %cst_68 {dimension_numbers = #tpu.dot_dimension_numbers<[1], [0], [0], [1], [0, 0, 1, 1], [], []>} : vector<256x128xf32>, vector<128x128xf32>, vector<256x128xf32> -> vector<256x128xf32>
    %37 = arith.addf %31, %36 : vector<256x128xf32>
    %c0_69 = arith.constant 0 : index
    %c1_70 = arith.constant 1 : index
    %c1_71 = arith.constant 1 : index
    %c0_72 = arith.constant 0 : index
    %38 = vector.load %arg11[%c0_69, %c1_70, %c1_71, %c0_72] : memref<1x18x18x128xf32, #tpu.memory_space<vmem>>, vector<1x16x16x128xf32>
    %39 = vector.shape_cast %38 : vector<1x16x16x128xf32> to vector<256x128xf32>
    %c4 = arith.constant 4 : index
    %c0_73 = arith.constant 0 : index
    %c0_74 = arith.constant 0 : index
    %40 = vector.load %arg2[%c4, %c0_73, %c0_74] : memref<9x128x128xf32, #tpu.memory_space<vmem>>, vector<1x128x128xf32>
    %41 = vector.shape_cast %40 : vector<1x128x128xf32> to vector<128x128xf32>
    %cst_75 = arith.constant dense<0.000000e+00> : vector<256x128xf32>
    %42 = tpu.matmul %39, %41, %cst_75 {dimension_numbers = #tpu.dot_dimension_numbers<[1], [0], [0], [1], [0, 0, 1, 1], [], []>} : vector<256x128xf32>, vector<128x128xf32>, vector<256x128xf32> -> vector<256x128xf32>
    %43 = arith.addf %37, %42 : vector<256x128xf32>
    %c0_76 = arith.constant 0 : index
    %c1_77 = arith.constant 1 : index
    %c2_78 = arith.constant 2 : index
    %c0_79 = arith.constant 0 : index
    %44 = vector.load %arg11[%c0_76, %c1_77, %c2_78, %c0_79] : memref<1x18x18x128xf32, #tpu.memory_space<vmem>>, vector<1x16x16x128xf32>
    %45 = vector.shape_cast %44 : vector<1x16x16x128xf32> to vector<256x128xf32>
    %c5 = arith.constant 5 : index
    %c0_80 = arith.constant 0 : index
    %c0_81 = arith.constant 0 : index
    %46 = vector.load %arg2[%c5, %c0_80, %c0_81] : memref<9x128x128xf32, #tpu.memory_space<vmem>>, vector<1x128x128xf32>
    %47 = vector.shape_cast %46 : vector<1x128x128xf32> to vector<128x128xf32>
    %cst_82 = arith.constant dense<0.000000e+00> : vector<256x128xf32>
    %48 = tpu.matmul %45, %47, %cst_82 {dimension_numbers = #tpu.dot_dimension_numbers<[1], [0], [0], [1], [0, 0, 1, 1], [], []>} : vector<256x128xf32>, vector<128x128xf32>, vector<256x128xf32> -> vector<256x128xf32>
    %49 = arith.addf %43, %48 : vector<256x128xf32>
    %c0_83 = arith.constant 0 : index
    %c2_84 = arith.constant 2 : index
    %c0_85 = arith.constant 0 : index
    %c0_86 = arith.constant 0 : index
    %50 = vector.load %arg11[%c0_83, %c2_84, %c0_85, %c0_86] : memref<1x18x18x128xf32, #tpu.memory_space<vmem>>, vector<1x16x16x128xf32>
    %51 = vector.shape_cast %50 : vector<1x16x16x128xf32> to vector<256x128xf32>
    %c6 = arith.constant 6 : index
    %c0_87 = arith.constant 0 : index
    %c0_88 = arith.constant 0 : index
    %52 = vector.load %arg2[%c6, %c0_87, %c0_88] : memref<9x128x128xf32, #tpu.memory_space<vmem>>, vector<1x128x128xf32>
    %53 = vector.shape_cast %52 : vector<1x128x128xf32> to vector<128x128xf32>
    %cst_89 = arith.constant dense<0.000000e+00> : vector<256x128xf32>
    %54 = tpu.matmul %51, %53, %cst_89 {dimension_numbers = #tpu.dot_dimension_numbers<[1], [0], [0], [1], [0, 0, 1, 1], [], []>} : vector<256x128xf32>, vector<128x128xf32>, vector<256x128xf32> -> vector<256x128xf32>
    %55 = arith.addf %49, %54 : vector<256x128xf32>
    %c0_90 = arith.constant 0 : index
    %c2_91 = arith.constant 2 : index
    %c1_92 = arith.constant 1 : index
    %c0_93 = arith.constant 0 : index
    %56 = vector.load %arg11[%c0_90, %c2_91, %c1_92, %c0_93] : memref<1x18x18x128xf32, #tpu.memory_space<vmem>>, vector<1x16x16x128xf32>
    %57 = vector.shape_cast %56 : vector<1x16x16x128xf32> to vector<256x128xf32>
    %c7 = arith.constant 7 : index
    %c0_94 = arith.constant 0 : index
    %c0_95 = arith.constant 0 : index
    %58 = vector.load %arg2[%c7, %c0_94, %c0_95] : memref<9x128x128xf32, #tpu.memory_space<vmem>>, vector<1x128x128xf32>
    %59 = vector.shape_cast %58 : vector<1x128x128xf32> to vector<128x128xf32>
    %cst_96 = arith.constant dense<0.000000e+00> : vector<256x128xf32>
    %60 = tpu.matmul %57, %59, %cst_96 {dimension_numbers = #tpu.dot_dimension_numbers<[1], [0], [0], [1], [0, 0, 1, 1], [], []>} : vector<256x128xf32>, vector<128x128xf32>, vector<256x128xf32> -> vector<256x128xf32>
    %61 = arith.addf %55, %60 : vector<256x128xf32>
    %c0_97 = arith.constant 0 : index
    %c2_98 = arith.constant 2 : index
    %c2_99 = arith.constant 2 : index
    %c0_100 = arith.constant 0 : index
    %62 = vector.load %arg11[%c0_97, %c2_98, %c2_99, %c0_100] : memref<1x18x18x128xf32, #tpu.memory_space<vmem>>, vector<1x16x16x128xf32>
    %63 = vector.shape_cast %62 : vector<1x16x16x128xf32> to vector<256x128xf32>
    %c8 = arith.constant 8 : index
    %c0_101 = arith.constant 0 : index
    %c0_102 = arith.constant 0 : index
    %64 = vector.load %arg2[%c8, %c0_101, %c0_102] : memref<9x128x128xf32, #tpu.memory_space<vmem>>, vector<1x128x128xf32>
    %65 = vector.shape_cast %64 : vector<1x128x128xf32> to vector<128x128xf32>
    %cst_103 = arith.constant dense<0.000000e+00> : vector<256x128xf32>
    %66 = tpu.matmul %63, %65, %cst_103 {dimension_numbers = #tpu.dot_dimension_numbers<[1], [0], [0], [1], [0, 0, 1, 1], [], []>} : vector<256x128xf32>, vector<128x128xf32>, vector<256x128xf32> -> vector<256x128xf32>
    %67 = arith.addf %61, %66 : vector<256x128xf32>
    %68 = vector.broadcast %12 : vector<1x128xf32> to vector<256x128xf32>
    %69 = arith.addf %67, %68 : vector<256x128xf32>
    %c0_104 = arith.constant 0 : index
    %c0_105 = arith.constant 0 : index
    %70 = vector.load %arg4[%c0_104, %c0_105] : memref<1x128xf32, #tpu.memory_space<vmem>>, vector<1x128xf32>
    %c0_106 = arith.constant 0 : index
    %c0_107 = arith.constant 0 : index
    %71 = vector.load %arg5[%c0_106, %c0_107] : memref<1x128xf32, #tpu.memory_space<vmem>>, vector<1x128xf32>
    %72 = vector.shape_cast %69 : vector<256x128xf32> to vector<1x256x128xf32>
    %cst_108 = arith.constant dense<0.000000e+00> : vector<1x128xf32>
    %73 = vector.multi_reduction <add>, %72, %cst_108 [1] : vector<1x256x128xf32> to vector<1x128xf32>
    %74 = vector.shape_cast %73 : vector<1x128xf32> to vector<1x1x128xf32>
    %cst_109 = arith.constant 2.560000e+02 : f32
    %75 = vector.broadcast %cst_109 : f32 to vector<1x1x128xf32>
    %76 = arith.divf %74, %75 : vector<1x1x128xf32>
    %77 = vector.broadcast %76 : vector<1x1x128xf32> to vector<1x256x128xf32>
    %78 = arith.subf %72, %77 : vector<1x256x128xf32>
    %79 = arith.mulf %78, %78 : vector<1x256x128xf32>
    %cst_110 = arith.constant dense<0.000000e+00> : vector<1x128xf32>
    %80 = vector.multi_reduction <add>, %79, %cst_110 [1] : vector<1x256x128xf32> to vector<1x128xf32>
    %81 = vector.shape_cast %80 : vector<1x128xf32> to vector<1x1x128xf32>
    %cst_111 = arith.constant 2.560000e+02 : f32
    %82 = vector.broadcast %cst_111 : f32 to vector<1x1x128xf32>
    %83 = arith.divf %81, %82 : vector<1x1x128xf32>
    %cst_112 = arith.constant 9.99999974E-6 : f32
    %84 = vector.broadcast %cst_112 : f32 to vector<1x1x128xf32>
    %85 = arith.addf %83, %84 : vector<1x1x128xf32>
    %86 = math.rsqrt %85 : vector<1x1x128xf32>
    %87 = vector.broadcast %86 : vector<1x1x128xf32> to vector<1x256x128xf32>
    %88 = arith.mulf %78, %87 : vector<1x256x128xf32>
    %89 = vector.shape_cast %70 : vector<1x128xf32> to vector<1x1x128xf32>
    %90 = vector.broadcast %89 : vector<1x1x128xf32> to vector<1x256x128xf32>
    %91 = arith.mulf %88, %90 : vector<1x256x128xf32>
    %92 = vector.shape_cast %71 : vector<1x128xf32> to vector<1x1x128xf32>
    %93 = vector.broadcast %92 : vector<1x1x128xf32> to vector<1x256x128xf32>
    %94 = arith.addf %91, %93 : vector<1x256x128xf32>
    %95 = vector.shape_cast %94 : vector<1x256x128xf32> to vector<256x128xf32>
    %cst_113 = arith.constant 0.000000e+00 : f32
    %96 = vector.broadcast %cst_113 : f32 to vector<256x128xf32>
    %97 = arith.maximumf %95, %96 : vector<256x128xf32>
    %98 = vector.shape_cast %97 : vector<256x128xf32> to vector<1x16x16x128xf32>
    %c0_114 = arith.constant 0 : index
    %c1_115 = arith.constant 1 : index
    %c1_116 = arith.constant 1 : index
    %c0_117 = arith.constant 0 : index
    %99 = vector.load %arg11[%c0_114, %c1_115, %c1_116, %c0_117] : memref<1x18x18x128xf32, #tpu.memory_space<vmem>>, vector<1x16x16x128xf32>
    tpu.vector_store %arg11[%c0_114, %c1_115, %c1_116, %c0_117], %98 {strides = array<i32>} : memref<1x18x18x128xf32, #tpu.memory_space<vmem>>, vector<1x16x16x128xf32>,
    %c0_118 = arith.constant 0 : index
    %c2_119 = arith.constant 2 : index
    %c1_120 = arith.constant 1 : index
    %c0_121 = arith.constant 0 : index
    %100 = vector.load %arg11[%c0_118, %c2_119, %c1_120, %c0_121] : memref<1x18x18x128xf32, #tpu.memory_space<vmem>>, vector<1x1x16x128xf32>
    %c0_122 = arith.constant 0 : index
    %c0_123 = arith.constant 0 : index
    %c1_124 = arith.constant 1 : index
    %c0_125 = arith.constant 0 : index
    %101 = vector.load %arg11[%c0_122, %c0_123, %c1_124, %c0_125] : memref<1x18x18x128xf32, #tpu.memory_space<vmem>>, vector<1x1x16x128xf32>
    tpu.vector_store %arg11[%c0_122, %c0_123, %c1_124, %c0_125], %100 {strides = array<i32>} : memref<1x18x18x128xf32, #tpu.memory_space<vmem>>, vector<1x1x16x128xf32>,
    %c0_126 = arith.constant 0 : index
    %c15_127 = arith.constant 15 : index
    %c1_128 = arith.constant 1 : index
    %c0_129 = arith.constant 0 : index
    %102 = vector.load %arg11[%c0_126, %c15_127, %c1_128, %c0_129] : memref<1x18x18x128xf32, #tpu.memory_space<vmem>>, vector<1x1x16x128xf32>
    %c0_130 = arith.constant 0 : index
    %c17_131 = arith.constant 17 : index
    %c1_132 = arith.constant 1 : index
    %c0_133 = arith.constant 0 : index
    %103 = vector.load %arg11[%c0_130, %c17_131, %c1_132, %c0_133] : memref<1x18x18x128xf32, #tpu.memory_space<vmem>>, vector<1x1x16x128xf32>
    tpu.vector_store %arg11[%c0_130, %c17_131, %c1_132, %c0_133], %102 {strides = array<i32>} : memref<1x18x18x128xf32, #tpu.memory_space<vmem>>, vector<1x1x16x128xf32>,
    %c0_134 = arith.constant 0 : index
    %c0_135 = arith.constant 0 : index
    %c2_136 = arith.constant 2 : index
    %c0_137 = arith.constant 0 : index
    %104 = vector.load %arg11[%c0_134, %c0_135, %c2_136, %c0_137] : memref<1x18x18x128xf32, #tpu.memory_space<vmem>>, vector<1x18x1x128xf32>
    %c0_138 = arith.constant 0 : index
    %c0_139 = arith.constant 0 : index
    %c0_140 = arith.constant 0 : index
    %c0_141 = arith.constant 0 : index
    %105 = vector.load %arg11[%c0_138, %c0_139, %c0_140, %c0_141] : memref<1x18x18x128xf32, #tpu.memory_space<vmem>>, vector<1x18x1x128xf32>
    tpu.vector_store %arg11[%c0_138, %c0_139, %c0_140, %c0_141], %104 {strides = array<i32>} : memref<1x18x18x128xf32, #tpu.memory_space<vmem>>, vector<1x18x1x128xf32>,
    %c0_142 = arith.constant 0 : index
    %c0_143 = arith.constant 0 : index
    %c15_144 = arith.constant 15 : index
    %c0_145 = arith.constant 0 : index
    %106 = vector.load %arg11[%c0_142, %c0_143, %c15_144, %c0_145] : memref<1x18x18x128xf32, #tpu.memory_space<vmem>>, vector<1x18x1x128xf32>
    %c0_146 = arith.constant 0 : index
    %c0_147 = arith.constant 0 : index
    %c17_148 = arith.constant 17 : index
    %c0_149 = arith.constant 0 : index
    %107 = vector.load %arg11[%c0_146, %c0_147, %c17_148, %c0_149] : memref<1x18x18x128xf32, #tpu.memory_space<vmem>>, vector<1x18x1x128xf32>
    tpu.vector_store %arg11[%c0_146, %c0_147, %c17_148, %c0_149], %106 {strides = array<i32>} : memref<1x18x18x128xf32, #tpu.memory_space<vmem>>, vector<1x18x1x128xf32>,
    %c0_150 = arith.constant 0 : index
    %c0_151 = arith.constant 0 : index
    %108 = vector.load %arg7[%c0_150, %c0_151] : memref<1x128xf32, #tpu.memory_space<vmem>>, vector<1x128xf32>
    %cst_152 = arith.constant 0.000000e+00 : f32
    %109 = vector.broadcast %cst_152 : f32 to vector<256x128xf32>
    %c0_153 = arith.constant 0 : index
    %c0_154 = arith.constant 0 : index
    %c0_155 = arith.constant 0 : index
    %c0_156 = arith.constant 0 : index
    %110 = vector.load %arg11[%c0_153, %c0_154, %c0_155, %c0_156] : memref<1x18x18x128xf32, #tpu.memory_space<vmem>>, vector<1x16x16x128xf32>
    %111 = vector.shape_cast %110 : vector<1x16x16x128xf32> to vector<256x128xf32>
    %c0_157 = arith.constant 0 : index
    %c0_158 = arith.constant 0 : index
    %c0_159 = arith.constant 0 : index
    %112 = vector.load %arg6[%c0_157, %c0_158, %c0_159] : memref<9x128x128xf32, #tpu.memory_space<vmem>>, vector<1x128x128xf32>
    %113 = vector.shape_cast %112 : vector<1x128x128xf32> to vector<128x128xf32>
    %cst_160 = arith.constant dense<0.000000e+00> : vector<256x128xf32>
    %114 = tpu.matmul %111, %113, %cst_160 {dimension_numbers = #tpu.dot_dimension_numbers<[1], [0], [0], [1], [0, 0, 1, 1], [], []>} : vector<256x128xf32>, vector<128x128xf32>, vector<256x128xf32> -> vector<256x128xf32>
    %115 = arith.addf %109, %114 : vector<256x128xf32>
    %c0_161 = arith.constant 0 : index
    %c0_162 = arith.constant 0 : index
    %c1_163 = arith.constant 1 : index
    %c0_164 = arith.constant 0 : index
    %116 = vector.load %arg11[%c0_161, %c0_162, %c1_163, %c0_164] : memref<1x18x18x128xf32, #tpu.memory_space<vmem>>, vector<1x16x16x128xf32>
    %117 = vector.shape_cast %116 : vector<1x16x16x128xf32> to vector<256x128xf32>
    %c1_165 = arith.constant 1 : index
    %c0_166 = arith.constant 0 : index
    %c0_167 = arith.constant 0 : index
    %118 = vector.load %arg6[%c1_165, %c0_166, %c0_167] : memref<9x128x128xf32, #tpu.memory_space<vmem>>, vector<1x128x128xf32>
    %119 = vector.shape_cast %118 : vector<1x128x128xf32> to vector<128x128xf32>
    %cst_168 = arith.constant dense<0.000000e+00> : vector<256x128xf32>
    %120 = tpu.matmul %117, %119, %cst_168 {dimension_numbers = #tpu.dot_dimension_numbers<[1], [0], [0], [1], [0, 0, 1, 1], [], []>} : vector<256x128xf32>, vector<128x128xf32>, vector<256x128xf32> -> vector<256x128xf32>
    %121 = arith.addf %115, %120 : vector<256x128xf32>
    %c0_169 = arith.constant 0 : index
    %c0_170 = arith.constant 0 : index
    %c2_171 = arith.constant 2 : index
    %c0_172 = arith.constant 0 : index
    %122 = vector.load %arg11[%c0_169, %c0_170, %c2_171, %c0_172] : memref<1x18x18x128xf32, #tpu.memory_space<vmem>>, vector<1x16x16x128xf32>
    %123 = vector.shape_cast %122 : vector<1x16x16x128xf32> to vector<256x128xf32>
    %c2_173 = arith.constant 2 : index
    %c0_174 = arith.constant 0 : index
    %c0_175 = arith.constant 0 : index
    %124 = vector.load %arg6[%c2_173, %c0_174, %c0_175] : memref<9x128x128xf32, #tpu.memory_space<vmem>>, vector<1x128x128xf32>
    %125 = vector.shape_cast %124 : vector<1x128x128xf32> to vector<128x128xf32>
    %cst_176 = arith.constant dense<0.000000e+00> : vector<256x128xf32>
    %126 = tpu.matmul %123, %125, %cst_176 {dimension_numbers = #tpu.dot_dimension_numbers<[1], [0], [0], [1], [0, 0, 1, 1], [], []>} : vector<256x128xf32>, vector<128x128xf32>, vector<256x128xf32> -> vector<256x128xf32>
    %127 = arith.addf %121, %126 : vector<256x128xf32>
    %c0_177 = arith.constant 0 : index
    %c1_178 = arith.constant 1 : index
    %c0_179 = arith.constant 0 : index
    %c0_180 = arith.constant 0 : index
    %128 = vector.load %arg11[%c0_177, %c1_178, %c0_179, %c0_180] : memref<1x18x18x128xf32, #tpu.memory_space<vmem>>, vector<1x16x16x128xf32>
    %129 = vector.shape_cast %128 : vector<1x16x16x128xf32> to vector<256x128xf32>
    %c3_181 = arith.constant 3 : index
    %c0_182 = arith.constant 0 : index
    %c0_183 = arith.constant 0 : index
    %130 = vector.load %arg6[%c3_181, %c0_182, %c0_183] : memref<9x128x128xf32, #tpu.memory_space<vmem>>, vector<1x128x128xf32>
    %131 = vector.shape_cast %130 : vector<1x128x128xf32> to vector<128x128xf32>
    %cst_184 = arith.constant dense<0.000000e+00> : vector<256x128xf32>
    %132 = tpu.matmul %129, %131, %cst_184 {dimension_numbers = #tpu.dot_dimension_numbers<[1], [0], [0], [1], [0, 0, 1, 1], [], []>} : vector<256x128xf32>, vector<128x128xf32>, vector<256x128xf32> -> vector<256x128xf32>
    %133 = arith.addf %127, %132 : vector<256x128xf32>
    %c0_185 = arith.constant 0 : index
    %c1_186 = arith.constant 1 : index
    %c1_187 = arith.constant 1 : index
    %c0_188 = arith.constant 0 : index
    %134 = vector.load %arg11[%c0_185, %c1_186, %c1_187, %c0_188] : memref<1x18x18x128xf32, #tpu.memory_space<vmem>>, vector<1x16x16x128xf32>
    %135 = vector.shape_cast %134 : vector<1x16x16x128xf32> to vector<256x128xf32>
    %c4_189 = arith.constant 4 : index
    %c0_190 = arith.constant 0 : index
    %c0_191 = arith.constant 0 : index
    %136 = vector.load %arg6[%c4_189, %c0_190, %c0_191] : memref<9x128x128xf32, #tpu.memory_space<vmem>>, vector<1x128x128xf32>
    %137 = vector.shape_cast %136 : vector<1x128x128xf32> to vector<128x128xf32>
    %cst_192 = arith.constant dense<0.000000e+00> : vector<256x128xf32>
    %138 = tpu.matmul %135, %137, %cst_192 {dimension_numbers = #tpu.dot_dimension_numbers<[1], [0], [0], [1], [0, 0, 1, 1], [], []>} : vector<256x128xf32>, vector<128x128xf32>, vector<256x128xf32> -> vector<256x128xf32>
    %139 = arith.addf %133, %138 : vector<256x128xf32>
    %c0_193 = arith.constant 0 : index
    %c1_194 = arith.constant 1 : index
    %c2_195 = arith.constant 2 : index
    %c0_196 = arith.constant 0 : index
    %140 = vector.load %arg11[%c0_193, %c1_194, %c2_195, %c0_196] : memref<1x18x18x128xf32, #tpu.memory_space<vmem>>, vector<1x16x16x128xf32>
    %141 = vector.shape_cast %140 : vector<1x16x16x128xf32> to vector<256x128xf32>
    %c5_197 = arith.constant 5 : index
    %c0_198 = arith.constant 0 : index
    %c0_199 = arith.constant 0 : index
    %142 = vector.load %arg6[%c5_197, %c0_198, %c0_199] : memref<9x128x128xf32, #tpu.memory_space<vmem>>, vector<1x128x128xf32>
    %143 = vector.shape_cast %142 : vector<1x128x128xf32> to vector<128x128xf32>
    %cst_200 = arith.constant dense<0.000000e+00> : vector<256x128xf32>
    %144 = tpu.matmul %141, %143, %cst_200 {dimension_numbers = #tpu.dot_dimension_numbers<[1], [0], [0], [1], [0, 0, 1, 1], [], []>} : vector<256x128xf32>, vector<128x128xf32>, vector<256x128xf32> -> vector<256x128xf32>
    %145 = arith.addf %139, %144 : vector<256x128xf32>
    %c0_201 = arith.constant 0 : index
    %c2_202 = arith.constant 2 : index
    %c0_203 = arith.constant 0 : index
    %c0_204 = arith.constant 0 : index
    %146 = vector.load %arg11[%c0_201, %c2_202, %c0_203, %c0_204] : memref<1x18x18x128xf32, #tpu.memory_space<vmem>>, vector<1x16x16x128xf32>
    %147 = vector.shape_cast %146 : vector<1x16x16x128xf32> to vector<256x128xf32>
    %c6_205 = arith.constant 6 : index
    %c0_206 = arith.constant 0 : index
    %c0_207 = arith.constant 0 : index
    %148 = vector.load %arg6[%c6_205, %c0_206, %c0_207] : memref<9x128x128xf32, #tpu.memory_space<vmem>>, vector<1x128x128xf32>
    %149 = vector.shape_cast %148 : vector<1x128x128xf32> to vector<128x128xf32>
    %cst_208 = arith.constant dense<0.000000e+00> : vector<256x128xf32>
    %150 = tpu.matmul %147, %149, %cst_208 {dimension_numbers = #tpu.dot_dimension_numbers<[1], [0], [0], [1], [0, 0, 1, 1], [], []>} : vector<256x128xf32>, vector<128x128xf32>, vector<256x128xf32> -> vector<256x128xf32>
    %151 = arith.addf %145, %150 : vector<256x128xf32>
    %c0_209 = arith.constant 0 : index
    %c2_210 = arith.constant 2 : index
    %c1_211 = arith.constant 1 : index
    %c0_212 = arith.constant 0 : index
    %152 = vector.load %arg11[%c0_209, %c2_210, %c1_211, %c0_212] : memref<1x18x18x128xf32, #tpu.memory_space<vmem>>, vector<1x16x16x128xf32>
    %153 = vector.shape_cast %152 : vector<1x16x16x128xf32> to vector<256x128xf32>
    %c7_213 = arith.constant 7 : index
    %c0_214 = arith.constant 0 : index
    %c0_215 = arith.constant 0 : index
    %154 = vector.load %arg6[%c7_213, %c0_214, %c0_215] : memref<9x128x128xf32, #tpu.memory_space<vmem>>, vector<1x128x128xf32>
    %155 = vector.shape_cast %154 : vector<1x128x128xf32> to vector<128x128xf32>
    %cst_216 = arith.constant dense<0.000000e+00> : vector<256x128xf32>
    %156 = tpu.matmul %153, %155, %cst_216 {dimension_numbers = #tpu.dot_dimension_numbers<[1], [0], [0], [1], [0, 0, 1, 1], [], []>} : vector<256x128xf32>, vector<128x128xf32>, vector<256x128xf32> -> vector<256x128xf32>
    %157 = arith.addf %151, %156 : vector<256x128xf32>
    %c0_217 = arith.constant 0 : index
    %c2_218 = arith.constant 2 : index
    %c2_219 = arith.constant 2 : index
    %c0_220 = arith.constant 0 : index
    %158 = vector.load %arg11[%c0_217, %c2_218, %c2_219, %c0_220] : memref<1x18x18x128xf32, #tpu.memory_space<vmem>>, vector<1x16x16x128xf32>
    %159 = vector.shape_cast %158 : vector<1x16x16x128xf32> to vector<256x128xf32>
    %c8_221 = arith.constant 8 : index
    %c0_222 = arith.constant 0 : index
    %c0_223 = arith.constant 0 : index
    %160 = vector.load %arg6[%c8_221, %c0_222, %c0_223] : memref<9x128x128xf32, #tpu.memory_space<vmem>>, vector<1x128x128xf32>
    %161 = vector.shape_cast %160 : vector<1x128x128xf32> to vector<128x128xf32>
    %cst_224 = arith.constant dense<0.000000e+00> : vector<256x128xf32>
    %162 = tpu.matmul %159, %161, %cst_224 {dimension_numbers = #tpu.dot_dimension_numbers<[1], [0], [0], [1], [0, 0, 1, 1], [], []>} : vector<256x128xf32>, vector<128x128xf32>, vector<256x128xf32> -> vector<256x128xf32>
    %163 = arith.addf %157, %162 : vector<256x128xf32>
    %164 = vector.broadcast %108 : vector<1x128xf32> to vector<256x128xf32>
    %165 = arith.addf %163, %164 : vector<256x128xf32>
    %c0_225 = arith.constant 0 : index
    %c0_226 = arith.constant 0 : index
    %166 = vector.load %arg8[%c0_225, %c0_226] : memref<1x128xf32, #tpu.memory_space<vmem>>, vector<1x128xf32>
    %c0_227 = arith.constant 0 : index
    %c0_228 = arith.constant 0 : index
    %167 = vector.load %arg9[%c0_227, %c0_228] : memref<1x128xf32, #tpu.memory_space<vmem>>, vector<1x128xf32>
    %168 = vector.shape_cast %165 : vector<256x128xf32> to vector<1x256x128xf32>
    %cst_229 = arith.constant dense<0.000000e+00> : vector<1x128xf32>
    %169 = vector.multi_reduction <add>, %168, %cst_229 [1] : vector<1x256x128xf32> to vector<1x128xf32>
    %170 = vector.shape_cast %169 : vector<1x128xf32> to vector<1x1x128xf32>
    %cst_230 = arith.constant 2.560000e+02 : f32
    %171 = vector.broadcast %cst_230 : f32 to vector<1x1x128xf32>
    %172 = arith.divf %170, %171 : vector<1x1x128xf32>
    %173 = vector.broadcast %172 : vector<1x1x128xf32> to vector<1x256x128xf32>
    %174 = arith.subf %168, %173 : vector<1x256x128xf32>
    %175 = arith.mulf %174, %174 : vector<1x256x128xf32>
    %cst_231 = arith.constant dense<0.000000e+00> : vector<1x128xf32>
    %176 = vector.multi_reduction <add>, %175, %cst_231 [1] : vector<1x256x128xf32> to vector<1x128xf32>
    %177 = vector.shape_cast %176 : vector<1x128xf32> to vector<1x1x128xf32>
    %cst_232 = arith.constant 2.560000e+02 : f32
    %178 = vector.broadcast %cst_232 : f32 to vector<1x1x128xf32>
    %179 = arith.divf %177, %178 : vector<1x1x128xf32>
    %cst_233 = arith.constant 9.99999974E-6 : f32
    %180 = vector.broadcast %cst_233 : f32 to vector<1x1x128xf32>
    %181 = arith.addf %179, %180 : vector<1x1x128xf32>
    %182 = math.rsqrt %181 : vector<1x1x128xf32>
    %183 = vector.broadcast %182 : vector<1x1x128xf32> to vector<1x256x128xf32>
    %184 = arith.mulf %174, %183 : vector<1x256x128xf32>
    %185 = vector.shape_cast %166 : vector<1x128xf32> to vector<1x1x128xf32>
    %186 = vector.broadcast %185 : vector<1x1x128xf32> to vector<1x256x128xf32>
    %187 = arith.mulf %184, %186 : vector<1x256x128xf32>
    %188 = vector.shape_cast %167 : vector<1x128xf32> to vector<1x1x128xf32>
    %189 = vector.broadcast %188 : vector<1x1x128xf32> to vector<1x256x128xf32>
    %190 = arith.addf %187, %189 : vector<1x256x128xf32>
    %191 = vector.shape_cast %190 : vector<1x256x128xf32> to vector<256x128xf32>
    %192 = vector.shape_cast %191 : vector<256x128xf32> to vector<1x16x16x128xf32>
    %193 = vector.extract_strided_slice %192 {offsets = [0, 0, 0, 0], sizes = [1, 16, 16, 4], strides = [1, 1, 1, 1]} : vector<1x16x16x128xf32> to vector<1x16x16x4xf32>
    %194 = arith.addf %193, %0 : vector<1x16x16x4xf32>
    %c0_234 = arith.constant 0 : index
    %c0_235 = arith.constant 0 : index
    %c0_236 = arith.constant 0 : index
    %c0_237 = arith.constant 0 : index
    %195 = vector.load %arg10[%c0_234, %c0_235, %c0_236, %c0_237] : memref<1x16x16x4xf32, #tpu.memory_space<vmem>>, vector<1x16x16x4xf32>
    tpu.vector_store %arg10[%c0_234, %c0_235, %c0_236, %c0_237], %194 {strides = array<i32>} : memref<1x16x16x4xf32, #tpu.memory_space<vmem>>, vector<1x16x16x4xf32>,
    return
  }
  func.func @transform_0(%arg0: i32) -> (i32, i32, i32, i32) {
    %c0_i32 = arith.constant 0 : i32
    %c0_i32_0 = arith.constant 0 : i32
    %c0_i32_1 = arith.constant 0 : i32
    %c0_i32_2 = arith.constant 0 : i32
    return %arg0, %c0_i32, %c0_i32_0, %c0_i32_1 : i32, i32, i32, i32
  }
  func.func @transform_1(%arg0: i32) -> (i32, i32, i32) {
    %c0_i32 = arith.constant 0 : i32
    %c0_i32_0 = arith.constant 0 : i32
    %c0_i32_1 = arith.constant 0 : i32
    %c0_i32_2 = arith.constant 0 : i32
    return %c0_i32, %c0_i32_0, %c0_i32_1 : i32, i32, i32
  }
  func.func @transform_2(%arg0: i32) -> (i32, i32) {
    %c0_i32 = arith.constant 0 : i32
    %c0_i32_0 = arith.constant 0 : i32
    %c0_i32_1 = arith.constant 0 : i32
    return %c0_i32, %c0_i32_0 : i32, i32
  }
  func.func @transform_3(%arg0: i32) -> (i32, i32) {
    %c0_i32 = arith.constant 0 : i32
    %c0_i32_0 = arith.constant 0 : i32
    %c0_i32_1 = arith.constant 0 : i32
    return %c0_i32, %c0_i32_0 : i32, i32
  }
  func.func @transform_4(%arg0: i32) -> (i32, i32) {
    %c0_i32 = arith.constant 0 : i32
    %c0_i32_0 = arith.constant 0 : i32
    %c0_i32_1 = arith.constant 0 : i32
    return %c0_i32, %c0_i32_0 : i32, i32
  }
  func.func @transform_5(%arg0: i32) -> (i32, i32, i32) {
    %c0_i32 = arith.constant 0 : i32
    %c0_i32_0 = arith.constant 0 : i32
    %c0_i32_1 = arith.constant 0 : i32
    %c0_i32_2 = arith.constant 0 : i32
    return %c0_i32, %c0_i32_0, %c0_i32_1 : i32, i32, i32
  }
  func.func @transform_6(%arg0: i32) -> (i32, i32) {
    %c0_i32 = arith.constant 0 : i32
    %c0_i32_0 = arith.constant 0 : i32
    %c0_i32_1 = arith.constant 0 : i32
    return %c0_i32, %c0_i32_0 : i32, i32
  }
  func.func @transform_7(%arg0: i32) -> (i32, i32) {
    %c0_i32 = arith.constant 0 : i32
    %c0_i32_0 = arith.constant 0 : i32
    %c0_i32_1 = arith.constant 0 : i32
    return %c0_i32, %c0_i32_0 : i32, i32
  }
  func.func @transform_8(%arg0: i32) -> (i32, i32) {
    %c0_i32 = arith.constant 0 : i32
    %c0_i32_0 = arith.constant 0 : i32
    %c0_i32_1 = arith.constant 0 : i32
    return %c0_i32, %c0_i32_0 : i32, i32
  }
  func.func @transform_9(%arg0: i32) -> (i32, i32, i32, i32) {
    %c0_i32 = arith.constant 0 : i32
    %c0_i32_0 = arith.constant 0 : i32
    %c0_i32_1 = arith.constant 0 : i32
    %c0_i32_2 = arith.constant 0 : i32
    return %arg0, %c0_i32, %c0_i32_0, %c0_i32_1 : i32, i32, i32, i32
  }
}

</mosaic_0001>

<bundles_post_ra>
// kernel: tpu_custom_call.1
= control target key start
LH: loop header
LB: loop body
LE: loop exit
PB: predicated region body
PF: predicated region fallthrough
CT: control target
= control target key end

     0   :  { %14 = vsyncpa [#allocation4], 0  ;;  %s7919_s0 = inlined_call_operand.vmem [shape: f32[2,16,16,4], index: 0, kind: input, shape index: {}]   ;;  %s7920_s1 = inlined_call_operand.hbm [shape: f32[9,128,128], index: 1, kind: input, shape index: {}]   ;;  %s7921_s2 = inlined_call_operand.vmem [shape: f32[1,128], index: 2, kind: input, shape index: {}]   ;;  %s7922_s3 = inlined_call_operand.vmem [shape: f32[1,128], index: 3, kind: input, shape index: {}]   ;;  %s7923_s4 = inlined_call_operand.vmem [shape: f32[1,128], index: 4, kind: input, shape index: {}]   ;;  %s7924_s5 = inlined_call_operand.hbm [shape: f32[9,128,128], index: 5, kind: input, shape index: {}]   ;;  %s7925_s6 = inlined_call_operand.vmem [shape: f32[1,128], index: 6, kind: input, shape index: {}]   ;;  %s7926_s7 = inlined_call_operand.vmem [shape: f32[1,128], index: 7, kind: input, shape index: {}]   ;;  %s7927_s8 = inlined_call_operand.vmem [shape: f32[1,128], index: 8, kind: input, shape index: {}]   ;;  %s7928_s9 = inlined_call_operand.vmem [shape: f32[2,16,16,4], index: 9, kind: output, shape index: {}]  }
   0x1   :  { %15 = vsyncpa [#allocation6], 0  ;;  %s5094_s30 = smov 0  }
   0x2 LB: > { %s257_s12 = sshll.u32 %s7920_s1, 4  ;;  %s4784_s13 = sadd.s32 4294967295, %s5037_s30   ;;  %s5037_s30 = sphi %s5094_s30, %s21_s30   ;;  %s258_s12 = int_to_ptr.hbm [resolvable:$true] %s257_s12 }
   0x3   : > { %p4786_p0 = scmp.ge.s32.totalorder %s5037_s30, 1  ;;  %p246_p1 = scmp.lt.s32.totalorder %s5037_s30, 3 }
   0x4   : > { %p4848_p2 = scmp.eq.s32.totalorder %s4784_s13, 0  ;;  %s5039_s15 = smov [#allocation3]  }
   0x5   : > { %p5105_p3 = pnand %p4786_p0, %p246_p1  ;;  %s259_s16 = sshll.u32 %s5039_s15, 4  ;;  %s260_s16 = int_to_ptr.vmem [resolvable:$true] %s259_s16 }
   0x6   : > { %s280_s19 = sshll.u32 %s7924_s5, 4  ;;  %s5040_s20 = smov [#allocation5]   ;;  %s281_s19 = int_to_ptr.hbm [resolvable:$true] %s280_s19 }
   0x7   : > { %p4841_p4 = pneg %p5105_p3  ;;  %s282_s21 = sshll.u32 %s5040_s20, 4  ;;  %s283_s21 = int_to_ptr.vmem [resolvable:$true] %s282_s21 }
   0x8   : > { %s5041_s22 = smov 128   ;;  %s5042_s23 = smov 8  }
   0x9   : > { %p4842_p5 = pnand %p4848_p2, %p4841_p4  ;;  %315 = sbr.rel (%p5105_p3) target bundleno = 2003 (0x7d3), region = 56 }
   0xb   : > { %4844 = dma.hbm_to_vmem [thread:$0]  (!%p4842_p5), %s258_s12, 18432, %s260_s16, [#allocation4], %s5041_s22, %s5041_s22, %s5042_s23  }
   0xc   : > { %4847 = dma.hbm_to_vmem [thread:$0]  (!%p4842_p5), %s281_s19, 18432, %s283_s21, [#allocation6], %s5041_s22, %s5041_s22, %s5042_s23  }
   0xe   : > { %5028 = dma.done.wait (%p4848_p2), [#allocation4], 18432  }
   0xf   : > { %5030 = vsyncadd (%p4848_p2), [#allocation4], 4294948864 }
  0x10   : > { %5032 = dma.done.wait (%p4848_p2), [#allocation6], 18432  }
  0x11   : > { %5034 = vsyncadd (%p4848_p2), [#allocation6], 4294948864  ;;  %p357_p6 = scmp.lt.s32.totalorder %s4784_s13, 1  ;;  %v645_v0 = vld [vmem:[#allocation3 + $0xf8] sm:$0xff]  ;;  %v644_v2 = vld [vmem:[#allocation3 + $0xf0] sm:$0xff]  ;;  %vm399_vm0 = vcmask 31744  }
  0x12   : > { %v596_v1 = vld [vmem:[#allocation3 + $0x78] sm:$0xff]  ;;  %4801 = vmatpush.msra.mxu2 %v645_v0  ;;  %v595_v3 = vld [vmem:[#allocation3 + $0x70] sm:$0xff]  ;;  %v643_v4 = vld [vmem:[#allocation3 + $0xe8] sm:$0xff]  ;;  %646 = vmatpush.msra.mxu0 %v645_v0 }
  0x13   : > { %s8096_s13 = smov (!%p357_p6, %s4784_s13), 1  ;;  %4817 = vmatpush.msra.mxu3 %v596_v1  ;;  %v594_v5 = vld [vmem:[#allocation3 + $0x68] sm:$0xff]  ;;  %759 = vmatpush.msra.mxu1 %v596_v1  ;;  %v642_v6 = vld [vmem:[#allocation3 + $0xe0] sm:$0xff]  ;;  %v641_v8 = vld [vmem:[#allocation3 + $0xd8] sm:$0xff] }
  0x14   : > { %4802 = vmatpush.msra.mxu2 %v644_v2  ;;  %v593_v7 = vld [vmem:[#allocation3 + $0x60] sm:$0xff]  ;;  %647 = vmatpush.msra.mxu0 %v644_v2  ;;  %s4799_s24 = sshll.u32 %s8096_s13, 8  ;;  %v592_v9 = vld [vmem:[#allocation3 + $0x58] sm:$0xff]  ;;  %v640_v10 = vld [vmem:[#allocation3 + $0xd0] sm:$0xff] }
  0x15   : > { %4818 = vmatpush.msra.mxu3 %v595_v3  ;;  %760 = vmatpush.msra.mxu1 %v595_v3  ;;  %s5129_s27 = scalar_lea.vmem %s7919_s0, %s4799_s24  ;;  %v591_v11 = vld [vmem:[#allocation3 + $0x50] sm:$0xff]  ;;  %v639_v12 = vld [vmem:[#allocation3 + $0xc8] sm:$0xff]  ;;  %v638_v17 = vld [vmem:[#allocation3 + $0xc0] sm:$0xff]  ;;  %s7732_s23 = scalar_lea.vmem %s7928_s9, %s4799_s24 }
  0x16   : > { %4803 = vmatpush.msra.mxu2 %v643_v4  ;;  %648 = vmatpush.msra.mxu0 %v643_v4  ;;  %v590_v13 = vld [vmem:[#allocation3 + $0x48] sm:$0xff]  ;;  %v5132_v14 = vld [vmem:[%s5129_s27 + $0x70] sm:$0xff]  ;;  %v5147_v22 = vld [vmem:[%s5129_s27 + $0x80] sm:$0xff] }
  0x17   : > { %4819 = vmatpush.msra.mxu3 %v594_v5  ;;  %761 = vmatpush.msra.mxu1 %v594_v5  ;;  %v414_v15 = vsel %vm399_vm0, %v5132_v14, 0.0  ;;  %v5137_v16 = vld [vmem:[%s5129_s27 + $0x78] sm:$0xff]  ;;  %v589_v18 = vld [vmem:[#allocation3 + $0x40] sm:$0xff]  ;;  %v637_v24 = vld [vmem:[#allocation3 + $0xb8] sm:$0xff]  ;;  %v416_v26 = vsel %vm399_vm0, %v5147_v22, 0.0 }
  0x18   : > { %4804 = vmatpush.msra.mxu2 %v642_v6  ;;  %649 = vmatpush.msra.mxu0 %v642_v6  ;;  %447 = vst [vmem:[#allocation2 + $0xc1] sm:$0xff] %v414_v15  ;;  %v415_v19 = vsel %vm399_vm0, %v5137_v16, 0.0  ;;  %v5142_v20 = vld [vmem:[%s5129_s27 + $0x10] sm:$0xff]  ;;  %v5150_v23 = vld [vmem:[%s5129_s27 + $0x18] sm:$0xff]  ;;  %v588_v25 = vld [vmem:[#allocation3 + $0x38] sm:$0xff] }
  0x19   : > { %4820 = vmatpush.msra.mxu3 %v593_v7  ;;  %762 = vmatpush.msra.mxu1 %v593_v7  ;;  %448 = vst [vmem:[#allocation2 + $0xc9] sm:$0xff] %v415_v19  ;;  %v402_v21 = vsel %vm399_vm0, %v5142_v20, 0.0  ;;  %v5155_v27 = vld [vmem:[%s5129_s27 + $0x88] sm:$0xff]  ;;  %v636_v28 = vld [vmem:[#allocation3 + $0xb0] sm:$0xff]  ;;  %v403_v29 = vsel %vm399_vm0, %v5150_v23, 0.0  ;;  %v635_v32 = vld [vmem:[#allocation3 + $0xa8] sm:$0xff] }
  0x1a   : > { %4805 = vmatpush.msra.mxu2 %v641_v8  ;;  %650 = vmatpush.msra.mxu0 %v641_v8  ;;  %435 = vst [vmem:[#allocation2 + $0x31] sm:$0xff] %v402_v21  ;;  %v5160_v30 = vld [vmem:[%s5129_s27] sm:$0xff]  ;;  %v417_v33 = vsel %vm399_vm0, %v5155_v27, 0.0  ;;  %v5165_v34 = vld [vmem:[%s5129_s27 + $0x90] sm:$0xff]  ;;  %v586_v35 = vld [vmem:[#allocation3 + $0x28] sm:$0xff] }
  0x1b   : > { %4821 = vmatpush.msra.mxu3 %v592_v9  ;;  %763 = vmatpush.msra.mxu1 %v592_v9  ;;  %468 = vst [vmem:[#allocation2 + $0x1] sm:$0xff] %v402_v21  ;;  %v587_v31 = vld [vmem:[#allocation3 + $0x30] sm:$0xff]  ;;  %v400_v36 = vsel %vm399_vm0, %v5160_v30, 0.0  ;;  %v418_v38 = vsel %vm399_vm0, %v5165_v34, 0.0  ;;  %v634_v39 = vld [vmem:[#allocation3 + $0xa0] sm:$0xff]  ;;  %v633_v41 = vld [vmem:[#allocation3 + $0x98] sm:$0xff] }
  0x1c   : > { %4806 = vmatpush.msra.mxu2 %v640_v10  ;;  %651 = vmatpush.msra.mxu0 %v640_v10  ;;  %449 = vst [vmem:[#allocation2 + $0xd9] sm:$0xff] %v416_v26  ;;  %v585_v40 = vld [vmem:[#allocation3 + $0x20] sm:$0xff]  ;;  %v584_v42 = vld [vmem:[#allocation3 + $0x18] sm:$0xff]  ;;  %v632_v45 = vld [vmem:[#allocation3 + $0x90] sm:$0xff] }
  0x1d   : > { %4822 = vmatpush.msra.mxu3 %v591_v11  ;;  %764 = vmatpush.msra.mxu1 %v591_v11  ;;  %436 = vst [vmem:[#allocation2 + $0x39] sm:$0xff] %v403_v29  ;;  %v583_v46 = vld [vmem:[#allocation3 + $0x10] sm:$0xff]  ;;  %v5172_v47 = vld [vmem:[%s5129_s27 + $0x8] sm:$0xff]  ;;  %v631_v48 = vld [vmem:[#allocation3 + $0x88] sm:$0xff] }
  0x1e   : > { %4807 = vmatpush.msra.mxu2 %v639_v12  ;;  %652 = vmatpush.msra.mxu0 %v639_v12  ;;  %469 = vst [vmem:[#allocation2 + $0x9] sm:$0xff] %v403_v29  ;;  %v582_v49 = vld [vmem:[#allocation3 + $0x8] sm:$0xff]  ;;  %v401_v50 = vsel %vm399_vm0, %v5172_v47, 0.0  ;;  %v630_v51 = vld [vmem:[#allocation3 + $0x80] sm:$0xff]  ;;  %v920_v55 = vld [vmem:[#allocation3 + $0x178] sm:$0xff] }
  0x1f   : > { %4823 = vmatpush.msra.mxu3 %v590_v13  ;;  %765 = vmatpush.msra.mxu1 %v590_v13  ;;  %v484_v37 = vld [vmem:[#allocation2 + $0xc2] sm:$0x1]  ;;  %450 = vst [vmem:[#allocation2 + $0xe1] sm:$0xff] %v417_v33  ;;  %v581_v52 = vld [vmem:[#allocation3] sm:$0xff]  ;;  %v1114_v57 = vld [vmem:[#allocation3 + $0x1f8] sm:$0xff] }
  0x20   : > { %4808 = vmatpush.msra.mxu2 %v638_v17  ;;  %653 = vmatpush.msra.mxu0 %v638_v17  ;;  %502 = vst [vmem:[#allocation2 + $0xc0] sm:$0x1] %v484_v37  ;;  %v5177_v58 = vld [vmem:[%s5129_s27 + $0x98] sm:$0xff]  ;;  %v5180_v59 = vld [vmem:[%s5129_s27 + $0xa0] sm:$0xff]  ;;  %v1308_v2 = vld [vmem:[#allocation3 + $0x278] sm:$0xff] }
  0x21   : > { %4824 = vmatpush.msra.mxu3 %v589_v18  ;;  %766 = vmatpush.msra.mxu1 %v589_v18  ;;  %433 = vst [vmem:[#allocation2 + $0x19] sm:$0xff] %v400_v36  ;;  %v419_v60 = vsel %vm399_vm0, %v5177_v58, 0.0  ;;  %v420_v61 = vsel %vm399_vm0, %v5180_v59, 0.0  ;;  %v919_v62 = vld [vmem:[#allocation3 + $0x170] sm:$0xff]  ;;  %v478_v1 = vld [vmem:[#allocation2 + $0x32] sm:$0x1] }
  0x22   : > { %4809 = vmatpush.msra.mxu2 %v637_v24  ;;  %654 = vmatpush.msra.mxu0 %v637_v24  ;;  %v476_v43 = vld [vmem:[#allocation2 + $0x2] sm:$0x1]  ;;  %451 = vst [vmem:[#allocation2 + $0xf1] sm:$0xff] %v418_v38  ;;  %v918_v3 = vld [vmem:[#allocation3 + $0x168] sm:$0xff]  ;;  %v917_v6 = vld [vmem:[#allocation3 + $0x160] sm:$0xff] }
  0x23   : > { %4825 = vmatpush.msra.mxu3 %v588_v25  ;;  %767 = vmatpush.msra.mxu1 %v588_v25  ;;  %494 = vst [vmem:[#allocation2] sm:$0x1] %v476_v43  ;;  %v485_v44 = vld [vmem:[#allocation2 + $0xda] sm:$0x1]  ;;  %v1113_v0 = vld [vmem:[#allocation3 + $0x1f0] sm:$0xff]  ;;  %v566_v7 = vld [vmem:[#allocation2 + $0xc8] sm:$0xff] }
  0x24   : > { %4810 = vmatpush.msra.mxu2 %v636_v28  ;;  %655 = vmatpush.msra.mxu0 %v636_v28  ;;  %503 = vst [vmem:[#allocation2 + $0xd8] sm:$0x1] %v485_v44  ;;  %v1112_v4 = vld [vmem:[#allocation3 + $0x1e8] sm:$0xff]  ;;  %v1307_v5 = vld [vmem:[#allocation3 + $0x270] sm:$0xff]  ;;  %v1111_v8 = vld [vmem:[#allocation3 + $0x1e0] sm:$0xff] }
  0x25   : > { %4826 = vmatpush.msra.mxu3 %v587_v31  ;;  %768 = vmatpush.msra.mxu1 %v587_v31  ;;  %434 = vst [vmem:[#allocation2 + $0x21] sm:$0xff] %v401_v50  ;;  %v1306_v9 = vld [vmem:[#allocation3 + $0x268] sm:$0xff]  ;;  %v916_v10 = vld [vmem:[#allocation3 + $0x158] sm:$0xff]  ;;  %v1305_v13 = vld [vmem:[#allocation3 + $0x260] sm:$0xff] }
  0x26   : > { %4811 = vmatpush.msra.mxu2 %v635_v32  ;;  %656 = vmatpush.msra.mxu0 %v635_v32  ;;  %452 = vst [vmem:[#allocation2 + $0xf9] sm:$0xff] %v419_v60  ;;  %v550_v11 = vld [vmem:[#allocation2 + $0x8] sm:$0xff]  ;;  %v5193_v15 = vld [vmem:[%s5129_s27 + $0x20] sm:$0xff]  ;;  %v5203_v25 = vld [vmem:[%s5129_s27 + $0xb0] sm:$0xff] }
  0x27   : > { %4827 = vmatpush.msra.mxu3 %v586_v35  ;;  %769 = vmatpush.msra.mxu1 %v586_v35  ;;  %v565_v54 = vld [vmem:[#allocation2 + $0xc0] sm:$0xff]  ;;  %453 = vst [vmem:[#allocation2 + $0x109] sm:$0xff] %v420_v61  ;;  %v1110_v12 = vld [vmem:[#allocation3 + $0x1d8] sm:$0xff]  ;;  %v404_v19 = vsel %vm399_vm0, %v5193_v15, 0.0  ;;  %v422_v28 = vsel %vm399_vm0, %v5203_v25, 0.0  ;;  %v914_v29 = vld [vmem:[#allocation3 + $0x148] sm:$0xff] }
  0x28   : > { %4812 = vmatpush.msra.mxu2 %v634_v39  ;;  %657 = vmatpush.msra.mxu0 %v634_v39  ;;  %v477_v53 = vld [vmem:[#allocation2 + $0x1a] sm:$0x1]  ;;  %496 = vst [vmem:[#allocation2 + $0x30] sm:$0x1] %v478_v1  ;;  %v915_v17 = vld [vmem:[#allocation3 + $0x150] sm:$0xff]  ;;  %v5200_v24 = vld [vmem:[%s5129_s27 + $0xa8] sm:$0xff] }
  0x29   : > { %4828 = vmatpush.msra.mxu3 %v585_v40  ;;  %770 = vmatpush.msra.mxu1 %v585_v40  ;;  %495 = vst [vmem:[#allocation2 + $0x18] sm:$0x1] %v477_v53  ;;  %v486_v56 = vld [vmem:[#allocation2 + $0xf2] sm:$0x1]  ;;  %v1109_v18 = vld [vmem:[#allocation3 + $0x1d0] sm:$0xff]  ;;  %v421_v26 = vsel %vm399_vm0, %v5200_v24, 0.0 }
  0x2a   : > { %4813 = vmatpush.msra.mxu2 %v633_v41  ;;  %658 = vmatpush.msra.mxu0 %v633_v41  ;;  %504 = vst [vmem:[#allocation2 + $0xf0] sm:$0x1] %v486_v56  ;;  %v549_v63 = vld [vmem:[#allocation2] sm:$0xff]  ;;  %v1108_v31 = vld [vmem:[#allocation3 + $0x1c8] sm:$0xff]  ;;  %v913_v37 = vld [vmem:[#allocation3 + $0x140] sm:$0xff] }
  0x2b   : > { %4829 = vmatpush.msra.mxu3 %v584_v42  ;;  %771 = vmatpush.msra.mxu1 %v584_v42  ;;  %437 = vst [vmem:[#allocation2 + $0x49] sm:$0xff] %v404_v19  ;;  %v567_v21 = vld [vmem:[#allocation2 + $0xd8] sm:$0xff]  ;;  %v1303_v33 = vld [vmem:[#allocation3 + $0x250] sm:$0xff]  ;;  %v1107_v38 = vld [vmem:[#allocation3 + $0x1c0] sm:$0xff] }
  0x2c   : > { %4814 = vmatpush.msra.mxu2 %v632_v45  ;;  %659 = vmatpush.msra.mxu0 %v632_v45  ;;  %454 = vst [vmem:[#allocation2 + $0x111] sm:$0xff] %v421_v26  ;;  %v5216_v36 = vld [vmem:[#allocation2 + $0x20] sm:$0xff]  ;;  %v1302_v39 = vld [vmem:[#allocation3 + $0x248] sm:$0xff]  ;;  %v5221_v41 = vld [vmem:[%s5129_s27 + $0x28] sm:$0xff] }
  0x2d   : > { %4830 = vmatpush.msra.mxu3 %v583_v46  ;;  %772 = vmatpush.msra.mxu1 %v583_v46  ;;  %455 = vst [vmem:[#allocation2 + $0x121] sm:$0xff] %v422_v28  ;;  %v5224_v42 = vld [vmem:[%s5129_s27 + $0x30] sm:$0xff]  ;;  %v405_v43 = vsel %vm399_vm0, %v5221_v41, 0.0  ;;  %v5234_v45 = vld [vmem:[%s5129_s27 + $0xb8] sm:$0xff]  ;;  %v5237_v46 = vld [vmem:[%s5129_s27 + $0xc0] sm:$0xff] }
  0x2e   : > { %4815 = vmatpush.msra.mxu2 %v631_v48  ;;  %660 = vmatpush.msra.mxu0 %v631_v48  ;;  %438 = vst [vmem:[#allocation2 + $0x51] sm:$0xff] %v405_v43  ;;  %v423_v48 = vsel %vm399_vm0, %v5234_v45, 0.0  ;;  %v912_v50 = vld [vmem:[#allocation3 + $0x138] sm:$0xff]  ;;  %v911_v56 = vld [vmem:[#allocation3 + $0x130] sm:$0xff]  ;;  %v5292_v19 = vld [vmem:[%s5129_s27 + $0x50] sm:$0xff] }
  0x2f   : > { %4831 = vmatpush.msra.mxu3 %v582_v49  ;;  %773 = vmatpush.msra.mxu1 %v582_v49  ;;  %v424_v49 = vsel %vm399_vm0, %v5237_v46, 0.0  ;;  %456 = vst [vmem:[#allocation2 + $0x129] sm:$0xff] %v423_v48  ;;  %v5245_v53 = vld [vmem:[#allocation2 + $0x30] sm:$0xff]  ;;  %v1300_v60 = vld [vmem:[#allocation3 + $0x238] sm:$0xff]  ;;  %v5302_v26 = vld [vmem:[%s5129_s27 + $0xd8] sm:$0xff] }
  0x30   : > { %4816 = vmatpush.msra.mxu2 %v630_v51  ;;  %661 = vmatpush.msra.mxu0 %v630_v51  ;;  %v5211_v32 = vld [vmem:[#allocation2 + $0x18] sm:$0xff]  ;;  %v1106_v51 = vld [vmem:[#allocation3 + $0x1b8] sm:$0xff]  ;;  %457 = vst [vmem:[#allocation2 + $0x139] sm:$0xff] %v424_v49  ;;  %v5305_v28 = vld [vmem:[%s5129_s27 + $0xe0] sm:$0xff] }
  0x31   : > { %4832 = vmatpush.msra.mxu3 %v581_v52  ;;  %4913 = vmatmul.msk.f32.vlgmr.msra.gmra.mxu2 %vm399_vm0, %v5132_v14  ;;  %v487_v14 = vld [vmem:[#allocation2 + $0x10a] sm:$0x1]  ;;  %v569_v44 = vld [vmem:[#allocation2 + $0xf0] sm:$0xff]  ;;  %v1501_v49 = vld [vmem:[#allocation3 + $0x2f0] sm:$0xff] }
  0x32   : > { %823 = vmatmul.f32.vlgmr.msra.gmra.mxu3 %v565_v54  ;;  %921 = vmatpush.msrb.mxu2 %v920_v55  ;;  %505 = vst [vmem:[#allocation2 + $0x108] sm:$0x1] %v487_v14  ;;  %v479_v35 = vld [vmem:[#allocation2 + $0x4a] sm:$0x1]  ;;  %v5250_v55 = vld [vmem:[#allocation2 + $0x38] sm:$0xff] }
  0x33   : > { %1115 = vmatpush.msrb.mxu3 %v1114_v57  ;;  %774 = vmatpush.msra.mxu1 %v581_v52  ;;  %497 = vst [vmem:[#allocation2 + $0x48] sm:$0x1] %v479_v35  ;;  %v1301_v52 = vld [vmem:[#allocation3 + $0x240] sm:$0xff]  ;;  %v1105_v57 = vld [vmem:[#allocation3 + $0x1b0] sm:$0xff]  ;;  %v1298_v14 = vld [vmem:[#allocation3 + $0x228] sm:$0xff] }
  0x34   : > { %922 = vmatpush.msrb.mxu2 %v919_v62  ;;  %4914 = vmatmul.msk.f32.vlgmr.msra.gmra.mxu0 %vm399_vm0, %v5142_v20  ;;  %v488_v40 = vld [vmem:[#allocation2 + $0x122] sm:$0x1]  ;;  %v5255_v62 = vld [vmem:[%s5129_s27 + $0x38] sm:$0xff]  ;;  %v1102_v35 = vld [vmem:[#allocation3 + $0x198] sm:$0xff] }
  0x35   : > { %775 = vmatmul.f32.vlgmr.msra.gmra.mxu1 %v549_v63  ;;  %1116 = vmatpush.msrb.mxu3 %v1113_v0  ;;  %506 = vst [vmem:[#allocation2 + $0x120] sm:$0x1] %v488_v40  ;;  %v5258_v63 = vld [vmem:[%s5129_s27 + $0x40] sm:$0xff]  ;;  %v407_v0 = vsel %vm399_vm0, %v5255_v62, 0.0  ;;  %v1296_v43 = vld [vmem:[#allocation3 + $0x218] sm:$0xff] }
  0x36   : > { %1309 = vmatpush.msrb.mxu0 %v1308_v2  ;;  %923 = vmatpush.msrb.mxu2 %v918_v3  ;;  %440 = vst [vmem:[#allocation2 + $0x69] sm:$0xff] %v407_v0  ;;  %v5268_v2 = vld [vmem:[%s5129_s27 + $0xc8] sm:$0xff]  ;;  %v5271_v3 = vld [vmem:[%s5129_s27 + $0xd0] sm:$0xff]  ;;  %v1101_v40 = vld [vmem:[#allocation3 + $0x190] sm:$0xff] }
  0x37   : > { %1117 = vmatpush.msrb.mxu3 %v1112_v4  ;;  %v489_v61 = vld [vmem:[#allocation2 + $0x13a] sm:$0x1]  ;;  %v425_v4 = vsel %vm399_vm0, %v5268_v2, 0.0 }
  0x38   : > { %1310 = vmatpush.msrb.mxu0 %v1307_v5  ;;  %924 = vmatpush.msrb.mxu2 %v917_v6  ;;  %507 = vst [vmem:[#allocation2 + $0x138] sm:$0x1] %v489_v61  ;;  %v426_v5 = vsel %vm399_vm0, %v5271_v3, 0.0  ;;  %v910_v6 = vld [vmem:[#allocation3 + $0x128] sm:$0xff] }
  0x39   : > { %4915 = vmatmul.msk.f32.gmra.mxu2 %vm399_vm0, %v5137_v16  ;;  %1118 = vmatpush.msrb.mxu3 %v1111_v8  ;;  %v1304_v16 = vld [vmem:[#allocation3 + $0x258] sm:$0xff]  ;;  %v1299_v8 = vld [vmem:[#allocation3 + $0x230] sm:$0xff]  ;;  %458 = vst [vmem:[#allocation2 + $0x141] sm:$0xff] %v425_v4  ;;  %v1100_v61 = vld [vmem:[#allocation3 + $0x188] sm:$0xff] }
  0x3a   : > { %826 = vmatmul.f32.gmra.mxu3 %v566_v7  ;;  %1311 = vmatpush.msrb.mxu0 %v1306_v9  ;;  %v571_v1 = vld [vmem:[#allocation2 + $0x108] sm:$0xff]  ;;  %v1104_v7 = vld [vmem:[#allocation3 + $0x1a8] sm:$0xff]  ;;  %459 = vst [vmem:[#allocation2 + $0x151] sm:$0xff] %v426_v5 }
  0x3b   : > { %925 = vmatpush.msrb.mxu2 %v916_v10  ;;  %1119 = vmatpush.msrb.mxu3 %v1110_v12  ;;  %v5279_v9 = vld [vmem:[#allocation2 + $0x48] sm:$0xff]  ;;  %v909_v12 = vld [vmem:[#allocation3 + $0x120] sm:$0xff] }
  0x3c   : > { %4916 = vmatmul.msk.f32.gmra.mxu0 %vm399_vm0, %v5150_v23  ;;  %v1498_v4 = vld [vmem:[#allocation3 + $0x2d8] sm:$0xff] }
  0x3d   : > { %778 = vmatmul.f32.gmra.mxu1 %v550_v11  ;;  %1312 = vmatpush.msrb.mxu0 %v1305_v13  ;;  %v5284_v11 = vld [vmem:[#allocation2 + $0x50] sm:$0xff] }
  0x3e   : > { %926 = vmatpush.msrb.mxu2 %v915_v17  ;;  %1120 = vmatpush.msrb.mxu3 %v1109_v18  ;;  %v1103_v13 = vld [vmem:[#allocation3 + $0x1a0] sm:$0xff]  ;;  %v5289_v18 = vld [vmem:[%s5129_s27 + $0x48] sm:$0xff] }
  0x3f   : > { %1313 = vmatpush.msrb.mxu0 %v1304_v16  ;;  %v409_v16 = vsel %vm399_vm0, %v5289_v18, 0.0 }
  0x40   : > { %927 = vmatpush.msrb.mxu2 %v914_v29  ;;  %1121 = vmatpush.msrb.mxu3 %v1108_v31  ;;  %442 = vst [vmem:[#allocation2 + $0x81] sm:$0xff] %v409_v16  ;;  %v427_v29 = vsel %vm399_vm0, %v5302_v26, 0.0  ;;  %v428_v31 = vsel %vm399_vm0, %v5305_v28, 0.0  ;;  %v1493_v16 = vld [vmem:[#allocation3 + $0x2b0] sm:$0xff] }
  0x41   : > { %4917 = vmatmul.msk.f32.gmra.mxu2 %vm399_vm0, %v5147_v22  ;;  %1314 = vmatpush.msrb.mxu0 %v1303_v33  ;;  %v568_v22 = vld [vmem:[#allocation2 + $0xe0] sm:$0xff]  ;;  %v490_v17 = vld [vmem:[#allocation2 + $0x152] sm:$0x1]  ;;  %v908_v33 = vld [vmem:[#allocation3 + $0x118] sm:$0xff]  ;;  %460 = vst [vmem:[#allocation2 + $0x159] sm:$0xff] %v427_v29 }
  0x42   : > { %829 = vmatmul.f32.gmra.mxu3 %v567_v21  ;;  %928 = vmatpush.msrb.mxu2 %v913_v37  ;;  %508 = vst [vmem:[#allocation2 + $0x150] sm:$0x1] %v490_v17  ;;  %v410_v21 = vsel %vm399_vm0, %v5292_v19, 0.0  ;;  %v5352_v17 = vld [vmem:[%s5129_s27 + $0x68] sm:$0xff] }
  0x43   : > { %1122 = vmatpush.msrb.mxu3 %v1107_v38  ;;  %1315 = vmatpush.msrb.mxu0 %v1302_v39  ;;  %443 = vst [vmem:[#allocation2 + $0x91] sm:$0xff] %v410_v21  ;;  %v907_v39 = vld [vmem:[#allocation3 + $0x110] sm:$0xff]  ;;  %v1696_v29 = vld [vmem:[#allocation3 + $0x378] sm:$0xff] }
  0x44   : > { %4918 = vmatmul.msk.f32.gmra.mxu0 %vm399_vm0, %v5160_v30  ;;  %929 = vmatpush.msrb.mxu2 %v912_v50  ;;  %461 = vst [vmem:[#allocation2 + $0x169] sm:$0xff] %v428_v31  ;;  %v5323_v50 = vld [vmem:[%s5129_s27 + $0x58] sm:$0xff] }
  0x45   : > { %781 = vmatmul.f32.gmra.mxu1 %v5211_v32  ;;  %1123 = vmatpush.msrb.mxu3 %v1106_v51  ;;  %v5326_v51 = vld [vmem:[%s5129_s27 + $0x60] sm:$0xff]  ;;  %v1492_v31 = vld [vmem:[#allocation3 + $0x2a8] sm:$0xff] }
  0x46   : > { %1316 = vmatpush.msrb.mxu0 %v1301_v52  ;;  %930 = vmatpush.msrb.mxu2 %v911_v56  ;;  %v412_v52 = vsel %vm399_vm0, %v5326_v51, 0.0 }
  0x47   : > { %1124 = vmatpush.msrb.mxu3 %v1105_v57  ;;  %445 = vst [vmem:[#allocation2 + $0xa9] sm:$0xff] %v412_v52  ;;  %v906_v57 = vld [vmem:[#allocation3 + $0x108] sm:$0xff]  ;;  %v1889_v52 = vld [vmem:[#allocation3 + $0x3f0] sm:$0xff] }
  0x48   : > { %1317 = vmatpush.msrb.mxu0 %v1300_v60  ;;  %931 = vmatpush.msrb.mxu2 %v910_v6  ;;  %v1500_v60 = vld [vmem:[#allocation3 + $0x2e8] sm:$0xff]  ;;  %v576_v6 = vld [vmem:[#allocation2 + $0x140] sm:$0xff] }
  0x49   : > { %4919 = vmatmul.msk.f32.gmra.mxu2 %vm399_vm0, %v5155_v27  ;;  %v406_v27 = vsel %vm399_vm0, %v5224_v42, 0.0  ;;  %1125 = vmatpush.msrb.mxu3 %v1104_v7  ;;  %v905_v7 = vld [vmem:[#allocation3 + $0x100] sm:$0xff] }
  0x4a   : > { %832 = vmatmul.f32.gmra.mxu3 %v568_v22  ;;  %439 = vst [vmem:[#allocation2 + $0x61] sm:$0xff] %v406_v27  ;;  %1318 = vmatpush.msrb.mxu0 %v1299_v8  ;;  %v1297_v22 = vld [vmem:[#allocation3 + $0x220] sm:$0xff]  ;;  %v1496_v8 = vld [vmem:[#allocation3 + $0x2c8] sm:$0xff] }
  0x4b   : > { %932 = vmatpush.msrb.mxu2 %v909_v12  ;;  %1126 = vmatpush.msrb.mxu3 %v1103_v13  ;;  %v482_v38 = vld [vmem:[#allocation2 + $0x92] sm:$0x1]  ;;  %v491_v48 = vld [vmem:[#allocation2 + $0x16a] sm:$0x1]  ;;  %v1294_v12 = vld [vmem:[#allocation3 + $0x208] sm:$0xff] }
  0x4c   : > { %4920 = vmatmul.msk.f32.gmra.mxu0 %vm399_vm0, %v5172_v47  ;;  %500 = vst [vmem:[#allocation2 + $0x90] sm:$0x1] %v482_v38  ;;  %v1495_v13 = vld [vmem:[#allocation3 + $0x2c0] sm:$0xff] }
  0x4d   : > { %784 = vmatmul.f32.gmra.mxu1 %v5216_v36  ;;  %1319 = vmatpush.msrb.mxu0 %v1298_v14  ;;  %509 = vst [vmem:[#allocation2 + $0x168] sm:$0x1] %v491_v48  ;;  %v1494_v14 = vld [vmem:[#allocation3 + $0x2b8] sm:$0xff]  ;;  %v577_v21 = vld [vmem:[#allocation2 + $0x150] sm:$0xff] }
  0x4e   : > { %933 = vmatpush.msrb.mxu2 %v908_v33  ;;  %1127 = vmatpush.msrb.mxu3 %v1102_v35  ;;  %v483_v5 = vld [vmem:[#allocation2 + $0xaa] sm:$0x1]  ;;  %v1293_v33 = vld [vmem:[#allocation3 + $0x200] sm:$0xff] }
  0x4f   : > { %1320 = vmatpush.msrb.mxu0 %v1297_v22  ;;  %501 = vst [vmem:[#allocation2 + $0xa8] sm:$0x1] %v483_v5  ;;  %v1890_v22 = vld [vmem:[#allocation3 + $0x3f8] sm:$0xff]  ;;  %v1491_v38 = vld [vmem:[#allocation3 + $0x2a0] sm:$0xff] }
  0x50   : > { %934 = vmatpush.msrb.mxu2 %v907_v39  ;;  %1128 = vmatpush.msrb.mxu3 %v1101_v40  ;;  %v578_v39 = vld [vmem:[#allocation2 + $0x158] sm:$0xff]  ;;  %v1487_v48 = vld [vmem:[#allocation3 + $0x280] sm:$0xff] }
  0x51   : > { %4921 = vmatmul.msk.f32.gmra.mxu2 %vm399_vm0, %v5165_v34  ;;  %v480_v54 = vld [vmem:[#allocation2 + $0x62] sm:$0x1]  ;;  %v570_v34 = vld [vmem:[#allocation2 + $0xf8] sm:$0xff]  ;;  %v5320_v27 = vld [vmem:[#allocation2 + $0x68] sm:$0xff]  ;;  %1321 = vmatpush.msrb.mxu0 %v1296_v43 }
  0x52   : > { %835 = vmatmul.f32.gmra.mxu3 %v569_v44  ;;  %498 = vst [vmem:[#allocation2 + $0x60] sm:$0x1] %v480_v54  ;;  %v1502_v44 = vld [vmem:[#allocation3 + $0x2f8] sm:$0xff]  ;;  %v575_v54 = vld [vmem:[#allocation2 + $0x138] sm:$0xff]  ;;  %935 = vmatpush.msrb.mxu2 %v906_v57  ;;  %v2083_v57 = vld [vmem:[#allocation3 + $0x470] sm:$0xff] }
  0x53   : > { %1503 = vmatpush.msrb.mxu1 %v1502_v44  ;;  %1129 = vmatpush.msrb.mxu3 %v1100_v61  ;;  %v5361_v35 = vld [vmem:[#allocation2 + $0x90] sm:$0xff]  ;;  %v1488_v40 = vld [vmem:[#allocation3 + $0x288] sm:$0xff]  ;;  %v2084_v43 = vld [vmem:[#allocation3 + $0x478] sm:$0xff] }
  0x54   : > { %4922 = vmatmul.msk.f32.gmra.mxu0 %vm399_vm0, %v5142_v20  ;;  %936 = vmatpush.msrb.mxu2 %v905_v7  ;;  %v872_v61 = vld [vmem:[#allocation2 + $0x2] sm:$0xff] }
  0x55   : > { %787 = vmatmul.f32.gmra.mxu1 %v5245_v53 }
  0x56   : > { %1504 = vmatpush.msrb.mxu1 %v1501_v49  ;;  %1697 = vmatpush.msra.mxu2 %v1696_v29  ;;  %v513_v49 = vld [vmem:[#allocation2 + $0x27] sm:$0x1] }
  0x57   : > { %531 = vst [vmem:[#allocation2 + $0x29] sm:$0x1] %v513_v49  ;;  %v1886_v49 = vld [vmem:[#allocation3 + $0x3d8] sm:$0xff] }
  0x58   : > { %1505 = vmatpush.msrb.mxu1 %v1500_v60 }
  0x59   : > { %4923 = vmatmul.msk.f32.gmra.mxu2 %vm399_vm0, %v5177_v58  ;;  %v408_v58 = vsel %vm399_vm0, %v5258_v63, 0.0  ;;  %v5313_v37 = vld [vmem:[#allocation2 + $0x60] sm:$0xff] }
  0x5a   : > { %838 = vmatmul.f32.gmra.mxu3 %v570_v34  ;;  %441 = vst [vmem:[#allocation2 + $0x79] sm:$0xff] %v408_v58  ;;  %v5336_v34 = vld [vmem:[%s5129_s27 + $0xe8] sm:$0xff]  ;;  %v1295_v58 = vld [vmem:[#allocation3 + $0x210] sm:$0xff] }
  0x5b   : > { %v429_v56 = vsel %vm399_vm0, %v5336_v34, 0.0  ;;  %1322 = vmatpush.msrb.mxu0 %v1295_v58 }
  0x5c   : > { %4924 = vmatmul.msk.f32.gmra.mxu0 %vm399_vm0, %v5150_v23  ;;  %462 = vst [vmem:[#allocation2 + $0x171] sm:$0xff] %v429_v56 }
  0x5d   : > { %790 = vmatmul.f32.gmra.mxu1 %v5250_v55  ;;  %1323 = vmatpush.msrb.mxu0 %v1294_v12 }
  0x5f   : > { %1324 = vmatpush.msrb.mxu0 %v1293_v33 }
  0x61   : > { %4925 = vmatmul.msk.f32.gmra.mxu2 %vm399_vm0, %v5180_v59  ;;  %v481_v10 = vld [vmem:[#allocation2 + $0x7a] sm:$0x1]  ;;  %v572_v59 = vld [vmem:[#allocation2 + $0x110] sm:$0xff]  ;;  %2085 = vmatpush.msra.mxu0 %v2084_v43  ;;  %v516_v43 = vld [vmem:[#allocation2 + $0x6f] sm:$0x1] }
  0x62   : > { %841 = vmatmul.f32.gmra.mxu3 %v571_v1  ;;  %499 = vst [vmem:[#allocation2 + $0x78] sm:$0x1] %v481_v10  ;;  %v1499_v1 = vld [vmem:[#allocation3 + $0x2e0] sm:$0xff] }
  0x63   : > { %1506 = vmatpush.msrb.mxu1 %v1499_v1  ;;  %v1099_v10 = vld [vmem:[#allocation3 + $0x180] sm:$0xff]  ;;  %2086 = vmatpush.msra.mxu0 %v2083_v57  ;;  %v1694_v1 = vld [vmem:[#allocation3 + $0x368] sm:$0xff]  ;;  %534 = vst [vmem:[#allocation2 + $0x71] sm:$0x1] %v516_v43  ;;  %v2080_v57 = vld [vmem:[#allocation3 + $0x458] sm:$0xff] }
  0x64   : > { %4926 = vmatmul.msk.f32.gmra.mxu0 %vm399_vm0, %v5193_v15  ;;  %1130 = vmatpush.msrb.mxu3 %v1099_v10  ;;  %v580_v56 = vld [vmem:[#allocation2 + $0x170] sm:$0xff]  ;;  %v2082_v10 = vld [vmem:[#allocation3 + $0x468] sm:$0xff] }
  0x65   : > { %793 = vmatmul.f32.gmra.mxu1 %v5279_v9  ;;  %2087 = vmatpush.msra.mxu0 %v2082_v10  ;;  %v1460_v10 = vld [vmem:[#allocation2 + $0x62] sm:$0xff] }
  0x66   : > { %1507 = vmatpush.msrb.mxu1 %v1498_v4  ;;  %1891 = vmatpush.msra.mxu3 %v1890_v22 }
  0x68   : > { %1892 = vmatpush.msra.mxu3 %v1889_v52 }
  0x69   : > { %4927 = vmatmul.msk.f32.gmra.mxu2 %vm399_vm0, %v5200_v24  ;;  %v573_v24 = vld [vmem:[#allocation2 + $0x120] sm:$0xff]  ;;  %v5342_v0 = vld [vmem:[#allocation2 + $0x78] sm:$0xff] }
  0x6a   : > { %844 = vmatmul.f32.gmra.mxu3 %v572_v59  ;;  %v5349_v59 = vld [vmem:[#allocation2 + $0x80] sm:$0xff] }
  0x6c   : > { %4928 = vmatmul.msk.f32.gmra.mxu0 %vm399_vm0, %v5221_v41 }
  0x6d   : > { %796 = vmatmul.f32.gmra.mxu1 %v5284_v11 }
  0x71   : > { %4929 = vmatmul.msk.f32.gmra.mxu2 %vm399_vm0, %v5203_v25  ;;  %v574_v25 = vld [vmem:[#allocation2 + $0x128] sm:$0xff] }
  0x72   : > { %847 = vmatmul.f32.gmra.mxu3 %v573_v24  ;;  %v512_v24 = vld [vmem:[#allocation2 + $0xf] sm:$0x1] }
  0x73   : > { %530 = vst [vmem:[#allocation2 + $0x11] sm:$0x1] %v512_v24  ;;  %v1887_v24 = vld [vmem:[#allocation3 + $0x3e0] sm:$0xff] }
  0x74   : > { %4930 = vmatmul.msk.f32.gmra.mxu0 %vm399_vm0, %v5224_v42 }
  0x75   : > { %799 = vmatmul.f32.gmra.mxu1 %v5313_v37 }
  0x79   : > { %4931 = vmatmul.msk.f32.gmra.mxu2 %vm399_vm0, %v5234_v45  ;;  %v411_v45 = vsel %vm399_vm0, %v5323_v50, 0.0 }
  0x7a   : > { %850 = vmatmul.f32.gmra.mxu3 %v574_v25  ;;  %444 = vst [vmem:[#allocation2 + $0x99] sm:$0xff] %v411_v45  ;;  %v1489_v25 = vld [vmem:[#allocation3 + $0x290] sm:$0xff]  ;;  %v579_v45 = vld [vmem:[#allocation2 + $0x168] sm:$0xff] }
  0x7c   : > { %4932 = vmatmul.msk.f32.gmra.mxu0 %vm399_vm0, %v5255_v62 }
  0x7d   : > { %802 = vmatmul.f32.gmra.mxu1 %v5320_v27 }
  0x81   : > { %4933 = vmatmul.msk.f32.gmra.mxu2 %vm399_vm0, %v5237_v46  ;;  %v1497_v46 = vld [vmem:[#allocation3 + $0x2d0] sm:$0xff]  ;;  %v5368_v44 = vld [vmem:[#allocation2 + $0x98] sm:$0xff] }
  0x82   : > { %853 = vmatmul.f32.gmra.mxu3 %v575_v54  ;;  %1508 = vmatpush.msrb.mxu1 %v1497_v46  ;;  %v5375_v54 = vld [vmem:[#allocation2 + $0xa8] sm:$0xff]  ;;  %v1454_v46 = vld [vmem:[#allocation2 + $0x1a] sm:$0xff] }
  0x84   : > { %4934 = vmatmul.msk.f32.gmra.mxu0 %vm399_vm0, %v5258_v63  ;;  %1509 = vmatpush.msrb.mxu1 %v1496_v8  ;;  %v873_v8 = vld [vmem:[#allocation2 + $0xa] sm:$0xff] }
  0x85   : > { %805 = vmatmul.f32.gmra.mxu1 %v5342_v0 }
  0x86   : > { %1510 = vmatpush.msrb.mxu1 %v1495_v13  ;;  %v1455_v13 = vld [vmem:[#allocation2 + $0x22] sm:$0xff] }
  0x88   : > { %1511 = vmatpush.msrb.mxu1 %v1494_v14 }
  0x89   : > { %4935 = vmatmul.msk.f32.gmra.mxu2 %vm399_vm0, %v5268_v2  ;;  %v413_v2 = vsel %vm399_vm0, %v5352_v17, 0.0 }
  0x8a   : > { %856 = vmatmul.f32.gmra.mxu3 %v576_v6  ;;  %446 = vst [vmem:[#allocation2 + $0xb1] sm:$0xff] %v413_v2  ;;  %1512 = vmatpush.msrb.mxu1 %v1493_v16 }
  0x8c   : > { %4936 = vmatmul.msk.f32.gmra.mxu0 %vm399_vm0, %v5289_v18  ;;  %1513 = vmatpush.msrb.mxu1 %v1492_v31  ;;  %v1456_v31 = vld [vmem:[#allocation2 + $0x32] sm:$0xff] }
  0x8d   : > { %808 = vmatmul.f32.gmra.mxu1 %v5349_v59 }
  0x8e   : > { %1514 = vmatpush.msrb.mxu1 %v1491_v38  ;;  %v2081_v38 = vld [vmem:[#allocation3 + $0x460] sm:$0xff] }
  0x8f   : > { %2088 = vmatpush.msra.mxu0 %v2081_v38  ;;  %v1884_v38 = vld [vmem:[#allocation3 + $0x3c8] sm:$0xff] }
  0x91   : > { %4937 = vmatmul.msk.f32.gmra.mxu2 %vm399_vm0, %v5271_v3  ;;  %v1490_v3 = vld [vmem:[#allocation3 + $0x298] sm:$0xff]  ;;  %v5382_v60 = vld [vmem:[#allocation2 + $0xb0] sm:$0xff]  ;;  %2089 = vmatpush.msra.mxu0 %v2080_v57 }
  0x92   : > { %859 = vmatmul.f32.gmra.mxu3 %v577_v21  ;;  %1515 = vmatpush.msrb.mxu1 %v1490_v3  ;;  %v1693_v21 = vld [vmem:[#allocation3 + $0x360] sm:$0xff] }
  0x93   : > { %v519_v57 = vld [vmem:[#allocation2 + $0xb7] sm:$0x1] }
  0x94   : > { %4938 = vmatmul.msk.f32.gmra.mxu0 %vm399_vm0, %v5292_v19  ;;  %1516 = vmatpush.msrb.mxu1 %v1489_v25  ;;  %537 = vst [vmem:[#allocation2 + $0xb9] sm:$0x1] %v519_v57  ;;  %v521_v57 = vld [vmem:[#allocation2 + $0xe7] sm:$0x1] }
  0x95   : > { %811 = vmatmul.f32.gmra.mxu1 %v5361_v35  ;;  %539 = vst [vmem:[#allocation2 + $0xe9] sm:$0x1] %v521_v57 }
  0x96   : > { %1517 = vmatpush.msrb.mxu1 %v1488_v40 }
  0x98   : > { %1518 = vmatpush.msrb.mxu1 %v1487_v48  ;;  %v1692_v48 = vld [vmem:[#allocation3 + $0x358] sm:$0xff] }
  0x99   : > { %4939 = vmatmul.msk.f32.gmra.mxu2 %vm399_vm0, %v5302_v26  ;;  %v1695_v26 = vld [vmem:[#allocation3 + $0x370] sm:$0xff] }
  0x9a   : > { %862 = vmatmul.f32.gmra.mxu3 %v578_v39  ;;  %1698 = vmatpush.msra.mxu2 %v1695_v26  ;;  %v1458_v26 = vld [vmem:[#allocation2 + $0x4a] sm:$0xff] }
  0x9c   : > { %4940 = vmatmul.msk.f32.gmra.mxu0 %vm399_vm0, %v5323_v50  ;;  %1699 = vmatpush.msra.mxu2 %v1694_v1 }
  0x9d   : > { %814 = vmatmul.f32.gmra.mxu1 %v5368_v44 }
  0x9e   : > { %1700 = vmatpush.msra.mxu2 %v1693_v21  ;;  %v1461_v21 = vld [vmem:[#allocation2 + $0x6a] sm:$0xff] }
  0xa0   : > { %1701 = vmatpush.msra.mxu2 %v1692_v48  ;;  %v2078_v48 = vld [vmem:[#allocation3 + $0x448] sm:$0xff] }
  0xa1   : > { %4941 = vmatmul.msk.f32.gmra.mxu2 %vm399_vm0, %v5305_v28  ;;  %v514_v28 = vld [vmem:[#allocation2 + $0x3f] sm:$0x1] }
  0xa2   : > { %865 = vmatmul.f32.gmra.mxu3 %v579_v45  ;;  %532 = vst [vmem:[#allocation2 + $0x41] sm:$0x1] %v514_v28 }
  0xa4   : > { %4942 = vmatmul.msk.f32.gmra.mxu0 %vm399_vm0, %v5326_v51 }
  0xa5   : > { %817 = vmatmul.f32.gmra.mxu1 %v5375_v54 }
  0xa9   : > { %4943 = vmatmul.msk.f32.gmra.mxu2 %vm399_vm0, %v5336_v34  ;;  %v1888_v34 = vld [vmem:[#allocation3 + $0x3e8] sm:$0xff] }
  0xaa   : > { %868 = vmatmul.f32.gmra.mxu3 %v580_v56  ;;  %v1457_v25 = vld [vmem:[#allocation2 + $0x3a] sm:$0xff] }
  0xab   : > { %1893 = vmatpush.msra.mxu3 %v1888_v34 }
  0xac   : > { %4944 = vmatmul.msk.f32.gmra.mxu0 %vm399_vm0, %v5352_v17 }
  0xad   : > { %820 = vmatmul.f32.gmra.mxu1 %v5382_v60  ;;  %1894 = vmatpush.msra.mxu3 %v1887_v24 }
  0xaf   : > { %1895 = vmatpush.msra.mxu3 %v1886_v49 }
  0xb1   : > { %937 = vmatmul.f32.vlgmr.msrb.gmra.mxu2 %v872_v61  ;;  %v5388_v58 = vpop.f32.mrf.mxu0 }
  0xb2   : > { %1131 = vmatmul.f32.vlgmr.msrb.gmra.mxu3 %v5211_v32  ;;  %v5390_v4 = vpop.f32.mrf.mxu1 }
  0xb4   : > { %v711_v5 = vpop.f32.mrf.mxu2  ;;  %4945 = vmatmul.msk.f32.vlgmr.msrb.gmra.mxu0 %vm399_vm0, %v5160_v30  ;;  %v515_v30 = vld [vmem:[#allocation2 + $0x57] sm:$0x1] }
  0xb5   : > { %v824_v6 = vpop.f32.mrf.mxu3  ;;  %1519 = vmatmul.f32.vlgmr.msrb.gmra.mxu1 %v1454_v46  ;;  %533 = vst [vmem:[#allocation2 + $0x59] sm:$0x1] %v515_v30 }
  0xb6   : > { %v5394_v7 = vadd.f32 %v824_v6, %v711_v5  ;;  %v1691_v5 = vld [vmem:[#allocation3 + $0x350] sm:$0xff] }
  0xb7   : > { %v1885_v6 = vld [vmem:[#allocation3 + $0x3d0] sm:$0xff]  ;;  %1702 = vmatpush.msra.mxu2 %v1691_v5 }
  0xb8   : > { %1896 = vmatpush.msra.mxu3 %v1885_v6 }
  0xb9   : > { %940 = vmatmul.f32.gmra.mxu2 %v873_v8  ;;  %v5397_v32 = vpop.f32.mrf.mxu0 }
  0xba   : > { %1134 = vmatmul.f32.gmra.mxu3 %v5216_v36  ;;  %v5399_v12 = vpop.f32.mrf.mxu1 }
  0xbb   : > { %1897 = vmatpush.msra.mxu3 %v1884_v38  ;;  %v1882_v38 = vld [vmem:[#allocation3 + $0x3b8] sm:$0xff] }
  0xbc   : > { %v714_v14 = vpop.f32.mrf.mxu2  ;;  %4946 = vmatmul.msk.f32.gmra.mxu0 %vm399_vm0, %v5172_v47  ;;  %v1459_v61 = vld [vmem:[#allocation2 + $0x52] sm:$0xff] }
  0xbd   : > { %v827_v2 = vpop.f32.mrf.mxu3  ;;  %1522 = vmatmul.f32.gmra.mxu1 %v1455_v13 }
  0xbe   : > { %v5403_v16 = vadd.f32 %v827_v2, %v714_v14  ;;  %v2079_v2 = vld [vmem:[#allocation3 + $0x450] sm:$0xff] }
  0xbf   : > { %2090 = vmatpush.msra.mxu0 %v2079_v2 }
  0xc1   : > { %943 = vmatmul.f32.gmra.mxu2 %v1454_v46  ;;  %v5406_v36 = vpop.f32.mrf.mxu0  ;;  %v517_v46 = vld [vmem:[#allocation2 + $0x87] sm:$0x1]  ;;  %2091 = vmatpush.msra.mxu0 %v2078_v48  ;;  %v1467_v48 = vld [vmem:[#allocation2 + $0xb2] sm:$0xff] }
  0xc2   : > { %1137 = vmatmul.f32.gmra.mxu3 %v5245_v53  ;;  %v5408_v29 = vpop.f32.mrf.mxu1  ;;  %535 = vst [vmem:[#allocation2 + $0x89] sm:$0x1] %v517_v46  ;;  %v1464_v46 = vld [vmem:[#allocation2 + $0x92] sm:$0xff] }
  0xc4   : > { %v717_v33 = vpop.f32.mrf.mxu2  ;;  %4947 = vmatmul.msk.f32.gmra.mxu0 %vm399_vm0, %v5142_v20 }
  0xc5   : > { %v830_v22 = vpop.f32.mrf.mxu3  ;;  %1525 = vmatmul.f32.gmra.mxu1 %v1456_v31 }
  0xc6   : > { %v5412_v47 = vadd.f32 %v830_v22, %v717_v33  ;;  %v518_v33 = vld [vmem:[#allocation2 + $0x9f] sm:$0x1] }
  0xc7   : > { %536 = vst [vmem:[#allocation2 + $0xa1] sm:$0x1] %v518_v33  ;;  %v1690_v22 = vld [vmem:[#allocation3 + $0x348] sm:$0xff] }
  0xc8   : > { %1703 = vmatpush.msra.mxu2 %v1690_v22  ;;  %v1466_v22 = vld [vmem:[#allocation2 + $0xaa] sm:$0xff] }
  0xc9   : > { %946 = vmatmul.f32.gmra.mxu2 %v1455_v13  ;;  %v5415_v53 = vpop.f32.mrf.mxu0 }
  0xca   : > { %1140 = vmatmul.f32.gmra.mxu3 %v5250_v55  ;;  %v5417_v3 = vpop.f32.mrf.mxu1 }
  0xcc   : > { %v720_v39 = vpop.f32.mrf.mxu2  ;;  %4948 = vmatmul.msk.f32.gmra.mxu0 %vm399_vm0, %v5150_v23 }
  0xcd   : > { %v833_v40 = vpop.f32.mrf.mxu3  ;;  %1528 = vmatmul.f32.gmra.mxu1 %v1457_v25 }
  0xce   : > { %v5421_v20 = vadd.f32 %v833_v40, %v720_v39  ;;  %v1462_v39 = vld [vmem:[#allocation2 + $0x7a] sm:$0xff] }
  0xd1   : > { %949 = vmatmul.f32.gmra.mxu2 %v1456_v31  ;;  %v5424_v55 = vpop.f32.mrf.mxu0 }
  0xd2   : > { %1143 = vmatmul.f32.gmra.mxu3 %v5279_v9  ;;  %v5426_v45 = vpop.f32.mrf.mxu1 }
  0xd4   : > { %v723_v52 = vpop.f32.mrf.mxu2  ;;  %4949 = vmatmul.msk.f32.gmra.mxu0 %vm399_vm0, %v5193_v15 }
  0xd5   : > { %v836_v56 = vpop.f32.mrf.mxu3  ;;  %1531 = vmatmul.f32.gmra.mxu1 %v1458_v26 }
  0xd6   : > { %v5430_v23 = vadd.f32 %v836_v56, %v723_v52 }
  0xd9   : > { %952 = vmatmul.f32.gmra.mxu2 %v1457_v25  ;;  %v5433_v9 = vpop.f32.mrf.mxu0 }
  0xda   : > { %1146 = vmatmul.f32.gmra.mxu3 %v5284_v11  ;;  %v5435_v28 = vpop.f32.mrf.mxu1 }
  0xdc   : > { %v726_v1 = vpop.f32.mrf.mxu2  ;;  %4950 = vmatmul.msk.f32.gmra.mxu0 %vm399_vm0, %v5221_v41 }
  0xdd   : > { %v839_v34 = vpop.f32.mrf.mxu3  ;;  %1534 = vmatmul.f32.gmra.mxu1 %v1459_v61 }
  0xde   : > { %v5439_v15 = vadd.f32 %v839_v34, %v726_v1  ;;  %v1883_v1 = vld [vmem:[#allocation3 + $0x3c0] sm:$0xff] }
  0xdf   : > { %1898 = vmatpush.msra.mxu3 %v1883_v1  ;;  %v1274_v1 = vld [vmem:[#allocation2 + $0xc1] sm:$0xff] }
  0xe1   : > { %955 = vmatmul.f32.gmra.mxu2 %v1458_v26  ;;  %v5442_v11 = vpop.f32.mrf.mxu0  ;;  %v1463_v26 = vld [vmem:[#allocation2 + $0x82] sm:$0xff]  ;;  %1899 = vmatpush.msra.mxu3 %v1882_v38 }
  0xe2   : > { %1149 = vmatmul.f32.gmra.mxu3 %v5313_v37  ;;  %v5444_v8 = vpop.f32.mrf.mxu1 }
  0xe4   : > { %v729_v13 = vpop.f32.mrf.mxu2  ;;  %4951 = vmatmul.msk.f32.gmra.mxu0 %vm399_vm0, %v5224_v42 }
  0xe5   : > { %v842_v14 = vpop.f32.mrf.mxu3  ;;  %1537 = vmatmul.f32.gmra.mxu1 %v1460_v10 }
  0xe6   : > { %v5448_v41 = vadd.f32 %v842_v14, %v729_v13  ;;  %v1465_v14 = vld [vmem:[#allocation2 + $0x9a] sm:$0xff] }
  0xe9   : > { %958 = vmatmul.f32.gmra.mxu2 %v1459_v61  ;;  %v5451_v37 = vpop.f32.mrf.mxu0  ;;  %v1689_v61 = vld [vmem:[#allocation3 + $0x340] sm:$0xff] }
  0xea   : > { %1152 = vmatmul.f32.gmra.mxu3 %v5320_v27  ;;  %v5453_v30 = vpop.f32.mrf.mxu1  ;;  %1704 = vmatpush.msra.mxu2 %v1689_v61 }
  0xec   : > { %v732_v24 = vpop.f32.mrf.mxu2  ;;  %4952 = vmatmul.msk.f32.gmra.mxu0 %vm399_vm0, %v5255_v62 }
  0xed   : > { %v845_v31 = vpop.f32.mrf.mxu3  ;;  %1540 = vmatmul.f32.gmra.mxu1 %v1461_v21 }
  0xee   : > { %v5457_v42 = vadd.f32 %v845_v31, %v732_v24  ;;  %v520_v24 = vld [vmem:[#allocation2 + $0xcf] sm:$0x1] }
  0xef   : > { %538 = vst [vmem:[#allocation2 + $0xd1] sm:$0x1] %v520_v24  ;;  %v1688_v31 = vld [vmem:[#allocation3 + $0x338] sm:$0xff] }
  0xf0   : > { %1705 = vmatpush.msra.mxu2 %v1688_v31  ;;  %v5521_v31 = vld [vmem:[#allocation2 + $0xc9] sm:$0xff] }
  0xf1   : > { %961 = vmatmul.f32.gmra.mxu2 %v1460_v10  ;;  %v5460_v27 = vpop.f32.mrf.mxu0  ;;  %v2077_v10 = vld [vmem:[#allocation3 + $0x440] sm:$0xff] }
  0xf2   : > { %1155 = vmatmul.f32.gmra.mxu3 %v5342_v0  ;;  %v5462_v25 = vpop.f32.mrf.mxu1  ;;  %2092 = vmatpush.msra.mxu0 %v2077_v10  ;;  %v1881_v10 = vld [vmem:[#allocation3 + $0x3b0] sm:$0xff] }
  0xf3   : > { %1900 = vmatpush.msra.mxu3 %v1881_v10  ;;  %v1470_v10 = vld [vmem:[#allocation2 + $0xda] sm:$0xff] }
  0xf4   : > { %v735_v40 = vpop.f32.mrf.mxu2  ;;  %4953 = vmatmul.msk.f32.gmra.mxu0 %vm399_vm0, %v5258_v63 }
  0xf5   : > { %v848_v43 = vpop.f32.mrf.mxu3  ;;  %1543 = vmatmul.f32.gmra.mxu1 %v1462_v39 }
  0xf6   : > { %v5466_v62 = vadd.f32 %v848_v43, %v735_v40  ;;  %v1469_v38 = vld [vmem:[#allocation2 + $0xca] sm:$0xff] }
  0xf9   : > { %964 = vmatmul.f32.gmra.mxu2 %v1461_v21  ;;  %v5469_v0 = vpop.f32.mrf.mxu0 }
  0xfa   : > { %1158 = vmatmul.f32.gmra.mxu3 %v5349_v59  ;;  %v5471_v49 = vpop.f32.mrf.mxu1 }
  0xfc   : > { %v738_v52 = vpop.f32.mrf.mxu2  ;;  %4954 = vmatmul.msk.f32.gmra.mxu0 %vm399_vm0, %v5289_v18 }
  0xfd   : > { %v851_v56 = vpop.f32.mrf.mxu3  ;;  %1546 = vmatmul.f32.gmra.mxu1 %v1463_v26 }
  0xfe   : > { %v5475_v63 = vadd.f32 %v851_v56, %v738_v52 }
 0x101   : > { %967 = vmatmul.f32.gmra.mxu2 %v1462_v39  ;;  %v5478_v59 = vpop.f32.mrf.mxu0 }
 0x102   : > { %1161 = vmatmul.f32.gmra.mxu3 %v5361_v35  ;;  %v5480_v34 = vpop.f32.mrf.mxu1 }
 0x104   : > { %v741_v5 = vpop.f32.mrf.mxu2  ;;  %4955 = vmatmul.msk.f32.gmra.mxu0 %vm399_vm0, %v5292_v19 }
 0x105   : > { %v854_v6 = vpop.f32.mrf.mxu3  ;;  %1549 = vmatmul.f32.gmra.mxu1 %v1464_v46 }
 0x106   : > { %v5484_v18 = vadd.f32 %v854_v6, %v741_v5  ;;  %v1468_v6 = vld [vmem:[#allocation2 + $0xc2] sm:$0xff] }
 0x109   : > { %970 = vmatmul.f32.gmra.mxu2 %v1463_v26  ;;  %v5487_v35 = vpop.f32.mrf.mxu0  ;;  %v2076_v26 = vld [vmem:[#allocation3 + $0x438] sm:$0xff] }
 0x10a   : > { %1164 = vmatmul.f32.gmra.mxu3 %v5368_v44  ;;  %v5489_v13 = vpop.f32.mrf.mxu1  ;;  %2093 = vmatpush.msra.mxu0 %v2076_v26 }
 0x10c   : > { %v744_v2 = vpop.f32.mrf.mxu2  ;;  %4956 = vmatmul.msk.f32.gmra.mxu0 %vm399_vm0, %v5323_v50 }
 0x10d   : > { %v857_v21 = vpop.f32.mrf.mxu3  ;;  %1552 = vmatmul.f32.gmra.mxu1 %v1465_v14 }
 0x10e   : > { %v5493_v19 = vadd.f32 %v857_v21, %v744_v2  ;;  %v1081_v21 = vld [vmem:[#allocation2 + $0xc8] sm:$0xff] }
 0x111   : > { %973 = vmatmul.f32.gmra.mxu2 %v1464_v46  ;;  %v5496_v44 = vpop.f32.mrf.mxu0  ;;  %v1687_v46 = vld [vmem:[#allocation3 + $0x330] sm:$0xff] }
 0x112   : > { %1167 = vmatmul.f32.gmra.mxu3 %v5375_v54  ;;  %v5498_v33 = vpop.f32.mrf.mxu1  ;;  %1706 = vmatpush.msra.mxu2 %v1687_v46 }
 0x114   : > { %v747_v39 = vpop.f32.mrf.mxu2  ;;  %4957 = vmatmul.msk.f32.gmra.mxu0 %vm399_vm0, %v5326_v51  ;;  %v1080_v51 = vld [vmem:[#allocation2 + $0xc0] sm:$0xff] }
 0x115   : > { %v860_v40 = vpop.f32.mrf.mxu3  ;;  %1555 = vmatmul.f32.gmra.mxu1 %v1466_v22 }
 0x116   : > { %v5502_v50 = vadd.f32 %v860_v40, %v747_v39  ;;  %v2075_v39 = vld [vmem:[#allocation3 + $0x430] sm:$0xff] }
 0x117   : > { %2094 = vmatpush.msra.mxu0 %v2075_v39 }
 0x119   : > { %976 = vmatmul.f32.gmra.mxu2 %v1465_v14  ;;  %v5505_v54 = vpop.f32.mrf.mxu0 }
 0x11a   : > { %1170 = vmatmul.f32.gmra.mxu3 %v5382_v60  ;;  %v5507_v43 = vpop.f32.mrf.mxu1 }
 0x11c   : > { %v750_v52 = vpop.f32.mrf.mxu2  ;;  %4958 = vmatmul.msk.f32.gmra.mxu0 %vm399_vm0, %v5352_v17 }
 0x11d   : > { %v863_v56 = vpop.f32.mrf.mxu3  ;;  %1558 = vmatmul.f32.gmra.mxu1 %v1467_v48 }
 0x11e   : > { %v5511_v61 = vadd.f32 %v863_v56, %v750_v52  ;;  %v522_v52 = vld [vmem:[#allocation2 + $0xff] sm:$0x1] }
 0x11f   : > { %540 = vst [vmem:[#allocation2 + $0x101] sm:$0x1] %v522_v52 }
 0x121   : > { %979 = vmatmul.f32.gmra.mxu2 %v1466_v22  ;;  %v5513_v60 = vpop.f32.mrf.mxu0 }
 0x122   : > { %1173 = vmatmul.f32.gmra.mxu3 %v1080_v51  ;;  %v5515_v5 = vpop.f32.mrf.mxu1  ;;  %v5528_v51 = vld [vmem:[#allocation2 + $0xd9] sm:$0xff] }
 0x123   : > { %7949 = vst [vmem:[#allocation11_spill] sm:$0xff] %v5528_v51 }
 0x124   : > { %v753_v14 = vpop.f32.mrf.mxu2  ;;  %1367 = vmatmul.f32.gmra.mxu0 %v1274_v1  ;;  %v1686_v1 = vld [vmem:[#allocation3 + $0x328] sm:$0xff] }
 0x125   : > { %v866_v17 = vpop.f32.mrf.mxu3  ;;  %1561 = vmatmul.f32.gmra.mxu1 %v1468_v6  ;;  %1707 = vmatpush.msra.mxu2 %v1686_v1 }
 0x126   : > { %v5517_v2 = vadd.f32 %v866_v17, %v753_v14  ;;  %v777_v14 = vadd.f32 %v5390_v4, %v5388_v58  ;;  %v1880_v17 = vld [vmem:[#allocation3 + $0x3a8] sm:$0xff]  ;;  %v780_v58 = vadd.f32 %v5399_v12, %v5397_v32 }
 0x127   : > { %1901 = vmatpush.msra.mxu3 %v1880_v17  ;;  %v5546_v12 = vld [vmem:[#allocation2 + $0xf1] sm:$0xff] }
 0x128   : > { %7947 = vst [vmem:[#allocation9_spill] sm:$0xff] %v5517_v2  ;;  %v5535_v2 = vld [vmem:[#allocation2 + $0xe2] sm:$0xff] }
 0x129   : > { %982 = vmatmul.f32.gmra.mxu2 %v1467_v48  ;;  %v5519_v24 = vpop.f32.mrf.mxu0  ;;  %v1082_v48 = vld [vmem:[#allocation2 + $0xd8] sm:$0xff] }
 0x12a   : > { %1176 = vmatmul.f32.gmra.mxu3 %v1081_v21  ;;  %v5523_v22 = vpop.f32.mrf.mxu1 }
 0x12c   : > { %v756_v40 = vpop.f32.mrf.mxu2  ;;  %1370 = vmatmul.f32.gmra.mxu0 %v5521_v31 }
 0x12d   : > { %v869_v26 = vpop.f32.mrf.mxu3  ;;  %1564 = vmatmul.f32.gmra.mxu1 %v1469_v38 }
 0x12e   : > { %v5526_v56 = vadd.f32 %v869_v26, %v756_v40 }
 0x130   : > { %7948 = vst [vmem:[#allocation10_spill] sm:$0xff] %v5526_v56  ;;  %v5533_v56 = vld [vmem:[#allocation2 + $0xe1] sm:$0xff] }
 0x131   : > { %985 = vmatmul.f32.gmra.mxu2 %v1468_v6  ;;  %v1326_v57 = vpop.f32.mrf.mxu0  ;;  %v1083_v6 = vld [vmem:[#allocation2 + $0xe0] sm:$0xff] }
 0x132   : > { %1179 = vmatmul.f32.gmra.mxu3 %v1082_v48  ;;  %v1520_v46 = vpop.f32.mrf.mxu1 }
 0x134   : > { %v938_v21 = vpop.f32.mrf.mxu2  ;;  %1373 = vmatmul.f32.gmra.mxu0 %v5528_v51  ;;  %v2074_v51 = vld [vmem:[#allocation3 + $0x428] sm:$0xff] }
 0x135   : > { %v1132_v40 = vpop.f32.mrf.mxu3  ;;  %v1034_v39 = vadd.f32 %v938_v21, %v777_v14  ;;  %1567 = vmatmul.f32.gmra.mxu1 %v1470_v10  ;;  %v523_v21 = vld [vmem:[#allocation2 + $0x117] sm:$0x1]  ;;  %2095 = vmatpush.msra.mxu0 %v2074_v51 }
 0x136   : > { %541 = vst [vmem:[#allocation2 + $0x119] sm:$0x1] %v523_v21 }
 0x137   : > { %v1228_v26 = vadd.f32 %v1132_v40, %v1034_v39 }
 0x139   : > { %v1422_v52 = vadd.f32 %v1326_v57, %v1228_v26  ;;  %988 = vmatmul.f32.gmra.mxu2 %v1469_v38  ;;  %v1329_v48 = vpop.f32.mrf.mxu0  ;;  %v5543_v38 = vld [vmem:[#allocation2 + $0xf0] sm:$0xff] }
 0x13a   : > { %1182 = vmatmul.f32.gmra.mxu3 %v1083_v6  ;;  %v1523_v1 = vpop.f32.mrf.mxu1  ;;  %v5548_v26 = vld [vmem:[#allocation2 + $0xf2] sm:$0xff] }
 0x13b   : > { %v5539_v4 = vadd.f32 %v1520_v46, %v1422_v52  ;;  %v1685_v46 = vld [vmem:[#allocation3 + $0x320] sm:$0xff]  ;;  %v783_v52 = vadd.f32 %v5408_v29, %v5406_v36  ;;  %v5560_v29 = vld [vmem:[#allocation2 + $0xf9] sm:$0xff] }
 0x13c   : > { %v941_v17 = vpop.f32.mrf.mxu2  ;;  %1376 = vmatmul.f32.gmra.mxu0 %v5533_v56  ;;  %1708 = vmatpush.msra.mxu2 %v1685_v46 }
 0x13d   : > { %v1135_v14 = vpop.f32.mrf.mxu3  ;;  %v1035_v57 = vadd.f32 %v941_v17, %v780_v58  ;;  %1570 = vmatmul.f32.gmra.mxu1 %v5535_v2  ;;  %v1879_v58 = vld [vmem:[#allocation3 + $0x3a0] sm:$0xff] }
 0x13e   : > { %1902 = vmatpush.msra.mxu3 %v1879_v58 }
 0x13f   : > { %v1229_v40 = vadd.f32 %v1135_v14, %v1035_v57 }
 0x141   : > { %v1423_v39 = vadd.f32 %v1329_v48, %v1229_v40  ;;  %991 = vmatmul.f32.gmra.mxu2 %v1470_v10  ;;  %v1332_v32 = vpop.f32.mrf.mxu0  ;;  %v5556_v48 = vld [vmem:[#allocation2 + $0xf8] sm:$0xff] }
 0x142   : > { %1185 = vmatmul.f32.gmra.mxu3 %v5543_v38  ;;  %v1526_v6 = vpop.f32.mrf.mxu1  ;;  %v5562_v40 = vld [vmem:[#allocation2 + $0xfa] sm:$0xff] }
 0x143   : > { %v5552_v51 = vadd.f32 %v1523_v1, %v1423_v39  ;;  %v786_v39 = vadd.f32 %v5417_v3, %v5415_v53  ;;  %v5574_v3 = vld [vmem:[#allocation2 + $0x109] sm:$0xff] }
 0x144   : > { %v944_v17 = vpop.f32.mrf.mxu2  ;;  %1379 = vmatmul.f32.gmra.mxu0 %v5546_v12 }
 0x145   : > { %7950 = vst [vmem:[#allocation12_spill] sm:$0xff] %v5552_v51  ;;  %v1138_v14 = vpop.f32.mrf.mxu3  ;;  %v1036_v10 = vadd.f32 %v944_v17, %v783_v52  ;;  %1573 = vmatmul.f32.gmra.mxu1 %v5548_v26  ;;  %v2073_v52 = vld [vmem:[#allocation3 + $0x420] sm:$0xff] }
 0x146   : > { %2096 = vmatpush.msra.mxu0 %v2073_v52 }
 0x147   : > { %v1230_v21 = vadd.f32 %v1138_v14, %v1036_v10  ;;  %v5570_v10 = vld [vmem:[#allocation2 + $0x108] sm:$0xff] }
 0x148   : > { %7952 = vst [vmem:[#allocation14_spill] sm:$0xff] %v5570_v10 }
 0x149   : > { %v1424_v57 = vadd.f32 %v1332_v32, %v1230_v21  ;;  %994 = vmatmul.f32.gmra.mxu2 %v5535_v2  ;;  %v1335_v36 = vpop.f32.mrf.mxu0  ;;  %v524_v32 = vld [vmem:[#allocation2 + $0x12f] sm:$0x1] }
 0x14a   : > { %1188 = vmatmul.f32.gmra.mxu3 %v5556_v48  ;;  %v1529_v1 = vpop.f32.mrf.mxu1  ;;  %542 = vst [vmem:[#allocation2 + $0x131] sm:$0x1] %v524_v32 }
 0x14b   : > { %v5566_v46 = vadd.f32 %v1526_v6, %v1424_v57  ;;  %v1684_v6 = vld [vmem:[#allocation3 + $0x318] sm:$0xff] }
 0x14c   : > { %v947_v58 = vpop.f32.mrf.mxu2  ;;  %1382 = vmatmul.f32.gmra.mxu0 %v5560_v29  ;;  %1709 = vmatpush.msra.mxu2 %v1684_v6 }
 0x14d   : > { %7951 = vst [vmem:[#allocation13_spill] sm:$0xff] %v5566_v46  ;;  %v1141_v17 = vpop.f32.mrf.mxu3  ;;  %v1037_v14 = vadd.f32 %v947_v58, %v786_v39  ;;  %1576 = vmatmul.f32.gmra.mxu1 %v5562_v40  ;;  %v5576_v46 = vld [vmem:[#allocation2 + $0x10a] sm:$0xff]  ;;  %v789_v39 = vadd.f32 %v5426_v45, %v5424_v55 }
 0x14e   : > { %v1878_v58 = vld [vmem:[#allocation3 + $0x398] sm:$0xff]  ;;  %v5588_v45 = vld [vmem:[#allocation2 + $0x111] sm:$0xff] }
 0x14f   : > { %v1231_v21 = vadd.f32 %v1141_v17, %v1037_v14  ;;  %1903 = vmatpush.msra.mxu3 %v1878_v58  ;;  %v5584_v14 = vld [vmem:[#allocation2 + $0x110] sm:$0xff]  ;;  %v2072_v58 = vld [vmem:[#allocation3 + $0x418] sm:$0xff] }
 0x150   : > { %7954 = vst [vmem:[#allocation16_spill] sm:$0xff] %v5584_v14  ;;  %2097 = vmatpush.msra.mxu0 %v2072_v58 }
 0x151   : > { %v1425_v51 = vadd.f32 %v1335_v36, %v1231_v21  ;;  %997 = vmatmul.f32.gmra.mxu2 %v5548_v26  ;;  %v1338_v53 = vpop.f32.mrf.mxu0 }
 0x152   : > { %1191 = vmatmul.f32.gmra.mxu3 %v5570_v10  ;;  %v1532_v57 = vpop.f32.mrf.mxu1 }
 0x153   : > { %v5580_v52 = vadd.f32 %v1529_v1, %v1425_v51  ;;  %v5590_v51 = vld [vmem:[#allocation2 + $0x112] sm:$0xff]  ;;  %v792_v1 = vadd.f32 %v5435_v28, %v5433_v9  ;;  %v5602_v28 = vld [vmem:[#allocation2 + $0x121] sm:$0xff] }
 0x154   : > { %v950_v17 = vpop.f32.mrf.mxu2  ;;  %1385 = vmatmul.f32.gmra.mxu0 %v5574_v3 }
 0x155   : > { %7953 = vst [vmem:[#allocation15_spill] sm:$0xff] %v5580_v52  ;;  %v1144_v36 = vpop.f32.mrf.mxu3  ;;  %v1038_v32 = vadd.f32 %v950_v17, %v789_v39  ;;  %1579 = vmatmul.f32.gmra.mxu1 %v5576_v46 }
 0x157   : > { %v1232_v21 = vadd.f32 %v1144_v36, %v1038_v32  ;;  %v5598_v32 = vld [vmem:[#allocation2 + $0x120] sm:$0xff] }
 0x158   : > { %7956 = vst [vmem:[#allocation18_spill] sm:$0xff] %v5598_v32 }
 0x159   : > { %v1426_v10 = vadd.f32 %v1338_v53, %v1232_v21  ;;  %1000 = vmatmul.f32.gmra.mxu2 %v5562_v40  ;;  %v1341_v55 = vpop.f32.mrf.mxu0  ;;  %v525_v53 = vld [vmem:[#allocation2 + $0x147] sm:$0x1] }
 0x15a   : > { %1194 = vmatmul.f32.gmra.mxu3 %v5584_v14  ;;  %v1535_v39 = vpop.f32.mrf.mxu1  ;;  %543 = vst [vmem:[#allocation2 + $0x149] sm:$0x1] %v525_v53 }
 0x15b   : > { %v5594_v6 = vadd.f32 %v1532_v57, %v1426_v10  ;;  %v1683_v10 = vld [vmem:[#allocation3 + $0x310] sm:$0xff] }
 0x15c   : > { %v953_v17 = vpop.f32.mrf.mxu2  ;;  %1388 = vmatmul.f32.gmra.mxu0 %v5588_v45  ;;  %v5604_v57 = vld [vmem:[#allocation2 + $0x122] sm:$0xff]  ;;  %1710 = vmatpush.msra.mxu2 %v1683_v10 }
 0x15d   : > { %7955 = vst [vmem:[#allocation17_spill] sm:$0xff] %v5594_v6  ;;  %v1147_v52 = vpop.f32.mrf.mxu3  ;;  %v1039_v36 = vadd.f32 %v953_v17, %v792_v1  ;;  %1582 = vmatmul.f32.gmra.mxu1 %v5590_v51  ;;  %v795_v1 = vadd.f32 %v5444_v8, %v5442_v11  ;;  %v1877_v17 = vld [vmem:[#allocation3 + $0x390] sm:$0xff]  ;;  %v5616_v8 = vld [vmem:[#allocation2 + $0x129] sm:$0xff] }
 0x15e   : > { %1904 = vmatpush.msra.mxu3 %v1877_v17 }
 0x15f   : > { %v1233_v21 = vadd.f32 %v1147_v52, %v1039_v36 }
 0x161   : > { %v1427_v14 = vadd.f32 %v1341_v55, %v1233_v21  ;;  %1003 = vmatmul.f32.gmra.mxu2 %v5576_v46  ;;  %v1344_v9 = vpop.f32.mrf.mxu0  ;;  %v5612_v21 = vld [vmem:[#allocation2 + $0x128] sm:$0xff] }
 0x162   : > { %1197 = vmatmul.f32.gmra.mxu3 %v5598_v32  ;;  %v1538_v36 = vpop.f32.mrf.mxu1  ;;  %7958 = vst [vmem:[#allocation20_spill] sm:$0xff] %v5612_v21 }
 0x163   : > { %v5608_v58 = vadd.f32 %v1535_v39, %v1427_v14  ;;  %v5618_v14 = vld [vmem:[#allocation2 + $0x12a] sm:$0xff]  ;;  %v798_v39 = vadd.f32 %v5453_v30, %v5451_v37  ;;  %v5630_v30 = vld [vmem:[#allocation2 + $0x139] sm:$0xff] }
 0x164   : > { %v956_v53 = vpop.f32.mrf.mxu2  ;;  %1391 = vmatmul.f32.gmra.mxu0 %v5602_v28 }
 0x165   : > { %7957 = vst [vmem:[#allocation19_spill] sm:$0xff] %v5608_v58  ;;  %v1150_v52 = vpop.f32.mrf.mxu3  ;;  %v1040_v55 = vadd.f32 %v956_v53, %v795_v1  ;;  %1585 = vmatmul.f32.gmra.mxu1 %v5604_v57  ;;  %v2071_v1 = vld [vmem:[#allocation3 + $0x410] sm:$0xff] }
 0x166   : > { %2098 = vmatpush.msra.mxu0 %v2071_v1 }
 0x167   : > { %v1234_v6 = vadd.f32 %v1150_v52, %v1040_v55  ;;  %v5626_v52 = vld [vmem:[#allocation2 + $0x138] sm:$0xff] }
 0x168   : > { %7960 = vst [vmem:[#allocation22_spill] sm:$0xff] %v5626_v52 }
 0x169   : > { %v1428_v32 = vadd.f32 %v1344_v9, %v1234_v6  ;;  %1006 = vmatmul.f32.gmra.mxu2 %v5590_v51  ;;  %v1347_v11 = vpop.f32.mrf.mxu0  ;;  %v526_v6 = vld [vmem:[#allocation2 + $0x15f] sm:$0x1] }
 0x16a   : > { %1200 = vmatmul.f32.gmra.mxu3 %v5612_v21  ;;  %544 = vst [vmem:[#allocation2 + $0x161] sm:$0x1] %v526_v6  ;;  %v1541_v58 = vpop.f32.mrf.mxu1 }
 0x16b   : > { %v5622_v10 = vadd.f32 %v1538_v36, %v1428_v32  ;;  %v1682_v32 = vld [vmem:[#allocation3 + $0x308] sm:$0xff]  ;;  %v5633_v36 = vld [vmem:[%s5129_s27 + $0xf0] sm:$0xff] }
 0x16c   : > { %v959_v17 = vpop.f32.mrf.mxu2  ;;  %1394 = vmatmul.f32.gmra.mxu0 %v5616_v8  ;;  %7961 = vst [vmem:[#allocation23_spill] sm:$0xff] %v5633_v36  ;;  %1711 = vmatpush.msra.mxu2 %v1682_v32  ;;  %v430_v1 = vsel %vm399_vm0, %v5633_v36, 0.0 }
 0x16d   : > { %7959 = vst [vmem:[#allocation21_spill] sm:$0xff] %v5622_v10  ;;  %v1153_v53 = vpop.f32.mrf.mxu3  ;;  %v1041_v9 = vadd.f32 %v959_v17, %v798_v39  ;;  %1588 = vmatmul.f32.gmra.mxu1 %v5618_v14  ;;  %v5635_v39 = vld [vmem:[#allocation2 + $0x13a] sm:$0xff]  ;;  %v801_v17 = vadd.f32 %v5462_v25, %v5460_v27 }
 0x16e   : > { %463 = vst [vmem:[#allocation2 + $0x181] sm:$0xff] %v430_v1  ;;  %v5645_v10 = vld [vmem:[#allocation2 + $0x140] sm:$0xff]  ;;  %v804_v1 = vadd.f32 %v5471_v49, %v5469_v0 }
 0x16f   : > { %v1235_v55 = vadd.f32 %v1153_v53, %v1041_v9  ;;  %v1876_v53 = vld [vmem:[#allocation3 + $0x388] sm:$0xff]  ;;  %v5651_v25 = vld [vmem:[#allocation2 + $0x141] sm:$0xff] }
 0x170   : > { %1905 = vmatpush.msra.mxu3 %v1876_v53  ;;  %7964 = vst [vmem:[#allocation26_spill] sm:$0xff] %v5651_v25  ;;  %v2070_v53 = vld [vmem:[#allocation3 + $0x408] sm:$0xff] }
 0x171   : > { %v1429_v21 = vadd.f32 %v1347_v11, %v1235_v55  ;;  %1009 = vmatmul.f32.gmra.mxu2 %v5604_v57  ;;  %v1350_v37 = vpop.f32.mrf.mxu0  ;;  %2099 = vmatpush.msra.mxu0 %v2070_v53 }
 0x172   : > { %1203 = vmatmul.f32.gmra.mxu3 %v5626_v52 }
 0x173   : > { %v5641_v11 = vadd.f32 %v1541_v58, %v1429_v21  ;;  %v5653_v58 = vld [vmem:[#allocation2 + $0x142] sm:$0xff] }
 0x174   : > { %v962_v6 = vpop.f32.mrf.mxu2  ;;  %1397 = vmatmul.f32.gmra.mxu0 %v5630_v30 }
 0x175   : > { %7962 = vst [vmem:[#allocation24_spill] sm:$0xff] %v5641_v11  ;;  %v1156_v9 = vpop.f32.mrf.mxu3  ;;  %v1042_v55 = vadd.f32 %v962_v6, %v801_v17  ;;  %1591 = vmatmul.f32.gmra.mxu1 %v5635_v39  ;;  %v492_v21 = vld [vmem:[#allocation2 + $0x182] sm:$0x1]  ;;  %v5657_v17 = vld [vmem:[#allocation2 + $0x169] sm:$0xff] }
 0x176   : > { %510 = vst [vmem:[#allocation2 + $0x180] sm:$0x1] %v492_v21  ;;  %v1681_v11 = vld [vmem:[#allocation3 + $0x300] sm:$0xff] }
 0x177   : > { %v1236_v32 = vadd.f32 %v1156_v9, %v1042_v55  ;;  %v527_v9 = vld [vmem:[#allocation2 + $0x177] sm:$0x1]  ;;  %474 = vst [vmem:[#allocation2 + $0x199] sm:$0xff] %v5657_v17  ;;  %1712 = vmatpush.msra.mxu2 %v1681_v11  ;;  %v5684_v11 = vld [vmem:[#allocation2 + $0x158] sm:$0xff] }
 0x178   : > { %545 = vst [vmem:[#allocation2 + $0x179] sm:$0x1] %v527_v9 }
 0x179   : > { %v5647_v52 = vadd.f32 %v1350_v37, %v1236_v32  ;;  %1012 = vmatmul.f32.gmra.mxu2 %v5618_v14  ;;  %v1353_v27 = vpop.f32.mrf.mxu0  ;;  %v5662_v32 = vld [vmem:[#allocation2 + $0x150] sm:$0xff] }
 0x17a   : > { %1206 = vmatmul.f32.gmra.mxu3 %v5645_v10  ;;  %7965 = vst [vmem:[#allocation27_spill] sm:$0xff] %v5662_v32 }
 0x17b   : > { %7963 = vst [vmem:[#allocation25_spill] sm:$0xff] %v5647_v52  ;;  %v5668_v52 = vld [vmem:[#allocation2 + $0x151] sm:$0xff] }
 0x17c   : > { %v965_v6 = vpop.f32.mrf.mxu2  ;;  %1400 = vmatmul.f32.gmra.mxu0 %v5651_v25  ;;  %7967 = vst [vmem:[#allocation29_spill] sm:$0xff] %v5668_v52  ;;  %v5671_v25 = vld [vmem:[%s5129_s27 + $0xf8] sm:$0xff] }
 0x17d   : > { %v1159_v37 = vpop.f32.mrf.mxu3  ;;  %v1043_v55 = vadd.f32 %v965_v6, %v804_v1  ;;  %1594 = vmatmul.f32.gmra.mxu1 %v5653_v58  ;;  %7968 = vst [vmem:[#allocation30_spill] sm:$0xff] %v5671_v25  ;;  %v5673_v1 = vld [vmem:[#allocation2 + $0x152] sm:$0xff]  ;;  %v431_v53 = vsel %vm399_vm0, %v5671_v25, 0.0 }
 0x17e   : > { %v5679_v6 = vld [vmem:[#allocation2 + $0x171] sm:$0xff]  ;;  %464 = vst [vmem:[#allocation2 + $0x189] sm:$0xff] %v431_v53  ;;  %v5692_v53 = vld [vmem:[#allocation2 + $0x15a] sm:$0xff] }
 0x17f   : > { %v1237_v0 = vadd.f32 %v1159_v37, %v1043_v55  ;;  %v1875_v37 = vld [vmem:[#allocation3 + $0x380] sm:$0xff]  ;;  %475 = vst [vmem:[#allocation2 + $0x1a1] sm:$0xff] %v5679_v6 }
 0x180   : > { %1906 = vmatpush.msra.mxu3 %v1875_v37  ;;  %v810_v37 = vadd.f32 %v5489_v13, %v5487_v35  ;;  %v5704_v13 = vld [vmem:[#allocation2 + $0x16a] sm:$0xff] }
 0x181   : > { %v5664_v49 = vadd.f32 %v1353_v27, %v1237_v0  ;;  %1015 = vmatmul.f32.gmra.mxu2 %v5635_v39  ;;  %v1356_v21 = vpop.f32.mrf.mxu0  ;;  %v807_v27 = vadd.f32 %v5480_v34, %v5478_v59  ;;  %v5690_v34 = vld [vmem:[#allocation2 + $0x159] sm:$0xff] }
 0x182   : > { %1209 = vmatmul.f32.gmra.mxu3 %v5662_v32  ;;  %7970 = vst [vmem:[#allocation32_spill] sm:$0xff] %v5690_v34 }
 0x183   : > { %7966 = vst [vmem:[#allocation28_spill] sm:$0xff] %v5664_v49 }
 0x184   : > { %v968_v9 = vpop.f32.mrf.mxu2  ;;  %1403 = vmatmul.f32.gmra.mxu0 %v5668_v52 }
 0x185   : > { %v1162_v55 = vpop.f32.mrf.mxu3  ;;  %v1044_v0 = vadd.f32 %v968_v9, %v807_v27  ;;  %1597 = vmatmul.f32.gmra.mxu1 %v5673_v1  ;;  %v2069_v27 = vld [vmem:[#allocation3 + $0x400] sm:$0xff] }
 0x186   : > { %2100 = vmatpush.msra.mxu0 %v2069_v27 }
 0x187   : > { %v1238_v49 = vadd.f32 %v1162_v55, %v1044_v0  ;;  %v528_v55 = vld [vmem:[#allocation2 + $0x18f] sm:$0x1] }
 0x188   : > { %546 = vst [vmem:[#allocation2 + $0x191] sm:$0x1] %v528_v55 }
 0x189   : > { %v5686_v32 = vadd.f32 %v1356_v21, %v1238_v49  ;;  %1018 = vmatmul.f32.gmra.mxu2 %v5653_v58  ;;  %v1359_v59 = vpop.f32.mrf.mxu0  ;;  %v5698_v21 = vld [vmem:[#allocation2 + $0x168] sm:$0xff] }
 0x18a   : > { %1212 = vmatmul.f32.gmra.mxu3 %v5684_v11 }
 0x18b   : > { %7969 = vst [vmem:[#allocation31_spill] sm:$0xff] %v5686_v32 }
 0x18c   : > { %v971_v9 = vpop.f32.mrf.mxu2  ;;  %1406 = vmatmul.f32.gmra.mxu0 %v5690_v34  ;;  %v813_v34 = vadd.f32 %v5498_v33, %v5496_v44  ;;  %v816_v44 = vadd.f32 %v5507_v43, %v5505_v54  ;;  %v819_v54 = vadd.f32 %v5515_v5, %v5513_v60  ;;  %v822_v60 = vadd.f32 %v5523_v22, %v5519_v24  ;;  %v1649_v22 = vld [vmem:[#allocation2 + $0x38] sm:$0xff] }
 0x18d   : > { %v1165_v52 = vpop.f32.mrf.mxu3  ;;  %v1045_v49 = vadd.f32 %v971_v9, %v810_v37  ;;  %1600 = vmatmul.f32.gmra.mxu1 %v5692_v53 }
 0x18f   : > { %v1239_v0 = vadd.f32 %v1165_v52, %v1045_v49  ;;  %v5710_v52 = vld [vmem:[#allocation2 + $0x170] sm:$0xff] }
 0x191   : > { %v5700_v32 = vadd.f32 %v1359_v59, %v1239_v0  ;;  %1021 = vmatmul.f32.gmra.mxu2 %v5673_v1  ;;  %v1362_v35 = vpop.f32.mrf.mxu0  ;;  %v5716_v0 = vld [vmem:[#allocation2 + $0x172] sm:$0xff] }
 0x192   : > { %1215 = vmatmul.f32.gmra.mxu3 %v5698_v21 }
 0x193   : > { %7971 = vst [vmem:[#allocation33_spill] sm:$0xff] %v5700_v32 }
 0x194   : > { %v974_v37 = vpop.f32.mrf.mxu2  ;;  %1409 = vmatmul.f32.gmra.mxu0 %v5657_v17 }
 0x195   : > { %v1168_v9 = vpop.f32.mrf.mxu3  ;;  %v1046_v27 = vadd.f32 %v974_v37, %v813_v34  ;;  %1603 = vmatmul.f32.gmra.mxu1 %v5704_v13  ;;  %v5722_v37 = vld [vmem:[#allocation2 + $0x180] sm:$0xff] }
 0x197   : > { %v1240_v59 = vadd.f32 %v1168_v9, %v1046_v27 }
 0x199   : > { %v5712_v55 = vadd.f32 %v1362_v35, %v1240_v59  ;;  %1024 = vmatmul.f32.gmra.mxu2 %v5692_v53  ;;  %v1365_v49 = vpop.f32.mrf.mxu0  ;;  %v5728_v59 = vld [vmem:[#allocation2 + $0x182] sm:$0xff] }
 0x19a   : > { %1218 = vmatmul.f32.gmra.mxu3 %v5710_v52  ;;  %7974 = vst [vmem:[#allocation36_spill] sm:$0xff] %v5728_v59 }
 0x19b   : > { %7972 = vst [vmem:[#allocation34_spill] sm:$0xff] %v5712_v55 }
 0x19c   : > { %v977_v33 = vpop.f32.mrf.mxu2  ;;  %1412 = vmatmul.f32.gmra.mxu0 %v5679_v6 }
 0x19d   : > { %v1171_v32 = vpop.f32.mrf.mxu3  ;;  %v1047_v34 = vadd.f32 %v977_v33, %v816_v44  ;;  %1606 = vmatmul.f32.gmra.mxu1 %v5716_v0 }
 0x19f   : > { %v1241_v35 = vadd.f32 %v1171_v32, %v1047_v34  ;;  %v5735_v32 = vld [vmem:[#allocation2 + $0x188] sm:$0xff] }
 0x1a0   : > { %7975 = vst [vmem:[#allocation37_spill] sm:$0xff] %v5735_v32 }
 0x1a1   : > { %v5724_v9 = vadd.f32 %v1365_v49, %v1241_v35  ;;  %1027 = vmatmul.f32.gmra.mxu2 %v5704_v13  ;;  %v1368_v27 = vpop.f32.mrf.mxu0  ;;  %v5741_v35 = vld [vmem:[#allocation2 + $0x18a] sm:$0xff] }
 0x1a2   : > { %1221 = vmatmul.f32.gmra.mxu3 %v5722_v37 }
 0x1a3   : > { %7973 = vst [vmem:[#allocation35_spill] sm:$0xff] %v5724_v9 }
 0x1a4   : > { %v980_v43 = vpop.f32.mrf.mxu2  ;;  %4959 = vmatmul.msk.f32.gmra.mxu0 %vm399_vm0, %v5633_v36  ;;  %v1843_v36 = vld [vmem:[#allocation2 + $0x39] sm:$0xff] }
 0x1a5   : > { %v1174_v55 = vpop.f32.mrf.mxu3  ;;  %v1048_v44 = vadd.f32 %v980_v43, %v819_v54  ;;  %1609 = vmatmul.f32.gmra.mxu1 %v5728_v59 }
 0x1a7   : > { %v1242_v49 = vadd.f32 %v1174_v55, %v1048_v44  ;;  %v1648_v55 = vld [vmem:[#allocation2 + $0x30] sm:$0xff] }
 0x1a9   : > { %v5737_v33 = vadd.f32 %v1368_v27, %v1242_v49  ;;  %1030 = vmatmul.f32.gmra.mxu2 %v5716_v0  ;;  %v1371_v34 = vpop.f32.mrf.mxu0  ;;  %v1842_v27 = vld [vmem:[#allocation2 + $0x31] sm:$0xff] }
 0x1aa   : > { %1224 = vmatmul.f32.gmra.mxu3 %v5735_v32 }
 0x1ab   : > { %7976 = vst [vmem:[#allocation38_spill] sm:$0xff] %v5737_v33  ;;  %v2036_v33 = vld [vmem:[#allocation2 + $0x32] sm:$0xff] }
 0x1ac   : > { %v983_v5 = vpop.f32.mrf.mxu2  ;;  %4960 = vmatmul.msk.f32.gmra.mxu0 %vm399_vm0, %v5671_v25 }
 0x1ad   : > { %v1177_v9 = vpop.f32.mrf.mxu3  ;;  %v1049_v54 = vadd.f32 %v983_v5, %v822_v60  ;;  %1612 = vmatmul.f32.gmra.mxu1 %v5741_v35 }
 0x1af   : > { %v1243_v43 = vadd.f32 %v1177_v9, %v1049_v54  ;;  %v2037_v9 = vld [vmem:[#allocation2 + $0x3a] sm:$0xff] }
 0x1b1   : > { %v5748_v44 = vadd.f32 %v1371_v34, %v1243_v43  ;;  %1713 = vmatmul.f32.vlgmr.msra.gmra.mxu2 %v1648_v55  ;;  %v1374_v49 = vpop.f32.mrf.mxu0  ;;  %v1844_v43 = vld [vmem:[#allocation2 + $0x49] sm:$0xff] }
 0x1b2   : > { %1907 = vmatmul.f32.vlgmr.msra.gmra.mxu3 %v1842_v27  ;;  %v1650_v27 = vld [vmem:[#allocation2 + $0x48] sm:$0xff] }
 0x1b3   : > { %7977 = vst [vmem:[#allocation39_spill] sm:$0xff] %v5748_v44 }
 0x1b4   : > { %v986_v32 = vpop.f32.mrf.mxu2  ;;  %2101 = vmatmul.f32.vlgmr.msra.gmra.mxu0 %v2036_v33 }
 0x1b5   : > { %v1180_v59 = vpop.f32.mrf.mxu3  ;;  %v1050_v24 = vadd.f32 %v986_v32, %v5394_v7 }
 0x1b7   : > { %v1244_v25 = vadd.f32 %v1180_v59, %v1050_v24  ;;  %v2038_v59 = vld [vmem:[#allocation2 + $0x4a] sm:$0xff] }
 0x1b8   : > { %v1845_v24 = vld [vmem:[#allocation2 + $0x51] sm:$0xff] }
 0x1b9   : > { %v5751_v60 = vadd.f32 %v1374_v49, %v1244_v25  ;;  %1716 = vmatmul.f32.gmra.mxu2 %v1649_v22  ;;  %v1377_v5 = vpop.f32.mrf.mxu0  ;;  %v1651_v49 = vld [vmem:[#allocation2 + $0x50] sm:$0xff] }
 0x1ba   : > { %1910 = vmatmul.f32.gmra.mxu3 %v1843_v36 }
 0x1bc   : > { %v989_v34 = vpop.f32.mrf.mxu2  ;;  %2104 = vmatmul.f32.gmra.mxu0 %v2037_v9 }
 0x1bd   : > { %v1183_v54 = vpop.f32.mrf.mxu3  ;;  %v1051_v55 = vadd.f32 %v989_v34, %v5403_v16  ;;  %v2039_v34 = vld [vmem:[#allocation2 + $0x52] sm:$0xff] }
 0x1bf   : > { %v1245_v44 = vadd.f32 %v1183_v54, %v1051_v55  ;;  %v1652_v55 = vld [vmem:[#allocation2 + $0x60] sm:$0xff] }
 0x1c1   : > { %v5754_v33 = vadd.f32 %v1377_v5, %v1245_v44  ;;  %1719 = vmatmul.f32.gmra.mxu2 %v1650_v27  ;;  %v1380_v7 = vpop.f32.mrf.mxu0  ;;  %v1846_v27 = vld [vmem:[#allocation2 + $0x61] sm:$0xff] }
 0x1c2   : > { %1913 = vmatmul.f32.gmra.mxu3 %v1844_v43 }
 0x1c4   : > { %v992_v25 = vpop.f32.mrf.mxu2  ;;  %2107 = vmatmul.f32.gmra.mxu0 %v2038_v59 }
 0x1c5   : > { %v1186_v32 = vpop.f32.mrf.mxu3  ;;  %v1052_v36 = vadd.f32 %v992_v25, %v5412_v47  ;;  %v2040_v25 = vld [vmem:[#allocation2 + $0x62] sm:$0xff] }
 0x1c7   : > { %v1246_v22 = vadd.f32 %v1186_v32, %v1052_v36 }
 0x1c9   : > { %v5757_v9 = vadd.f32 %v1380_v7, %v1246_v22  ;;  %1722 = vmatmul.f32.gmra.mxu2 %v1651_v49  ;;  %v1383_v16 = vpop.f32.mrf.mxu0  ;;  %v1653_v49 = vld [vmem:[#allocation2 + $0x68] sm:$0xff] }
 0x1ca   : > { %1916 = vmatmul.f32.gmra.mxu3 %v1845_v24  ;;  %v1847_v24 = vld [vmem:[#allocation2 + $0x69] sm:$0xff] }
 0x1cc   : > { %v995_v44 = vpop.f32.mrf.mxu2  ;;  %2110 = vmatmul.f32.gmra.mxu0 %v2039_v34 }
 0x1cd   : > { %v1189_v5 = vpop.f32.mrf.mxu3  ;;  %v1053_v54 = vadd.f32 %v995_v44, %v5421_v20  ;;  %v2041_v44 = vld [vmem:[#allocation2 + $0x6a] sm:$0xff] }
 0x1cf   : > { %v1247_v43 = vadd.f32 %v1189_v5, %v1053_v54 }
 0x1d1   : > { %v5760_v59 = vadd.f32 %v1383_v16, %v1247_v43  ;;  %1725 = vmatmul.f32.gmra.mxu2 %v1652_v55  ;;  %v1386_v47 = vpop.f32.mrf.mxu0  ;;  %v1654_v55 = vld [vmem:[#allocation2 + $0x78] sm:$0xff] }
 0x1d2   : > { %1919 = vmatmul.f32.gmra.mxu3 %v1846_v27  ;;  %v1848_v27 = vld [vmem:[#allocation2 + $0x79] sm:$0xff] }
 0x1d4   : > { %v998_v7 = vpop.f32.mrf.mxu2  ;;  %2113 = vmatmul.f32.gmra.mxu0 %v2040_v25 }
 0x1d5   : > { %v1192_v32 = vpop.f32.mrf.mxu3  ;;  %v1054_v36 = vadd.f32 %v998_v7, %v5430_v23  ;;  %v2042_v7 = vld [vmem:[#allocation2 + $0x7a] sm:$0xff] }
 0x1d7   : > { %v1248_v22 = vadd.f32 %v1192_v32, %v1054_v36 }
 0x1d9   : > { %v5763_v34 = vadd.f32 %v1386_v47, %v1248_v22  ;;  %1728 = vmatmul.f32.gmra.mxu2 %v1653_v49  ;;  %v1389_v20 = vpop.f32.mrf.mxu0  ;;  %v1655_v49 = vld [vmem:[#allocation2 + $0x80] sm:$0xff] }
 0x1da   : > { %1922 = vmatmul.f32.gmra.mxu3 %v1847_v24  ;;  %v1849_v24 = vld [vmem:[#allocation2 + $0x81] sm:$0xff] }
 0x1db   : > { %7978 = vst [vmem:[#allocation40_spill] sm:$0xff] %v5763_v34 }
 0x1dc   : > { %v1001_v16 = vpop.f32.mrf.mxu2  ;;  %2116 = vmatmul.f32.gmra.mxu0 %v2041_v44 }
 0x1dd   : > { %v1195_v5 = vpop.f32.mrf.mxu3  ;;  %v1055_v54 = vadd.f32 %v1001_v16, %v5439_v15  ;;  %v2043_v16 = vld [vmem:[#allocation2 + $0x82] sm:$0xff] }
 0x1df   : > { %v1249_v43 = vadd.f32 %v1195_v5, %v1055_v54 }
 0x1e1   : > { %v5766_v25 = vadd.f32 %v1389_v20, %v1249_v43  ;;  %1731 = vmatmul.f32.gmra.mxu2 %v1654_v55  ;;  %v1392_v23 = vpop.f32.mrf.mxu0  ;;  %v1656_v55 = vld [vmem:[#allocation2 + $0x90] sm:$0xff] }
 0x1e2   : > { %1925 = vmatmul.f32.gmra.mxu3 %v1848_v27  ;;  %v1850_v27 = vld [vmem:[#allocation2 + $0x91] sm:$0xff] }
 0x1e3   : > { %7979 = vst [vmem:[#allocation41_spill] sm:$0xff] %v5766_v25 }
 0x1e4   : > { %v1004_v47 = vpop.f32.mrf.mxu2  ;;  %2119 = vmatmul.f32.gmra.mxu0 %v2042_v7 }
 0x1e5   : > { %v1198_v32 = vpop.f32.mrf.mxu3  ;;  %v1056_v36 = vadd.f32 %v1004_v47, %v5448_v41  ;;  %v2044_v47 = vld [vmem:[#allocation2 + $0x92] sm:$0xff] }
 0x1e7   : > { %v1250_v22 = vadd.f32 %v1198_v32, %v1056_v36 }
 0x1e9   : > { %v5769_v44 = vadd.f32 %v1392_v23, %v1250_v22  ;;  %1734 = vmatmul.f32.gmra.mxu2 %v1655_v49  ;;  %v1395_v15 = vpop.f32.mrf.mxu0  ;;  %v1657_v49 = vld [vmem:[#allocation2 + $0x98] sm:$0xff] }
 0x1ea   : > { %1928 = vmatmul.f32.gmra.mxu3 %v1849_v24  ;;  %v1851_v24 = vld [vmem:[#allocation2 + $0x99] sm:$0xff] }
 0x1eb   : > { %7980 = vst [vmem:[#allocation42_spill] sm:$0xff] %v5769_v44 }
 0x1ec   : > { %v1007_v20 = vpop.f32.mrf.mxu2  ;;  %2122 = vmatmul.f32.gmra.mxu0 %v2043_v16 }
 0x1ed   : > { %v1201_v5 = vpop.f32.mrf.mxu3  ;;  %v1057_v54 = vadd.f32 %v1007_v20, %v5457_v42  ;;  %v2045_v20 = vld [vmem:[#allocation2 + $0x9a] sm:$0xff] }
 0x1ef   : > { %v1251_v43 = vadd.f32 %v1201_v5, %v1057_v54 }
 0x1f1   : > { %v5772_v7 = vadd.f32 %v1395_v15, %v1251_v43  ;;  %1737 = vmatmul.f32.gmra.mxu2 %v1656_v55  ;;  %v1398_v41 = vpop.f32.mrf.mxu0  ;;  %v1658_v55 = vld [vmem:[#allocation2 + $0xa8] sm:$0xff] }
 0x1f2   : > { %1931 = vmatmul.f32.gmra.mxu3 %v1850_v27  ;;  %v1852_v27 = vld [vmem:[#allocation2 + $0xa9] sm:$0xff] }
 0x1f3   : > { %7981 = vst [vmem:[#allocation43_spill] sm:$0xff] %v5772_v7  ;;  %v2766_v7 = vld [vmem:[#allocation5 + $0xe8] sm:$0xff] }
 0x1f4   : > { %v1010_v23 = vpop.f32.mrf.mxu2  ;;  %2125 = vmatmul.f32.gmra.mxu0 %v2044_v47 }
 0x1f5   : > { %v1204_v32 = vpop.f32.mrf.mxu3  ;;  %v1058_v36 = vadd.f32 %v1010_v23, %v5466_v62  ;;  %v2046_v23 = vld [vmem:[#allocation2 + $0xaa] sm:$0xff] }
 0x1f7   : > { %v1252_v22 = vadd.f32 %v1204_v32, %v1058_v36 }
 0x1f9   : > { %v5775_v16 = vadd.f32 %v1398_v41, %v1252_v22  ;;  %1740 = vmatmul.f32.gmra.mxu2 %v1657_v49  ;;  %v1401_v42 = vpop.f32.mrf.mxu0  ;;  %v1659_v49 = vld [vmem:[#allocation2 + $0xb0] sm:$0xff] }
 0x1fa   : > { %1934 = vmatmul.f32.gmra.mxu3 %v1851_v24  ;;  %v1853_v24 = vld [vmem:[#allocation2 + $0xb1] sm:$0xff] }
 0x1fb   : > { %7982 = vst [vmem:[#allocation44_spill] sm:$0xff] %v5775_v16 }
 0x1fc   : > { %v1013_v15 = vpop.f32.mrf.mxu2  ;;  %2128 = vmatmul.f32.gmra.mxu0 %v2045_v20 }
 0x1fd   : > { %v1207_v5 = vpop.f32.mrf.mxu3  ;;  %v1059_v54 = vadd.f32 %v1013_v15, %v5475_v63  ;;  %v2047_v15 = vld [vmem:[#allocation2 + $0xb2] sm:$0xff] }
 0x1ff   : > { %v1253_v43 = vadd.f32 %v1207_v5, %v1059_v54 }
 0x201   : > { %v5778_v47 = vadd.f32 %v1401_v42, %v1253_v43  ;;  %1743 = vmatmul.f32.gmra.mxu2 %v1658_v55  ;;  %v1404_v62 = vpop.f32.mrf.mxu0  ;;  %v1660_v55 = vld [vmem:[#allocation2 + $0xc0] sm:$0xff] }
 0x202   : > { %1937 = vmatmul.f32.gmra.mxu3 %v1852_v27  ;;  %v1854_v27 = vld [vmem:[#allocation2 + $0xc1] sm:$0xff] }
 0x203   : > { %7983 = vst [vmem:[#allocation45_spill] sm:$0xff] %v5778_v47 }
 0x204   : > { %v1016_v41 = vpop.f32.mrf.mxu2  ;;  %2131 = vmatmul.f32.gmra.mxu0 %v2046_v23 }
 0x205   : > { %v1210_v32 = vpop.f32.mrf.mxu3  ;;  %v1060_v36 = vadd.f32 %v1016_v41, %v5484_v18  ;;  %v2048_v41 = vld [vmem:[#allocation2 + $0xc2] sm:$0xff] }
 0x207   : > { %v1254_v22 = vadd.f32 %v1210_v32, %v1060_v36 }
 0x209   : > { %v5781_v20 = vadd.f32 %v1404_v62, %v1254_v22  ;;  %1746 = vmatmul.f32.gmra.mxu2 %v1659_v49  ;;  %v1407_v63 = vpop.f32.mrf.mxu0  ;;  %v1661_v49 = vld [vmem:[#allocation2 + $0xc8] sm:$0xff] }
 0x20a   : > { %1940 = vmatmul.f32.gmra.mxu3 %v1853_v24 }
 0x20b   : > { %7984 = vst [vmem:[#allocation46_spill] sm:$0xff] %v5781_v20 }
 0x20c   : > { %v1019_v42 = vpop.f32.mrf.mxu2  ;;  %2134 = vmatmul.f32.gmra.mxu0 %v2047_v15  ;;  %v2049_v15 = vld [vmem:[#allocation2 + $0xca] sm:$0xff] }
 0x20d   : > { %v1213_v5 = vpop.f32.mrf.mxu3  ;;  %v1061_v54 = vadd.f32 %v1019_v42, %v5493_v19 }
 0x20f   : > { %v1255_v43 = vadd.f32 %v1213_v5, %v1061_v54  ;;  %v1662_v54 = vld [vmem:[#allocation2 + $0xd8] sm:$0xff] }
 0x211   : > { %v5784_v23 = vadd.f32 %v1407_v63, %v1255_v43  ;;  %1749 = vmatmul.f32.gmra.mxu2 %v1660_v55  ;;  %v1410_v18 = vpop.f32.mrf.mxu0 }
 0x212   : > { %1943 = vmatmul.f32.gmra.mxu3 %v1854_v27 }
 0x213   : > { %7985 = vst [vmem:[#allocation47_spill] sm:$0xff] %v5784_v23 }
 0x214   : > { %v1022_v62 = vpop.f32.mrf.mxu2  ;;  %2137 = vmatmul.f32.gmra.mxu0 %v2048_v41 }
 0x215   : > { %v1216_v32 = vpop.f32.mrf.mxu3  ;;  %v1062_v36 = vadd.f32 %v1022_v62, %v5502_v50  ;;  %v7988_v50 = vld [vmem:[#allocation11_spill] sm:$0xff] }
 0x217   : > { %v1256_v24 = vadd.f32 %v1216_v32, %v1062_v36  ;;  %v1663_v36 = vld [vmem:[#allocation2 + $0xe0] sm:$0xff] }
 0x219   : > { %v5787_v22 = vadd.f32 %v1410_v18, %v1256_v24  ;;  %1752 = vmatmul.f32.gmra.mxu2 %v1661_v49  ;;  %v1413_v19 = vpop.f32.mrf.mxu0  ;;  %v2050_v18 = vld [vmem:[#allocation2 + $0xda] sm:$0xff] }
 0x21a   : > { %1946 = vmatmul.f32.gmra.mxu3 %v5521_v31  ;;  %v7989_v31 = vld [vmem:[#allocation9_spill] sm:$0xff] }
 0x21b   : > { %7986 = vst [vmem:[#allocation48_spill] sm:$0xff] %v5787_v22 }
 0x21c   : > { %v1025_v63 = vpop.f32.mrf.mxu2  ;;  %2140 = vmatmul.f32.gmra.mxu0 %v2049_v15 }
 0x21d   : > { %v1219_v42 = vpop.f32.mrf.mxu3  ;;  %v1063_v5 = vadd.f32 %v1025_v63, %v5511_v61  ;;  %v7991_v63 = vld [vmem:[#allocation10_spill] sm:$0xff] }
 0x21f   : > { %v1257_v55 = vadd.f32 %v1219_v42, %v1063_v5 }
 0x221   : > { %v5791_v27 = vadd.f32 %v1413_v19, %v1257_v55  ;;  %1755 = vmatmul.f32.gmra.mxu2 %v1662_v54  ;;  %v1416_v43 = vpop.f32.mrf.mxu0 }
 0x222   : > { %1949 = vmatmul.f32.gmra.mxu3 %v7988_v50 }
 0x223   : > { %7987 = vst [vmem:[#allocation49_spill] sm:$0xff] %v5791_v27 }
 0x224   : > { %v1028_v41 = vpop.f32.mrf.mxu2  ;;  %2143 = vmatmul.f32.gmra.mxu0 %v2050_v18 }
 0x225   : > { %v1222_v62 = vpop.f32.mrf.mxu3  ;;  %v1064_v32 = vadd.f32 %v1028_v41, %v7989_v31 }
 0x227   : > { %v1258_v49 = vadd.f32 %v1222_v62, %v1064_v32 }
 0x229   : > { %v5795_v24 = vadd.f32 %v1416_v43, %v1258_v49  ;;  %1758 = vmatmul.f32.gmra.mxu2 %v1663_v36  ;;  %v1419_v61 = vpop.f32.mrf.mxu0  ;;  %v5812_v36 = vpop.f32.mrf.mxu1 }
 0x22a   : > { %1952 = vmatmul.f32.gmra.mxu3 %v5533_v56 }
 0x22b   : > { %7990 = vst [vmem:[#allocation11_spill] sm:$0xff] %v5795_v24 }
 0x22c   : > { %v1031_v19 = vpop.f32.mrf.mxu2  ;;  %2146 = vmatmul.f32.gmra.mxu0 %v5535_v2 }
 0x22d   : > { %v1225_v15 = vpop.f32.mrf.mxu3  ;;  %v1065_v42 = vadd.f32 %v1031_v19, %v7991_v63  ;;  %v7996_v63 = vld [vmem:[#allocation16_spill] sm:$0xff] }
 0x22f   : > { %v1259_v5 = vadd.f32 %v1225_v15, %v1065_v42 }
 0x231   : > { %v5800_v54 = vadd.f32 %v1419_v61, %v1259_v5  ;;  %1761 = vmatmul.f32.gmra.mxu2 %v5543_v38  ;;  %v2102_v55 = vpop.f32.mrf.mxu0  ;;  %v7993_v38 = vld [vmem:[#allocation12_spill] sm:$0xff]  ;;  %v5824_v5 = vpop.f32.mrf.mxu1 }
 0x232   : > { %1955 = vmatmul.f32.gmra.mxu3 %v5546_v12 }
 0x233   : > { %7992 = vst [vmem:[#allocation9_spill] sm:$0xff] %v5800_v54 }
 0x234   : > { %v1714_v50 = vpop.f32.mrf.mxu2  ;;  %2149 = vmatmul.f32.gmra.mxu0 %v5548_v26 }
 0x235   : > { %v1908_v43 = vpop.f32.mrf.mxu3  ;;  %v1810_v56 = vadd.f32 %v1714_v50, %v5539_v4  ;;  %v7994_v4 = vld [vmem:[#allocation14_spill] sm:$0xff] }
 0x237   : > { %v2004_v18 = vadd.f32 %v1908_v43, %v1810_v56 }
 0x239   : > { %v5806_v41 = vadd.f32 %v2102_v55, %v2004_v18  ;;  %1764 = vmatmul.f32.gmra.mxu2 %v5556_v48  ;;  %v2105_v2 = vpop.f32.mrf.mxu0  ;;  %v7998_v18 = vld [vmem:[#allocation18_spill] sm:$0xff] }
 0x23a   : > { %1958 = vmatmul.f32.gmra.mxu3 %v5560_v29  ;;  %v7995_v29 = vld [vmem:[#allocation13_spill] sm:$0xff] }
 0x23c   : > { %v1717_v62 = vpop.f32.mrf.mxu2  ;;  %2152 = vmatmul.f32.gmra.mxu0 %v5562_v40 }
 0x23d   : > { %v1911_v31 = vpop.f32.mrf.mxu3  ;;  %v1811_v12 = vadd.f32 %v1717_v62, %v7993_v38  ;;  %v7999_v38 = vld [vmem:[#allocation17_spill] sm:$0xff] }
 0x23f   : > { %v2005_v32 = vadd.f32 %v1911_v31, %v1811_v12 }
 0x241   : > { %v5814_v26 = vadd.f32 %v2105_v2, %v2005_v32  ;;  %1767 = vmatmul.f32.gmra.mxu2 %v7994_v4  ;;  %v2108_v49 = vpop.f32.mrf.mxu0  ;;  %v8000_v4 = vld [vmem:[#allocation20_spill] sm:$0xff] }
 0x242   : > { %1961 = vmatmul.f32.gmra.mxu3 %v5574_v3  ;;  %v7997_v3 = vld [vmem:[#allocation15_spill] sm:$0xff] }
 0x244   : > { %v1720_v48 = vpop.f32.mrf.mxu2  ;;  %2155 = vmatmul.f32.gmra.mxu0 %v5576_v46 }
 0x245   : > { %v1914_v61 = vpop.f32.mrf.mxu3  ;;  %v1812_v19 = vadd.f32 %v1720_v48, %v7995_v29 }
 0x247   : > { %v2006_v15 = vadd.f32 %v1914_v61, %v1812_v19 }
 0x249   : > { %v5820_v40 = vadd.f32 %v2108_v49, %v2006_v15  ;;  %1770 = vmatmul.f32.gmra.mxu2 %v7996_v63  ;;  %v2111_v42 = vpop.f32.mrf.mxu0  ;;  %v8002_v63 = vld [vmem:[#allocation22_spill] sm:$0xff] }
 0x24a   : > { %1964 = vmatmul.f32.gmra.mxu3 %v5588_v45  ;;  %v5833_v45 = vpop.f32.mrf.mxu1 }
 0x24c   : > { %v1723_v55 = vpop.f32.mrf.mxu2  ;;  %2158 = vmatmul.f32.gmra.mxu0 %v5590_v51 }
 0x24d   : > { %v1917_v50 = vpop.f32.mrf.mxu3  ;;  %v1813_v43 = vadd.f32 %v1723_v55, %v7997_v3 }
 0x24f   : > { %v2007_v56 = vadd.f32 %v1917_v50, %v1813_v43 }
 0x251   : > { %v5828_v46 = vadd.f32 %v2111_v42, %v2007_v56  ;;  %1773 = vmatmul.f32.gmra.mxu2 %v7998_v18  ;;  %v2114_v2 = vpop.f32.mrf.mxu0  ;;  %v8004_v18 = vld [vmem:[#allocation26_spill] sm:$0xff] }
 0x252   : > { %1967 = vmatmul.f32.gmra.mxu3 %v5602_v28  ;;  %v8001_v28 = vld [vmem:[#allocation19_spill] sm:$0xff]  ;;  %v5842_v19 = vpop.f32.mrf.mxu1 }
 0x254   : > { %v1726_v62 = vpop.f32.mrf.mxu2  ;;  %2161 = vmatmul.f32.gmra.mxu0 %v5604_v57 }
 0x255   : > { %v1920_v31 = vpop.f32.mrf.mxu3  ;;  %v1814_v12 = vadd.f32 %v1726_v62, %v7999_v38 }
 0x257   : > { %v2008_v32 = vadd.f32 %v1920_v31, %v1814_v12 }
 0x259   : > { %v5836_v51 = vadd.f32 %v2114_v2, %v2008_v32  ;;  %1776 = vmatmul.f32.gmra.mxu2 %v8000_v4  ;;  %v2117_v49 = vpop.f32.mrf.mxu0  ;;  %v8006_v32 = vld [vmem:[#allocation27_spill] sm:$0xff]  ;;  %v8007_v4 = vld [vmem:[#allocation29_spill] sm:$0xff] }
 0x25a   : > { %1970 = vmatmul.f32.gmra.mxu3 %v5616_v8  ;;  %v8003_v8 = vld [vmem:[#allocation21_spill] sm:$0xff] }
 0x25c   : > { %v1729_v48 = vpop.f32.mrf.mxu2  ;;  %2164 = vmatmul.f32.gmra.mxu0 %v5618_v14  ;;  %v5850_v14 = vpop.f32.mrf.mxu1 }
 0x25d   : > { %v1923_v61 = vpop.f32.mrf.mxu3  ;;  %v1815_v29 = vadd.f32 %v1729_v48, %v8001_v28  ;;  %v8008_v28 = vld [vmem:[#allocation32_spill] sm:$0xff] }
 0x25f   : > { %v2009_v57 = vadd.f32 %v1923_v61, %v1815_v29 }
 0x261   : > { %v5844_v15 = vadd.f32 %v2117_v49, %v2009_v57  ;;  %1779 = vmatmul.f32.gmra.mxu2 %v8002_v63  ;;  %v2120_v42 = vpop.f32.mrf.mxu0 }
 0x262   : > { %1973 = vmatmul.f32.gmra.mxu3 %v5630_v30  ;;  %v8005_v30 = vld [vmem:[#allocation24_spill] sm:$0xff] }
 0x264   : > { %v1732_v55 = vpop.f32.mrf.mxu2  ;;  %2167 = vmatmul.f32.gmra.mxu0 %v5635_v39  ;;  %v5864_v48 = vpop.f32.mrf.mxu1 }
 0x265   : > { %v1926_v50 = vpop.f32.mrf.mxu3  ;;  %v1816_v3 = vadd.f32 %v1732_v55, %v8003_v8  ;;  %v529_v8 = vld [vmem:[#allocation2 + $0x1a7] sm:$0x1] }
 0x266   : > { %547 = vst [vmem:[#allocation2 + $0x1a9] sm:$0x1] %v529_v8 }
 0x267   : > { %v2010_v43 = vadd.f32 %v1926_v50, %v1816_v3 }
 0x269   : > { %v5852_v56 = vadd.f32 %v2120_v42, %v2010_v43  ;;  %1782 = vmatmul.f32.gmra.mxu2 %v5645_v10  ;;  %v2123_v2 = vpop.f32.mrf.mxu0 }
 0x26a   : > { %1976 = vmatmul.f32.gmra.mxu3 %v8004_v18 }
 0x26c   : > { %v1735_v62 = vpop.f32.mrf.mxu2  ;;  %2170 = vmatmul.f32.gmra.mxu0 %v5653_v58  ;;  %v493_v58 = vld [vmem:[#allocation2 + $0x19a] sm:$0x1]  ;;  %v5880_v42 = vpop.f32.mrf.mxu1 }
 0x26d   : > { %v1929_v31 = vpop.f32.mrf.mxu3  ;;  %v1817_v38 = vadd.f32 %v1735_v62, %v8005_v30  ;;  %511 = vst [vmem:[#allocation2 + $0x198] sm:$0x1] %v493_v58  ;;  %v8010_v62 = vld [vmem:[#allocation36_spill] sm:$0xff]  ;;  %v8012_v30 = vld [vmem:[#allocation30_spill] sm:$0xff] }
 0x26e   : > { %v2066_v58 = vld [vmem:[#allocation2 + $0x19a] sm:$0xff] }
 0x26f   : > { %v2011_v12 = vadd.f32 %v1929_v31, %v1817_v38  ;;  %v8011_v31 = vld [vmem:[#allocation37_spill] sm:$0xff] }
 0x271   : > { %v5858_v39 = vadd.f32 %v2123_v2, %v2011_v12  ;;  %1785 = vmatmul.f32.gmra.mxu2 %v8006_v32  ;;  %v5862_v49 = vpop.f32.mrf.mxu0 }
 0x272   : > { %1979 = vmatmul.f32.gmra.mxu3 %v8007_v4 }
 0x274   : > { %v5866_v10 = vpop.f32.mrf.mxu2  ;;  %2173 = vmatmul.f32.gmra.mxu0 %v5673_v1  ;;  %v5891_v50 = vpop.f32.mrf.mxu1  ;;  %v1678_v32 = vld [vmem:[#allocation2 + $0x198] sm:$0xff] }
 0x275   : > { %v5868_v61 = vpop.f32.mrf.mxu3 }
 0x279   : > { %1788 = vmatmul.f32.gmra.mxu2 %v5684_v11  ;;  %v5873_v29 = vpop.f32.mrf.mxu0 }
 0x27a   : > { %1982 = vmatmul.f32.gmra.mxu3 %v8008_v28 }
 0x27c   : > { %v5875_v57 = vpop.f32.mrf.mxu2  ;;  %2176 = vmatmul.f32.gmra.mxu0 %v5692_v53  ;;  %v5902_v43 = vpop.f32.mrf.mxu1 }
 0x27d   : > { %v5877_v63 = vpop.f32.mrf.mxu3 }
 0x281   : > { %1791 = vmatmul.f32.gmra.mxu2 %v5698_v21  ;;  %v5884_v1 = vpop.f32.mrf.mxu0 }
 0x282   : > { %1985 = vmatmul.f32.gmra.mxu3 %v5657_v17 }
 0x284   : > { %v5886_v11 = vpop.f32.mrf.mxu2  ;;  %2179 = vmatmul.f32.gmra.mxu0 %v5704_v13  ;;  %v8009_v13 = vld [vmem:[#allocation23_spill] sm:$0xff]  ;;  %v5919_v38 = vpop.f32.mrf.mxu1 }
 0x285   : > { %v5888_v55 = vpop.f32.mrf.mxu3 }
 0x289   : > { %1794 = vmatmul.f32.gmra.mxu2 %v5710_v52  ;;  %v5895_v53 = vpop.f32.mrf.mxu0 }
 0x28a   : > { %1988 = vmatmul.f32.gmra.mxu3 %v5679_v6 }
 0x28c   : > { %v5897_v21 = vpop.f32.mrf.mxu2  ;;  %2182 = vmatmul.f32.gmra.mxu0 %v5716_v0 }
 0x28d   : > { %v5899_v3 = vpop.f32.mrf.mxu3 }
 0x291   : > { %1797 = vmatmul.f32.gmra.mxu2 %v5722_v37  ;;  %v5907_v52 = vpop.f32.mrf.mxu0 }
 0x292   : > { %4961 = vmatmul.msk.f32.gmra.mxu3 %vm399_vm0, %v8009_v13  ;;  %v5933_v13 = vpop.f32.mrf.mxu1 }
 0x294   : > { %v5909_v18 = vpop.f32.mrf.mxu2  ;;  %2185 = vmatmul.f32.gmra.mxu0 %v8010_v62  ;;  %v2768_v62 = vld [vmem:[#allocation5 + $0xf8] sm:$0xff] }
 0x295   : > { %v5911_v2 = vpop.f32.mrf.mxu3  ;;  %2769 = vmatpush.msra.mxu1 %v2768_v62  ;;  %v2767_v62 = vld [vmem:[#allocation5 + $0xf0] sm:$0xff] }
 0x297   : > { %2770 = vmatpush.msra.mxu1 %v2767_v62 }
 0x299   : > { %1800 = vmatmul.f32.gmra.mxu2 %v8011_v31  ;;  %v5917_v0 = vpop.f32.mrf.mxu0  ;;  %v1679_v31 = vld [vmem:[#allocation2 + $0x1a0] sm:$0xff]  ;;  %2771 = vmatpush.msra.mxu1 %v2766_v7 }
 0x29a   : > { %4962 = vmatmul.msk.f32.gmra.mxu3 %vm399_vm0, %v8012_v30  ;;  %v2067_v30 = vld [vmem:[#allocation2 + $0x1a2] sm:$0xff]  ;;  %v5942_v54 = vpop.f32.mrf.mxu1  ;;  %v5985_v7 = vld [vmem:[%s7921_s2] ss:$0 sm:$0xff] }
 0x29c   : > { %v5921_v37 = vpop.f32.mrf.mxu2  ;;  %2188 = vmatmul.f32.gmra.mxu0 %v5741_v35 }
 0x29d   : > { %v5923_v12 = vpop.f32.mrf.mxu3 }
 0x2a1   : > { %1803 = vmatmul.f32.gmra.mxu2 %v1678_v32  ;;  %v5927_v4 = vpop.f32.mrf.mxu0 }
 0x2a2   : > { %1997 = vmatmul.f32.gmra.mxu3 %v5657_v17 }
 0x2a4   : > { %v5929_v28 = vpop.f32.mrf.mxu2  ;;  %2191 = vmatmul.f32.gmra.mxu0 %v2066_v58 }
 0x2a5   : > { %v5931_v8 = vpop.f32.mrf.mxu3 }
 0x2a9   : > { %1806 = vmatmul.f32.gmra.mxu2 %v1679_v31  ;;  %v5936_v35 = vpop.f32.mrf.mxu0  ;;  %v5950_v31 = vpop.f32.mrf.mxu1 }
 0x2aa   : > { %2000 = vmatmul.f32.gmra.mxu3 %v5679_v6  ;;  %8014 = vst [vmem:[#allocation12_spill] sm:$0xff] %v5950_v31 }
 0x2ac   : > { %v5938_v17 = vpop.f32.mrf.mxu2  ;;  %2194 = vmatmul.f32.gmra.mxu0 %v2067_v30 }
 0x2ad   : > { %v5940_v32 = vpop.f32.mrf.mxu3 }
 0x2b1   : > { %v5944_v24 = vpop.f32.mrf.mxu0  ;;  %v5960_v30 = vpop.f32.mrf.mxu1 }
 0x2b2   : > { %8013 = vst [vmem:[#allocation10_spill] sm:$0xff] %v5944_v24 }
 0x2b3   : > { %8017 = vst [vmem:[#allocation16_spill] sm:$0xff] %v5960_v30  ;;  %v2765_v30 = vld [vmem:[#allocation5 + $0xe0] sm:$0xff] }
 0x2b4   : > { %v5946_v58 = vpop.f32.mrf.mxu2  ;;  %2772 = vmatpush.msra.mxu1 %v2765_v30  ;;  %v8031_v30 = vld [vmem:[#allocation28_spill] sm:$0xff] }
 0x2b5   : > { %v5948_v27 = vpop.f32.mrf.mxu3 }
 0x2b9   : > { %v5952_v6 = vpop.f32.mrf.mxu0 }
 0x2ba   : > { %8015 = vst [vmem:[#allocation14_spill] sm:$0xff] %v5952_v6  ;;  %v5972_v6 = vpop.f32.mrf.mxu1 }
 0x2bb   : > { %8022 = vst [vmem:[#allocation19_spill] sm:$0xff] %v5972_v6 }
 0x2bc   : > { %v5954_v22 = vpop.f32.mrf.mxu2 }
 0x2bd   : > { %v5956_v23 = vpop.f32.mrf.mxu3 }
 0x2c1   : > { %v5958_v20 = vpop.f32.mrf.mxu0 }
 0x2c2   : > { %8016 = vst [vmem:[#allocation13_spill] sm:$0xff] %v5958_v20  ;;  %v5980_v34 = vpop.f32.mrf.mxu1 }
 0x2c3   : > { %8026 = vst [vmem:[#allocation24_spill] sm:$0xff] %v5980_v34  ;;  %v1625_v34 = vadd.f32 %v5824_v5, %v8031_v30 }
 0x2c4   : > { %v5962_v47 = vpop.f32.mrf.mxu2 }
 0x2c5   : > { %v5964_v16 = vpop.f32.mrf.mxu3  ;;  %v1819_v5 = vadd.f32 %v5875_v57, %v1625_v34  ;;  %v6035_v34 = vadd.f32 %v5985_v7, %v5844_v15 }
 0x2c6   : > { %8018 = vst [vmem:[#allocation15_spill] sm:$0xff] %v5964_v16  ;;  %v6003_v16 = vadd.f32 %v5985_v7, %v5806_v41  ;;  %v8033_v41 = vld [vmem:[#allocation33_spill] sm:$0xff] }
 0x2c7   : > { %v1627_v30 = vadd.f32 %v5842_v19, %v8033_v41  ;;  %v2013_v19 = vadd.f32 %v5877_v63, %v1819_v5  ;;  %v2764_v63 = vld [vmem:[#allocation5 + $0xd8] sm:$0xff]  ;;  %v8035_v5 = vld [vmem:[#allocation35_spill] sm:$0xff] }
 0x2c8   : > { %2773 = vmatpush.msra.mxu1 %v2764_v63  ;;  %v1633_v63 = vadd.f32 %v5919_v38, %v5754_v33 }
 0x2c9   : > { %v5966_v44 = vpop.f32.mrf.mxu0  ;;  %v1821_v57 = vadd.f32 %v5897_v21, %v1627_v30  ;;  %v1629_v21 = vadd.f32 %v5864_v48, %v8035_v5 }
 0x2ca   : > { %8019 = vst [vmem:[#allocation18_spill] sm:$0xff] %v5966_v44  ;;  %v1827_v33 = vadd.f32 %v5954_v22, %v1633_v63 }
 0x2cc   : > { %v5968_v62 = vpop.f32.mrf.mxu2 }
 0x2cd   : > { %8020 = vst [vmem:[#allocation17_spill] sm:$0xff] %v5968_v62  ;;  %v5970_v25 = vpop.f32.mrf.mxu3  ;;  %v6021_v62 = vpop.f32.mrf.mxu1 }
 0x2ce   : > { %8021 = vst [vmem:[#allocation20_spill] sm:$0xff] %v5970_v25  ;;  %v8028_v25 = vld [vmem:[#allocation25_spill] sm:$0xff] }
 0x2cf   : > { %v1624_v6 = vadd.f32 %v5812_v36, %v8028_v25  ;;  %v8032_v36 = vld [vmem:[#allocation31_spill] sm:$0xff] }
 0x2d1   : > { %v5974_v24 = vpop.f32.mrf.mxu0  ;;  %v1818_v25 = vadd.f32 %v5866_v10, %v1624_v6  ;;  %v6026_v10 = vadd.f32 %v5985_v7, %v5836_v51 }
 0x2d2   : > { %8023 = vst [vmem:[#allocation22_spill] sm:$0xff] %v5974_v24  ;;  %v5993_v24 = vadd.f32 %v5985_v7, %v5814_v26  ;;  %v1626_v26 = vadd.f32 %v5833_v45, %v8032_v36 }
 0x2d3   : > { %v2012_v45 = vadd.f32 %v5868_v61, %v1818_v25  ;;  %v6048_v25 = vadd.f32 %v5985_v7, %v5852_v56  ;;  %v2207_v56 = vadd.f32 %v5873_v29, %v2013_v19 }
 0x2d4   : > { %v5976_v31 = vpop.f32.mrf.mxu2  ;;  %v1820_v6 = vadd.f32 %v5886_v11, %v1626_v26 }
 0x2d5   : > { %8024 = vst [vmem:[#allocation21_spill] sm:$0xff] %v5976_v31  ;;  %v5978_v20 = vpop.f32.mrf.mxu3  ;;  %v2206_v15 = vadd.f32 %v5862_v49, %v2012_v45  ;;  %v8036_v49 = vld [vmem:[#allocation38_spill] sm:$0xff]  ;;  %v1823_v45 = vadd.f32 %v5921_v37, %v1629_v21  ;;  %v6076_v19 = vpop.f32.mrf.mxu1  ;;  %v6080_v37 = vadd.f32 %v5985_v7, %v2207_v56 }
 0x2d6   : > { %8025 = vst [vmem:[#allocation26_spill] sm:$0xff] %v5978_v20  ;;  %v2014_v26 = vadd.f32 %v5888_v55, %v1820_v6  ;;  %v1630_v55 = vadd.f32 %v5880_v42, %v8036_v49 }
 0x2d8   : > { %v2208_v6 = vadd.f32 %v5884_v1, %v2014_v26  ;;  %v1632_v1 = vadd.f32 %v5902_v43, %v5751_v60 }
 0x2d9   : > { %v5987_v44 = vpop.f32.mrf.mxu0 }
 0x2da   : > { %8027 = vst [vmem:[#allocation27_spill] sm:$0xff] %v5987_v44  ;;  %v6007_v44 = vadd.f32 %v5985_v7, %v5820_v40  ;;  %v6091_v26 = vadd.f32 %v5985_v7, %v2208_v6  ;;  %v1826_v60 = vadd.f32 %v5946_v58, %v1632_v1 }
 0x2dc   : > { %v5995_v31 = vpop.f32.mrf.mxu2 }
 0x2dd   : > { %8029 = vst [vmem:[#allocation29_spill] sm:$0xff] %v5995_v31  ;;  %v5997_v20 = vpop.f32.mrf.mxu3  ;;  %v2267_v31 = vadd.f32 %v5993_v24, %v6003_v16 }
 0x2de   : > { %8030 = vst [vmem:[#allocation32_spill] sm:$0xff] %v5997_v20  ;;  %v6016_v20 = vadd.f32 %v5985_v7, %v5828_v46 }
 0x2df   : > { %v2268_v40 = vadd.f32 %v2267_v31, %v6007_v44  ;;  %v8034_v31 = vld [vmem:[#allocation34_spill] sm:$0xff] }
 0x2e0   : > { %v1628_v51 = vadd.f32 %v5850_v14, %v8034_v31 }
 0x2e1   : > { %v6030_v36 = vpop.f32.mrf.mxu0  ;;  %v2269_v46 = vadd.f32 %v2268_v40, %v6016_v20  ;;  %v6058_v40 = vadd.f32 %v5985_v7, %v5858_v39  ;;  %v8037_v39 = vld [vmem:[#allocation39_spill] sm:$0xff] }
 0x2e2   : > { %v1822_v14 = vadd.f32 %v5909_v18, %v1628_v51  ;;  %v6067_v18 = vadd.f32 %v5985_v7, %v2206_v15  ;;  %v1631_v51 = vadd.f32 %v5891_v50, %v8037_v39  ;;  %v8041_v39 = vld [vmem:[#allocation10_spill] sm:$0xff] }
 0x2e3   : > { %v2270_v11 = vadd.f32 %v2269_v46, %v6026_v10  ;;  %v2015_v46 = vadd.f32 %v5899_v3, %v1821_v57  ;;  %v1824_v3 = vadd.f32 %v5929_v28, %v1630_v55  ;;  %v8039_v55 = vld [vmem:[#allocation40_spill] sm:$0xff] }
 0x2e4   : > { %v6041_v41 = vpop.f32.mrf.mxu2  ;;  %v2016_v29 = vadd.f32 %v5911_v2, %v1822_v14  ;;  %v1825_v50 = vadd.f32 %v5938_v17, %v1631_v51  ;;  %v1634_v17 = vadd.f32 %v5933_v13, %v5757_v9  ;;  %v2020_v9 = vadd.f32 %v5948_v27, %v1826_v60  ;;  %v2763_v27 = vld [vmem:[#allocation5 + $0xd0] sm:$0xff]  ;;  %v8048_v60 = vld [vmem:[#allocation42_spill] sm:$0xff] }
 0x2e5   : > { %v6043_v61 = vpop.f32.mrf.mxu3  ;;  %v2271_v30 = vadd.f32 %v2270_v11, %v6035_v34  ;;  %v2209_v57 = vadd.f32 %v5895_v53, %v2015_v46  ;;  %v2017_v11 = vadd.f32 %v5923_v12, %v1823_v45  ;;  %v2018_v5 = vadd.f32 %v5931_v8, %v1824_v3  ;;  %v8040_v45 = vld [vmem:[#allocation12_spill] sm:$0xff]  ;;  %2774 = vmatpush.msra.mxu1 %v2763_v27 }
 0x2e6   : > { %v2210_v53 = vadd.f32 %v5907_v52, %v2016_v29  ;;  %v2019_v14 = vadd.f32 %v5940_v32, %v1825_v50  ;;  %v1635_v52 = vadd.f32 %v5942_v54, %v5760_v59  ;;  %v2021_v54 = vadd.f32 %v5956_v23, %v1827_v33  ;;  %v8038_v32 = vld [vmem:[#allocation17_spill] sm:$0xff]  ;;  %v8042_v29 = vld [vmem:[#allocation15_spill] sm:$0xff]  ;;  %v8044_v3 = vld [vmem:[#allocation16_spill] sm:$0xff] }
 0x2e7   : > { %v2272_v48 = vadd.f32 %v2271_v30, %v6048_v25  ;;  %v6100_v12 = vadd.f32 %v5985_v7, %v2209_v57  ;;  %v2211_v21 = vadd.f32 %v5917_v0, %v2017_v11  ;;  %v2212_v30 = vadd.f32 %v5927_v4, %v2018_v5  ;;  %v8043_v23 = vld [vmem:[#allocation41_spill] sm:$0xff] }
 0x2e8   : > { %v6113_v58 = vadd.f32 %v5985_v7, %v2210_v53  ;;  %v1828_v0 = vadd.f32 %v5962_v47, %v1634_v17  ;;  %v2213_v59 = vadd.f32 %v5936_v35, %v2019_v14  ;;  %v1829_v56 = vadd.f32 %v8038_v32, %v1635_v52  ;;  %v8045_v57 = vld [vmem:[#allocation21_spill] sm:$0xff]  ;;  %v8047_v53 = vld [vmem:[#allocation20_spill] sm:$0xff]  ;;  %v8054_v32 = vld [vmem:[#allocation26_spill] sm:$0xff] }
 0x2e9   : > { %v6070_v31 = vpop.f32.mrf.mxu0  ;;  %v2273_v42 = vadd.f32 %v2272_v48, %v6058_v40  ;;  %v6120_v22 = vadd.f32 %v5985_v7, %v2211_v21  ;;  %v1636_v4 = vadd.f32 %v8040_v45, %v8039_v55  ;;  %v1598_v48 = vpop.f32.mrf.mxu1  ;;  %v6129_v6 = vadd.f32 %v5985_v7, %v2212_v30  ;;  %v8050_v21 = vld [vmem:[#allocation29_spill] sm:$0xff] }
 0x2ea   : > { %v2214_v51 = vadd.f32 %v8041_v39, %v2020_v9  ;;  %v2022_v35 = vadd.f32 %v8042_v29, %v1828_v0  ;;  %v6138_v50 = vadd.f32 %v5985_v7, %v2213_v59  ;;  %v2023_v5 = vadd.f32 %v8047_v53, %v1829_v56  ;;  %v8051_v30 = vld [vmem:[#allocation13_spill] sm:$0xff]  ;;  %v8052_v0 = vld [vmem:[#allocation43_spill] sm:$0xff] }
 0x2eb   : > { %v2274_v28 = vadd.f32 %v2273_v42, %v6067_v18  ;;  %v1637_v42 = vadd.f32 %v8044_v3, %v8043_v23  ;;  %v1830_v1 = vadd.f32 %v8045_v57, %v1636_v4  ;;  %v8055_v4 = vld [vmem:[#allocation18_spill] sm:$0xff] }
 0x2ec   : > { %v1783_v15 = vpop.f32.mrf.mxu2  ;;  %v2216_v9 = vadd.f32 %v8051_v30, %v2022_v35  ;;  %v2217_v27 = vadd.f32 %v8055_v4, %v2023_v5  ;;  %v8057_v35 = vld [vmem:[#allocation32_spill] sm:$0xff] }
 0x2ed   : > { %v6087_v2 = vpop.f32.mrf.mxu3  ;;  %v2275_v43 = vadd.f32 %v2274_v28, %v6080_v37  ;;  %v8046_v28 = vld [vmem:[#allocation14_spill] sm:$0xff]  ;;  %v1831_v14 = vadd.f32 %v8050_v21, %v1637_v42 }
 0x2ee   : > { %v2215_v63 = vadd.f32 %v8046_v28, %v2021_v54  ;;  %v2024_v54 = vadd.f32 %v8054_v32, %v1830_v1  ;;  %v6164_v57 = vadd.f32 %v5985_v7, %v2216_v9  ;;  %v8059_v28 = vld [vmem:[#allocation22_spill] sm:$0xff] }
 0x2ef   : > { %v2276_v38 = vadd.f32 %v2275_v43, %v6091_v26  ;;  %v8049_v43 = vld [vmem:[#allocation19_spill] sm:$0xff]  ;;  %v2025_v23 = vadd.f32 %v8057_v35, %v1831_v14 }
 0x2f0   : > { %v1638_v17 = vadd.f32 %v8049_v43, %v8048_v60  ;;  %v6156_v45 = vadd.f32 %v5985_v7, %v2215_v63  ;;  %v2218_v63 = vadd.f32 %v8059_v28, %v2024_v54 }
 0x2f1   : > { %v6110_v8 = vpop.f32.mrf.mxu0  ;;  %v2277_v13 = vadd.f32 %v2276_v38, %v6100_v12  ;;  %v6147_v38 = vadd.f32 %v5985_v7, %v2214_v51  ;;  %v8056_v51 = vld [vmem:[#allocation44_spill] sm:$0xff] }
 0x2f2   : > { %v1832_v56 = vadd.f32 %v6041_v41, %v1638_v17  ;;  %v1640_v29 = vadd.f32 %v6021_v62, %v8056_v51  ;;  %v8058_v41 = vld [vmem:[#allocation45_spill] sm:$0xff]  ;;  %v6172_v62 = vadd.f32 %v5985_v7, %v2217_v27  ;;  %v6179_v9 = vadd.f32 %v5985_v7, %v2218_v63 }
 0x2f3   : > { %v2278_v47 = vadd.f32 %v2277_v13, %v6113_v58  ;;  %v8053_v13 = vld [vmem:[#allocation24_spill] sm:$0xff]  ;;  %v1641_v1 = vadd.f32 %v6076_v19, %v8058_v41  ;;  %v8061_v19 = vld [vmem:[#allocation46_spill] sm:$0xff] }
 0x2f4   : > { %v1786_v46 = vpop.f32.mrf.mxu2  ;;  %v1639_v59 = vadd.f32 %v8053_v13, %v8052_v0  ;;  %v2026_v53 = vadd.f32 %v6043_v61, %v1832_v56  ;;  %v1642_v30 = vadd.f32 %v1598_v48, %v8061_v19 }
 0x2f5   : > { %v1980_v49 = vpop.f32.mrf.mxu3  ;;  %v2279_v11 = vadd.f32 %v2278_v47, %v6120_v22  ;;  %v1834_v5 = vadd.f32 %v1786_v46, %v1640_v29 }
 0x2f6   : > { %v1833_v3 = vadd.f32 %v1783_v15, %v1639_v59  ;;  %v8060_v15 = vld [vmem:[#allocation27_spill] sm:$0xff]  ;;  %v2220_v61 = vadd.f32 %v6030_v36, %v2026_v53 }
 0x2f7   : > { %v2280_v52 = vadd.f32 %v2279_v11, %v6129_v6  ;;  %v1601_v11 = vpop.f32.mrf.mxu1  ;;  %v2219_v43 = vadd.f32 %v8060_v15, %v2025_v23  ;;  %v2028_v46 = vadd.f32 %v1980_v49, %v1834_v5 }
 0x2f8   : > { %v2027_v17 = vadd.f32 %v6087_v2, %v1833_v3  ;;  %v6189_v4 = vadd.f32 %v5985_v7, %v2220_v61 }
 0x2f9   : > { %v2177_v33 = vpop.f32.mrf.mxu0  ;;  %v2281_v55 = vadd.f32 %v2280_v52, %v6138_v50  ;;  %v6184_v32 = vadd.f32 %v5985_v7, %v2219_v43  ;;  %v2222_v36 = vadd.f32 %v6110_v8, %v2028_v46  ;;  %v8063_v43 = vld [vmem:[#allocation48_spill] sm:$0xff] }
 0x2fa   : > { %v2221_v2 = vadd.f32 %v6070_v31, %v2027_v17 }
 0x2fb   : > { %v2282_v42 = vadd.f32 %v2281_v55, %v6147_v38  ;;  %v2762_v55 = vld [vmem:[#allocation5 + $0xc8] sm:$0xff]  ;;  %v6199_v3 = vadd.f32 %v5985_v7, %v2222_v36 }
 0x2fc   : > { %v1789_v47 = vpop.f32.mrf.mxu2  ;;  %2775 = vmatpush.msra.mxu1 %v2762_v55  ;;  %v6194_v51 = vadd.f32 %v5985_v7, %v2221_v2  ;;  %v8064_v2 = vld [vmem:[#allocation49_spill] sm:$0xff] }
 0x2fd   : > { %v1983_v39 = vpop.f32.mrf.mxu3  ;;  %v2283_v60 = vadd.f32 %v2282_v42, %v6156_v45  ;;  %v1835_v21 = vadd.f32 %v1789_v47, %v1641_v1 }
 0x2ff   : > { %v2284_v52 = vadd.f32 %v2283_v60, %v6164_v57  ;;  %v2029_v54 = vadd.f32 %v1983_v39, %v1835_v21  ;;  %v1604_v27 = vpop.f32.mrf.mxu1  ;;  %v8062_v39 = vld [vmem:[#allocation47_spill] sm:$0xff] }
 0x300   : > { %v1643_v35 = vadd.f32 %v1601_v11, %v8062_v39  ;;  %v1644_v17 = vadd.f32 %v1604_v27, %v8063_v43  ;;  %v5043_v43 = vmov 256.0  }
 0x301   : > { %v2180_v14 = vpop.f32.mrf.mxu0  ;;  %v2285_v0 = vadd.f32 %v2284_v52, %v6172_v62  ;;  %v2223_v29 = vadd.f32 %v2177_v33, %v2029_v54  ;;  %4871 = vrcp.f32 %v5043_v43 }
 0x303   : > { %v2286_v48 = vadd.f32 %v2285_v0, %v6179_v9  ;;  %v6203_v28 = vadd.f32 %v5985_v7, %v2223_v29 }
 0x304   : > { %v1792_v13 = vpop.f32.mrf.mxu2 }
 0x305   : > { %v1986_v59 = vpop.f32.mrf.mxu3  ;;  %v1836_v56 = vadd.f32 %v1792_v13, %v1642_v30  ;;  %v2287_v47 = vadd.f32 %v2286_v48, %v6184_v32 }
 0x307   : > { %v2030_v49 = vadd.f32 %v1986_v59, %v1836_v56  ;;  %v2288_v23 = vadd.f32 %v2287_v47, %v6189_v4  ;;  %v1607_v21 = vpop.f32.mrf.mxu1 }
 0x308   : > { %v1645_v54 = vadd.f32 %v1607_v21, %v8064_v2 }
 0x309   : > { %v2183_v31 = vpop.f32.mrf.mxu0  ;;  %v2224_v42 = vadd.f32 %v2180_v14, %v2030_v49  ;;  %v2289_v8 = vadd.f32 %v2288_v23, %v6194_v51 }
 0x30b   : > { %v2290_v53 = vadd.f32 %v2289_v8, %v6199_v3  ;;  %v2259_v33 = vadd.f32 %v5985_v7, %v2224_v42 }
 0x30c   : > { %v1795_v41 = vpop.f32.mrf.mxu2 }
 0x30d   : > { %v1989_v1 = vpop.f32.mrf.mxu3  ;;  %v1837_v63 = vadd.f32 %v1795_v41, %v1643_v35  ;;  %v2291_v11 = vadd.f32 %v2290_v53, %v6203_v28 }
 0x30f   : > { %v2031_v5 = vadd.f32 %v1989_v1, %v1837_v63  ;;  %v2292_v14 = vadd.f32 %v2291_v11, %v2259_v33  ;;  %v1610_v27 = vpop.f32.mrf.mxu1  ;;  %v8066_v11 = vld [vmem:[#allocation9_spill] sm:$0xff] }
 0x311   : > { %v2225_v60 = vadd.f32 %v2183_v31, %v2031_v5  ;;  %v2186_v15 = vpop.f32.mrf.mxu0  ;;  %v8065_v31 = vld [vmem:[#allocation11_spill] sm:$0xff] }
 0x312   : > { %v1646_v39 = vadd.f32 %v1610_v27, %v8065_v31 }
 0x313   : > { %v2260_v52 = vadd.f32 %v5985_v7, %v2225_v60 }
 0x314   : > { %v1798_v19 = vpop.f32.mrf.mxu2 }
 0x315   : > { %v1992_v30 = vpop.f32.mrf.mxu3  ;;  %v2293_v61 = vadd.f32 %v2292_v14, %v2260_v52  ;;  %v1838_v46 = vadd.f32 %v1798_v19, %v1644_v17 }
 0x317   : > { %v2032_v0 = vadd.f32 %v1992_v30, %v1838_v46  ;;  %v1613_v53 = vpop.f32.mrf.mxu1  ;;  %v4872_v46 = vpop.eup %4871 }
 0x318   : > { %v1647_v60 = vadd.f32 %v1613_v53, %v8066_v11  ;;  %vm2309_vm1 = vweird.f32 %v4872_v46 }
 0x319   : > { %v2226_v13 = vadd.f32 %v2186_v15, %v2032_v0  ;;  %v2189_v59 = vpop.f32.mrf.mxu0 }
 0x31b   : > { %v2261_v56 = vadd.f32 %v5985_v7, %v2226_v13 }
 0x31c   : > { %v1801_v55 = vpop.f32.mrf.mxu2 }
 0x31d   : > { %v1995_v48 = vpop.f32.mrf.mxu3  ;;  %v2294_v36 = vadd.f32 %v2293_v61, %v2261_v56  ;;  %v1839_v49 = vadd.f32 %v1801_v55, %v1645_v54 }
 0x31f   : > { %v2033_v47 = vadd.f32 %v1995_v48, %v1839_v49 }
 0x321   : > { %v2227_v29 = vadd.f32 %v2189_v59, %v2033_v47  ;;  %v2192_v23 = vpop.f32.mrf.mxu0  ;;  %v2305_v59 = vmul.f32 256.0, %v4872_v46 }
 0x323   : > { %v2262_v35 = vadd.f32 %v5985_v7, %v2227_v29  ;;  %v2306_v55 = vsub.f32 1.0, %v2305_v59 }
 0x324   : > { %v1804_v42 = vpop.f32.mrf.mxu2 }
 0x325   : > { %v1998_v41 = vpop.f32.mrf.mxu3  ;;  %v2295_v1 = vadd.f32 %v2294_v36, %v2262_v35  ;;  %v1840_v8 = vadd.f32 %v1804_v42, %v1646_v39  ;;  %v2307_v49 = vmul.f32 %v4872_v46, %v2306_v55 }
 0x327   : > { %v2034_v63 = vadd.f32 %v1998_v41, %v1840_v8  ;;  %v2308_v29 = vadd.f32 %v4872_v46, %v2307_v49 }
 0x329   : > { %v2228_v5 = vadd.f32 %v2192_v23, %v2034_v63  ;;  %v2195_v30 = vpop.f32.mrf.mxu0  ;;  %v6217_v39 = vsel %vm2309_vm1, %v4872_v46, %v2308_v29 }
 0x32a   : > { %8067 = vst [vmem:[#allocation23_spill] sm:$0xff] %v6217_v39 }
 0x32b   : > { %v2263_v15 = vadd.f32 %v5985_v7, %v2228_v5 }
 0x32c   : > { %v1807_v17 = vpop.f32.mrf.mxu2 }
 0x32d   : > { %v2001_v21 = vpop.f32.mrf.mxu3  ;;  %v2296_v14 = vadd.f32 %v2295_v1, %v2263_v15  ;;  %v1841_v19 = vadd.f32 %v1807_v17, %v1647_v60 }
 0x32f   : > { %v2035_v61 = vadd.f32 %v2001_v21, %v1841_v19 }
 0x331   : > { %v2229_v0 = vadd.f32 %v2195_v30, %v2035_v61 }
 0x333   : > { %v2264_v13 = vadd.f32 %v5985_v7, %v2229_v0 }
 0x335   : > { %v2297_v2 = vadd.f32 %v2296_v14, %v2264_v13 }
 0x337   : > { %v2298_v54 = vrot.slane %v2297_v2, 4 }
 0x339   : > { %v2299_v48 = vadd.f32 %v2298_v54, %v2297_v2 }
 0x33b   : > { %v2300_v36 = vrot.slane %v2299_v48, 2 }
 0x33d   : > { %v2301_v27 = vadd.f32 %v2300_v36, %v2299_v48 }
 0x33f   : > { %v2302_v47 = vrot.slane %v2301_v27, 1 }
 0x341   : > { %v2303_v31 = vadd.f32 %v2302_v47, %v2301_v27 }
 0x343   : > { %v6220_v23 = vmul.f32 %v6217_v39, %v2303_v31 }
 0x345   : > { %v6223_v42 = vsub.f32 %v2259_v33, %v6220_v23  ;;  %v6226_v7 = vsub.f32 %v2260_v52, %v6220_v23  ;;  %v6229_v41 = vsub.f32 %v2261_v56, %v6220_v23  ;;  %v6232_v1 = vsub.f32 %v2262_v35, %v6220_v23 }
 0x346   : > { %v6235_v8 = vsub.f32 %v2263_v15, %v6220_v23  ;;  %v6238_v63 = vsub.f32 %v2264_v13, %v6220_v23  ;;  %v6242_v53 = vsub.f32 %v6003_v16, %v6220_v23  ;;  %v6246_v33 = vsub.f32 %v5993_v24, %v6220_v23 }
 0x347   : > { %v6250_v52 = vsub.f32 %v6007_v44, %v6220_v23  ;;  %v6258_v5 = vsub.f32 %v6016_v20, %v6220_v23  ;;  %v6262_v16 = vsub.f32 %v6026_v10, %v6220_v23  ;;  %v6268_v44 = vsub.f32 %v6035_v34, %v6220_v23 }
 0x348   : > { %v2344_v56 = vmul.f32 %v6242_v53, %v6242_v53  ;;  %v2345_v35 = vmul.f32 %v6246_v33, %v6246_v33  ;;  %v6274_v20 = vsub.f32 %v6048_v25, %v6220_v23  ;;  %v6280_v17 = vsub.f32 %v6058_v40, %v6220_v23 }
 0x349   : > { %v2346_v24 = vmul.f32 %v6250_v52, %v6250_v52  ;;  %v2347_v60 = vmul.f32 %v6258_v5, %v6258_v5  ;;  %v2348_v10 = vmul.f32 %v6262_v16, %v6262_v16  ;;  %v2349_v34 = vmul.f32 %v6268_v44, %v6268_v44 }
 0x34a   : > { %v2376_v11 = vadd.f32 %v2345_v35, %v2344_v56  ;;  %v6286_v14 = vsub.f32 %v6067_v18, %v6220_v23  ;;  %v2350_v25 = vmul.f32 %v6274_v20, %v6274_v20  ;;  %v6292_v30 = vsub.f32 %v6080_v37, %v6220_v23 }
 0x34b   : > { %v2351_v40 = vmul.f32 %v6280_v17, %v6280_v17  ;;  %v6298_v46 = vsub.f32 %v6091_v26, %v6220_v23  ;;  %v6304_v13 = vsub.f32 %v6100_v12, %v6220_v23  ;;  %v6310_v2 = vsub.f32 %v6113_v58, %v6220_v23 }
 0x34c   : > { %v2377_v15 = vadd.f32 %v2376_v11, %v2346_v24  ;;  %v2352_v18 = vmul.f32 %v6286_v14, %v6286_v14  ;;  %v2353_v37 = vmul.f32 %v6292_v30, %v6292_v30  ;;  %v6316_v55 = vsub.f32 %v6120_v22, %v6220_v23 }
 0x34d   : > { %v2354_v26 = vmul.f32 %v6298_v46, %v6298_v46  ;;  %v2355_v12 = vmul.f32 %v6304_v13, %v6304_v13  ;;  %v6322_v36 = vsub.f32 %v6129_v6, %v6220_v23  ;;  %v2356_v58 = vmul.f32 %v6310_v2, %v6310_v2 }
 0x34e   : > { %v2378_v43 = vadd.f32 %v2377_v15, %v2347_v60  ;;  %v6328_v27 = vsub.f32 %v6138_v50, %v6220_v23  ;;  %v2357_v22 = vmul.f32 %v6316_v55, %v6316_v55  ;;  %v6334_v29 = vsub.f32 %v6147_v38, %v6220_v23 }
 0x34f   : > { %v2358_v6 = vmul.f32 %v6322_v36, %v6322_v36  ;;  %v6340_v56 = vsub.f32 %v6156_v45, %v6220_v23  ;;  %v6346_v24 = vsub.f32 %v6164_v57, %v6220_v23  ;;  %v6352_v60 = vsub.f32 %v6172_v62, %v6220_v23 }
 0x350   : > { %v2379_v21 = vadd.f32 %v2378_v43, %v2348_v10  ;;  %v2359_v50 = vmul.f32 %v6328_v27, %v6328_v27  ;;  %v2360_v38 = vmul.f32 %v6334_v29, %v6334_v29  ;;  %v6358_v10 = vsub.f32 %v6179_v9, %v6220_v23 }
 0x351   : > { %v2361_v45 = vmul.f32 %v6340_v56, %v6340_v56  ;;  %v2362_v57 = vmul.f32 %v6346_v24, %v6346_v24  ;;  %v2363_v62 = vmul.f32 %v6352_v60, %v6352_v60 }
 0x352   : > { %v2380_v19 = vadd.f32 %v2379_v21, %v2349_v34  ;;  %v6364_v34 = vsub.f32 %v6184_v32, %v6220_v23  ;;  %v2364_v9 = vmul.f32 %v6358_v10, %v6358_v10 }
 0x354   : > { %v2381_v61 = vadd.f32 %v2380_v19, %v2350_v25  ;;  %v6370_v25 = vsub.f32 %v6189_v4, %v6220_v23  ;;  %v2365_v32 = vmul.f32 %v6364_v34, %v6364_v34 }
 0x356   : > { %v2382_v0 = vadd.f32 %v2381_v61, %v2351_v40  ;;  %v6376_v40 = vsub.f32 %v6194_v51, %v6220_v23  ;;  %v2366_v4 = vmul.f32 %v6370_v25, %v6370_v25 }
 0x358   : > { %v2383_v59 = vadd.f32 %v2382_v0, %v2352_v18  ;;  %v6382_v18 = vsub.f32 %v6199_v3, %v6220_v23  ;;  %v2367_v51 = vmul.f32 %v6376_v40, %v6376_v40 }
 0x35a   : > { %v2384_v54 = vadd.f32 %v2383_v59, %v2353_v37  ;;  %v6388_v37 = vsub.f32 %v6203_v28, %v6220_v23  ;;  %v2371_v28 = vmul.f32 %v6226_v7, %v6226_v7 }
 0x35c   : > { %v2385_v48 = vadd.f32 %v2384_v54, %v2354_v26  ;;  %v2368_v26 = vmul.f32 %v6382_v18, %v6382_v18  ;;  %v2369_v3 = vmul.f32 %v6388_v37, %v6388_v37 }
 0x35e   : > { %v2386_v49 = vadd.f32 %v2385_v48, %v2355_v12  ;;  %v2370_v48 = vmul.f32 %v6223_v42, %v6223_v42 }
 0x360   : > { %v2387_v47 = vadd.f32 %v2386_v49, %v2356_v58  ;;  %v2372_v49 = vmul.f32 %v6229_v41, %v6229_v41 }
 0x362   : > { %v2388_v31 = vadd.f32 %v2387_v47, %v2357_v22  ;;  %v2373_v47 = vmul.f32 %v6232_v1, %v6232_v1 }
 0x364   : > { %v2389_v35 = vadd.f32 %v2388_v31, %v2358_v6  ;;  %v2374_v31 = vmul.f32 %v6235_v8, %v6235_v8 }
 0x366   : > { %v2390_v11 = vadd.f32 %v2389_v35, %v2359_v50  ;;  %v2375_v35 = vmul.f32 %v6238_v63, %v6238_v63 }
 0x368   : > { %v2391_v15 = vadd.f32 %v2390_v11, %v2360_v38 }
 0x36a   : > { %v2392_v43 = vadd.f32 %v2391_v15, %v2361_v45 }
 0x36c   : > { %v2393_v21 = vadd.f32 %v2392_v43, %v2362_v57 }
 0x36e   : > { %v2394_v19 = vadd.f32 %v2393_v21, %v2363_v62 }
 0x370   : > { %v2395_v61 = vadd.f32 %v2394_v19, %v2364_v9 }
 0x372   : > { %v2396_v0 = vadd.f32 %v2395_v61, %v2365_v32  ;;  %v2761_v32 = vld [vmem:[#allocation5 + $0xc0] sm:$0xff] }
 0x373   : > { %2776 = vmatpush.msra.mxu1 %v2761_v32 }
 0x374   : > { %v2397_v59 = vadd.f32 %v2396_v0, %v2366_v4 }
 0x376   : > { %v2398_v54 = vadd.f32 %v2397_v59, %v2367_v51 }
 0x378   : > { %v2399_v12 = vadd.f32 %v2398_v54, %v2368_v26  ;;  %v6412_v54 = vld [vmem:[%s7922_s3] ss:$0 sm:$0xff] }
 0x37a   : > { %v2400_v58 = vadd.f32 %v2399_v12, %v2369_v3  ;;  %v6419_v12 = vld [vmem:[%s7923_s4] ss:$0 sm:$0xff] }
 0x37c   : > { %v2401_v23 = vadd.f32 %v2400_v58, %v2370_v48  ;;  %v3043_v58 = vld [vmem:[#allocation5 + $0x178] sm:$0xff] }
 0x37d   : > { %3044 = vmatpush.msrb.mxu3 %v3043_v58 }
 0x37e   : > { %v2402_v22 = vadd.f32 %v2401_v23, %v2371_v28  ;;  %v3042_v23 = vld [vmem:[#allocation5 + $0x170] sm:$0xff] }
 0x37f   : > { %3045 = vmatpush.msrb.mxu3 %v3042_v23 }
 0x380   : > { %v2403_v6 = vadd.f32 %v2402_v22, %v2372_v49  ;;  %v3041_v22 = vld [vmem:[#allocation5 + $0x168] sm:$0xff] }
 0x381   : > { %3046 = vmatpush.msrb.mxu3 %v3041_v22 }
 0x382   : > { %v2404_v50 = vadd.f32 %v2403_v6, %v2373_v47  ;;  %v3040_v6 = vld [vmem:[#allocation5 + $0x160] sm:$0xff] }
 0x383   : > { %3047 = vmatpush.msrb.mxu3 %v3040_v6 }
 0x384   : > { %v2405_v38 = vadd.f32 %v2404_v50, %v2374_v31  ;;  %v2760_v31 = vld [vmem:[#allocation5 + $0xb8] sm:$0xff] }
 0x385   : > { %v3237_v50 = vld [vmem:[#allocation5 + $0x1f8] sm:$0xff]  ;;  %2777 = vmatpush.msra.mxu1 %v2760_v31  ;;  %v3038_v31 = vld [vmem:[#allocation5 + $0x150] sm:$0xff] }
 0x386   : > { %v2406_v11 = vadd.f32 %v2405_v38, %v2375_v35  ;;  %v2759_v35 = vld [vmem:[#allocation5 + $0xb0] sm:$0xff]  ;;  %3238 = vmatpush.msrb.mxu0 %v3237_v50 }
 0x387   : > { %2778 = vmatpush.msra.mxu1 %v2759_v35  ;;  %v3232_v50 = vld [vmem:[#allocation5 + $0x1d0] sm:$0xff] }
 0x388   : > { %v2407_v45 = vrot.slane %v2406_v11, 4 }
 0x38a   : > { %v2408_v15 = vadd.f32 %v2407_v45, %v2406_v11 }
 0x38c   : > { %v2409_v57 = vrot.slane %v2408_v15, 2 }
 0x38e   : > { %v2410_v43 = vadd.f32 %v2409_v57, %v2408_v15  ;;  %v2758_v15 = vld [vmem:[#allocation5 + $0xa8] sm:$0xff] }
 0x38f   : > { %v3235_v57 = vld [vmem:[#allocation5 + $0x1e8] sm:$0xff]  ;;  %2779 = vmatpush.msra.mxu1 %v2758_v15 }
 0x390   : > { %v2411_v62 = vrot.slane %v2410_v43, 1 }
 0x392   : > { %v2412_v21 = vadd.f32 %v2411_v62, %v2410_v43 }
 0x394   : > { %v2413_v9 = vmul.f32 %v2412_v21, %v6217_v39 }
 0x396   : > { %v2414_v19 = vadd.f32 1e-05, %v2413_v9  ;;  %v3234_v9 = vld [vmem:[#allocation5 + $0x1e0] sm:$0xff] }
 0x398   : > { %4873 = vrsqrt.f32 %v2414_v19  ;;  %vm2421_vm3 = vweird.f32 %v2414_v19 }
 0x39e   : > { %v4874_v61 = vpop.eup %4873 }
 0x39f   : > { %v2416_v4 = vmul.f32 %v4874_v61, %v2414_v19  ;;  %vm2422_vm2 = vweird.f32 %v4874_v61 }
 0x3a0   : > { %vm2423_vm4 = vmor %vm2421_vm3, %vm2422_vm2 }
 0x3a1   : > { %v2417_v0 = vmul.f32 %v4874_v61, %v2416_v4  ;;  %v2756_v4 = vld [vmem:[#allocation5 + $0x98] sm:$0xff] }
 0x3a3   : > { %v2418_v51 = vmul.f32 0.5, %v2417_v0  ;;  %v3039_v0 = vld [vmem:[#allocation5 + $0x158] sm:$0xff] }
 0x3a4   : > { %3048 = vmatpush.msrb.mxu3 %v3039_v0  ;;  %v3229_v0 = vld [vmem:[#allocation5 + $0x1b8] sm:$0xff] }
 0x3a5   : > { %v2419_v59 = vsub.f32 1.5, %v2418_v51 }
 0x3a6   : > { %3049 = vmatpush.msrb.mxu3 %v3038_v31 }
 0x3a7   : > { %v2420_v26 = vmul.f32 %v4874_v61, %v2419_v59 }
 0x3a9   : > { %v6414_v3 = vsel %vm2423_vm4, %v4874_v61, %v2420_v26 }
 0x3aa   : > { %v2456_v48 = vmul.f32 %v6414_v3, %v6238_v63  ;;  %v3236_v63 = vld [vmem:[#allocation5 + $0x1f0] sm:$0xff]  ;;  %v2425_v38 = vmul.f32 %v6414_v3, %v6242_v53  ;;  %v2426_v11 = vmul.f32 %v6414_v3, %v6246_v33  ;;  %v2427_v45 = vmul.f32 %v6414_v3, %v6250_v52  ;;  %v2757_v33 = vld [vmem:[#allocation5 + $0xa0] sm:$0xff] }
 0x3ab   : > { %3239 = vmatpush.msrb.mxu0 %v3236_v63  ;;  %v2428_v43 = vmul.f32 %v6414_v3, %v6258_v5  ;;  %v2429_v62 = vmul.f32 %v6414_v3, %v6262_v16  ;;  %v2430_v21 = vmul.f32 %v6414_v3, %v6268_v44  ;;  %v2431_v53 = vmul.f32 %v6414_v3, %v6274_v20  ;;  %v2719_v44 = vld [vmem:[#allocation5 + $0x78] sm:$0xff] }
 0x3ac   : > { %v2491_v28 = vmul.f32 %v6412_v54, %v2456_v48  ;;  %v2432_v52 = vmul.f32 %v6414_v3, %v6280_v17  ;;  %v2433_v19 = vmul.f32 %v6414_v3, %v6286_v14  ;;  %v2434_v5 = vmul.f32 %v6414_v3, %v6292_v30  ;;  %2780 = vmatpush.msra.mxu1 %v2757_v33 }
 0x3ad   : > { %3240 = vmatpush.msrb.mxu0 %v3235_v57  ;;  %v2435_v16 = vmul.f32 %v6414_v3, %v6298_v46  ;;  %v2436_v20 = vmul.f32 %v6414_v3, %v6304_v13  ;;  %v2460_v32 = vmul.f32 %v6412_v54, %v2425_v38  ;;  %v2461_v61 = vmul.f32 %v6412_v54, %v2426_v11  ;;  %v2717_v38 = vld [vmem:[#allocation5 + $0x68] sm:$0xff]  ;;  %v2753_v11 = vld [vmem:[#allocation5 + $0x80] sm:$0xff] }
 0x3ae   : > { %v2526_v49 = vadd.f32 %v6419_v12, %v2491_v28  ;;  %v2462_v17 = vmul.f32 %v6412_v54, %v2427_v45  ;;  %v2437_v14 = vmul.f32 %v6414_v3, %v6310_v2  ;;  %v6456_v30 = vmul.f32 %v6414_v3, %v6316_v55  ;;  %2781 = vmatpush.msra.mxu1 %v2756_v4 }
 0x3af   : > { %3241 = vmatpush.msrb.mxu0 %v3234_v9  ;;  %v6460_v46 = vmul.f32 %v6414_v3, %v6322_v36  ;;  %v2463_v13 = vmul.f32 %v6412_v54, %v2428_v43  ;;  %v6465_v51 = vmul.f32 %v6414_v3, %v6328_v27  ;;  %v6469_v59 = vmul.f32 %v6414_v3, %v6334_v29  ;;  %v2755_v36 = vld [vmem:[#allocation5 + $0x90] sm:$0xff]  ;;  %v3231_v43 = vld [vmem:[#allocation5 + $0x1c8] sm:$0xff] }
 0x3b0   : > { %v2558_v47 = vmax.f32 %v2526_v49, 0.0  ;;  %v6473_v2 = vmul.f32 %v6414_v3, %v6340_v56  ;;  %v2464_v55 = vmul.f32 %v6412_v54, %v2429_v62  ;;  %2882 = vmatpush.msrb.mxu2 %v2719_v44  ;;  %v6478_v26 = vmul.f32 %v6414_v3, %v6346_v24  ;;  %2782 = vmatpush.msra.mxu1 %v2755_v36  ;;  %v3233_v56 = vld [vmem:[#allocation5 + $0x1d8] sm:$0xff]  ;;  %v2718_v49 = vld [vmem:[#allocation5 + $0x70] sm:$0xff]  ;;  %v3230_v44 = vld [vmem:[#allocation5 + $0x1c0] sm:$0xff] }
 0x3b1   : > { %v6482_v27 = vmul.f32 %v6414_v3, %v6352_v60  ;;  %v6486_v29 = vmul.f32 %v6414_v3, %v6358_v10  ;;  %v2465_v48 = vmul.f32 %v6412_v54, %v2430_v21  ;;  %v2466_v58 = vmul.f32 %v6412_v54, %v2431_v53  ;;  %v2754_v60 = vld [vmem:[#allocation5 + $0x88] sm:$0xff]  ;;  %3242 = vmatpush.msrb.mxu0 %v3233_v56 }
 0x3b2   : > { %2590 = vst [vmem:[#allocation2 + $0x189] sm:$0xff] %v2558_v47  ;;  %v6491_v28 = vadd.f32 %v6419_v12, %v2460_v32  ;;  %v6494_v24 = vadd.f32 %v6419_v12, %v2461_v61  ;;  %v2497_v23 = vadd.f32 %v6419_v12, %v2462_v17  ;;  %v6499_v10 = vmul.f32 %v6414_v3, %v6364_v34 }
 0x3b3   : > { %v6503_v22 = vmul.f32 %v6414_v3, %v6370_v25  ;;  %v2467_v47 = vmul.f32 %v6412_v54, %v2432_v52  ;;  %v2498_v6 = vadd.f32 %v6419_v12, %v2463_v13  ;;  %2783 = vmatpush.msra.mxu1 %v2754_v60  ;;  %v6509_v35 = vmul.f32 %v6414_v3, %v6376_v40  ;;  %v3034_v60 = vld [vmem:[#allocation5 + $0x130] sm:$0xff] }
 0x3b4   : > { %v6513_v63 = vmul.f32 %v6414_v3, %v6382_v18  ;;  %v2468_v34 = vmul.f32 %v6412_v54, %v2433_v19  ;;  %v6517_v25 = vadd.f32 %v6419_v12, %v2464_v55  ;;  %v6521_v45 = vmul.f32 %v6414_v3, %v6388_v37  ;;  %2883 = vmatpush.msrb.mxu2 %v2718_v49  ;;  %v3037_v18 = vld [vmem:[#allocation5 + $0x148] sm:$0xff]  ;;  %v2716_v37 = vld [vmem:[#allocation5 + $0x60] sm:$0xff]  ;;  %v3228_v49 = vld [vmem:[#allocation5 + $0x1b0] sm:$0xff] }
 0x3b5   : > { %v2469_v15 = vmul.f32 %v6412_v54, %v2434_v5  ;;  %v2470_v40 = vmul.f32 %v6412_v54, %v2435_v16  ;;  %v6526_v57 = vadd.f32 %v6419_v12, %v2465_v48  ;;  %v6529_v62 = vadd.f32 %v6419_v12, %v2466_v58  ;;  %3243 = vmatpush.msrb.mxu0 %v3232_v50  ;;  %v3036_v16 = vld [vmem:[#allocation5 + $0x140] sm:$0xff]  ;;  %v2714_v48 = vld [vmem:[#allocation5 + $0x50] sm:$0xff] }
 0x3b6   : > { %v2527_v21 = vmax.f32 %v6491_v28, 0.0  ;;  %v2528_v53 = vmax.f32 %v6494_v24, 0.0  ;;  %v6533_v33 = vmax.f32 %v2497_v23, 0.0  ;;  %v6537_v9 = vmul.f32 %v6414_v3, %v6223_v42  ;;  %2884 = vmatpush.msrb.mxu2 %v2717_v38  ;;  %2784 = vmatpush.msra.mxu1 %v2753_v11  ;;  %v2715_v42 = vld [vmem:[#allocation5 + $0x58] sm:$0xff]  ;;  %v3033_v38 = vld [vmem:[#allocation5 + $0x128] sm:$0xff] }
 0x3b7   : > { %v2471_v52 = vmul.f32 %v6412_v54, %v2436_v20  ;;  %v6541_v19 = vadd.f32 %v6419_v12, %v2467_v47  ;;  %v6543_v5 = vmax.f32 %v2498_v6, 0.0  ;;  %v2472_v32 = vmul.f32 %v6412_v54, %v2437_v14  ;;  %3050 = vmatpush.msrb.mxu3 %v3037_v18  ;;  %3244 = vmatpush.msrb.mxu0 %v3231_v43  ;;  %v3035_v14 = vld [vmem:[#allocation5 + $0x138] sm:$0xff]  ;;  %v3227_v11 = vld [vmem:[#allocation5 + $0x1a8] sm:$0xff] }
 0x3b8   : > { %v6547_v61 = vadd.f32 %v6419_v12, %v2468_v34  ;;  %v2531_v17 = vmax.f32 %v6517_v25, 0.0  ;;  %2559 = vst [vmem:[#allocation2 + $0x19] sm:$0xff] %v2527_v21  ;;  %v2473_v20 = vmul.f32 %v6412_v54, %v6456_v30  ;;  %v6555_v4 = vadd.f32 %v6419_v12, %v2469_v15  ;;  %2885 = vmatpush.msrb.mxu2 %v2716_v37 }
 0x3b9   : > { %v2532_v13 = vmax.f32 %v6526_v57, 0.0  ;;  %2560 = vst [vmem:[#allocation2 + $0x21] sm:$0xff] %v2528_v53  ;;  %2785 = vmatmul.f32.vlgmr.msra.gmra.mxu1 %v6533_v33  ;;  %v2474_v55 = vmul.f32 %v6412_v54, %v6460_v46  ;;  %v6564_v36 = vadd.f32 %v6419_v12, %v2470_v40  ;;  %v2533_v30 = vmax.f32 %v6529_v62, 0.0  ;;  %3051 = vmatpush.msrb.mxu3 %v3036_v16  ;;  %v3226_v16 = vld [vmem:[#allocation5 + $0x1a0] sm:$0xff] }
 0x3ba   : > { %2561 = vst [vmem:[#allocation2 + $0x31] sm:$0xff] %v6533_v33  ;;  %3245 = vmatpush.msrb.mxu0 %v3230_v44  ;;  %v6570_v56 = vmul.f32 %v6414_v3, %v6226_v7  ;;  %v2475_v58 = vmul.f32 %v6412_v54, %v6465_v51  ;;  %v6575_v23 = vadd.f32 %v6419_v12, %v2471_v52  ;;  %v2534_v46 = vmax.f32 %v6541_v19, 0.0  ;;  %v2713_v51 = vld [vmem:[#allocation5 + $0x48] sm:$0xff]  ;;  %v3032_v52 = vld [vmem:[#allocation5 + $0x120] sm:$0xff] }
 0x3bb   : > { %2562 = vst [vmem:[#allocation2 + $0x39] sm:$0xff] %v6543_v5  ;;  %2886 = vmatpush.msrb.mxu2 %v2715_v42  ;;  %v2476_v47 = vmul.f32 %v6412_v54, %v6469_v59  ;;  %v6582_v6 = vadd.f32 %v6419_v12, %v2472_v32  ;;  %v2535_v7 = vmax.f32 %v6547_v61, 0.0  ;;  %3052 = vmatpush.msrb.mxu3 %v3035_v14  ;;  %v2536_v34 = vmax.f32 %v6555_v4, 0.0 }
 0x3bc   : > { %2563 = vst [vmem:[#allocation2 + $0x49] sm:$0xff] %v2531_v17  ;;  %3246 = vmatpush.msrb.mxu0 %v3229_v0  ;;  %v6589_v31 = vmul.f32 %v6414_v3, %v6229_v41  ;;  %v2477_v50 = vmul.f32 %v6412_v54, %v6473_v2  ;;  %v6594_v59 = vadd.f32 %v6419_v12, %v2473_v20  ;;  %v2537_v40 = vmax.f32 %v6564_v36, 0.0  ;;  %v2712_v2 = vld [vmem:[#allocation5 + $0x40] sm:$0xff]  ;;  %v3225_v0 = vld [vmem:[#allocation5 + $0x198] sm:$0xff] }
 0x3bd   : > { %2564 = vst [vmem:[#allocation2 + $0x51] sm:$0xff] %v2532_v13  ;;  %2887 = vmatpush.msrb.mxu2 %v2714_v48  ;;  %v2478_v15 = vmul.f32 %v6412_v54, %v6478_v26  ;;  %v6602_v41 = vadd.f32 %v6419_v12, %v2474_v55  ;;  %3053 = vmatpush.msrb.mxu3 %v3034_v60  ;;  %v2538_v37 = vmax.f32 %v6575_v23, 0.0  ;;  %v2539_v32 = vmax.f32 %v6582_v6, 0.0  ;;  %v3431_v55 = vld [vmem:[#allocation5 + $0x278] sm:$0xff]  ;;  %v2710_v60 = vld [vmem:[#allocation5 + $0x30] sm:$0xff] }
 0x3be   : > { %2565 = vst [vmem:[#allocation2 + $0x61] sm:$0xff] %v2533_v30  ;;  %3247 = vmatpush.msrb.mxu0 %v3228_v49  ;;  %v6609_v18 = vmul.f32 %v6414_v3, %v6232_v1  ;;  %v2479_v43 = vmul.f32 %v6412_v54, %v6482_v27  ;;  %v6614_v26 = vadd.f32 %v6419_v12, %v2475_v58  ;;  %v2711_v27 = vld [vmem:[#allocation5 + $0x38] sm:$0xff]  ;;  %v2540_v14 = vmax.f32 %v6594_v59, 0.0 }
 0x3bf   : > { %2566 = vst [vmem:[#allocation2 + $0x69] sm:$0xff] %v2534_v46  ;;  %2888 = vmatpush.msrb.mxu2 %v2713_v51  ;;  %v2480_v44 = vmul.f32 %v6412_v54, %v6486_v29  ;;  %v6622_v1 = vadd.f32 %v6419_v12, %v2476_v47  ;;  %3054 = vmatpush.msrb.mxu3 %v3033_v38  ;;  %v3031_v29 = vld [vmem:[#allocation5 + $0x118] sm:$0xff] }
 0x3c0   : > { %2567 = vst [vmem:[#allocation2 + $0x79] sm:$0xff] %v2535_v7  ;;  %3248 = vmatpush.msrb.mxu0 %v3227_v11  ;;  %v2481_v42 = vmul.f32 %v6412_v54, %v6499_v10  ;;  %v6630_v20 = vadd.f32 %v6419_v12, %v2477_v50  ;;  %v2482_v48 = vmul.f32 %v6412_v54, %v6503_v22  ;;  %v2541_v10 = vmax.f32 %v6602_v41, 0.0  ;;  %v3030_v22 = vld [vmem:[#allocation5 + $0x110] sm:$0xff] }
 0x3c1   : > { %2568 = vst [vmem:[#allocation2 + $0x81] sm:$0xff] %v2536_v34  ;;  %2889 = vmatpush.msrb.mxu2 %v2712_v2  ;;  %2788 = vmatmul.f32.gmra.mxu1 %v6543_v5  ;;  %v6639_v58 = vadd.f32 %v6419_v12, %v2478_v15  ;;  %v2483_v49 = vmul.f32 %v6412_v54, %v6509_v35  ;;  %v2542_v51 = vmax.f32 %v6614_v26, 0.0  ;;  %v3224_v50 = vld [vmem:[#allocation5 + $0x190] sm:$0xff]  ;;  %v2543_v35 = vmax.f32 %v6622_v1, 0.0  ;;  %v2709_v15 = vld [vmem:[#allocation5 + $0x28] sm:$0xff] }
 0x3c2   : > { %2569 = vst [vmem:[#allocation2 + $0x91] sm:$0xff] %v2537_v40  ;;  %3055 = vmatpush.msrb.mxu3 %v3032_v52  ;;  %3249 = vmatpush.msrb.mxu0 %v3226_v16  ;;  %v6647_v47 = vadd.f32 %v6419_v12, %v2479_v43  ;;  %v2484_v38 = vmul.f32 %v6412_v54, %v6513_v63  ;;  %v2544_v63 = vmax.f32 %v6630_v20, 0.0  ;;  %v3029_v16 = vld [vmem:[#allocation5 + $0x108] sm:$0xff] }
 0x3c3   : > { %2570 = vst [vmem:[#allocation2 + $0x99] sm:$0xff] %v2538_v37  ;;  %2890 = vmatpush.msrb.mxu2 %v2711_v27  ;;  %3432 = vmatpush.msrb.mxu1 %v3431_v55  ;;  %v6655_v11 = vadd.f32 %v6419_v12, %v2480_v44  ;;  %v2455_v2 = vmul.f32 %v6414_v3, %v6235_v8  ;;  %v3223_v44 = vld [vmem:[#allocation5 + $0x188] sm:$0xff]  ;;  %v2545_v8 = vmax.f32 %v6639_v58, 0.0  ;;  %v2708_v3 = vld [vmem:[#allocation5 + $0x20] sm:$0xff]  ;;  %v2602_v24 = vld [vmem:[#allocation2 + $0x4a] sm:$0x1] }
 0x3c4   : > { %2571 = vst [vmem:[#allocation2 + $0xa9] sm:$0xff] %v2539_v32  ;;  %3056 = vmatpush.msrb.mxu3 %v3031_v29  ;;  %3250 = vmatpush.msrb.mxu0 %v3225_v0  ;;  %v2485_v43 = vmul.f32 %v6412_v54, %v6521_v45  ;;  %v6665_v52 = vadd.f32 %v6419_v12, %v2481_v42  ;;  %v2546_v0 = vmax.f32 %v6647_v47, 0.0  ;;  %v3222_v55 = vld [vmem:[#allocation5 + $0x180] sm:$0xff]  ;;  %v3192_v57 = vld [vmem:[#allocation2 + $0x38] sm:$0xff] }
 0x3c5   : > { %2572 = vst [vmem:[#allocation2 + $0xb1] sm:$0xff] %v2540_v14  ;;  %2891 = vmatpush.msrb.mxu2 %v2710_v60  ;;  %v2486_v27 = vmul.f32 %v6412_v54, %v6537_v9  ;;  %v6673_v29 = vadd.f32 %v6419_v12, %v2482_v48  ;;  %v2487_v45 = vmul.f32 %v6412_v54, %v6570_v56  ;;  %v3028_v9 = vld [vmem:[#allocation5 + $0x100] sm:$0xff]  ;;  %v2707_v56 = vld [vmem:[#allocation5 + $0x18] sm:$0xff]  ;;  %v3421_v20 = vld [vmem:[#allocation5 + $0x228] sm:$0xff] }
 0x3c6   : > { %2573 = vst [vmem:[#allocation2 + $0xc1] sm:$0xff] %v2541_v10  ;;  %3057 = vmatpush.msrb.mxu3 %v3030_v22  ;;  %3251 = vmatpush.msrb.mxu0 %v3224_v50  ;;  %v6681_v42 = vadd.f32 %v6419_v12, %v2483_v49  ;;  %v2488_v48 = vmul.f32 %v6412_v54, %v6589_v31  ;;  %v2547_v22 = vmax.f32 %v6655_v11, 0.0  ;;  %v3001_v19 = vld [vmem:[#allocation2 + $0x4a] sm:$0xff] }
 0x3c7   : > { %2574 = vst [vmem:[#allocation2 + $0xc9] sm:$0xff] %v2542_v51  ;;  %2892 = vmatpush.msrb.mxu2 %v2709_v15  ;;  %v6689_v60 = vadd.f32 %v6419_v12, %v2484_v38  ;;  %v2489_v49 = vmul.f32 %v6412_v54, %v6609_v18  ;;  %v6697_v50 = vadd.f32 %v6419_v12, %v2485_v43  ;;  %v2548_v15 = vmax.f32 %v6665_v52, 0.0  ;;  %v2706_v18 = vld [vmem:[#allocation5 + $0x10] sm:$0xff] }
 0x3c8   : > { %2575 = vst [vmem:[#allocation2 + $0xd9] sm:$0xff] %v2543_v35  ;;  %3058 = vmatpush.msrb.mxu3 %v3029_v16  ;;  %3252 = vmatpush.msrb.mxu0 %v3223_v44  ;;  %v2490_v31 = vmul.f32 %v6412_v54, %v2455_v2  ;;  %v6706_v38 = vadd.f32 %v6419_v12, %v2486_v27  ;;  %v2549_v16 = vmax.f32 %v6673_v29, 0.0  ;;  %v2550_v44 = vmax.f32 %v6681_v42, 0.0  ;;  %v3005_v36 = vld [vmem:[#allocation2 + $0x7a] sm:$0xff] }
 0x3c9   : > { %2576 = vst [vmem:[#allocation2 + $0xe1] sm:$0xff] %v2544_v63  ;;  %2893 = vmatpush.msrb.mxu2 %v2708_v3  ;;  %2791 = vmatmul.f32.gmra.mxu1 %v2527_v21  ;;  %v2522_v43 = vadd.f32 %v6419_v12, %v2487_v45  ;;  %v2523_v54 = vadd.f32 %v6419_v12, %v2488_v48  ;;  %v2551_v28 = vmax.f32 %v6689_v60, 0.0  ;;  %v2705_v21 = vld [vmem:[#allocation5 + $0x8] sm:$0xff]  ;;  %v2552_v27 = vmax.f32 %v6697_v50, 0.0 }
 0x3ca   : > { %2577 = vst [vmem:[#allocation2 + $0xf1] sm:$0xff] %v2545_v8  ;;  %3059 = vmatpush.msrb.mxu3 %v3028_v9  ;;  %3253 = vmatpush.msrb.mxu0 %v3222_v55  ;;  %v2524_v2 = vadd.f32 %v6419_v12, %v2489_v49  ;;  %v2525_v3 = vadd.f32 %v6419_v12, %v2490_v31  ;;  %v2553_v45 = vmax.f32 %v6706_v38, 0.0  ;;  %v2704_v9 = vld [vmem:[#allocation5] sm:$0xff]  ;;  %v3430_v12 = vld [vmem:[#allocation5 + $0x270] sm:$0xff]  ;;  %v2600_v31 = vld [vmem:[#allocation2 + $0x1a] sm:$0x1] }
 0x3cb   : > { %2578 = vst [vmem:[#allocation2 + $0xf9] sm:$0xff] %v2546_v0  ;;  %2894 = vmatpush.msrb.mxu2 %v2707_v56  ;;  %v2554_v55 = vmax.f32 %v2522_v43, 0.0  ;;  %v2555_v48 = vmax.f32 %v2523_v54, 0.0  ;;  %3433 = vmatpush.msrb.mxu1 %v3430_v12  ;;  %v2636_v43 = vld [vmem:[#allocation2 + $0x27] sm:$0x1]  ;;  %v3007_v6 = vld [vmem:[#allocation2 + $0x92] sm:$0xff] }
 0x3cc   : > { %2579 = vst [vmem:[#allocation2 + $0x109] sm:$0xff] %v2547_v22  ;;  %v2556_v56 = vmax.f32 %v2524_v2, 0.0  ;;  %v2557_v49 = vmax.f32 %v2525_v3, 0.0  ;;  %v2603_v54 = vld [vmem:[#allocation2 + $0x62] sm:$0x1]  ;;  %v3819_v38 = vld [vmem:[#allocation5 + $0x378] sm:$0xff] }
 0x3cd   : > { %2580 = vst [vmem:[#allocation2 + $0x111] sm:$0xff] %v2548_v15  ;;  %2895 = vmatpush.msrb.mxu2 %v2706_v18  ;;  %v2601_v18 = vld [vmem:[#allocation2 + $0x32] sm:$0x1]  ;;  %v2604_v3 = vld [vmem:[#allocation2 + $0x7a] sm:$0x1]  ;;  %3820 = vmatpush.msra.mxu3 %v3819_v38  ;;  %v3810_v38 = vld [vmem:[#allocation5 + $0x330] sm:$0xff] }
 0x3ce   : > { %2581 = vst [vmem:[#allocation2 + $0x121] sm:$0xff] %v2549_v16  ;;  %v2605_v12 = vld [vmem:[#allocation2 + $0x92] sm:$0x1] }
 0x3cf   : > { %2582 = vst [vmem:[#allocation2 + $0x129] sm:$0xff] %v2550_v44  ;;  %2896 = vmatpush.msrb.mxu2 %v2705_v21  ;;  %v2638_v21 = vld [vmem:[#allocation2 + $0x57] sm:$0x1] }
 0x3d0   : > { %2583 = vst [vmem:[#allocation2 + $0x139] sm:$0xff] %v2551_v28 }
 0x3d1   : > { %2584 = vst [vmem:[#allocation2 + $0x141] sm:$0xff] %v2552_v27  ;;  %2897 = vmatpush.msrb.mxu2 %v2704_v9  ;;  %2794 = vmatmul.f32.gmra.mxu1 %v2528_v53  ;;  %v2637_v53 = vld [vmem:[#allocation2 + $0x3f] sm:$0x1] }
 0x3d2   : > { %2585 = vst [vmem:[#allocation2 + $0x151] sm:$0xff] %v2553_v45 }
 0x3d3   : > { %2586 = vst [vmem:[#allocation2 + $0x159] sm:$0xff] %v2554_v55 }
 0x3d4   : > { %2587 = vst [vmem:[#allocation2 + $0x169] sm:$0xff] %v2555_v48 }
 0x3d5   : > { %2588 = vst [vmem:[#allocation2 + $0x171] sm:$0xff] %v2556_v56  ;;  %v2639_v56 = vld [vmem:[#allocation2 + $0x6f] sm:$0x1] }
 0x3d6   : > { %2589 = vst [vmem:[#allocation2 + $0x181] sm:$0xff] %v2557_v49  ;;  %v2640_v49 = vld [vmem:[#allocation2 + $0x87] sm:$0x1] }
 0x3d7   : > { %2593 = vst [vmem:[#allocation2 + $0x1] sm:$0xff] %v6533_v33 }
 0x3d8   : > { %2594 = vst [vmem:[#allocation2 + $0x9] sm:$0xff] %v6543_v5 }
 0x3d9   : > { %2618 = vst [vmem:[#allocation2 + $0x18] sm:$0x1] %v2600_v31  ;;  %2797 = vmatmul.f32.gmra.mxu1 %v6533_v33  ;;  %v3429_v33 = vld [vmem:[#allocation5 + $0x268] sm:$0xff]  ;;  %v2606_v31 = vld [vmem:[#allocation2 + $0xaa] sm:$0x1] }
 0x3da   : > { %2619 = vst [vmem:[#allocation2 + $0x30] sm:$0x1] %v2601_v18  ;;  %3434 = vmatpush.msrb.mxu1 %v3429_v33  ;;  %v2641_v18 = vld [vmem:[#allocation2 + $0x9f] sm:$0x1]  ;;  %v2611_v33 = vld [vmem:[#allocation2 + $0x122] sm:$0x1] }
 0x3db   : > { %2654 = vst [vmem:[#allocation2 + $0x29] sm:$0x1] %v2636_v43  ;;  %v2607_v43 = vld [vmem:[#allocation2 + $0xc2] sm:$0x1] }
 0x3dc   : > { %2620 = vst [vmem:[#allocation2 + $0x48] sm:$0x1] %v2602_v24  ;;  %v2596_v62 = vld [vmem:[#allocation2 + $0x171] sm:$0xff] }
 0x3dd   : > { %2655 = vst [vmem:[#allocation2 + $0x41] sm:$0x1] %v2637_v53  ;;  %v2642_v53 = vld [vmem:[#allocation2 + $0xb7] sm:$0x1] }
 0x3de   : > { %v2599_v2 = vld [vmem:[#allocation2 + $0x2] sm:$0x1]  ;;  %2621 = vst [vmem:[#allocation2 + $0x60] sm:$0x1] %v2603_v54 }
 0x3df   : > { %v2995_v9 = vld [vmem:[#allocation2 + $0x2] sm:$0xff]  ;;  %2617 = vst [vmem:[#allocation2] sm:$0x1] %v2599_v2  ;;  %v2635_v55 = vld [vmem:[#allocation2 + $0xf] sm:$0x1] }
 0x3e0   : > { %3060 = vmatmul.f32.vlgmr.msrb.gmra.mxu3 %v2995_v9  ;;  %v6740_v48 = vld [vmem:[#allocation2 + $0x18] sm:$0xff]  ;;  %2653 = vst [vmem:[#allocation2 + $0x11] sm:$0x1] %v2635_v55  ;;  %v2644_v9 = vld [vmem:[#allocation2 + $0xe7] sm:$0x1] }
 0x3e1   : > { %3254 = vmatmul.f32.vlgmr.msrb.gmra.mxu0 %v6740_v48  ;;  %2800 = vmatmul.f32.gmra.mxu1 %v6543_v5  ;;  %2656 = vst [vmem:[#allocation2 + $0x59] sm:$0x1] %v2638_v21  ;;  %v2608_v2 = vld [vmem:[#allocation2 + $0xda] sm:$0x1]  ;;  %v3190_v5 = vld [vmem:[#allocation2 + $0x20] sm:$0xff]  ;;  %v6746_v25 = vld [vmem:[#allocation2 + $0x30] sm:$0xff] }
 0x3e2   : > { %2622 = vst [vmem:[#allocation2 + $0x78] sm:$0x1] %v2604_v3  ;;  %v2643_v21 = vld [vmem:[#allocation2 + $0xcf] sm:$0x1]  ;;  %v2609_v3 = vld [vmem:[#allocation2 + $0xf2] sm:$0x1] }
 0x3e3   : > { %2657 = vst [vmem:[#allocation2 + $0x71] sm:$0x1] %v2639_v56  ;;  %v2610_v55 = vld [vmem:[#allocation2 + $0x10a] sm:$0x1]  ;;  %v2645_v56 = vld [vmem:[#allocation2 + $0xff] sm:$0x1] }
 0x3e4   : > { %2623 = vst [vmem:[#allocation2 + $0x90] sm:$0x1] %v2605_v12  ;;  %v2673_v12 = vld [vmem:[#allocation2 + $0x8] sm:$0xff] }
 0x3e5   : > { %2658 = vst [vmem:[#allocation2 + $0x89] sm:$0x1] %v2640_v49  ;;  %v2646_v49 = vld [vmem:[#allocation2 + $0x117] sm:$0x1] }
 0x3e6   : > { %v2672_v24 = vld [vmem:[#allocation2] sm:$0xff]  ;;  %2624 = vst [vmem:[#allocation2 + $0xa8] sm:$0x1] %v2606_v31 }
 0x3e7   : > { %2898 = vmatmul.f32.vlgmr.msrb.gmra.mxu2 %v2672_v24  ;;  %v2996_v54 = vld [vmem:[#allocation2 + $0xa] sm:$0xff]  ;;  %2659 = vst [vmem:[#allocation2 + $0xa1] sm:$0x1] %v2641_v18  ;;  %v2997_v31 = vld [vmem:[#allocation2 + $0x1a] sm:$0xff]  ;;  %v2613_v24 = vld [vmem:[#allocation2 + $0x152] sm:$0x1] }
 0x3e8   : > { %3063 = vmatmul.f32.gmra.mxu3 %v2996_v54  ;;  %2625 = vst [vmem:[#allocation2 + $0xc0] sm:$0x1] %v2607_v43  ;;  %v2612_v18 = vld [vmem:[#allocation2 + $0x13a] sm:$0x1]  ;;  %v3428_v43 = vld [vmem:[#allocation5 + $0x260] sm:$0xff] }
 0x3e9   : > { %3257 = vmatmul.f32.gmra.mxu0 %v3190_v5  ;;  %2803 = vmatmul.f32.gmra.mxu1 %v2531_v17  ;;  %2660 = vst [vmem:[#allocation2 + $0xb9] sm:$0x1] %v2642_v53  ;;  %v2647_v17 = vld [vmem:[#allocation2 + $0x12f] sm:$0x1]  ;;  %v2648_v53 = vld [vmem:[#allocation2 + $0x147] sm:$0x1] }
 0x3ea   : > { %2626 = vst [vmem:[#allocation2 + $0xd8] sm:$0x1] %v2608_v2  ;;  %3435 = vmatpush.msrb.mxu1 %v3428_v43  ;;  %v2614_v54 = vld [vmem:[#allocation2 + $0x16a] sm:$0x1]  ;;  %v2649_v2 = vld [vmem:[#allocation2 + $0x15f] sm:$0x1] }
 0x3eb   : > { %2661 = vst [vmem:[#allocation2 + $0xd1] sm:$0x1] %v2643_v21  ;;  %v2615_v21 = vld [vmem:[#allocation2 + $0x182] sm:$0x1]  ;;  %v3002_v61 = vld [vmem:[#allocation2 + $0x52] sm:$0xff]  ;;  %v3004_v4 = vld [vmem:[#allocation2 + $0x6a] sm:$0xff] }
 0x3ec   : > { %2627 = vst [vmem:[#allocation2 + $0xf0] sm:$0x1] %v2609_v3  ;;  %v2650_v3 = vld [vmem:[#allocation2 + $0x177] sm:$0x1]  ;;  %v3425_v43 = vld [vmem:[#allocation5 + $0x248] sm:$0xff]  ;;  %v3006_v23 = vld [vmem:[#allocation2 + $0x82] sm:$0xff] }
 0x3ed   : > { %2662 = vst [vmem:[#allocation2 + $0xe9] sm:$0x1] %v2644_v9  ;;  %v2998_v9 = vld [vmem:[#allocation2 + $0x22] sm:$0xff] }
 0x3ee   : > { %2628 = vst [vmem:[#allocation2 + $0x108] sm:$0x1] %v2610_v55  ;;  %v3193_v55 = vld [vmem:[#allocation2 + $0x48] sm:$0xff] }
 0x3ef   : > { %2901 = vmatmul.f32.gmra.mxu2 %v2673_v12  ;;  %2663 = vst [vmem:[#allocation2 + $0x101] sm:$0x1] %v2645_v56  ;;  %v3427_v56 = vld [vmem:[#allocation5 + $0x258] sm:$0xff]  ;;  %v3194_v12 = vld [vmem:[#allocation2 + $0x50] sm:$0xff] }
 0x3f0   : > { %3066 = vmatmul.f32.gmra.mxu3 %v2997_v31  ;;  %2629 = vst [vmem:[#allocation2 + $0x120] sm:$0x1] %v2611_v33  ;;  %3436 = vmatpush.msrb.mxu1 %v3427_v56  ;;  %v3000_v33 = vld [vmem:[#allocation2 + $0x3a] sm:$0xff]  ;;  %v7018_v39 = vld [vmem:[#allocation2 + $0xb2] sm:$0xff] }
 0x3f1   : > { %3260 = vmatmul.f32.gmra.mxu0 %v6746_v25  ;;  %2806 = vmatmul.f32.gmra.mxu1 %v2532_v13  ;;  %2664 = vst [vmem:[#allocation2 + $0x119] sm:$0x1] %v2646_v49  ;;  %v2999_v13 = vld [vmem:[#allocation2 + $0x32] sm:$0xff]  ;;  %v3426_v49 = vld [vmem:[#allocation5 + $0x250] sm:$0xff] }
 0x3f2   : > { %2630 = vst [vmem:[#allocation2 + $0x138] sm:$0x1] %v2612_v18  ;;  %3437 = vmatpush.msrb.mxu1 %v3426_v49  ;;  %v3003_v18 = vld [vmem:[#allocation2 + $0x62] sm:$0xff]  ;;  %v3012_v58 = vld [vmem:[#allocation2 + $0xca] sm:$0xff] }
 0x3f3   : > { %2665 = vst [vmem:[#allocation2 + $0x131] sm:$0x1] %v2647_v17  ;;  %v3197_v17 = vld [vmem:[#allocation2 + $0x78] sm:$0xff] }
 0x3f4   : > { %2631 = vst [vmem:[#allocation2 + $0x150] sm:$0x1] %v2613_v24  ;;  %3438 = vmatpush.msrb.mxu1 %v3425_v43  ;;  %v3424_v24 = vld [vmem:[#allocation5 + $0x240] sm:$0xff]  ;;  %v3208_v43 = vld [vmem:[#allocation2 + $0xf8] sm:$0xff] }
 0x3f5   : > { %2666 = vst [vmem:[#allocation2 + $0x149] sm:$0x1] %v2648_v53 }
 0x3f6   : > { %2632 = vst [vmem:[#allocation2 + $0x168] sm:$0x1] %v2614_v54  ;;  %3439 = vmatpush.msrb.mxu1 %v3424_v24  ;;  %v3423_v54 = vld [vmem:[#allocation5 + $0x238] sm:$0xff]  ;;  %v3015_v24 = vld [vmem:[#allocation2 + $0xf2] sm:$0xff] }
 0x3f7   : > { %2904 = vmatmul.f32.gmra.mxu2 %v6740_v48  ;;  %2667 = vst [vmem:[#allocation2 + $0x161] sm:$0x1] %v2649_v2  ;;  %v3411_v48 = vld [vmem:[#allocation2 + $0x169] sm:$0xff] }
 0x3f8   : > { %3069 = vmatmul.f32.gmra.mxu3 %v2998_v9  ;;  %2633 = vst [vmem:[#allocation2 + $0x180] sm:$0x1] %v2615_v21  ;;  %3440 = vmatpush.msrb.mxu1 %v3423_v54  ;;  %v3202_v2 = vld [vmem:[#allocation2 + $0xb0] sm:$0xff]  ;;  %v3203_v21 = vld [vmem:[#allocation2 + $0xc0] sm:$0xff]  ;;  %v3204_v9 = vld [vmem:[#allocation2 + $0xc8] sm:$0xff] }
 0x3f9   : > { %3263 = vmatmul.f32.gmra.mxu0 %v3192_v57  ;;  %2809 = vmatmul.f32.gmra.mxu1 %v2533_v30  ;;  %2668 = vst [vmem:[#allocation2 + $0x179] sm:$0x1] %v2650_v3  ;;  %v2651_v30 = vld [vmem:[#allocation2 + $0x18f] sm:$0x1]  ;;  %v3422_v3 = vld [vmem:[#allocation5 + $0x230] sm:$0xff] }
 0x3fa   : > { %2597 = vst [vmem:[#allocation2 + $0x199] sm:$0xff] %v3411_v48  ;;  %3441 = vmatpush.msrb.mxu1 %v3422_v3 }
 0x3fb   : > { %2598 = vst [vmem:[#allocation2 + $0x1a1] sm:$0xff] %v2596_v62 }
 0x3fc   : > { %2669 = vst [vmem:[#allocation2 + $0x191] sm:$0x1] %v2651_v30  ;;  %3442 = vmatpush.msrb.mxu1 %v3421_v20 }
 0x3ff   : > { %2907 = vmatmul.f32.gmra.mxu2 %v3190_v5 }
 0x400   : > { %3072 = vmatmul.f32.gmra.mxu3 %v2999_v13  ;;  %v3205_v13 = vld [vmem:[#allocation2 + $0xd8] sm:$0xff] }
 0x401   : > { %3266 = vmatmul.f32.gmra.mxu0 %v3193_v55  ;;  %2812 = vmatmul.f32.gmra.mxu1 %v2534_v46  ;;  %v2616_v5 = vld [vmem:[#allocation2 + $0x19a] sm:$0x1]  ;;  %v3195_v46 = vld [vmem:[#allocation2 + $0x60] sm:$0xff] }
 0x402   : > { %2634 = vst [vmem:[#allocation2 + $0x198] sm:$0x1] %v2616_v5  ;;  %v2652_v31 = vld [vmem:[#allocation2 + $0x1a7] sm:$0x1] }
 0x403   : > { %2670 = vst [vmem:[#allocation2 + $0x1a9] sm:$0x1] %v2652_v31 }
 0x407   : > { %2910 = vmatmul.f32.gmra.mxu2 %v6746_v25 }
 0x408   : > { %3075 = vmatmul.f32.gmra.mxu3 %v3000_v33 }
 0x409   : > { %3269 = vmatmul.f32.gmra.mxu0 %v3194_v12  ;;  %2815 = vmatmul.f32.gmra.mxu1 %v2535_v7  ;;  %v3196_v7 = vld [vmem:[#allocation2 + $0x68] sm:$0xff] }
 0x40f   : > { %2913 = vmatmul.f32.gmra.mxu2 %v3192_v57  ;;  %v3011_v57 = vld [vmem:[#allocation2 + $0xc2] sm:$0xff] }
 0x410   : > { %3078 = vmatmul.f32.gmra.mxu3 %v3001_v19  ;;  %v3207_v19 = vld [vmem:[#allocation2 + $0xf0] sm:$0xff] }
 0x411   : > { %3272 = vmatmul.f32.gmra.mxu0 %v3195_v46  ;;  %2818 = vmatmul.f32.gmra.mxu1 %v2536_v34  ;;  %v3198_v34 = vld [vmem:[#allocation2 + $0x80] sm:$0xff] }
 0x417   : > { %2916 = vmatmul.f32.gmra.mxu2 %v3193_v55 }
 0x418   : > { %3081 = vmatmul.f32.gmra.mxu3 %v3002_v61 }
 0x419   : > { %3275 = vmatmul.f32.gmra.mxu0 %v3196_v7  ;;  %2821 = vmatmul.f32.gmra.mxu1 %v2537_v40  ;;  %v3199_v40 = vld [vmem:[#allocation2 + $0x90] sm:$0xff] }
 0x41f   : > { %2919 = vmatmul.f32.gmra.mxu2 %v3194_v12 }
 0x420   : > { %3084 = vmatmul.f32.gmra.mxu3 %v3003_v18  ;;  %v3014_v18 = vld [vmem:[#allocation2 + $0xe2] sm:$0xff] }
 0x421   : > { %3278 = vmatmul.f32.gmra.mxu0 %v3197_v17  ;;  %2824 = vmatmul.f32.gmra.mxu1 %v2538_v37  ;;  %v3200_v37 = vld [vmem:[#allocation2 + $0x98] sm:$0xff] }
 0x427   : > { %2922 = vmatmul.f32.gmra.mxu2 %v3195_v46  ;;  %v3420_v46 = vld [vmem:[#allocation5 + $0x220] sm:$0xff] }
 0x428   : > { %3087 = vmatmul.f32.gmra.mxu3 %v3004_v4  ;;  %3443 = vmatpush.msrb.mxu1 %v3420_v46 }
 0x429   : > { %3281 = vmatmul.f32.gmra.mxu0 %v3198_v34  ;;  %2827 = vmatmul.f32.gmra.mxu1 %v2539_v32  ;;  %v3201_v32 = vld [vmem:[#allocation2 + $0xa8] sm:$0xff] }
 0x42f   : > { %2925 = vmatmul.f32.gmra.mxu2 %v3196_v7 }
 0x430   : > { %3090 = vmatmul.f32.gmra.mxu3 %v3005_v36 }
 0x431   : > { %3284 = vmatmul.f32.gmra.mxu0 %v3199_v40  ;;  %2830 = vmatmul.f32.gmra.mxu1 %v2540_v14  ;;  %v3008_v14 = vld [vmem:[#allocation2 + $0x9a] sm:$0xff] }
 0x436   : > { %v2786_v53 = vpop.f32.mrf.mxu1 }
 0x437   : > { %2928 = vmatmul.f32.gmra.mxu2 %v3197_v17 }
 0x438   : > { %3093 = vmatmul.f32.gmra.mxu3 %v3006_v23 }
 0x439   : > { %3287 = vmatmul.f32.gmra.mxu0 %v3200_v37  ;;  %2833 = vmatmul.f32.gmra.mxu1 %v2541_v10  ;;  %v3009_v10 = vld [vmem:[#allocation2 + $0xaa] sm:$0xff] }
 0x43e   : > { %v2789_v59 = vpop.f32.mrf.mxu1 }
 0x43f   : > { %2931 = vmatmul.f32.gmra.mxu2 %v3198_v34 }
 0x440   : > { %3096 = vmatmul.f32.gmra.mxu3 %v3007_v6 }
 0x441   : > { %3290 = vmatmul.f32.gmra.mxu0 %v3201_v32  ;;  %2836 = vmatmul.f32.gmra.mxu1 %v2542_v51  ;;  %v3010_v51 = vld [vmem:[#allocation2 + $0xb2] sm:$0xff] }
 0x446   : > { %v6775_v41 = vpop.f32.mrf.mxu1 }
 0x447   : > { %2934 = vmatmul.f32.gmra.mxu2 %v3199_v40 }
 0x448   : > { %3099 = vmatmul.f32.gmra.mxu3 %v3008_v14  ;;  %v3016_v14 = vld [vmem:[#allocation2 + $0xfa] sm:$0xff] }
 0x449   : > { %3293 = vmatmul.f32.gmra.mxu0 %v3202_v2  ;;  %2839 = vmatmul.f32.gmra.mxu1 %v2543_v35 }
 0x44e   : > { %v6779_v26 = vpop.f32.mrf.mxu1 }
 0x44f   : > { %2937 = vmatmul.f32.gmra.mxu2 %v3200_v37  ;;  %v3209_v37 = vld [vmem:[#allocation2 + $0x108] sm:$0xff] }
 0x450   : > { %3102 = vmatmul.f32.gmra.mxu3 %v3009_v10 }
 0x451   : > { %3296 = vmatmul.f32.gmra.mxu0 %v3203_v21  ;;  %2842 = vmatmul.f32.gmra.mxu1 %v2544_v63 }
 0x456   : > { %v6783_v1 = vpop.f32.mrf.mxu1 }
 0x457   : > { %2940 = vmatmul.f32.gmra.mxu2 %v3201_v32 }
 0x458   : > { %3105 = vmatmul.f32.gmra.mxu3 %v3010_v51  ;;  %v3017_v51 = vld [vmem:[#allocation2 + $0x10a] sm:$0xff] }
 0x459   : > { %3299 = vmatmul.f32.gmra.mxu0 %v3204_v9  ;;  %2845 = vmatmul.f32.gmra.mxu1 %v2545_v8  ;;  %v3206_v8 = vld [vmem:[#allocation2 + $0xe0] sm:$0xff] }
 0x45e   : > { %v3255_v35 = vpop.f32.mrf.mxu0  ;;  %v6787_v55 = vpop.f32.mrf.mxu1 }
 0x45f   : > { %2943 = vmatmul.f32.gmra.mxu2 %v3202_v2 }
 0x460   : > { %3108 = vmatmul.f32.gmra.mxu3 %v3011_v57  ;;  %v3418_v57 = vld [vmem:[#allocation5 + $0x210] sm:$0xff] }
 0x461   : > { %3302 = vmatmul.f32.gmra.mxu0 %v3205_v13  ;;  %2848 = vmatmul.f32.gmra.mxu1 %v2546_v0  ;;  %v3013_v0 = vld [vmem:[#allocation2 + $0xda] sm:$0xff] }
 0x463   : > { %v3061_v63 = vpop.f32.mrf.mxu3 }
 0x466   : > { %v3258_v56 = vpop.f32.mrf.mxu0  ;;  %v6791_v30 = vpop.f32.mrf.mxu1 }
 0x467   : > { %2946 = vmatmul.f32.gmra.mxu2 %v3203_v21 }
 0x468   : > { %3111 = vmatmul.f32.gmra.mxu3 %v3012_v58  ;;  %v6827_v58 = vld [vmem:[#allocation2 + $0x128] sm:$0xff] }
 0x469   : > { %3305 = vmatmul.f32.gmra.mxu0 %v3206_v8  ;;  %2851 = vmatmul.f32.gmra.mxu1 %v2547_v22 }
 0x46a   : > { %v2899_v48 = vpop.f32.mrf.mxu2 }
 0x46b   : > { %v2900_v33 = vadd.f32 %v2899_v48, %v2786_v53  ;;  %v3064_v12 = vpop.f32.mrf.mxu3  ;;  %v3419_v53 = vld [vmem:[#allocation5 + $0x218] sm:$0xff] }
 0x46c   : > { %3444 = vmatpush.msrb.mxu1 %v3419_v53 }
 0x46d   : > { %v3157_v62 = vadd.f32 %v3061_v63, %v2900_v33 }
 0x46e   : > { %v3261_v47 = vpop.f32.mrf.mxu0  ;;  %v6797_v61 = vpop.f32.mrf.mxu1  ;;  %3445 = vmatpush.msrb.mxu1 %v3418_v57  ;;  %v3622_v57 = vld [vmem:[#allocation5 + $0x2e0] sm:$0xff] }
 0x46f   : > { %2949 = vmatmul.f32.gmra.mxu2 %v3204_v9  ;;  %v6793_v5 = vadd.f32 %v3255_v35, %v3157_v62  ;;  %v3211_v35 = vld [vmem:[#allocation2 + $0x120] sm:$0xff] }
 0x470   : > { %3114 = vmatmul.f32.gmra.mxu3 %v3013_v0  ;;  %v3019_v62 = vld [vmem:[#allocation2 + $0x122] sm:$0xff]  ;;  %v2749_v0 = vld [vmem:[#allocation2 + $0x159] sm:$0xff] }
 0x471   : > { %3308 = vmatmul.f32.gmra.mxu0 %v3207_v19  ;;  %2854 = vmatmul.f32.gmra.mxu1 %v2548_v15 }
 0x472   : > { %v2902_v11 = vpop.f32.mrf.mxu2 }
 0x473   : > { %v2903_v22 = vadd.f32 %v2902_v11, %v2789_v59  ;;  %v3067_v49 = vpop.f32.mrf.mxu3 }
 0x475   : > { %v3158_v31 = vadd.f32 %v3064_v12, %v2903_v22 }
 0x476   : > { %v3264_v7 = vpop.f32.mrf.mxu0  ;;  %v6804_v36 = vpop.f32.mrf.mxu1 }
 0x477   : > { %2952 = vmatmul.f32.gmra.mxu2 %v3205_v13  ;;  %v6799_v17 = vadd.f32 %v3258_v56, %v3158_v31  ;;  %v3018_v56 = vld [vmem:[#allocation2 + $0x112] sm:$0xff]  ;;  %v3818_v31 = vld [vmem:[#allocation5 + $0x370] sm:$0xff] }
 0x478   : > { %3117 = vmatmul.f32.gmra.mxu3 %v3014_v18 }
 0x479   : > { %3311 = vmatmul.f32.gmra.mxu0 %v3208_v43  ;;  %2857 = vmatmul.f32.gmra.mxu1 %v2549_v16 }
 0x47a   : > { %v2905_v52 = vpop.f32.mrf.mxu2  ;;  %3821 = vmatpush.msra.mxu3 %v3818_v31  ;;  %v6872_v31 = vld [vmem:[#allocation2 + $0x158] sm:$0xff] }
 0x47b   : > { %v2906_v15 = vadd.f32 %v2905_v52, %v6775_v41  ;;  %v3070_v4 = vpop.f32.mrf.mxu3  ;;  %v3210_v41 = vld [vmem:[#allocation2 + $0x110] sm:$0xff]  ;;  %v3817_v52 = vld [vmem:[#allocation5 + $0x368] sm:$0xff] }
 0x47c   : > { %3822 = vmatpush.msra.mxu3 %v3817_v52  ;;  %v3808_v52 = vld [vmem:[#allocation5 + $0x320] sm:$0xff] }
 0x47d   : > { %v3159_v34 = vadd.f32 %v3067_v49, %v2906_v15  ;;  %v4011_v15 = vld [vmem:[#allocation5 + $0x3e8] sm:$0xff] }
 0x47e   : > { %v3267_v40 = vpop.f32.mrf.mxu0  ;;  %v6811_v54 = vpop.f32.mrf.mxu1 }
 0x47f   : > { %2955 = vmatmul.f32.gmra.mxu2 %v3206_v8  ;;  %v6806_v23 = vadd.f32 %v3261_v47, %v3159_v34  ;;  %v6839_v47 = vld [vmem:[#allocation2 + $0x138] sm:$0xff]  ;;  %v4010_v34 = vld [vmem:[#allocation5 + $0x3e0] sm:$0xff] }
 0x480   : > { %3120 = vmatmul.f32.gmra.mxu3 %v3015_v24  ;;  %v3625_v24 = vld [vmem:[#allocation5 + $0x2f8] sm:$0xff] }
 0x481   : > { %3314 = vmatmul.f32.gmra.mxu0 %v3209_v37  ;;  %2860 = vmatmul.f32.gmra.mxu1 %v2550_v44 }
 0x482   : > { %v2908_v29 = vpop.f32.mrf.mxu2  ;;  %3626 = vmatpush.msra.mxu2 %v3625_v24  ;;  %v3807_v24 = vld [vmem:[#allocation5 + $0x318] sm:$0xff] }
 0x483   : > { %v2909_v16 = vadd.f32 %v2908_v29, %v6779_v26  ;;  %v3073_v6 = vpop.f32.mrf.mxu3  ;;  %v3815_v29 = vld [vmem:[#allocation5 + $0x358] sm:$0xff] }
 0x485   : > { %v3160_v32 = vadd.f32 %v3070_v4, %v2909_v16  ;;  %v3020_v4 = vld [vmem:[#allocation2 + $0x12a] sm:$0xff] }
 0x486   : > { %v3270_v59 = vpop.f32.mrf.mxu0  ;;  %v6818_v3 = vpop.f32.mrf.mxu1  ;;  %v2750_v16 = vld [vmem:[#allocation2 + $0x169] sm:$0xff] }
 0x487   : > { %2958 = vmatmul.f32.gmra.mxu2 %v3207_v19  ;;  %v6813_v2 = vadd.f32 %v3264_v7, %v3160_v32  ;;  %v3417_v19 = vld [vmem:[#allocation5 + $0x208] sm:$0xff]  ;;  %v4012_v7 = vld [vmem:[#allocation5 + $0x3f0] sm:$0xff] }
 0x488   : > { %3123 = vmatmul.f32.gmra.mxu3 %v3016_v14  ;;  %3446 = vmatpush.msrb.mxu1 %v3417_v19  ;;  %v3620_v19 = vld [vmem:[#allocation5 + $0x2d0] sm:$0xff] }
 0x489   : > { %3317 = vmatmul.f32.gmra.mxu0 %v3210_v41  ;;  %2863 = vmatmul.f32.gmra.mxu1 %v2551_v28 }
 0x48a   : > { %v2911_v42 = vpop.f32.mrf.mxu2 }
 0x48b   : > { %v2912_v44 = vadd.f32 %v2911_v42, %v6783_v1  ;;  %v3076_v10 = vpop.f32.mrf.mxu3  ;;  %v3814_v42 = vld [vmem:[#allocation5 + $0x350] sm:$0xff] }
 0x48d   : > { %v3161_v21 = vadd.f32 %v3073_v6, %v2912_v44  ;;  %v4008_v44 = vld [vmem:[#allocation5 + $0x3d0] sm:$0xff] }
 0x48e   : > { %v3273_v26 = vpop.f32.mrf.mxu0  ;;  %v6825_v20 = vpop.f32.mrf.mxu1 }
 0x48f   : > { %2961 = vmatmul.f32.gmra.mxu2 %v3208_v43  ;;  %v6820_v9 = vadd.f32 %v3267_v40, %v3161_v21  ;;  %v6849_v40 = vld [vmem:[#allocation2 + $0x140] sm:$0xff] }
 0x490   : > { %3126 = vmatmul.f32.gmra.mxu3 %v3017_v51  ;;  %v3813_v51 = vld [vmem:[#allocation5 + $0x348] sm:$0xff] }
 0x491   : > { %3320 = vmatmul.f32.gmra.mxu0 %v3211_v35  ;;  %2866 = vmatmul.f32.gmra.mxu1 %v2552_v27 }
 0x492   : > { %v2914_v60 = vpop.f32.mrf.mxu2 }
 0x493   : > { %v2915_v28 = vadd.f32 %v2914_v60, %v6787_v55  ;;  %v3079_v1 = vpop.f32.mrf.mxu3  ;;  %v6860_v60 = vld [vmem:[#allocation2 + $0x150] sm:$0xff] }
 0x495   : > { %v3162_v13 = vadd.f32 %v3076_v10, %v2915_v28  ;;  %v3812_v28 = vld [vmem:[#allocation5 + $0x340] sm:$0xff] }
 0x496   : > { %v3276_v63 = vpop.f32.mrf.mxu0  ;;  %v6835_v33 = vpop.f32.mrf.mxu1 }
 0x497   : > { %2964 = vmatmul.f32.gmra.mxu2 %v3209_v37  ;;  %v6829_v8 = vadd.f32 %v3270_v59, %v3162_v13  ;;  %v4009_v37 = vld [vmem:[#allocation5 + $0x3d8] sm:$0xff]  ;;  %v3416_v13 = vld [vmem:[#allocation5 + $0x200] sm:$0xff] }
 0x498   : > { %3129 = vmatmul.f32.gmra.mxu3 %v3018_v56  ;;  %3447 = vmatpush.msrb.mxu1 %v3416_v13  ;;  %v3998_v13 = vld [vmem:[#allocation5 + $0x380] sm:$0xff] }
 0x499   : > { %3323 = vmatmul.f32.gmra.mxu0 %v6827_v58  ;;  %2869 = vmatmul.f32.gmra.mxu1 %v2553_v45  ;;  %v4013_v45 = vld [vmem:[#allocation5 + $0x3f8] sm:$0xff] }
 0x49a   : > { %v2917_v50 = vpop.f32.mrf.mxu2  ;;  %4014 = vmatpush.msra.mxu0 %v4013_v45  ;;  %v4004_v45 = vld [vmem:[#allocation5 + $0x3b0] sm:$0xff] }
 0x49b   : > { %v2918_v27 = vadd.f32 %v2917_v50, %v6791_v30  ;;  %v3082_v55 = vpop.f32.mrf.mxu3  ;;  %v3811_v50 = vld [vmem:[#allocation5 + $0x338] sm:$0xff] }
 0x49c   : > { %4015 = vmatpush.msra.mxu0 %v4012_v7  ;;  %v3618_v7 = vld [vmem:[#allocation5 + $0x2c0] sm:$0xff] }
 0x49d   : > { %v3163_v48 = vadd.f32 %v3079_v1, %v2918_v27  ;;  %v4006_v1 = vld [vmem:[#allocation5 + $0x3c0] sm:$0xff] }
 0x49e   : > { %v6837_v12 = vpop.f32.mrf.mxu0  ;;  %v6845_v18 = vpop.f32.mrf.mxu1  ;;  %4016 = vmatpush.msra.mxu0 %v4011_v15  ;;  %v4002_v15 = vld [vmem:[#allocation5 + $0x3a0] sm:$0xff] }
 0x49f   : > { %2967 = vmatmul.f32.gmra.mxu2 %v3210_v41  ;;  %v6842_v46 = vadd.f32 %v3273_v26, %v3163_v48  ;;  %v3624_v41 = vld [vmem:[#allocation5 + $0x2f0] sm:$0xff]  ;;  %v3623_v26 = vld [vmem:[#allocation5 + $0x2e8] sm:$0xff] }
 0x4a0   : > { %3132 = vmatmul.f32.gmra.mxu3 %v3019_v62  ;;  %4017 = vmatpush.msra.mxu0 %v4010_v34  ;;  %v2751_v48 = vld [vmem:[#allocation2 + $0x171] sm:$0xff]  ;;  %v3617_v34 = vld [vmem:[#allocation5 + $0x2b8] sm:$0xff] }
 0x4a1   : > { %3326 = vmatmul.f32.gmra.mxu0 %v6839_v47  ;;  %2872 = vmatmul.f32.gmra.mxu1 %v2749_v0 }
 0x4a2   : > { %v2920_v30 = vpop.f32.mrf.mxu2  ;;  %4018 = vmatpush.msra.mxu0 %v4009_v37  ;;  %3627 = vmatpush.msra.mxu2 %v3624_v41  ;;  %v4001_v37 = vld [vmem:[#allocation5 + $0x398] sm:$0xff]  ;;  %v3023_v41 = vld [vmem:[#allocation2 + $0x152] sm:$0xff] }
 0x4a3   : > { %v2921_v11 = vadd.f32 %v2920_v30, %v6797_v61  ;;  %v3085_v22 = vpop.f32.mrf.mxu3  ;;  %v3816_v61 = vld [vmem:[#allocation5 + $0x360] sm:$0xff] }
 0x4a4   : > { %3823 = vmatpush.msra.mxu3 %v3816_v61  ;;  %4019 = vmatpush.msra.mxu0 %v4008_v44  ;;  %v3615_v44 = vld [vmem:[#allocation5 + $0x2a8] sm:$0xff] }
 0x4a5   : > { %v3164_v49 = vadd.f32 %v3082_v55, %v2921_v11  ;;  %3628 = vmatpush.msra.mxu2 %v3623_v26  ;;  %v4005_v55 = vld [vmem:[#allocation5 + $0x3b8] sm:$0xff] }
 0x4a6   : > { %v6847_v43 = vpop.f32.mrf.mxu0  ;;  %3824 = vmatpush.msra.mxu3 %v3815_v29  ;;  %v6855_v10 = vpop.f32.mrf.mxu1  ;;  %v6884_v26 = vld [vmem:[#allocation2 + $0x168] sm:$0xff] }
 0x4a7   : > { %2970 = vmatmul.f32.gmra.mxu2 %v3211_v35  ;;  %v6853_v59 = vadd.f32 %v3276_v63, %v3164_v49  ;;  %v4007_v35 = vld [vmem:[#allocation5 + $0x3c8] sm:$0xff]  ;;  %v3621_v63 = vld [vmem:[#allocation5 + $0x2d8] sm:$0xff] }
 0x4a8   : > { %3135 = vmatmul.f32.gmra.mxu3 %v3020_v4  ;;  %4020 = vmatpush.msra.mxu0 %v4007_v35  ;;  %v3809_v49 = vld [vmem:[#allocation5 + $0x328] sm:$0xff]  ;;  %v4207_v35 = vld [vmem:[#allocation5 + $0x478] sm:$0xff] }
 0x4a9   : > { %3329 = vmatmul.f32.gmra.mxu0 %v6849_v40  ;;  %2875 = vmatmul.f32.gmra.mxu1 %v2750_v16  ;;  %v3616_v16 = vld [vmem:[#allocation5 + $0x2b0] sm:$0xff] }
 0x4aa   : > { %v2923_v53 = vpop.f32.mrf.mxu2  ;;  %3825 = vmatpush.msra.mxu3 %v3814_v42  ;;  %3629 = vmatpush.msra.mxu2 %v3622_v57  ;;  %v4000_v42 = vld [vmem:[#allocation5 + $0x390] sm:$0xff] }
 0x4ab   : > { %v2924_v6 = vadd.f32 %v2923_v53, %v6804_v36  ;;  %v3088_v32 = vpop.f32.mrf.mxu3  ;;  %v3021_v36 = vld [vmem:[#allocation2 + $0x13a] sm:$0xff]  ;;  %4021 = vmatpush.msra.mxu0 %v4006_v1  ;;  %4208 = vmatpush.msra.mxu1 %v4207_v35 }
 0x4ac   : > { %3826 = vmatpush.msra.mxu3 %v3813_v51  ;;  %3630 = vmatpush.msra.mxu2 %v3621_v63  ;;  %v3383_v53 = vld [vmem:[#allocation2 + $0x19] sm:$0xff]  ;;  %v3613_v63 = vld [vmem:[#allocation5 + $0x298] sm:$0xff] }
 0x4ad   : > { %v3165_v14 = vadd.f32 %v3085_v22, %v2924_v6  ;;  %4022 = vmatpush.msra.mxu0 %v4005_v55  ;;  %v3022_v22 = vld [vmem:[#allocation2 + $0x142] sm:$0xff]  ;;  %v3805_v51 = vld [vmem:[#allocation5 + $0x308] sm:$0xff] }
 0x4ae   : > { %v6857_v21 = vpop.f32.mrf.mxu0  ;;  %3827 = vmatpush.msra.mxu3 %v3812_v28  ;;  %v6867_v30 = vpop.f32.mrf.mxu1  ;;  %3631 = vmatpush.msra.mxu2 %v3620_v19  ;;  %v3804_v28 = vld [vmem:[#allocation5 + $0x300] sm:$0xff] }
 0x4af   : > { %2973 = vmatmul.f32.gmra.mxu2 %v6827_v58  ;;  %v6865_v62 = vadd.f32 %v6837_v12, %v3165_v14  ;;  %v4003_v12 = vld [vmem:[#allocation5 + $0x3a8] sm:$0xff]  ;;  %4023 = vmatpush.msra.mxu0 %v4004_v45  ;;  %v3218_v19 = vld [vmem:[#allocation2 + $0x170] sm:$0xff] }
 0x4b0   : > { %3138 = vmatmul.f32.gmra.mxu3 %v3021_v36  ;;  %v3614_v36 = vld [vmem:[#allocation5 + $0x2a0] sm:$0xff] }
 0x4b1   : > { %3332 = vmatmul.f32.gmra.mxu0 %v6860_v60  ;;  %3828 = vmatpush.msra.mxu3 %v3811_v50 }
 0x4b2   : > { %v2926_v56 = vpop.f32.mrf.mxu2  ;;  %2878 = vmatmul.f32.gmra.mxu1 %v2751_v48  ;;  %4024 = vmatpush.msra.mxu0 %v4003_v12 }
 0x4b3   : > { %v2927_v58 = vadd.f32 %v2926_v56, %v6811_v54  ;;  %v3091_v27 = vpop.f32.mrf.mxu3  ;;  %v3619_v54 = vld [vmem:[#allocation5 + $0x2c8] sm:$0xff]  ;;  %3829 = vmatpush.msra.mxu3 %v3810_v38  ;;  %v3384_v56 = vld [vmem:[#allocation2 + $0x21] sm:$0xff]  ;;  %v3610_v38 = vld [vmem:[#allocation5 + $0x280] sm:$0xff] }
 0x4b4   : > { %3632 = vmatpush.msra.mxu2 %v3619_v54  ;;  %4025 = vmatpush.msra.mxu0 %v4002_v15  ;;  %v3219_v15 = vld [vmem:[#allocation2 + $0x180] sm:$0xff] }
 0x4b5   : > { %v3166_v0 = vadd.f32 %v3088_v32, %v2927_v58  ;;  %3830 = vmatpush.msra.mxu3 %v3809_v49  ;;  %v3612_v58 = vld [vmem:[#allocation5 + $0x290] sm:$0xff]  ;;  %v3965_v49 = vld [vmem:[#allocation2 + $0x31] sm:$0xff] }
 0x4b6   : > { %v6869_v11 = vpop.f32.mrf.mxu0  ;;  %3633 = vmatpush.msra.mxu2 %v3618_v7  ;;  %v6876_v6 = vpop.f32.mrf.mxu1  ;;  %4026 = vmatpush.msra.mxu0 %v4001_v37 }
 0x4b7   : > { %2976 = vmatmul.f32.gmra.mxu2 %v6839_v47  ;;  %3831 = vmatpush.msra.mxu3 %v3808_v52  ;;  %v6879_v32 = vadd.f32 %v6847_v43, %v3166_v0  ;;  %v3999_v43 = vld [vmem:[#allocation5 + $0x388] sm:$0xff]  ;;  %v3025_v52 = vld [vmem:[#allocation2 + $0x16a] sm:$0xff] }
 0x4b8   : > { %3141 = vmatmul.f32.gmra.mxu3 %v3022_v22  ;;  %3634 = vmatpush.msra.mxu2 %v3617_v34  ;;  %v3611_v0 = vld [vmem:[#allocation5 + $0x288] sm:$0xff] }
 0x4b9   : > { %3335 = vmatmul.f32.gmra.mxu0 %v6872_v31  ;;  %3832 = vmatpush.msra.mxu3 %v3807_v24 }
 0x4ba   : > { %v2929_v4 = vpop.f32.mrf.mxu2  ;;  %3448 = vmatmul.f32.vlgmr.msrb.gmra.mxu1 %v3383_v53  ;;  %3635 = vmatpush.msra.mxu2 %v3616_v16 }
 0x4bb   : > { %v2930_v47 = vadd.f32 %v2929_v4, %v6818_v3  ;;  %v3094_v61 = vpop.f32.mrf.mxu3  ;;  %v3806_v3 = vld [vmem:[#allocation5 + $0x310] sm:$0xff]  ;;  %4027 = vmatpush.msra.mxu0 %v4000_v42 }
 0x4bc   : > { %3833 = vmatpush.msra.mxu3 %v3806_v3  ;;  %3636 = vmatpush.msra.mxu2 %v3615_v44  ;;  %v4206_v4 = vld [vmem:[#allocation5 + $0x470] sm:$0xff] }
 0x4bd   : > { %v3167_v29 = vadd.f32 %v3091_v27, %v2930_v47  ;;  %4028 = vmatpush.msra.mxu0 %v3999_v43  ;;  %4209 = vmatpush.msra.mxu1 %v4206_v4  ;;  %v3774_v4 = vld [vmem:[#allocation2 + $0x50] sm:$0xff] }
 0x4be   : > { %v6881_v14 = vpop.f32.mrf.mxu0  ;;  %3834 = vmatpush.msra.mxu3 %v3805_v51  ;;  %3637 = vmatpush.msra.mxu2 %v3614_v36  ;;  %v6888_v27 = vpop.f32.mrf.mxu1 }
 0x4bf   : > { %2979 = vmatmul.f32.gmra.mxu2 %v6849_v40  ;;  %4029 = vmatpush.msra.mxu0 %v3998_v13  ;;  %v6891_v48 = vadd.f32 %v6857_v21, %v3167_v29  ;;  %v6908_v29 = vld [vmem:[#allocation2 + $0x188] sm:$0xff]  ;;  %v3772_v13 = vld [vmem:[#allocation2 + $0x38] sm:$0xff] }
 0x4c0   : > { %3144 = vmatmul.f32.gmra.mxu3 %v3023_v41  ;;  %3638 = vmatpush.msra.mxu2 %v3613_v63  ;;  %v3967_v41 = vld [vmem:[#allocation2 + $0x49] sm:$0xff] }
 0x4c1   : > { %3338 = vmatmul.f32.gmra.mxu0 %v6884_v26  ;;  %3835 = vmatpush.msra.mxu3 %v3804_v28 }
 0x4c2   : > { %v2932_v57 = vpop.f32.mrf.mxu2  ;;  %3451 = vmatmul.f32.gmra.mxu1 %v3384_v56  ;;  %3639 = vmatpush.msra.mxu2 %v3612_v58  ;;  %v3969_v58 = vld [vmem:[#allocation2 + $0x61] sm:$0xff] }
 0x4c3   : > { %v2933_v40 = vadd.f32 %v2932_v57, %v6825_v20  ;;  %v3097_v1 = vpop.f32.mrf.mxu3  ;;  %v3024_v20 = vld [vmem:[#allocation2 + $0x15a] sm:$0xff] }
 0x4c4   : > { %3640 = vmatpush.msra.mxu2 %v3611_v0  ;;  %v3578_v0 = vld [vmem:[#allocation2 + $0x22] sm:$0xff] }
 0x4c5   : > { %v3168_v50 = vadd.f32 %v3094_v61, %v2933_v40  ;;  %v3966_v61 = vld [vmem:[#allocation2 + $0x39] sm:$0xff] }
 0x4c6   : > { %v3294_v55 = vpop.f32.mrf.mxu0  ;;  %3641 = vmatpush.msra.mxu2 %v3610_v38  ;;  %v6895_v7 = vpop.f32.mrf.mxu1  ;;  %v4204_v38 = vld [vmem:[#allocation5 + $0x460] sm:$0xff] }
 0x4c7   : > { %2982 = vmatmul.f32.gmra.mxu2 %v6860_v60  ;;  %v6898_v60 = vadd.f32 %v6869_v11, %v3168_v50  ;;  %v3026_v11 = vld [vmem:[#allocation2 + $0x172] sm:$0xff] }
 0x4c8   : > { %3147 = vmatmul.f32.gmra.mxu3 %v3024_v20 }
 0x4c9   : > { %3341 = vmatmul.f32.gmra.mxu0 %v3218_v19 }
 0x4ca   : > { %v2935_v45 = vpop.f32.mrf.mxu2  ;;  %3454 = vmatmul.f32.gmra.mxu1 %v3965_v49 }
 0x4cb   : > { %v2936_v54 = vadd.f32 %v2935_v45, %v6835_v33  ;;  %v3100_v22 = vpop.f32.mrf.mxu3 }
 0x4cd   : > { %v3169_v12 = vadd.f32 %v3097_v1, %v2936_v54  ;;  %v3577_v1 = vld [vmem:[#allocation2 + $0x1a] sm:$0xff] }
 0x4ce   : > { %v3297_v21 = vpop.f32.mrf.mxu0  ;;  %v6902_v37 = vpop.f32.mrf.mxu1 }
 0x4cf   : > { %2985 = vmatmul.f32.gmra.mxu2 %v6872_v31  ;;  %v6906_v31 = vadd.f32 %v6881_v14, %v3169_v12 }
 0x4d0   : > { %3150 = vmatmul.f32.gmra.mxu3 %v3025_v52 }
 0x4d1   : > { %3344 = vmatmul.f32.gmra.mxu0 %v3219_v15  ;;  %v6930_v15 = vld [vmem:[#allocation2 + $0x32] sm:$0xff] }
 0x4d2   : > { %v2938_v34 = vpop.f32.mrf.mxu2  ;;  %3457 = vmatmul.f32.gmra.mxu1 %v3966_v61 }
 0x4d3   : > { %v2939_v33 = vadd.f32 %v2938_v34, %v6845_v18  ;;  %v3103_v47 = vpop.f32.mrf.mxu3 }
 0x4d5   : > { %v3170_v24 = vadd.f32 %v3100_v22, %v2939_v33 }
 0x4d6   : > { %v3300_v53 = vpop.f32.mrf.mxu0  ;;  %v6912_v44 = vpop.f32.mrf.mxu1 }
 0x4d7   : > { %2988 = vmatmul.f32.gmra.mxu2 %v6884_v26  ;;  %v6915_v14 = vadd.f32 %v3294_v55, %v3170_v24  ;;  %v4205_v26 = vld [vmem:[#allocation5 + $0x468] sm:$0xff] }
 0x4d8   : > { %3153 = vmatmul.f32.gmra.mxu3 %v3026_v11  ;;  %4210 = vmatpush.msra.mxu1 %v4205_v26  ;;  %v3972_v26 = vld [vmem:[#allocation2 + $0x81] sm:$0xff] }
 0x4d9   : > { %3347 = vmatmul.f32.gmra.mxu0 %v6908_v29 }
 0x4da   : > { %v2941_v16 = vpop.f32.mrf.mxu2  ;;  %3460 = vmatmul.f32.gmra.mxu1 %v3967_v41 }
 0x4db   : > { %v2942_v18 = vadd.f32 %v2941_v16, %v6855_v10  ;;  %v3106_v3 = vpop.f32.mrf.mxu3  ;;  %v3968_v10 = vld [vmem:[#allocation2 + $0x51] sm:$0xff]  ;;  %4211 = vmatpush.msra.mxu1 %v4204_v38  ;;  %v6938_v16 = vld [vmem:[#allocation2 + $0x3a] sm:$0xff] }
 0x4dd   : > { %v3171_v42 = vadd.f32 %v3103_v47, %v2942_v18  ;;  %v3775_v18 = vld [vmem:[#allocation2 + $0x60] sm:$0xff] }
 0x4de   : > { %v3303_v51 = vpop.f32.mrf.mxu0  ;;  %v6918_v28 = vpop.f32.mrf.mxu1 }
 0x4df   : > { %2991 = vmatmul.f32.gmra.mxu2 %v3218_v19  ;;  %v3773_v19 = vld [vmem:[#allocation2 + $0x48] sm:$0xff] }
 0x4e0   : > { %3836 = vmatmul.f32.vlgmr.msra.gmra.mxu3 %v6746_v25  ;;  %v6920_v25 = vadd.f32 %v3297_v21, %v3171_v42 }
 0x4e1   : > { %4030 = vmatmul.f32.vlgmr.msra.gmra.mxu0 %v3965_v49  ;;  %v3970_v49 = vld [vmem:[#allocation2 + $0x69] sm:$0xff] }
 0x4e2   : > { %v2944_v43 = vpop.f32.mrf.mxu2  ;;  %3463 = vmatmul.f32.gmra.mxu1 %v3968_v10 }
 0x4e3   : > { %v2945_v36 = vadd.f32 %v2944_v43, %v6867_v30  ;;  %v3109_v35 = vpop.f32.mrf.mxu3 }
 0x4e5   : > { %v3172_v57 = vadd.f32 %v3106_v3, %v2945_v36  ;;  %v4203_v3 = vld [vmem:[#allocation5 + $0x458] sm:$0xff] }
 0x4e6   : > { %v3306_v40 = vpop.f32.mrf.mxu0  ;;  %v6923_v55 = vpop.f32.mrf.mxu1  ;;  %4212 = vmatpush.msra.mxu1 %v4203_v3 }
 0x4e7   : > { %3642 = vmatmul.f32.vlgmr.msra.gmra.mxu2 %v3577_v1  ;;  %v6925_v45 = vadd.f32 %v3300_v53, %v3172_v57  ;;  %v3776_v57 = vld [vmem:[#allocation2 + $0x68] sm:$0xff] }
 0x4e8   : > { %3839 = vmatmul.f32.gmra.mxu3 %v3772_v13 }
 0x4e9   : > { %4033 = vmatmul.f32.gmra.mxu0 %v3966_v61  ;;  %v3971_v61 = vld [vmem:[#allocation2 + $0x79] sm:$0xff] }
 0x4ea   : > { %v2947_v63 = vpop.f32.mrf.mxu2  ;;  %3466 = vmatmul.f32.gmra.mxu1 %v3969_v58 }
 0x4eb   : > { %v2948_v56 = vadd.f32 %v2947_v63, %v6876_v6  ;;  %v3112_v50 = vpop.f32.mrf.mxu3 }
 0x4ed   : > { %v3173_v30 = vadd.f32 %v3109_v35, %v2948_v56 }
 0x4ee   : > { %v3309_v20 = vpop.f32.mrf.mxu0  ;;  %v6928_v21 = vpop.f32.mrf.mxu1 }
 0x4ef   : > { %3645 = vmatmul.f32.gmra.mxu2 %v3578_v0  ;;  %v6933_v33 = vadd.f32 %v3303_v51, %v3173_v30  ;;  %v6954_v30 = vld [vmem:[#allocation2 + $0x52] sm:$0xff] }
 0x4f0   : > { %3842 = vmatmul.f32.gmra.mxu3 %v3773_v19  ;;  %v3777_v0 = vld [vmem:[#allocation2 + $0x78] sm:$0xff]  ;;  %v4202_v19 = vld [vmem:[#allocation5 + $0x450] sm:$0xff] }
 0x4f1   : > { %4036 = vmatmul.f32.gmra.mxu0 %v3967_v41  ;;  %4213 = vmatpush.msra.mxu1 %v4202_v19 }
 0x4f2   : > { %v2950_v54 = vpop.f32.mrf.mxu2  ;;  %3469 = vmatmul.f32.gmra.mxu1 %v3970_v49 }
 0x4f3   : > { %v2951_v22 = vadd.f32 %v2950_v54, %v6888_v27  ;;  %v3115_v6 = vpop.f32.mrf.mxu3 }
 0x4f5   : > { %v3174_v12 = vadd.f32 %v3112_v50, %v2951_v22  ;;  %v3974_v22 = vld [vmem:[#allocation2 + $0x99] sm:$0xff] }
 0x4f6   : > { %v3312_v52 = vpop.f32.mrf.mxu0  ;;  %v6936_v53 = vpop.f32.mrf.mxu1 }
 0x4f7   : > { %3648 = vmatmul.f32.gmra.mxu2 %v6930_v15  ;;  %v6942_v51 = vadd.f32 %v3306_v40, %v3174_v12  ;;  %v3973_v40 = vld [vmem:[#allocation2 + $0x91] sm:$0xff] }
 0x4f8   : > { %3845 = vmatmul.f32.gmra.mxu3 %v3774_v4  ;;  %v6962_v4 = vld [vmem:[#allocation2 + $0x62] sm:$0xff] }
 0x4f9   : > { %4039 = vmatmul.f32.gmra.mxu0 %v3968_v10  ;;  %v6946_v10 = vld [vmem:[#allocation2 + $0x4a] sm:$0xff] }
 0x4fa   : > { %v2953_v34 = vpop.f32.mrf.mxu2  ;;  %3472 = vmatmul.f32.gmra.mxu1 %v3971_v61 }
 0x4fb   : > { %v2954_v47 = vadd.f32 %v2953_v34, %v6895_v7  ;;  %v3118_v27 = vpop.f32.mrf.mxu3  ;;  %v3778_v34 = vld [vmem:[#allocation2 + $0x80] sm:$0xff] }
 0x4fd   : > { %v3175_v24 = vadd.f32 %v3115_v6, %v2954_v47 }
 0x4fe   : > { %v3315_v11 = vpop.f32.mrf.mxu0  ;;  %v6944_v36 = vpop.f32.mrf.mxu1 }
 0x4ff   : > { %3651 = vmatmul.f32.gmra.mxu2 %v6938_v16  ;;  %v6950_v63 = vadd.f32 %v3309_v20, %v3175_v24 }
 0x500   : > { %3848 = vmatmul.f32.gmra.mxu3 %v3775_v18 }
 0x501   : > { %4042 = vmatmul.f32.gmra.mxu0 %v3969_v58 }
 0x502   : > { %v2956_v41 = vpop.f32.mrf.mxu2  ;;  %3475 = vmatmul.f32.gmra.mxu1 %v3972_v26 }
 0x503   : > { %v2957_v42 = vadd.f32 %v2956_v41, %v6902_v37  ;;  %v3121_v7 = vpop.f32.mrf.mxu3  ;;  %v6970_v41 = vld [vmem:[#allocation2 + $0x6a] sm:$0xff] }
 0x505   : > { %v3176_v43 = vadd.f32 %v3118_v27, %v2957_v42  ;;  %v3779_v42 = vld [vmem:[#allocation2 + $0x90] sm:$0xff] }
 0x506   : > { %v3318_v35 = vpop.f32.mrf.mxu0  ;;  %v6952_v50 = vpop.f32.mrf.mxu1 }
 0x507   : > { %3654 = vmatmul.f32.gmra.mxu2 %v6946_v10  ;;  %v6958_v54 = vadd.f32 %v3312_v52, %v3176_v43  ;;  %v3975_v52 = vld [vmem:[#allocation2 + $0xa9] sm:$0xff] }
 0x508   : > { %3851 = vmatmul.f32.gmra.mxu3 %v3776_v57  ;;  %v3976_v57 = vld [vmem:[#allocation2 + $0xb1] sm:$0xff] }
 0x509   : > { %4045 = vmatmul.f32.gmra.mxu0 %v3970_v49 }
 0x50a   : > { %v2959_v1 = vpop.f32.mrf.mxu2  ;;  %3478 = vmatmul.f32.gmra.mxu1 %v3973_v40 }
 0x50b   : > { %v2960_v13 = vadd.f32 %v2959_v1, %v6912_v44  ;;  %v3124_v37 = vpop.f32.mrf.mxu3 }
 0x50d   : > { %v3177_v56 = vadd.f32 %v3121_v7, %v2960_v13  ;;  %v4201_v7 = vld [vmem:[#allocation5 + $0x448] sm:$0xff] }
 0x50e   : > { %v3321_v58 = vpop.f32.mrf.mxu0  ;;  %v6960_v49 = vpop.f32.mrf.mxu1  ;;  %4214 = vmatpush.msra.mxu1 %v4201_v7 }
 0x50f   : > { %3657 = vmatmul.f32.gmra.mxu2 %v6954_v30 }
 0x510   : > { %3854 = vmatmul.f32.gmra.mxu3 %v3777_v0  ;;  %v3780_v0 = vld [vmem:[#allocation2 + $0x98] sm:$0xff] }
 0x511   : > { %4048 = vmatmul.f32.gmra.mxu0 %v3971_v61  ;;  %v6966_v61 = vadd.f32 %v3315_v11, %v3177_v56  ;;  %v6978_v56 = vld [vmem:[#allocation2 + $0x7a] sm:$0xff] }
 0x512   : > { %v2962_v38 = vpop.f32.mrf.mxu2  ;;  %3481 = vmatmul.f32.gmra.mxu1 %v3974_v22 }
 0x513   : > { %v2963_v44 = vadd.f32 %v2962_v38, %v6918_v28  ;;  %v3127_v20 = vpop.f32.mrf.mxu3 }
 0x515   : > { %v3178_v6 = vadd.f32 %v3124_v37, %v2963_v44 }
 0x516   : > { %v3324_v12 = vpop.f32.mrf.mxu0  ;;  %v6968_v18 = vpop.f32.mrf.mxu1 }
 0x517   : > { %3660 = vmatmul.f32.gmra.mxu2 %v6962_v4  ;;  %v6974_v43 = vadd.f32 %v3318_v35, %v3178_v6  ;;  %v3977_v35 = vld [vmem:[#allocation2 + $0xc1] sm:$0xff] }
 0x518   : > { %3857 = vmatmul.f32.gmra.mxu3 %v3778_v34  ;;  %v6986_v34 = vld [vmem:[#allocation2 + $0x82] sm:$0xff] }
 0x519   : > { %4051 = vmatmul.f32.gmra.mxu0 %v3972_v26 }
 0x51a   : > { %v2965_v47 = vpop.f32.mrf.mxu2  ;;  %3484 = vmatmul.f32.gmra.mxu1 %v3975_v52 }
 0x51b   : > { %v2966_v27 = vadd.f32 %v2965_v47, %v6923_v55  ;;  %v3130_v28 = vpop.f32.mrf.mxu3  ;;  %v3781_v47 = vld [vmem:[#allocation2 + $0xa8] sm:$0xff] }
 0x51d   : > { %v3179_v24 = vadd.f32 %v3127_v20, %v2966_v27 }
 0x51e   : > { %v3327_v3 = vpop.f32.mrf.mxu0  ;;  %v6976_v13 = vpop.f32.mrf.mxu1 }
 0x51f   : > { %3663 = vmatmul.f32.gmra.mxu2 %v6970_v41  ;;  %v6982_v38 = vadd.f32 %v3321_v58, %v3179_v24  ;;  %v3978_v24 = vld [vmem:[#allocation2 + $0xc9] sm:$0xff] }
 0x520   : > { %3860 = vmatmul.f32.gmra.mxu3 %v3779_v42 }
 0x521   : > { %4054 = vmatmul.f32.gmra.mxu0 %v3973_v40 }
 0x522   : > { %v2968_v26 = vpop.f32.mrf.mxu2  ;;  %3487 = vmatmul.f32.gmra.mxu1 %v3976_v57 }
 0x523   : > { %v2969_v55 = vadd.f32 %v2968_v26, %v6928_v21  ;;  %v3133_v11 = vpop.f32.mrf.mxu3 }
 0x525   : > { %v3180_v1 = vadd.f32 %v3130_v28, %v2969_v55  ;;  %v6994_v55 = vld [vmem:[#allocation2 + $0x92] sm:$0xff] }
 0x526   : > { %v3330_v37 = vpop.f32.mrf.mxu0  ;;  %v6984_v20 = vpop.f32.mrf.mxu1 }
 0x527   : > { %3666 = vmatmul.f32.gmra.mxu2 %v6978_v56  ;;  %v6990_v28 = vadd.f32 %v3324_v12, %v3180_v1  ;;  %v3979_v12 = vld [vmem:[#allocation2 + $0xd9] sm:$0xff] }
 0x528   : > { %3863 = vmatmul.f32.gmra.mxu3 %v3780_v0 }
 0x529   : > { %4057 = vmatmul.f32.gmra.mxu0 %v3974_v22  ;;  %v4200_v22 = vld [vmem:[#allocation5 + $0x440] sm:$0xff] }
 0x52a   : > { %v2971_v40 = vpop.f32.mrf.mxu2  ;;  %3490 = vmatmul.f32.gmra.mxu1 %v3977_v35 }
 0x52b   : > { %v2972_v19 = vadd.f32 %v2971_v40, %v6936_v53  ;;  %v3136_v21 = vpop.f32.mrf.mxu3  ;;  %4215 = vmatpush.msra.mxu1 %v4200_v22 }
 0x52d   : > { %v3181_v44 = vadd.f32 %v3133_v11, %v2972_v19  ;;  %v3782_v11 = vld [vmem:[#allocation2 + $0xb0] sm:$0xff] }
 0x52e   : > { %v3333_v6 = vpop.f32.mrf.mxu0 }
 0x52f   : > { %3669 = vmatmul.f32.gmra.mxu2 %v6986_v34  ;;  %v6992_v7 = vpop.f32.mrf.mxu1  ;;  %v6998_v40 = vadd.f32 %v3327_v3, %v3181_v44 }
 0x530   : > { %3866 = vmatmul.f32.gmra.mxu3 %v3781_v47  ;;  %v7000_v47 = vld [vmem:[#allocation2 + $0x9a] sm:$0xff] }
 0x531   : > { %4060 = vmatmul.f32.gmra.mxu0 %v3975_v52 }
 0x532   : > { %v2974_v27 = vpop.f32.mrf.mxu2  ;;  %3493 = vmatmul.f32.gmra.mxu1 %v3978_v24 }
 0x533   : > { %v2975_v53 = vadd.f32 %v2974_v27, %v6944_v36  ;;  %v3139_v58 = vpop.f32.mrf.mxu3  ;;  %v3783_v27 = vld [vmem:[#allocation2 + $0xc0] sm:$0xff] }
 0x535   : > { %v3182_v42 = vadd.f32 %v3136_v21, %v2975_v53 }
 0x536   : > { %v3336_v26 = vpop.f32.mrf.mxu0 }
 0x537   : > { %3672 = vmatmul.f32.gmra.mxu2 %v6994_v55  ;;  %v3449_v19 = vpop.f32.mrf.mxu1  ;;  %v7007_v53 = vadd.f32 %v3330_v37, %v3182_v42 }
 0x538   : > { %3869 = vmatmul.f32.gmra.mxu3 %v3782_v11  ;;  %v7003_v22 = vadd.f32 %v3449_v19, %v6793_v5  ;;  %v7009_v5 = vld [vmem:[#allocation2 + $0xaa] sm:$0xff] }
 0x539   : > { %4063 = vmatmul.f32.gmra.mxu0 %v3976_v57  ;;  %v4199_v57 = vld [vmem:[#allocation5 + $0x438] sm:$0xff] }
 0x53a   : > { %v2977_v52 = vpop.f32.mrf.mxu2  ;;  %3496 = vmatmul.f32.gmra.mxu1 %v3979_v12 }
 0x53b   : > { %v2978_v0 = vadd.f32 %v2977_v52, %v6952_v50  ;;  %v3142_v36 = vpop.f32.mrf.mxu3  ;;  %4216 = vmatpush.msra.mxu1 %v4199_v57 }
 0x53d   : > { %v3183_v1 = vadd.f32 %v3139_v58, %v2978_v0  ;;  %v3980_v58 = vld [vmem:[#allocation2 + $0xe1] sm:$0xff] }
 0x53e   : > { %v3339_v21 = vpop.f32.mrf.mxu0 }
 0x53f   : > { %3675 = vmatmul.f32.gmra.mxu2 %v7000_v47  ;;  %v3452_v52 = vpop.f32.mrf.mxu1  ;;  %v7016_v42 = vadd.f32 %v3333_v6, %v3183_v1 }
 0x540   : > { %3872 = vmatmul.f32.gmra.mxu3 %v3783_v27  ;;  %v7012_v19 = vadd.f32 %v3452_v52, %v6799_v17  ;;  %v3785_v52 = vld [vmem:[#allocation2 + $0xd8] sm:$0xff] }
 0x541   : > { %4066 = vmatmul.f32.gmra.mxu0 %v3977_v35  ;;  %v3784_v35 = vld [vmem:[#allocation2 + $0xc8] sm:$0xff]  ;;  %8068 = vst [vmem:[#allocation36_spill] sm:$0xff] %v7016_v42 }
 0x542   : > { %v2980_v50 = vpop.f32.mrf.mxu2  ;;  %3499 = vmatmul.f32.gmra.mxu1 %v3980_v58 }
 0x543   : > { %v2981_v3 = vadd.f32 %v2980_v50, %v6960_v49  ;;  %v3145_v44 = vpop.f32.mrf.mxu3 }
 0x545   : > { %v3184_v11 = vadd.f32 %v3142_v36, %v2981_v3  ;;  %v3981_v36 = vld [vmem:[#allocation2 + $0xf1] sm:$0xff] }
 0x546   : > { %v3342_v0 = vpop.f32.mrf.mxu0 }
 0x547   : > { %3678 = vmatmul.f32.gmra.mxu2 %v7009_v5  ;;  %v3455_v50 = vpop.f32.mrf.mxu1 }
 0x548   : > { %3875 = vmatmul.f32.gmra.mxu3 %v3784_v35  ;;  %v7021_v17 = vadd.f32 %v3455_v50, %v6806_v23  ;;  %v3982_v35 = vld [vmem:[#allocation2 + $0xf9] sm:$0xff]  ;;  %v7027_v23 = vld [vmem:[#allocation2 + $0xc2] sm:$0xff] }
 0x549   : > { %4069 = vmatmul.f32.gmra.mxu0 %v3978_v24  ;;  %v4198_v24 = vld [vmem:[#allocation5 + $0x430] sm:$0xff] }
 0x54a   : > { %v2983_v27 = vpop.f32.mrf.mxu2  ;;  %3502 = vmatmul.f32.gmra.mxu1 %v3981_v36 }
 0x54b   : > { %v2984_v49 = vadd.f32 %v2983_v27, %v6968_v18  ;;  %v3148_v37 = vpop.f32.mrf.mxu3  ;;  %4217 = vmatpush.msra.mxu1 %v4198_v24 }
 0x54d   : > { %v3185_v57 = vadd.f32 %v3145_v44, %v2984_v49  ;;  %v7025_v44 = vadd.f32 %v3336_v26, %v3184_v11 }
 0x54e   : > { %v3345_v3 = vpop.f32.mrf.mxu0 }
 0x54f   : > { %3681 = vmatmul.f32.gmra.mxu2 %v7018_v39  ;;  %8069 = vst [vmem:[#allocation37_spill] sm:$0xff] %v7025_v44  ;;  %v3458_v49 = vpop.f32.mrf.mxu1  ;;  %v7034_v11 = vadd.f32 %v3339_v21, %v3185_v57  ;;  %v7036_v44 = vld [vmem:[#allocation2 + $0xca] sm:$0xff] }
 0x550   : > { %3878 = vmatmul.f32.gmra.mxu3 %v3785_v52  ;;  %v7030_v50 = vadd.f32 %v3458_v49, %v6813_v2  ;;  %v3787_v49 = vld [vmem:[#allocation2 + $0xf0] sm:$0xff] }
 0x551   : > { %4072 = vmatmul.f32.gmra.mxu0 %v3979_v12  ;;  %v3786_v12 = vld [vmem:[#allocation2 + $0xe0] sm:$0xff]  ;;  %8070 = vst [vmem:[#allocation30_spill] sm:$0xff] %v7034_v11 }
 0x552   : > { %v2986_v18 = vpop.f32.mrf.mxu2  ;;  %3505 = vmatmul.f32.gmra.mxu1 %v3982_v35 }
 0x553   : > { %v2987_v6 = vadd.f32 %v2986_v18, %v6976_v13  ;;  %v3151_v1 = vpop.f32.mrf.mxu3 }
 0x555   : > { %v3186_v27 = vadd.f32 %v3148_v37, %v2987_v6  ;;  %v3983_v37 = vld [vmem:[#allocation2 + $0x109] sm:$0xff] }
 0x556   : > { %v3348_v42 = vpop.f32.mrf.mxu0 }
 0x557   : > { %3684 = vmatmul.f32.gmra.mxu2 %v7027_v23  ;;  %v3461_v18 = vpop.f32.mrf.mxu1 }
 0x558   : > { %3881 = vmatmul.f32.gmra.mxu3 %v3786_v12  ;;  %v7039_v2 = vadd.f32 %v3461_v18, %v6820_v9  ;;  %v3984_v12 = vld [vmem:[#allocation2 + $0x111] sm:$0xff]  ;;  %v7045_v9 = vld [vmem:[#allocation2 + $0xda] sm:$0xff] }
 0x559   : > { %4075 = vmatmul.f32.gmra.mxu0 %v3980_v58  ;;  %v4197_v58 = vld [vmem:[#allocation5 + $0x428] sm:$0xff] }
 0x55a   : > { %v2989_v52 = vpop.f32.mrf.mxu2  ;;  %3508 = vmatmul.f32.gmra.mxu1 %v3983_v37 }
 0x55b   : > { %v2990_v13 = vadd.f32 %v2989_v52, %v6984_v20  ;;  %v3154_v26 = vpop.f32.mrf.mxu3  ;;  %4218 = vmatpush.msra.mxu1 %v4197_v58 }
 0x55d   : > { %v3187_v24 = vadd.f32 %v3151_v1, %v2990_v13  ;;  %v7043_v1 = vadd.f32 %v3342_v0, %v3186_v27 }
 0x55e   : > { %v4031_v6 = vpop.f32.mrf.mxu0 }
 0x55f   : > { %3687 = vmatmul.f32.gmra.mxu2 %v7036_v44  ;;  %8071 = vst [vmem:[#allocation25_spill] sm:$0xff] %v7043_v1  ;;  %v3464_v13 = vpop.f32.mrf.mxu1  ;;  %v7052_v27 = vadd.f32 %v3345_v3, %v3187_v24  ;;  %v7054_v1 = vld [vmem:[#allocation2 + $0xe2] sm:$0xff] }
 0x560   : > { %3884 = vmatmul.f32.gmra.mxu3 %v3787_v49  ;;  %v7048_v18 = vadd.f32 %v3464_v13, %v6829_v8  ;;  %v3789_v13 = vld [vmem:[#allocation2 + $0x108] sm:$0xff] }
 0x561   : > { %4078 = vmatmul.f32.gmra.mxu0 %v3981_v36  ;;  %v3788_v36 = vld [vmem:[#allocation2 + $0xf8] sm:$0xff]  ;;  %8072 = vst [vmem:[#allocation28_spill] sm:$0xff] %v7052_v27 }
 0x562   : > { %v2992_v20 = vpop.f32.mrf.mxu2  ;;  %3511 = vmatmul.f32.gmra.mxu1 %v3984_v12 }
 0x563   : > { %v2993_v21 = vadd.f32 %v2992_v20, %v6992_v7  ;;  %v3837_v57 = vpop.f32.mrf.mxu3 }
 0x565   : > { %v3188_v52 = vadd.f32 %v3154_v26, %v2993_v21  ;;  %v3985_v26 = vld [vmem:[#allocation2 + $0x121] sm:$0xff] }
 0x566   : > { %v4034_v11 = vpop.f32.mrf.mxu0 }
 0x567   : > { %3690 = vmatmul.f32.gmra.mxu2 %v7045_v9  ;;  %v3467_v20 = vpop.f32.mrf.mxu1 }
 0x568   : > { %3887 = vmatmul.f32.gmra.mxu3 %v3788_v36  ;;  %v7057_v8 = vadd.f32 %v3467_v20, %v6842_v46  ;;  %v3986_v36 = vld [vmem:[#allocation2 + $0x129] sm:$0xff]  ;;  %v7063_v46 = vld [vmem:[#allocation2 + $0xf2] sm:$0xff] }
 0x569   : > { %4081 = vmatmul.f32.gmra.mxu0 %v3982_v35  ;;  %v4196_v35 = vld [vmem:[#allocation5 + $0x420] sm:$0xff] }
 0x56a   : > { %v3643_v49 = vpop.f32.mrf.mxu2  ;;  %3514 = vmatmul.f32.gmra.mxu1 %v3985_v26 }
 0x56b   : > { %v3739_v7 = vadd.f32 %v3643_v49, %v7003_v22  ;;  %v3840_v0 = vpop.f32.mrf.mxu3  ;;  %4219 = vmatpush.msra.mxu1 %v4196_v35 }
 0x56d   : > { %v3933_v58 = vadd.f32 %v3837_v57, %v3739_v7  ;;  %v7061_v57 = vadd.f32 %v3348_v42, %v3188_v52 }
 0x56e   : > { %v4037_v21 = vpop.f32.mrf.mxu0 }
 0x56f   : > { %3693 = vmatmul.f32.gmra.mxu2 %v7054_v1  ;;  %8073 = vst [vmem:[#allocation31_spill] sm:$0xff] %v7061_v57  ;;  %v3470_v7 = vpop.f32.mrf.mxu1  ;;  %v7070_v52 = vadd.f32 %v4031_v6, %v3933_v58  ;;  %v7072_v57 = vld [vmem:[#allocation2 + $0xfa] sm:$0xff] }
 0x570   : > { %3890 = vmatmul.f32.gmra.mxu3 %v3789_v13  ;;  %v7066_v20 = vadd.f32 %v3470_v7, %v6853_v59  ;;  %v3791_v7 = vld [vmem:[#allocation2 + $0x120] sm:$0xff] }
 0x571   : > { %4084 = vmatmul.f32.gmra.mxu0 %v3983_v37  ;;  %v3790_v37 = vld [vmem:[#allocation2 + $0x110] sm:$0xff]  ;;  %8074 = vst [vmem:[#allocation33_spill] sm:$0xff] %v7070_v52 }
 0x572   : > { %v3646_v22 = vpop.f32.mrf.mxu2  ;;  %3517 = vmatmul.f32.gmra.mxu1 %v3986_v36 }
 0x573   : > { %v3740_v3 = vadd.f32 %v3646_v22, %v7012_v19  ;;  %v3843_v24 = vpop.f32.mrf.mxu3 }
 0x575   : > { %v3934_v49 = vadd.f32 %v3840_v0, %v3740_v3  ;;  %v3987_v0 = vld [vmem:[#allocation2 + $0x139] sm:$0xff] }
 0x576   : > { %v4040_v27 = vpop.f32.mrf.mxu0 }
 0x577   : > { %3696 = vmatmul.f32.gmra.mxu2 %v7063_v46  ;;  %v3473_v22 = vpop.f32.mrf.mxu1 }
 0x578   : > { %3893 = vmatmul.f32.gmra.mxu3 %v3790_v37  ;;  %v7075_v59 = vadd.f32 %v3473_v22, %v6865_v62  ;;  %v3988_v37 = vld [vmem:[#allocation2 + $0x141] sm:$0xff]  ;;  %v7081_v62 = vld [vmem:[#allocation2 + $0x10a] sm:$0xff] }
 0x579   : > { %4087 = vmatmul.f32.gmra.mxu0 %v3984_v12  ;;  %v4195_v12 = vld [vmem:[#allocation5 + $0x418] sm:$0xff] }
 0x57a   : > { %v3649_v13 = vpop.f32.mrf.mxu2  ;;  %3520 = vmatmul.f32.gmra.mxu1 %v3987_v0 }
 0x57b   : > { %v3741_v19 = vadd.f32 %v3649_v13, %v7021_v17  ;;  %v3846_v42 = vpop.f32.mrf.mxu3  ;;  %4220 = vmatpush.msra.mxu1 %v4195_v12 }
 0x57d   : > { %v3935_v35 = vadd.f32 %v3843_v24, %v3741_v19  ;;  %v7079_v24 = vadd.f32 %v4034_v11, %v3934_v49 }
 0x57e   : > { %v4043_v3 = vpop.f32.mrf.mxu0 }
 0x57f   : > { %3699 = vmatmul.f32.gmra.mxu2 %v7072_v57  ;;  %8075 = vst [vmem:[#allocation34_spill] sm:$0xff] %v7079_v24  ;;  %v3476_v19 = vpop.f32.mrf.mxu1  ;;  %v7088_v49 = vadd.f32 %v4037_v21, %v3935_v35  ;;  %v7090_v24 = vld [vmem:[#allocation2 + $0x112] sm:$0xff] }
 0x580   : > { %3896 = vmatmul.f32.gmra.mxu3 %v3791_v7  ;;  %v7084_v22 = vadd.f32 %v3476_v19, %v6879_v32  ;;  %v3793_v19 = vld [vmem:[#allocation2 + $0x138] sm:$0xff] }
 0x581   : > { %4090 = vmatmul.f32.gmra.mxu0 %v3985_v26  ;;  %v3792_v26 = vld [vmem:[#allocation2 + $0x128] sm:$0xff]  ;;  %8076 = vst [vmem:[#allocation35_spill] sm:$0xff] %v7088_v49 }
 0x582   : > { %v3652_v17 = vpop.f32.mrf.mxu2  ;;  %3523 = vmatmul.f32.gmra.mxu1 %v3988_v37  ;;  %v7099_v49 = vld [vmem:[#allocation2 + $0x122] sm:$0xff] }
 0x583   : > { %v3742_v6 = vadd.f32 %v3652_v17, %v7030_v50  ;;  %v3849_v58 = vpop.f32.mrf.mxu3 }
 0x585   : > { %v3936_v13 = vadd.f32 %v3846_v42, %v3742_v6  ;;  %v3989_v42 = vld [vmem:[#allocation2 + $0x151] sm:$0xff] }
 0x586   : > { %v4046_v52 = vpop.f32.mrf.mxu0 }
 0x587   : > { %3702 = vmatmul.f32.gmra.mxu2 %v7081_v62  ;;  %v3479_v17 = vpop.f32.mrf.mxu1 }
 0x588   : > { %3899 = vmatmul.f32.gmra.mxu3 %v3792_v26  ;;  %v7093_v32 = vadd.f32 %v3479_v17, %v6891_v48  ;;  %v3990_v26 = vld [vmem:[#allocation2 + $0x159] sm:$0xff] }
 0x589   : > { %4093 = vmatmul.f32.gmra.mxu0 %v3986_v36  ;;  %v4194_v36 = vld [vmem:[#allocation5 + $0x410] sm:$0xff] }
 0x58a   : > { %v3655_v7 = vpop.f32.mrf.mxu2  ;;  %3526 = vmatmul.f32.gmra.mxu1 %v3989_v42 }
 0x58b   : > { %v3743_v50 = vadd.f32 %v3655_v7, %v7039_v2  ;;  %v3852_v11 = vpop.f32.mrf.mxu3  ;;  %4221 = vmatpush.msra.mxu1 %v4194_v36 }
 0x58d   : > { %v3937_v12 = vadd.f32 %v3849_v58, %v3743_v50  ;;  %v7097_v58 = vadd.f32 %v4040_v27, %v3936_v13 }
 0x58e   : > { %v4049_v6 = vpop.f32.mrf.mxu0 }
 0x58f   : > { %3705 = vmatmul.f32.gmra.mxu2 %v7090_v24  ;;  %v3482_v50 = vpop.f32.mrf.mxu1  ;;  %v7106_v13 = vadd.f32 %v4043_v3, %v3937_v12 }
 0x590   : > { %3902 = vmatmul.f32.gmra.mxu3 %v3793_v19  ;;  %v7102_v48 = vadd.f32 %v3482_v50, %v6898_v60  ;;  %v7111_v60 = vld [vmem:[#allocation2 + $0x12a] sm:$0xff] }
 0x591   : > { %4096 = vmatmul.f32.gmra.mxu0 %v3987_v0  ;;  %v3794_v0 = vld [vmem:[#allocation2 + $0x140] sm:$0xff]  ;;  %8077 = vst [vmem:[#allocation38_spill] sm:$0xff] %v7106_v13  ;;  %v4878_v13 = vld [vmem:[#allocation2 + $0x171] sm:$0xff] }
 0x592   : > { %v3658_v2 = vpop.f32.mrf.mxu2  ;;  %3529 = vmatmul.f32.gmra.mxu1 %v3990_v26 }
 0x593   : > { %v3744_v21 = vadd.f32 %v3658_v2, %v7048_v18  ;;  %v3855_v35 = vpop.f32.mrf.mxu3  ;;  %v7108_v2 = vld [vmem:[#allocation2 + $0x199] sm:$0xff] }
 0x595   : > { %v3938_v7 = vadd.f32 %v3852_v11, %v3744_v21 }
 0x596   : > { %v4052_v17 = vpop.f32.mrf.mxu0 }
 0x597   : > { %3708 = vmatmul.f32.gmra.mxu2 %v7099_v49  ;;  %v3485_v36 = vpop.f32.mrf.mxu1 }
 0x598   : > { %3905 = vmatmul.f32.gmra.mxu3 %v3794_v0  ;;  %v7114_v21 = vadd.f32 %v3485_v36, %v6906_v31  ;;  %v7118_v0 = vadd.f32 %v4046_v52, %v3938_v7  ;;  %v7120_v31 = vld [vmem:[#allocation2 + $0x13a] sm:$0xff] }
 0x599   : > { %4099 = vmatmul.f32.gmra.mxu0 %v3988_v37  ;;  %v3795_v37 = vld [vmem:[#allocation2 + $0x150] sm:$0xff] }
 0x59a   : > { %v3661_v19 = vpop.f32.mrf.mxu2  ;;  %3532 = vmatmul.f32.gmra.mxu1 %v7108_v2  ;;  %8078 = vst [vmem:[#allocation39_spill] sm:$0xff] %v7118_v0  ;;  %v7129_v0 = vld [vmem:[#allocation2 + $0x142] sm:$0xff] }
 0x59b   : > { %v3745_v18 = vadd.f32 %v3661_v19, %v7057_v8  ;;  %v3858_v27 = vpop.f32.mrf.mxu3  ;;  %v4193_v8 = vld [vmem:[#allocation5 + $0x408] sm:$0xff]  ;;  %8080 = vst [vmem:[#allocation40_spill] sm:$0xff] %v7129_v0 }
 0x59c   : > { %4222 = vmatpush.msra.mxu1 %v4193_v8 }
 0x59d   : > { %v3939_v11 = vadd.f32 %v3855_v35, %v3745_v18 }
 0x59e   : > { %v4055_v50 = vpop.f32.mrf.mxu0 }
 0x59f   : > { %3711 = vmatmul.f32.gmra.mxu2 %v7111_v60  ;;  %v3488_v18 = vpop.f32.mrf.mxu1  ;;  %v7127_v52 = vadd.f32 %v4049_v6, %v3939_v11 }
 0x5a0   : > { %3908 = vmatmul.f32.gmra.mxu3 %v3795_v37  ;;  %v7123_v36 = vadd.f32 %v3488_v18, %v6915_v14  ;;  %v3797_v18 = vld [vmem:[#allocation2 + $0x168] sm:$0xff] }
 0x5a1   : > { %4102 = vmatmul.f32.gmra.mxu0 %v3989_v42  ;;  %v3796_v42 = vld [vmem:[#allocation2 + $0x158] sm:$0xff]  ;;  %8079 = vst [vmem:[#allocation17_spill] sm:$0xff] %v7127_v52 }
 0x5a2   : > { %v3664_v3 = vpop.f32.mrf.mxu2  ;;  %3535 = vmatmul.f32.gmra.mxu1 %v4878_v13 }
 0x5a3   : > { %v3746_v12 = vadd.f32 %v3664_v3, %v7066_v20  ;;  %v3861_v35 = vpop.f32.mrf.mxu3 }
 0x5a5   : > { %v3940_v19 = vadd.f32 %v3858_v27, %v3746_v12  ;;  %v3993_v27 = vld [vmem:[#allocation2 + $0x181] sm:$0xff] }
 0x5a6   : > { %v4058_v7 = vpop.f32.mrf.mxu0 }
 0x5a7   : > { %3714 = vmatmul.f32.gmra.mxu2 %v7120_v31  ;;  %v3491_v12 = vpop.f32.mrf.mxu1 }
 0x5a8   : > { %3911 = vmatmul.f32.gmra.mxu3 %v3796_v42  ;;  %v7132_v14 = vadd.f32 %v3491_v12, %v6920_v25  ;;  %v7138_v12 = vld [vmem:[#allocation2 + $0x152] sm:$0xff] }
 0x5a9   : > { %4105 = vmatmul.f32.gmra.mxu0 %v3990_v26  ;;  %v4879_v26 = vld [vmem:[#allocation2 + $0x169] sm:$0xff] }
 0x5aa   : > { %v3667_v37 = vpop.f32.mrf.mxu2  ;;  %3538 = vmatmul.f32.gmra.mxu1 %v3993_v27 }
 0x5ab   : > { %v3747_v20 = vadd.f32 %v3667_v37, %v7075_v59  ;;  %v3864_v8 = vpop.f32.mrf.mxu3  ;;  %v4192_v59 = vld [vmem:[#allocation5 + $0x400] sm:$0xff] }
 0x5ac   : > { %4223 = vmatpush.msra.mxu1 %v4192_v59  ;;  %v3994_v37 = vld [vmem:[#allocation2 + $0x189] sm:$0xff] }
 0x5ad   : > { %v3941_v3 = vadd.f32 %v3861_v35, %v3747_v20  ;;  %v7136_v35 = vadd.f32 %v4052_v17, %v3940_v19 }
 0x5ae   : > { %v4061_v25 = vpop.f32.mrf.mxu0 }
 0x5af   : > { %3717 = vmatmul.f32.gmra.mxu2 %v7129_v0  ;;  %v3494_v52 = vpop.f32.mrf.mxu1  ;;  %v7145_v19 = vadd.f32 %v4055_v50, %v3941_v3 }
 0x5b0   : > { %3914 = vmatmul.f32.gmra.mxu3 %v3797_v18  ;;  %v7141_v0 = vadd.f32 %v3494_v52, %v6925_v45  ;;  %v3798_v18 = vld [vmem:[#allocation2 + $0x170] sm:$0xff]  ;;  %v3799_v52 = vld [vmem:[#allocation2 + $0x180] sm:$0xff] }
 0x5b1   : > { %4108 = vmatmul.f32.gmra.mxu0 %v4879_v26 }
 0x5b2   : > { %v3670_v42 = vpop.f32.mrf.mxu2  ;;  %3541 = vmatmul.f32.gmra.mxu1 %v3994_v37 }
 0x5b3   : > { %v3748_v6 = vadd.f32 %v3670_v42, %v7084_v22  ;;  %v3867_v11 = vpop.f32.mrf.mxu3  ;;  %v7148_v42 = vld [vmem:[#allocation2 + $0x15a] sm:$0xff] }
 0x5b5   : > { %v3942_v20 = vadd.f32 %v3864_v8, %v3748_v6 }
 0x5b6   : > { %v4064_v6 = vpop.f32.mrf.mxu0 }
 0x5b7   : > { %3720 = vmatmul.f32.gmra.mxu2 %v7138_v12  ;;  %v3497_v59 = vpop.f32.mrf.mxu1  ;;  %v7155_v3 = vadd.f32 %v4058_v7, %v3942_v20 }
 0x5b8   : > { %3917 = vmatmul.f32.gmra.mxu3 %v3798_v18  ;;  %v7151_v45 = vadd.f32 %v3497_v59, %v6933_v33  ;;  %v3801_v59 = vld [vmem:[#allocation2 + $0x198] sm:$0xff] }
 0x5b9   : > { %4111 = vmatmul.f32.gmra.mxu0 %v4878_v13 }
 0x5ba   : > { %v3673_v26 = vpop.f32.mrf.mxu2  ;;  %4224 = vmatmul.f32.vlgmr.msra.gmra.mxu1 %v6930_v15  ;;  %v7158_v15 = vld [vmem:[#allocation2 + $0x16a] sm:$0xff] }
 0x5bb   : > { %v3749_v22 = vadd.f32 %v3673_v26, %v7093_v32  ;;  %v3870_v17 = vpop.f32.mrf.mxu3 }
 0x5bd   : > { %v3943_v8 = vadd.f32 %v3867_v11, %v3749_v22 }
 0x5bf   : > { %3723 = vmatmul.f32.gmra.mxu2 %v7148_v42  ;;  %v3500_v18 = vpop.f32.mrf.mxu1  ;;  %v7166_v20 = vadd.f32 %v4061_v25, %v3943_v8 }
 0x5c0   : > { %3920 = vmatmul.f32.gmra.mxu3 %v3799_v52  ;;  %v7161_v33 = vadd.f32 %v3500_v18, %v6942_v51 }
 0x5c1   : > { %4114 = vmatmul.f32.gmra.mxu0 %v3993_v27  ;;  %v4067_v27 = vpop.f32.mrf.mxu0 }
 0x5c2   : > { %v3676_v13 = vpop.f32.mrf.mxu2  ;;  %4227 = vmatmul.f32.gmra.mxu1 %v6938_v16  ;;  %v7169_v16 = vld [vmem:[#allocation2 + $0x172] sm:$0xff] }
 0x5c3   : > { %v3750_v32 = vadd.f32 %v3676_v13, %v7102_v48  ;;  %v3873_v50 = vpop.f32.mrf.mxu3 }
 0x5c5   : > { %v3944_v11 = vadd.f32 %v3870_v17, %v3750_v32  ;;  %v3802_v32 = vld [vmem:[#allocation2 + $0x1a0] sm:$0xff] }
 0x5c7   : > { %3726 = vmatmul.f32.gmra.mxu2 %v7158_v15  ;;  %v3503_v17 = vpop.f32.mrf.mxu1  ;;  %v7175_v25 = vadd.f32 %v4064_v6, %v3944_v11 }
 0x5c8   : > { %3923 = vmatmul.f32.gmra.mxu3 %v6908_v29  ;;  %v3563_v51 = vadd.f32 %v3503_v17, %v6950_v63 }
 0x5c9   : > { %4117 = vmatmul.f32.gmra.mxu0 %v3994_v37  ;;  %v4070_v8 = vpop.f32.mrf.mxu0 }
 0x5ca   : > { %v3679_v26 = vpop.f32.mrf.mxu2  ;;  %4230 = vmatmul.f32.gmra.mxu1 %v6946_v10  ;;  %v7178_v10 = vld [vmem:[#allocation2 + $0x182] sm:$0xff] }
 0x5cb   : > { %v3751_v48 = vadd.f32 %v3679_v26, %v7114_v21  ;;  %v3876_v7 = vpop.f32.mrf.mxu3 }
 0x5cd   : > { %v3945_v22 = vadd.f32 %v3873_v50, %v3751_v48  ;;  %v7186_v48 = vld [vmem:[#allocation2 + $0x18a] sm:$0xff] }
 0x5cf   : > { %3729 = vmatmul.f32.gmra.mxu2 %v7169_v16  ;;  %v3506_v13 = vpop.f32.mrf.mxu1  ;;  %v7183_v11 = vadd.f32 %v4067_v27, %v3945_v22 }
 0x5d0   : > { %3926 = vmatmul.f32.gmra.mxu3 %v3801_v59  ;;  %v3564_v63 = vadd.f32 %v3506_v13, %v6958_v54 }
 0x5d1   : > { %4120 = vmatmul.f32.gmra.mxu0 %v7108_v2  ;;  %v4880_v2 = vld [vmem:[#allocation2 + $0x1a1] sm:$0xff] }
 0x5d2   : > { %v3682_v29 = vpop.f32.mrf.mxu2  ;;  %4233 = vmatmul.f32.gmra.mxu1 %v6954_v30  ;;  %v4073_v30 = vpop.f32.mrf.mxu0 }
 0x5d3   : > { %v3752_v21 = vadd.f32 %v3682_v29, %v7123_v36  ;;  %v3879_v37 = vpop.f32.mrf.mxu3 }
 0x5d5   : > { %v3946_v52 = vadd.f32 %v3876_v7, %v3752_v21 }
 0x5d7   : > { %3732 = vmatmul.f32.gmra.mxu2 %v7178_v10  ;;  %v3509_v26 = vpop.f32.mrf.mxu1  ;;  %v7191_v59 = vadd.f32 %v4070_v8, %v3946_v52 }
 0x5d8   : > { %3929 = vmatmul.f32.gmra.mxu3 %v3802_v32  ;;  %v3565_v54 = vadd.f32 %v3509_v26, %v6966_v61 }
 0x5d9   : > { %4123 = vmatmul.f32.gmra.mxu0 %v4880_v2 }
 0x5da   : > { %v3685_v50 = vpop.f32.mrf.mxu2  ;;  %4236 = vmatmul.f32.gmra.mxu1 %v6962_v4  ;;  %v4076_v4 = vpop.f32.mrf.mxu0 }
 0x5db   : > { %v3753_v36 = vadd.f32 %v3685_v50, %v7132_v14  ;;  %v3882_v6 = vpop.f32.mrf.mxu3 }
 0x5dd   : > { %v3947_v18 = vadd.f32 %v3879_v37, %v3753_v36 }
 0x5df   : > { %3735 = vmatmul.f32.gmra.mxu2 %v7186_v48  ;;  %v3512_v27 = vpop.f32.mrf.mxu1  ;;  %v7198_v61 = vadd.f32 %v4073_v30, %v3947_v18 }
 0x5e0   : > { %v7195_v22 = vadd.f32 %v3512_v27, %v6974_v43 }
 0x5e2   : > { %v3688_v7 = vpop.f32.mrf.mxu2  ;;  %4239 = vmatmul.f32.gmra.mxu1 %v6970_v41  ;;  %v4079_v52 = vpop.f32.mrf.mxu0 }
 0x5e3   : > { %v3754_v17 = vadd.f32 %v3688_v7, %v7141_v0  ;;  %v3885_v14 = vpop.f32.mrf.mxu3 }
 0x5e5   : > { %v3948_v29 = vadd.f32 %v3882_v6, %v3754_v17 }
 0x5e7   : > { %v3515_v32 = vpop.f32.mrf.mxu1  ;;  %v7205_v43 = vadd.f32 %v4076_v4, %v3948_v29 }
 0x5e8   : > { %v7202_v8 = vadd.f32 %v3515_v32, %v6982_v38 }
 0x5ea   : > { %v3691_v21 = vpop.f32.mrf.mxu2  ;;  %4242 = vmatmul.f32.gmra.mxu1 %v6978_v56  ;;  %v4082_v38 = vpop.f32.mrf.mxu0 }
 0x5eb   : > { %v3755_v37 = vadd.f32 %v3691_v21, %v7151_v45  ;;  %v3888_v0 = vpop.f32.mrf.mxu3 }
 0x5ed   : > { %v3949_v13 = vadd.f32 %v3885_v14, %v3755_v37 }
 0x5ef   : > { %v3518_v36 = vpop.f32.mrf.mxu1  ;;  %v7211_v26 = vadd.f32 %v4079_v52, %v3949_v13 }
 0x5f0   : > { %v7209_v45 = vadd.f32 %v3518_v36, %v6990_v28 }
 0x5f2   : > { %v3694_v2 = vpop.f32.mrf.mxu2  ;;  %4245 = vmatmul.f32.gmra.mxu1 %v6986_v34 }
 0x5f3   : > { %v3756_v41 = vadd.f32 %v3694_v2, %v7161_v33  ;;  %v3891_v6 = vpop.f32.mrf.mxu3 }
 0x5f5   : > { %v3950_v50 = vadd.f32 %v3888_v0, %v3756_v41 }
 0x5f7   : > { %v3521_v7 = vpop.f32.mrf.mxu1  ;;  %v7217_v34 = vadd.f32 %v4082_v38, %v3950_v50 }
 0x5f8   : > { %v7215_v33 = vadd.f32 %v3521_v7, %v6998_v40 }
 0x5fa   : > { %v3697_v18 = vpop.f32.mrf.mxu2  ;;  %4248 = vmatmul.f32.gmra.mxu1 %v6994_v55 }
 0x5fb   : > { %v3757_v56 = vadd.f32 %v3697_v18, %v3563_v51  ;;  %v3894_v17 = vpop.f32.mrf.mxu3  ;;  %v4085_v51 = vpop.f32.mrf.mxu0 }
 0x5fd   : > { %v3951_v30 = vadd.f32 %v3891_v6, %v3757_v56  ;;  %v8083_v6 = vld [vmem:[#allocation30_spill] sm:$0xff]  ;;  %v8084_v56 = vld [vmem:[#allocation25_spill] sm:$0xff] }
 0x5ff   : > { %v3524_v27 = vpop.f32.mrf.mxu1  ;;  %v7223_v13 = vadd.f32 %v4085_v51, %v3951_v30  ;;  %v8088_v51 = vld [vmem:[#allocation34_spill] sm:$0xff] }
 0x600   : > { %v7221_v4 = vadd.f32 %v3524_v27, %v7007_v53  ;;  %v8082_v53 = vld [vmem:[#allocation37_spill] sm:$0xff] }
 0x602   : > { %v3700_v14 = vpop.f32.mrf.mxu2  ;;  %4251 = vmatmul.f32.gmra.mxu1 %v7000_v47 }
 0x603   : > { %v3758_v29 = vadd.f32 %v3700_v14, %v3564_v63  ;;  %v3897_v55 = vpop.f32.mrf.mxu3  ;;  %v8081_v63 = vld [vmem:[#allocation36_spill] sm:$0xff]  ;;  %v4088_v52 = vpop.f32.mrf.mxu0  ;;  %v8086_v14 = vld [vmem:[#allocation31_spill] sm:$0xff] }
 0x605   : > { %v3952_v28 = vadd.f32 %v3894_v17, %v3758_v29 }
 0x607   : > { %v3527_v32 = vpop.f32.mrf.mxu1  ;;  %v7229_v2 = vadd.f32 %v4088_v52, %v3952_v28  ;;  %v8087_v28 = vld [vmem:[#allocation33_spill] sm:$0xff]  ;;  %v8091_v52 = vld [vmem:[#allocation39_spill] sm:$0xff] }
 0x608   : > { %v7227_v0 = vadd.f32 %v3527_v32, %v8081_v63  ;;  %v8090_v32 = vld [vmem:[#allocation38_spill] sm:$0xff] }
 0x60a   : > { %v3703_v21 = vpop.f32.mrf.mxu2  ;;  %4254 = vmatmul.f32.gmra.mxu1 %v7009_v5 }
 0x60b   : > { %v3759_v37 = vadd.f32 %v3703_v21, %v3565_v54  ;;  %v4091_v54 = vpop.f32.mrf.mxu0 }
 0x60d   : > { %v3953_v40 = vadd.f32 %v3897_v55, %v3759_v37  ;;  %v8089_v37 = vld [vmem:[#allocation35_spill] sm:$0xff] }
 0x60f   : > { %v3530_v47 = vpop.f32.mrf.mxu1  ;;  %v7235_v50 = vadd.f32 %v4091_v54, %v3953_v40  ;;  %v8093_v54 = vld [vmem:[#allocation40_spill] sm:$0xff] }
 0x610   : > { %v7233_v41 = vadd.f32 %v3530_v47, %v8082_v53  ;;  %v8092_v53 = vld [vmem:[#allocation17_spill] sm:$0xff] }
 0x612   : > { %4257 = vmatmul.f32.gmra.mxu1 %v7018_v39  ;;  %v8085_v39 = vld [vmem:[#allocation28_spill] sm:$0xff] }
 0x617   : > { %v3533_v36 = vpop.f32.mrf.mxu1 }
 0x618   : > { %v7239_v5 = vadd.f32 %v3533_v36, %v8083_v6 }
 0x61a   : > { %4260 = vmatmul.f32.gmra.mxu1 %v7027_v23 }
 0x61f   : > { %v3536_v18 = vpop.f32.mrf.mxu1 }
 0x620   : > { %v7243_v38 = vadd.f32 %v3536_v18, %v8084_v56 }
 0x622   : > { %4263 = vmatmul.f32.gmra.mxu1 %v7036_v44 }
 0x627   : > { %v3539_v30 = vpop.f32.mrf.mxu1 }
 0x628   : > { %v7247_v7 = vadd.f32 %v3539_v30, %v8085_v39  ;;  %v4190_v39 = vld [vmem:[#allocation2 + $0x1a2] sm:$0xff] }
 0x62a   : > { %4266 = vmatmul.f32.gmra.mxu1 %v7045_v9 }
 0x62f   : > { %v3542_v17 = vpop.f32.mrf.mxu1 }
 0x630   : > { %v7251_v23 = vadd.f32 %v3542_v17, %v8086_v14  ;;  %v3706_v14 = vpop.f32.mrf.mxu2 }
 0x632   : > { %4269 = vmatmul.f32.gmra.mxu1 %v7054_v1 }
 0x637   : > { %v4225_v29 = vpop.f32.mrf.mxu1 }
 0x638   : > { %v7255_v44 = vadd.f32 %v4225_v29, %v8087_v28  ;;  %v3900_v29 = vpop.f32.mrf.mxu3 }
 0x63a   : > { %4272 = vmatmul.f32.gmra.mxu1 %v7063_v46 }
 0x63f   : > { %v4228_v27 = vpop.f32.mrf.mxu1 }
 0x640   : > { %v7259_v9 = vadd.f32 %v4228_v27, %v8088_v51  ;;  %v7319_v27 = vpop.f32.mrf.mxu0  ;;  %v3709_v51 = vpop.f32.mrf.mxu2 }
 0x642   : > { %4275 = vmatmul.f32.gmra.mxu1 %v7072_v57 }
 0x647   : > { %v4231_v21 = vpop.f32.mrf.mxu1 }
 0x648   : > { %v7263_v1 = vadd.f32 %v4231_v21, %v8089_v37  ;;  %v3903_v21 = vpop.f32.mrf.mxu3 }
 0x64a   : > { %4278 = vmatmul.f32.gmra.mxu1 %v7081_v62 }
 0x64f   : > { %v4234_v55 = vpop.f32.mrf.mxu1 }
 0x650   : > { %v7267_v46 = vadd.f32 %v4234_v55, %v7097_v58  ;;  %v3712_v55 = vpop.f32.mrf.mxu2 }
 0x652   : > { %4281 = vmatmul.f32.gmra.mxu1 %v7090_v24 }
 0x657   : > { %v4237_v40 = vpop.f32.mrf.mxu1 }
 0x658   : > { %v7271_v57 = vadd.f32 %v4237_v40, %v8090_v32  ;;  %v3906_v32 = vpop.f32.mrf.mxu3 }
 0x65a   : > { %4284 = vmatmul.f32.gmra.mxu1 %v7099_v49 }
 0x65f   : > { %v4240_v63 = vpop.f32.mrf.mxu1 }
 0x660   : > { %v7275_v62 = vadd.f32 %v4240_v63, %v8091_v52  ;;  %v7335_v63 = vld [vmem:[%s7925_s6] ss:$0 sm:$0xff] }
 0x661   : > { %v7341_v52 = vadd.f32 %v7335_v63, %v7259_v9 }
 0x662   : > { %4287 = vmatmul.f32.gmra.mxu1 %v7111_v60 }
 0x667   : > { %v4243_v47 = vpop.f32.mrf.mxu1 }
 0x668   : > { %v7279_v24 = vadd.f32 %v4243_v47, %v8092_v53  ;;  %v7345_v47 = vadd.f32 %v7335_v63, %v7255_v44  ;;  %v3909_v44 = vpop.f32.mrf.mxu3 }
 0x66a   : > { %4290 = vmatmul.f32.gmra.mxu1 %v7120_v31 }
 0x66f   : > { %v4246_v58 = vpop.f32.mrf.mxu1 }
 0x670   : > { %v7283_v49 = vadd.f32 %v4246_v58, %v7136_v35  ;;  %v4390_v58 = vadd.f32 %v7341_v52, %v7345_v47 }
 0x672   : > { %4293 = vmatmul.f32.gmra.mxu1 %v8093_v54  ;;  %v7355_v54 = vadd.f32 %v7335_v63, %v7267_v46  ;;  %v7370_v46 = vadd.f32 %v7335_v63, %v7279_v24 }
 0x677   : > { %v4249_v36 = vpop.f32.mrf.mxu1 }
 0x678   : > { %v7287_v60 = vadd.f32 %v4249_v36, %v7145_v19  ;;  %v7360_v36 = vadd.f32 %v7335_v63, %v7271_v57  ;;  %v7375_v57 = vadd.f32 %v7335_v63, %v7283_v49 }
 0x67a   : > { %4296 = vmatmul.f32.gmra.mxu1 %v7138_v12 }
 0x67f   : > { %v4252_v6 = vpop.f32.mrf.mxu1 }
 0x680   : > { %v7291_v31 = vadd.f32 %v4252_v6, %v7155_v3 }
 0x682   : > { %4299 = vmatmul.f32.gmra.mxu1 %v7148_v42  ;;  %v7385_v24 = vadd.f32 %v7335_v63, %v7291_v31 }
 0x687   : > { %v4255_v18 = vpop.f32.mrf.mxu1 }
 0x688   : > { %v7295_v56 = vadd.f32 %v4255_v18, %v7166_v20  ;;  %v4189_v20 = vld [vmem:[#allocation2 + $0x19a] sm:$0xff] }
 0x68a   : > { %4302 = vmatmul.f32.gmra.mxu1 %v7158_v15 }
 0x68f   : > { %v4258_v35 = vpop.f32.mrf.mxu1 }
 0x690   : > { %v7299_v12 = vadd.f32 %v4258_v35, %v7175_v25 }
 0x692   : > { %4305 = vmatmul.f32.gmra.mxu1 %v7169_v16 }
 0x697   : > { %v4261_v19 = vpop.f32.mrf.mxu1 }
 0x698   : > { %v7303_v42 = vadd.f32 %v4261_v19, %v7183_v11 }
 0x69a   : > { %4308 = vmatmul.f32.gmra.mxu1 %v7178_v10  ;;  %v7400_v31 = vadd.f32 %v7335_v63, %v7303_v42 }
 0x69f   : > { %v4264_v3 = vpop.f32.mrf.mxu1 }
 0x6a0   : > { %v7307_v15 = vadd.f32 %v4264_v3, %v7191_v59 }
 0x6a2   : > { %4311 = vmatmul.f32.gmra.mxu1 %v7186_v48 }
 0x6a7   : > { %v4267_v30 = vpop.f32.mrf.mxu1 }
 0x6a8   : > { %v4335_v16 = vadd.f32 %v4267_v30, %v7198_v61 }
 0x6aa   : > { %4314 = vmatmul.f32.gmra.mxu1 %v4189_v20 }
 0x6af   : > { %v4270_v25 = vpop.f32.mrf.mxu1 }
 0x6b0   : > { %v7311_v17 = vadd.f32 %v4270_v25, %v7205_v43  ;;  %v3912_v25 = vpop.f32.mrf.mxu3 }
 0x6b2   : > { %4317 = vmatmul.f32.gmra.mxu1 %v4190_v39 }
 0x6b7   : > { %v4273_v10 = vpop.f32.mrf.mxu1 }
 0x6b8   : > { %v7314_v11 = vadd.f32 %v4273_v10, %v7211_v26  ;;  %v7327_v26 = vpop.f32.mrf.mxu0 }
 0x6bf   : > { %v4276_v48 = vpop.f32.mrf.mxu1 }
 0x6c0   : > { %v7317_v59 = vadd.f32 %v4276_v48, %v7217_v34  ;;  %v7390_v48 = vadd.f32 %v7335_v63, %v7295_v56  ;;  %v7405_v56 = vadd.f32 %v7335_v63, %v7307_v15  ;;  %v3762_v15 = vadd.f32 %v3712_v55, %v7209_v45 }
 0x6c7   : > { %v4279_v28 = vpop.f32.mrf.mxu1 }
 0x6c8   : > { %v7322_v61 = vadd.f32 %v4279_v28, %v7223_v13  ;;  %v7337_v13 = vpop.f32.mrf.mxu0 }
 0x6ca   : > { %v7434_v55 = vadd.f32 %v7335_v63, %v7322_v61 }
 0x6cf   : > { %v4282_v43 = vpop.f32.mrf.mxu1 }
 0x6d0   : > { %v7325_v37 = vadd.f32 %v4282_v43, %v7229_v2  ;;  %v3715_v2 = vpop.f32.mrf.mxu2  ;;  %v4103_v18 = vpop.f32.mrf.mxu0 }
 0x6d7   : > { %v4285_v40 = vpop.f32.mrf.mxu1 }
 0x6d8   : > { %v7330_v34 = vadd.f32 %v4285_v40, %v7235_v50  ;;  %v7349_v50 = vadd.f32 %v7335_v63, %v7263_v1  ;;  %v7365_v1 = vadd.f32 %v7335_v63, %v7275_v62  ;;  %v3718_v19 = vpop.f32.mrf.mxu2  ;;  %v7380_v62 = vadd.f32 %v7335_v63, %v7287_v60  ;;  %v4106_v28 = vpop.f32.mrf.mxu0 }
 0x6d9   : > { %v7395_v60 = vadd.f32 %v7335_v63, %v7299_v12  ;;  %v7410_v12 = vadd.f32 %v7335_v63, %v4335_v16  ;;  %v7422_v16 = vadd.f32 %v7335_v63, %v7314_v11  ;;  %v3764_v45 = vadd.f32 %v3718_v19, %v7221_v4 }
 0x6da   : > { %v4391_v9 = vadd.f32 %v4390_v58, %v7349_v50 }
 0x6db   : > { %v3958_v61 = vadd.f32 %v3912_v25, %v3764_v45 }
 0x6dc   : > { %v4392_v6 = vadd.f32 %v4391_v9, %v7355_v54 }
 0x6de   : > { %v4393_v35 = vadd.f32 %v4392_v6, %v7360_v36  ;;  %v3760_v6 = vadd.f32 %v3706_v14, %v7195_v22 }
 0x6df   : > { %v4288_v53 = vpop.f32.mrf.mxu1 }
 0x6e0   : > { %v4394_v20 = vadd.f32 %v4393_v35, %v7365_v1  ;;  %v3721_v40 = vpop.f32.mrf.mxu2 }
 0x6e2   : > { %v4395_v30 = vadd.f32 %v4394_v20, %v7370_v46  ;;  %v3761_v20 = vadd.f32 %v3709_v51, %v7202_v8  ;;  %v3763_v8 = vadd.f32 %v3715_v2, %v7215_v33 }
 0x6e4   : > { %v4396_v39 = vadd.f32 %v4395_v30, %v7375_v57  ;;  %v3915_v30 = vpop.f32.mrf.mxu3  ;;  %v3955_v14 = vadd.f32 %v3903_v21, %v3761_v20  ;;  %v3957_v21 = vadd.f32 %v3909_v44, %v3763_v8 }
 0x6e6   : > { %v4397_v10 = vadd.f32 %v4396_v39, %v7380_v62  ;;  %v4149_v33 = vadd.f32 %v7327_v26, %v3955_v14  ;;  %v4151_v44 = vadd.f32 %v4103_v18, %v3957_v21  ;;  %v4152_v14 = vadd.f32 %v4106_v28, %v3958_v61 }
 0x6e7   : > { %v4291_v3 = vpop.f32.mrf.mxu1 }
 0x6e8   : > { %v4398_v43 = vadd.f32 %v4397_v10, %v7385_v24  ;;  %v7416_v10 = vadd.f32 %v7335_v63, %v7311_v17  ;;  %v3724_v51 = vpop.f32.mrf.mxu2  ;;  %v7428_v17 = vadd.f32 %v7335_v63, %v7317_v59  ;;  %v4343_v26 = vadd.f32 %v4291_v3, %v4149_v33 }
 0x6ea   : > { %v4399_v58 = vadd.f32 %v4398_v43, %v7390_v48  ;;  %v3954_v43 = vadd.f32 %v3900_v29, %v3760_v6  ;;  %v3765_v6 = vadd.f32 %v3721_v40, %v7227_v0 }
 0x6ec   : > { %v4400_v9 = vadd.f32 %v4399_v58, %v7395_v60  ;;  %v4109_v58 = vpop.f32.mrf.mxu0  ;;  %v4148_v11 = vadd.f32 %v7319_v27, %v3954_v43  ;;  %v3918_v19 = vpop.f32.mrf.mxu3  ;;  %v7448_v27 = vadd.f32 %v7335_v63, %v7330_v34  ;;  %v3959_v40 = vadd.f32 %v3915_v30, %v3765_v6 }
 0x6ed   : > { %v3766_v43 = vadd.f32 %v3724_v51, %v7233_v41 }
 0x6ee   : > { %v4401_v35 = vadd.f32 %v4400_v9, %v7400_v31  ;;  %v4342_v4 = vadd.f32 %v4288_v53, %v4148_v11 }
 0x6ef   : > { %v4294_v49 = vpop.f32.mrf.mxu1 }
 0x6f0   : > { %v4402_v42 = vadd.f32 %v4401_v35, %v7405_v56  ;;  %v3956_v35 = vadd.f32 %v3906_v32, %v3762_v15  ;;  %v7442_v32 = vadd.f32 %v7335_v63, %v7325_v37  ;;  %v7452_v37 = vadd.f32 %v7335_v63, %v4342_v4 }
 0x6f2   : > { %v4403_v22 = vadd.f32 %v4402_v42, %v7410_v12  ;;  %v4150_v20 = vadd.f32 %v7337_v13, %v3956_v35  ;;  %v3727_v13 = vpop.f32.mrf.mxu2  ;;  %v3960_v35 = vadd.f32 %v3918_v19, %v3766_v43 }
 0x6f3   : > { %v3767_v11 = vadd.f32 %v3727_v13, %v7239_v5 }
 0x6f4   : > { %v4404_v9 = vadd.f32 %v4403_v22, %v7416_v10  ;;  %v4112_v0 = vpop.f32.mrf.mxu0  ;;  %v4344_v53 = vadd.f32 %v4294_v49, %v4150_v20  ;;  %v7457_v22 = vadd.f32 %v7335_v63, %v4343_v26  ;;  %v3921_v45 = vpop.f32.mrf.mxu3 }
 0x6f5   : > { %v4154_v33 = vadd.f32 %v4112_v0, %v3960_v35  ;;  %v3961_v19 = vadd.f32 %v3921_v45, %v3767_v11 }
 0x6f6   : > { %v4405_v29 = vadd.f32 %v4404_v9, %v7422_v16  ;;  %v7461_v30 = vadd.f32 %v7335_v63, %v4344_v53  ;;  %v4153_v9 = vadd.f32 %v4109_v58, %v3959_v40 }
 0x6f7   : > { %v4297_v39 = vpop.f32.mrf.mxu1 }
 0x6f8   : > { %v4406_v59 = vadd.f32 %v4405_v29, %v7428_v17  ;;  %v4345_v34 = vadd.f32 %v4297_v39, %v4151_v44 }
 0x6fa   : > { %v4407_v42 = vadd.f32 %v4406_v59, %v7434_v55  ;;  %v7465_v41 = vadd.f32 %v7335_v63, %v4345_v34 }
 0x6fc   : > { %v4408_v15 = vadd.f32 %v4407_v42, %v7442_v32  ;;  %v4115_v39 = vpop.f32.mrf.mxu0  ;;  %v3924_v26 = vpop.f32.mrf.mxu3 }
 0x6fd   : > { %v4155_v40 = vadd.f32 %v4115_v39, %v3961_v19 }
 0x6fe   : > { %v4409_v25 = vadd.f32 %v4408_v15, %v7448_v27 }
 0x6ff   : > { %v4300_v2 = vpop.f32.mrf.mxu1 }
 0x700   : > { %v4410_v18 = vadd.f32 %v4409_v25, %v7452_v37  ;;  %v4346_v8 = vadd.f32 %v4300_v2, %v4152_v14  ;;  %v3730_v2 = vpop.f32.mrf.mxu2 }
 0x701   : > { %v3768_v44 = vadd.f32 %v3730_v2, %v7243_v38 }
 0x702   : > { %v4411_v49 = vadd.f32 %v4410_v18, %v7457_v22  ;;  %v7469_v28 = vadd.f32 %v7335_v63, %v4346_v8 }
 0x703   : > { %v3962_v13 = vadd.f32 %v3924_v26, %v3768_v44 }
 0x704   : > { %v4412_v29 = vadd.f32 %v4411_v49, %v7461_v30  ;;  %v4118_v53 = vpop.f32.mrf.mxu0 }
 0x705   : > { %v4156_v14 = vadd.f32 %v4118_v53, %v3962_v13  ;;  %v8094_v53 = vld [vmem:[#allocation23_spill] sm:$0xff] }
 0x706   : > { %v4413_v21 = vadd.f32 %v4412_v29, %v7465_v41 }
 0x707   : > { %v4303_v3 = vpop.f32.mrf.mxu1 }
 0x708   : > { %v4347_v51 = vadd.f32 %v4303_v3, %v4153_v9  ;;  %v4414_v59 = vadd.f32 %v4413_v21, %v7469_v28  ;;  %v3733_v43 = vpop.f32.mrf.mxu2  ;;  %v3927_v3 = vpop.f32.mrf.mxu3 }
 0x709   : > { %v3769_v34 = vadd.f32 %v3733_v43, %v7247_v7 }
 0x70a   : > { %v4382_v58 = vadd.f32 %v7335_v63, %v4347_v51 }
 0x70b   : > { %v3963_v9 = vadd.f32 %v3927_v3, %v3769_v34 }
 0x70c   : > { %v4415_v20 = vadd.f32 %v4414_v59, %v4382_v58  ;;  %v4121_v49 = vpop.f32.mrf.mxu0 }
 0x70d   : > { %v4157_v29 = vadd.f32 %v4121_v49, %v3963_v9 }
 0x70f   : > { %v4306_v6 = vpop.f32.mrf.mxu1 }
 0x710   : > { %v4348_v4 = vadd.f32 %v4306_v6, %v4154_v33  ;;  %v3736_v38 = vpop.f32.mrf.mxu2  ;;  %v3930_v21 = vpop.f32.mrf.mxu3 }
 0x711   : > { %v3770_v45 = vadd.f32 %v3736_v38, %v7251_v23 }
 0x712   : > { %v4383_v61 = vadd.f32 %v7335_v63, %v4348_v4 }
 0x713   : > { %v3964_v33 = vadd.f32 %v3930_v21, %v3770_v45 }
 0x714   : > { %v4416_v42 = vadd.f32 %v4415_v20, %v4383_v61  ;;  %v4124_v6 = vpop.f32.mrf.mxu0 }
 0x715   : > { %v4158_v59 = vadd.f32 %v4124_v6, %v3964_v33 }
 0x717   : > { %v4309_v5 = vpop.f32.mrf.mxu1 }
 0x718   : > { %v4349_v15 = vadd.f32 %v4309_v5, %v4155_v40 }
 0x71a   : > { %v4384_v0 = vadd.f32 %v7335_v63, %v4349_v15 }
 0x71c   : > { %v4417_v25 = vadd.f32 %v4416_v42, %v4384_v0 }
 0x71f   : > { %v4312_v18 = vpop.f32.mrf.mxu1 }
 0x720   : > { %v4350_v8 = vadd.f32 %v4312_v18, %v4156_v14 }
 0x722   : > { %v4385_v35 = vadd.f32 %v7335_v63, %v4350_v8 }
 0x724   : > { %v4418_v51 = vadd.f32 %v4417_v25, %v4385_v35 }
 0x727   : > { %v4315_v39 = vpop.f32.mrf.mxu1 }
 0x728   : > { %v4351_v11 = vadd.f32 %v4315_v39, %v4157_v29 }
 0x72a   : > { %v4386_v2 = vadd.f32 %v7335_v63, %v4351_v11 }
 0x72c   : > { %v4419_v7 = vadd.f32 %v4418_v51, %v4386_v2 }
 0x72f   : > { %v4318_v4 = vpop.f32.mrf.mxu1 }
 0x730   : > { %v4352_v19 = vadd.f32 %v4318_v4, %v4158_v59 }
 0x732   : > { %v4387_v20 = vadd.f32 %v7335_v63, %v4352_v19 }
 0x734   : > { %v4420_v42 = vadd.f32 %v4419_v7, %v4387_v20 }
 0x736   : > { %v4421_v26 = vrot.slane %v4420_v42, 4 }
 0x738   : > { %v4422_v44 = vadd.f32 %v4421_v26, %v4420_v42 }
 0x73a   : > { %v4423_v40 = vrot.slane %v4422_v44, 2 }
 0x73c   : > { %v4424_v5 = vadd.f32 %v4423_v40, %v4422_v44 }
 0x73e   : > { %v4425_v23 = vrot.slane %v4424_v5, 1 }
 0x740   : > { %v4426_v15 = vadd.f32 %v4425_v23, %v4424_v5 }
 0x742   : > { %v7484_v43 = vmul.f32 %v4426_v15, %v8094_v53 }
 0x744   : > { %v7487_v13 = vsub.f32 %v4382_v58, %v7484_v43  ;;  %v7490_v25 = vsub.f32 %v4383_v61, %v7484_v43  ;;  %v7493_v34 = vsub.f32 %v4384_v0, %v7484_v43  ;;  %v7496_v63 = vsub.f32 %v4385_v35, %v7484_v43 }
 0x745   : > { %v7499_v14 = vsub.f32 %v4386_v2, %v7484_v43  ;;  %v7502_v3 = vsub.f32 %v4387_v20, %v7484_v43  ;;  %v7506_v18 = vsub.f32 %v7345_v47, %v7484_v43  ;;  %v7510_v58 = vsub.f32 %v7341_v52, %v7484_v43 }
 0x746   : > { %v7514_v61 = vsub.f32 %v7349_v50, %v7484_v43  ;;  %v7522_v9 = vsub.f32 %v7355_v54, %v7484_v43  ;;  %v7526_v47 = vsub.f32 %v7360_v36, %v7484_v43  ;;  %v7532_v50 = vsub.f32 %v7365_v1, %v7484_v43 }
 0x747   : > { %v4460_v0 = vmul.f32 %v7506_v18, %v7506_v18  ;;  %v4461_v8 = vmul.f32 %v7510_v58, %v7510_v58  ;;  %v7538_v54 = vsub.f32 %v7370_v46, %v7484_v43  ;;  %v7544_v45 = vsub.f32 %v7375_v57, %v7484_v43 }
 0x748   : > { %v4462_v52 = vmul.f32 %v7514_v61, %v7514_v61  ;;  %v4463_v49 = vmul.f32 %v7522_v9, %v7522_v9  ;;  %v4464_v36 = vmul.f32 %v7526_v47, %v7526_v47  ;;  %v4465_v1 = vmul.f32 %v7532_v50, %v7532_v50 }
 0x749   : > { %v4492_v35 = vadd.f32 %v4461_v8, %v4460_v0  ;;  %v7550_v39 = vsub.f32 %v7380_v62, %v7484_v43  ;;  %v4466_v46 = vmul.f32 %v7538_v54, %v7538_v54  ;;  %v7556_v21 = vsub.f32 %v7385_v24, %v7484_v43 }
 0x74a   : > { %v4467_v57 = vmul.f32 %v7544_v45, %v7544_v45  ;;  %v7562_v2 = vsub.f32 %v7390_v48, %v7484_v43  ;;  %v7568_v6 = vsub.f32 %v7395_v60, %v7484_v43  ;;  %v7574_v4 = vsub.f32 %v7400_v31, %v7484_v43 }
 0x74b   : > { %v4493_v38 = vadd.f32 %v4492_v35, %v4462_v52  ;;  %v4468_v62 = vmul.f32 %v7550_v39, %v7550_v39  ;;  %v4469_v24 = vmul.f32 %v7556_v21, %v7556_v21  ;;  %v7580_v20 = vsub.f32 %v7405_v56, %v7484_v43 }
 0x74c   : > { %v4470_v48 = vmul.f32 %v7562_v2, %v7562_v2  ;;  %v4471_v60 = vmul.f32 %v7568_v6, %v7568_v6  ;;  %v7586_v26 = vsub.f32 %v7410_v12, %v7484_v43  ;;  %v4472_v31 = vmul.f32 %v7574_v4, %v7574_v4 }
 0x74d   : > { %v4494_v51 = vadd.f32 %v4493_v38, %v4463_v49  ;;  %v7592_v40 = vsub.f32 %v7416_v10, %v7484_v43  ;;  %v4473_v56 = vmul.f32 %v7580_v20, %v7580_v20  ;;  %v7598_v23 = vsub.f32 %v7422_v16, %v7484_v43 }
 0x74e   : > { %v4474_v12 = vmul.f32 %v7586_v26, %v7586_v26  ;;  %v7604_v0 = vsub.f32 %v7428_v17, %v7484_v43  ;;  %v7610_v52 = vsub.f32 %v7434_v55, %v7484_v43  ;;  %v7616_v49 = vsub.f32 %v7442_v32, %v7484_v43 }
 0x74f   : > { %v4495_v29 = vadd.f32 %v4494_v51, %v4464_v36  ;;  %v4475_v10 = vmul.f32 %v7592_v40, %v7592_v40  ;;  %v4476_v16 = vmul.f32 %v7598_v23, %v7598_v23  ;;  %v7622_v36 = vsub.f32 %v7448_v27, %v7484_v43 }
 0x750   : > { %v4477_v17 = vmul.f32 %v7604_v0, %v7604_v0  ;;  %v4478_v55 = vmul.f32 %v7610_v52, %v7610_v52  ;;  %v4479_v32 = vmul.f32 %v7616_v49, %v7616_v49 }
 0x751   : > { %v4496_v11 = vadd.f32 %v4495_v29, %v4465_v1  ;;  %v7628_v1 = vsub.f32 %v7452_v37, %v7484_v43  ;;  %v4480_v27 = vmul.f32 %v7622_v36, %v7622_v36 }
 0x753   : > { %v4497_v33 = vadd.f32 %v4496_v11, %v4466_v46  ;;  %v7634_v46 = vsub.f32 %v7457_v22, %v7484_v43  ;;  %v4481_v37 = vmul.f32 %v7628_v1, %v7628_v1 }
 0x755   : > { %v4498_v7 = vadd.f32 %v4497_v33, %v4467_v57  ;;  %v7640_v57 = vsub.f32 %v7461_v30, %v7484_v43  ;;  %v4482_v22 = vmul.f32 %v7634_v46, %v7634_v46 }
 0x757   : > { %v4499_v59 = vadd.f32 %v4498_v7, %v4468_v62  ;;  %v7646_v62 = vsub.f32 %v7465_v41, %v7484_v43  ;;  %v4483_v30 = vmul.f32 %v7640_v57, %v7640_v57 }
 0x759   : > { %v4500_v19 = vadd.f32 %v4499_v59, %v4469_v24  ;;  %v7652_v24 = vsub.f32 %v7469_v28, %v7484_v43  ;;  %v4487_v28 = vmul.f32 %v7490_v25, %v7490_v25 }
 0x75b   : > { %v4501_v42 = vadd.f32 %v4500_v19, %v4470_v48  ;;  %v4484_v48 = vmul.f32 %v7646_v62, %v7646_v62  ;;  %v4485_v41 = vmul.f32 %v7652_v24, %v7652_v24 }
 0x75d   : > { %v4502_v44 = vadd.f32 %v4501_v42, %v4471_v60  ;;  %v4486_v42 = vmul.f32 %v7487_v13, %v7487_v13 }
 0x75f   : > { %v4503_v5 = vadd.f32 %v4502_v44, %v4472_v31  ;;  %v4488_v44 = vmul.f32 %v7493_v34, %v7493_v34 }
 0x761   : > { %v4504_v15 = vadd.f32 %v4503_v5, %v4473_v56  ;;  %v4489_v5 = vmul.f32 %v7496_v63, %v7496_v63 }
 0x763   : > { %v4505_v8 = vadd.f32 %v4504_v15, %v4474_v12  ;;  %v4490_v15 = vmul.f32 %v7499_v14, %v7499_v14 }
 0x765   : > { %v4506_v35 = vadd.f32 %v4505_v8, %v4475_v10  ;;  %v4491_v8 = vmul.f32 %v7502_v3, %v7502_v3 }
 0x767   : > { %v4507_v38 = vadd.f32 %v4506_v35, %v4476_v16 }
 0x769   : > { %v4508_v51 = vadd.f32 %v4507_v38, %v4477_v17 }
 0x76b   : > { %v4509_v29 = vadd.f32 %v4508_v51, %v4478_v55 }
 0x76d   : > { %v4510_v11 = vadd.f32 %v4509_v29, %v4479_v32 }
 0x76f   : > { %v4511_v33 = vadd.f32 %v4510_v11, %v4480_v27 }
 0x771   : > { %v4512_v7 = vadd.f32 %v4511_v33, %v4481_v37 }
 0x773   : > { %v4513_v59 = vadd.f32 %v4512_v7, %v4482_v22 }
 0x775   : > { %v4514_v19 = vadd.f32 %v4513_v59, %v4483_v30 }
 0x777   : > { %v4515_v60 = vadd.f32 %v4514_v19, %v4484_v48 }
 0x779   : > { %v4516_v31 = vadd.f32 %v4515_v60, %v4485_v41  ;;  %v7684_v60 = vld [vmem:[%s7926_s7] ss:$0 sm:$0xff] }
 0x77b   : > { %v4517_v43 = vadd.f32 %v4516_v31, %v4486_v42 }
 0x77d   : > { %v4518_v56 = vadd.f32 %v4517_v43, %v4487_v28 }
 0x77f   : > { %v4519_v12 = vadd.f32 %v4518_v56, %v4488_v44  ;;  %v7700_v44 = vld [vmem:[%s7927_s8] ss:$0 sm:$0xff] }
 0x781   : > { %v4520_v10 = vadd.f32 %v4519_v12, %v4489_v5 }
 0x783   : > { %v4521_v16 = vadd.f32 %v4520_v10, %v4490_v15 }
 0x785   : > { %v4522_v35 = vadd.f32 %v4521_v16, %v4491_v8 }
 0x787   : > { %v4523_v17 = vrot.slane %v4522_v35, 4 }
 0x789   : > { %v4524_v38 = vadd.f32 %v4523_v17, %v4522_v35 }
 0x78b   : > { %v4525_v55 = vrot.slane %v4524_v38, 2 }
 0x78d   : > { %v4526_v51 = vadd.f32 %v4525_v55, %v4524_v38 }
 0x78f   : > { %v4527_v32 = vrot.slane %v4526_v51, 1 }
 0x791   : > { %v4528_v29 = vadd.f32 %v4527_v32, %v4526_v51  ;;  %v4881_v32 = vld [vmem:[%s5129_s27] sm:$0xff] }
 0x793   : > { %v4529_v27 = vmul.f32 %v4528_v29, %v8094_v53 }
 0x795   : > { %v4530_v11 = vadd.f32 1e-05, %v4529_v27  ;;  %v4882_v27 = vld [vmem:[%s5129_s27 + $0x8] sm:$0xff] }
 0x797   : > { %4875 = vrsqrt.f32 %v4530_v11  ;;  %vm4537_vm6 = vweird.f32 %v4530_v11 }
 0x79d   : > { %v4876_v37 = vpop.eup %4875 }
 0x79e   : > { %v4532_v33 = vmul.f32 %v4876_v37, %v4530_v11  ;;  %vm4538_vm5 = vweird.f32 %v4876_v37 }
 0x79f   : > { %vm4539_vm7 = vmor %vm4537_vm6, %vm4538_vm5 }
 0x7a0   : > { %v4533_v22 = vmul.f32 %v4876_v37, %v4532_v33 }
 0x7a2   : > { %v4534_v7 = vmul.f32 0.5, %v4533_v22 }
 0x7a4   : > { %v4535_v30 = vsub.f32 1.5, %v4534_v7 }
 0x7a6   : > { %v4536_v59 = vmul.f32 %v4876_v37, %v4535_v30  ;;  %v4884_v30 = vld [vmem:[%s5129_s27 + $0x18] sm:$0xff] }
 0x7a8   : > { %v7673_v48 = vsel %vm4539_vm7, %v4876_v37, %v4536_v59  ;;  %v4883_v37 = vld [vmem:[%s5129_s27 + $0x10] sm:$0xff] }
 0x7a9   : > { %v4541_v19 = vmul.f32 %v7673_v48, %v7506_v18  ;;  %v4542_v41 = vmul.f32 %v7673_v48, %v7510_v58  ;;  %v4543_v53 = vmul.f32 %v7673_v48, %v7514_v61  ;;  %v4544_v42 = vmul.f32 %v7673_v48, %v7522_v9 }
 0x7aa   : > { %v4545_v31 = vmul.f32 %v7673_v48, %v7526_v47  ;;  %v4546_v18 = vmul.f32 %v7673_v48, %v7532_v50  ;;  %v4547_v58 = vmul.f32 %v7673_v48, %v7538_v54  ;;  %v4548_v9 = vmul.f32 %v7673_v48, %v7544_v45 }
 0x7ab   : > { %v4576_v28 = vmul.f32 %v7684_v60, %v4541_v19  ;;  %v4577_v61 = vmul.f32 %v7684_v60, %v4542_v41  ;;  %v4578_v43 = vmul.f32 %v7684_v60, %v4543_v53  ;;  %v4579_v47 = vmul.f32 %v7684_v60, %v4544_v42  ;;  %v4885_v42 = vld [vmem:[%s5129_s27 + $0x20] sm:$0xff] }
 0x7ac   : > { %v4549_v50 = vmul.f32 %v7673_v48, %v7550_v39  ;;  %v4580_v54 = vmul.f32 %v7684_v60, %v4545_v31  ;;  %v4550_v56 = vmul.f32 %v7673_v48, %v7556_v21  ;;  %v4551_v5 = vmul.f32 %v7673_v48, %v7562_v2 }
 0x7ad   : > { %v4581_v12 = vmul.f32 %v7684_v60, %v4546_v18  ;;  %v4582_v15 = vmul.f32 %v7684_v60, %v4547_v58  ;;  %v4611_v45 = vadd.f32 %v7700_v44, %v4576_v28  ;;  %v4612_v10 = vadd.f32 %v7700_v44, %v4577_v61  ;;  %v4886_v28 = vld [vmem:[%s5129_s27 + $0x28] sm:$0xff] }
 0x7ae   : > { %v4613_v39 = vadd.f32 %v7700_v44, %v4578_v43  ;;  %v4552_v8 = vmul.f32 %v7673_v48, %v7568_v6  ;;  %v4583_v21 = vmul.f32 %v7684_v60, %v4548_v9  ;;  %v4614_v2 = vadd.f32 %v7700_v44, %v4579_v47  ;;  %v4887_v47 = vld [vmem:[%s5129_s27 + $0x30] sm:$0xff] }
 0x7af   : > { %v4553_v16 = vmul.f32 %v7673_v48, %v7574_v4  ;;  %v4554_v35 = vmul.f32 %v7673_v48, %v7580_v20  ;;  %v4584_v17 = vmul.f32 %v7684_v60, %v4549_v50  ;;  %v4615_v38 = vadd.f32 %v7700_v44, %v4580_v54 }
 0x7b0   : > { %v4555_v6 = vmul.f32 %v7673_v48, %v7586_v26  ;;  %v4585_v55 = vmul.f32 %v7684_v60, %v4550_v56  ;;  %v4586_v4 = vmul.f32 %v7684_v60, %v4551_v5  ;;  %v4616_v20 = vadd.f32 %v7700_v44, %v4581_v12  ;;  %v4888_v5 = vld [vmem:[%s5129_s27 + $0x38] sm:$0xff] }
 0x7b1   : > { %v4617_v51 = vadd.f32 %v7700_v44, %v4582_v15  ;;  %v4643_v29 = vadd.f32 %v4881_v32, %v4611_v45  ;;  %v4644_v11 = vadd.f32 %v4882_v27, %v4612_v10  ;;  %v4645_v33 = vadd.f32 %v4883_v37, %v4613_v39  ;;  %v4889_v10 = vld [vmem:[%s5129_s27 + $0x40] sm:$0xff] }
 0x7b2   : > { %v4556_v26 = vmul.f32 %v7673_v48, %v7592_v40  ;;  %v4587_v22 = vmul.f32 %v7684_v60, %v4552_v8  ;;  %v4618_v7 = vadd.f32 %v7700_v44, %v4583_v21  ;;  %v4646_v59 = vadd.f32 %v4884_v30, %v4614_v2  ;;  %v4890_v2 = vld [vmem:[%s5129_s27 + $0x48] sm:$0xff]  ;;  %v4893_v27 = vld [vmem:[%s5129_s27 + $0x60] sm:$0xff] }
 0x7b3   : > { %v4557_v19 = vmul.f32 %v7673_v48, %v7598_v23  ;;  %v4588_v41 = vmul.f32 %v7684_v60, %v4553_v16  ;;  %v4619_v53 = vadd.f32 %v7700_v44, %v4584_v17  ;;  %v4647_v31 = vadd.f32 %v4885_v42, %v4615_v38  ;;  %4675 = vst.msk [vmem:[%s7732_s23] sm:$0xff] %vm399_vm0, %v4643_v29  ;;  %v4891_v38 = vld [vmem:[%s5129_s27 + $0x50] sm:$0xff]  ;;  %v4896_v42 = vld [vmem:[%s5129_s27 + $0x78] sm:$0xff] }
 0x7b4   : > { %v4558_v40 = vmul.f32 %v7673_v48, %v7604_v0  ;;  %v4589_v18 = vmul.f32 %v7684_v60, %v4554_v35  ;;  %v4620_v58 = vadd.f32 %v7700_v44, %v4585_v55  ;;  %v4648_v23 = vadd.f32 %v4886_v28, %v4616_v20  ;;  %4676 = vst.msk [vmem:[%s7732_s23 + $0x8] sm:$0xff] %vm399_vm0, %v4644_v11  ;;  %v4892_v20 = vld [vmem:[%s5129_s27 + $0x58] sm:$0xff] }
 0x7b5   : > { %v4559_v61 = vmul.f32 %v7673_v48, %v7610_v52  ;;  %v4590_v43 = vmul.f32 %v7684_v60, %v4555_v6  ;;  %v4621_v9 = vadd.f32 %v7700_v44, %v4586_v4  ;;  %v4649_v0 = vadd.f32 %v4887_v47, %v4617_v51  ;;  %4677 = vst.msk [vmem:[%s7732_s23 + $0x10] sm:$0xff] %vm399_vm0, %v4645_v33 }
 0x7b6   : > { %v4560_v50 = vmul.f32 %v7673_v48, %v7616_v49  ;;  %v4591_v54 = vmul.f32 %v7684_v60, %v4556_v26  ;;  %v4622_v56 = vadd.f32 %v7700_v44, %v4587_v22  ;;  %v4650_v52 = vadd.f32 %v4888_v5, %v4618_v7  ;;  %4678 = vst.msk [vmem:[%s7732_s23 + $0x18] sm:$0xff] %vm399_vm0, %v4646_v59  ;;  %v4894_v26 = vld [vmem:[%s5129_s27 + $0x68] sm:$0xff]  ;;  %v4895_v59 = vld [vmem:[%s5129_s27 + $0x70] sm:$0xff] }
 0x7b7   : > { %v4561_v12 = vmul.f32 %v7673_v48, %v7622_v36  ;;  %v4592_v15 = vmul.f32 %v7684_v60, %v4557_v19  ;;  %v4623_v45 = vadd.f32 %v7700_v44, %v4588_v41  ;;  %v4651_v49 = vadd.f32 %v4889_v10, %v4619_v53  ;;  %4679 = vst.msk [vmem:[%s7732_s23 + $0x20] sm:$0xff] %vm399_vm0, %v4647_v31 }
 0x7b8   : > { %v4562_v39 = vmul.f32 %v7673_v48, %v7628_v1  ;;  %v4593_v8 = vmul.f32 %v7684_v60, %v4558_v40  ;;  %v4624_v21 = vadd.f32 %v7700_v44, %v4589_v18  ;;  %v4652_v36 = vadd.f32 %v4890_v2, %v4620_v58  ;;  %4680 = vst.msk [vmem:[%s7732_s23 + $0x28] sm:$0xff] %vm399_vm0, %v4648_v23  ;;  %v4897_v58 = vld [vmem:[%s5129_s27 + $0x80] sm:$0xff]  ;;  %v4903_v2 = vld [vmem:[%s5129_s27 + $0xb0] sm:$0xff] }
 0x7b9   : > { %v4563_v16 = vmul.f32 %v7673_v48, %v7634_v46  ;;  %v4594_v35 = vmul.f32 %v7684_v60, %v4559_v61  ;;  %v4625_v17 = vadd.f32 %v7700_v44, %v4590_v43  ;;  %v4653_v1 = vadd.f32 %v4891_v38, %v4621_v9  ;;  %4681 = vst.msk [vmem:[%s7732_s23 + $0x30] sm:$0xff] %vm399_vm0, %v4649_v0  ;;  %v4898_v43 = vld [vmem:[%s5129_s27 + $0x88] sm:$0xff] }
 0x7ba   : > { %v4564_v6 = vmul.f32 %v7673_v48, %v7640_v57  ;;  %v4595_v55 = vmul.f32 %v7684_v60, %v4560_v50  ;;  %v4626_v4 = vadd.f32 %v7700_v44, %v4591_v54  ;;  %v4654_v46 = vadd.f32 %v4892_v20, %v4622_v56  ;;  %4682 = vst.msk [vmem:[%s7732_s23 + $0x38] sm:$0xff] %vm399_vm0, %v4650_v52  ;;  %v4899_v50 = vld [vmem:[%s5129_s27 + $0x90] sm:$0xff] }
 0x7bb   : > { %v4565_v51 = vmul.f32 %v7673_v48, %v7646_v62  ;;  %v4596_v32 = vmul.f32 %v7684_v60, %v4561_v12  ;;  %v4627_v29 = vadd.f32 %v7700_v44, %v4592_v15  ;;  %v4655_v57 = vadd.f32 %v4893_v27, %v4623_v45  ;;  %4683 = vst.msk [vmem:[%s7732_s23 + $0x40] sm:$0xff] %vm399_vm0, %v4651_v49  ;;  %v4901_v45 = vld [vmem:[%s5129_s27 + $0xa0] sm:$0xff]  ;;  %v4902_v49 = vld [vmem:[%s5129_s27 + $0xa8] sm:$0xff]  ;;  %v4908_v27 = vld [vmem:[%s5129_s27 + $0xd8] sm:$0xff] }
 0x7bc   : > { %v4566_v11 = vmul.f32 %v7673_v48, %v7652_v24  ;;  %v4597_v37 = vmul.f32 %v7684_v60, %v4562_v39  ;;  %v4628_v33 = vadd.f32 %v7700_v44, %v4593_v8  ;;  %v4656_v62 = vadd.f32 %v4894_v26, %v4624_v21  ;;  %4684 = vst.msk [vmem:[%s7732_s23 + $0x48] sm:$0xff] %vm399_vm0, %v4652_v36 }
 0x7bd   : > { %v4567_v22 = vmul.f32 %v7673_v48, %v7487_v13  ;;  %v4598_v7 = vmul.f32 %v7684_v60, %v4563_v16  ;;  %v4629_v30 = vadd.f32 %v7700_v44, %v4594_v35  ;;  %v4657_v24 = vadd.f32 %v4895_v59, %v4625_v17  ;;  %4685 = vst.msk [vmem:[%s7732_s23 + $0x50] sm:$0xff] %vm399_vm0, %v4653_v1  ;;  %v4904_v17 = vld [vmem:[%s5129_s27 + $0xb8] sm:$0xff] }
 0x7be   : > { %v4568_v19 = vmul.f32 %v7673_v48, %v7490_v25  ;;  %v4599_v41 = vmul.f32 %v7684_v60, %v4564_v6  ;;  %v4630_v53 = vadd.f32 %v7700_v44, %v4595_v55  ;;  %v4658_v13 = vadd.f32 %v4896_v42, %v4626_v4  ;;  %4686 = vst.msk [vmem:[%s7732_s23 + $0x58] sm:$0xff] %vm399_vm0, %v4654_v46  ;;  %v4905_v6 = vld [vmem:[%s5129_s27 + $0xc0] sm:$0xff]  ;;  %v4906_v4 = vld [vmem:[%s5129_s27 + $0xc8] sm:$0xff] }
 0x7bf   : > { %v4569_v31 = vmul.f32 %v7673_v48, %v7493_v34  ;;  %v4600_v40 = vmul.f32 %v7684_v60, %v4565_v51  ;;  %v4631_v18 = vadd.f32 %v7700_v44, %v4596_v32  ;;  %v4659_v25 = vadd.f32 %v4897_v58, %v4627_v29  ;;  %4687 = vst.msk [vmem:[%s7732_s23 + $0x60] sm:$0xff] %vm399_vm0, %v4655_v57  ;;  %v4907_v51 = vld [vmem:[%s5129_s27 + $0xd0] sm:$0xff] }
 0x7c0   : > { %v4570_v28 = vmul.f32 %v7673_v48, %v7496_v63  ;;  %v4601_v23 = vmul.f32 %v7684_v60, %v4566_v11  ;;  %v4632_v61 = vadd.f32 %v7700_v44, %v4597_v37  ;;  %v4660_v34 = vadd.f32 %v4898_v43, %v4628_v33  ;;  %4688 = vst.msk [vmem:[%s7732_s23 + $0x68] sm:$0xff] %vm399_vm0, %v4656_v62  ;;  %v4909_v11 = vld [vmem:[%s5129_s27 + $0xe0] sm:$0xff]  ;;  %v4910_v33 = vld [vmem:[%s5129_s27 + $0xe8] sm:$0xff]  ;;  %v4911_v62 = vld [vmem:[%s5129_s27 + $0xf0] sm:$0xff] }
 0x7c1   : > { %v4571_v9 = vmul.f32 %v7673_v48, %v7499_v14  ;;  %v4602_v47 = vmul.f32 %v7684_v60, %v4567_v22  ;;  %v4633_v0 = vadd.f32 %v7700_v44, %v4598_v7  ;;  %v4661_v63 = vadd.f32 %v4899_v50, %v4629_v30  ;;  %4689 = vst.msk [vmem:[%s7732_s23 + $0x70] sm:$0xff] %vm399_vm0, %v4657_v24  ;;  %v4900_v14 = vld [vmem:[%s5129_s27 + $0x98] sm:$0xff] }
 0x7c2   : > { %v4572_v54 = vmul.f32 %v7673_v48, %v7502_v3  ;;  %v4603_v56 = vmul.f32 %v7684_v60, %v4568_v19  ;;  %v4634_v5 = vadd.f32 %v7700_v44, %v4599_v41  ;;  %v4662_v52 = vadd.f32 %v4900_v14, %v4630_v53  ;;  %4690 = vst.msk [vmem:[%s7732_s23 + $0x78] sm:$0xff] %vm399_vm0, %v4658_v13 }
 0x7c3   : > { %v4604_v12 = vmul.f32 %v7684_v60, %v4569_v31  ;;  %v4635_v15 = vadd.f32 %v7700_v44, %v4600_v40  ;;  %v4663_v10 = vadd.f32 %v4901_v45, %v4631_v18  ;;  %4691 = vst.msk [vmem:[%s7732_s23 + $0x80] sm:$0xff] %vm399_vm0, %v4659_v25  ;;  %v4605_v3 = vmul.f32 %v7684_v60, %v4570_v28 }
 0x7c4   : > { %v4636_v48 = vadd.f32 %v7700_v44, %v4601_v23  ;;  %v4664_v39 = vadd.f32 %v4902_v49, %v4632_v61  ;;  %4692 = vst.msk [vmem:[%s7732_s23 + $0x88] sm:$0xff] %vm399_vm0, %v4660_v34  ;;  %v4606_v8 = vmul.f32 %v7684_v60, %v4571_v9  ;;  %v4637_v21 = vadd.f32 %v7700_v44, %v4602_v47 }
 0x7c5   : > { %v4665_v36 = vadd.f32 %v4903_v2, %v4633_v0  ;;  %4693 = vst.msk [vmem:[%s7732_s23 + $0x90] sm:$0xff] %vm399_vm0, %v4661_v63  ;;  %v4607_v16 = vmul.f32 %v7684_v60, %v4572_v54  ;;  %v4638_v35 = vadd.f32 %v7700_v44, %v4603_v56  ;;  %v4666_v38 = vadd.f32 %v4904_v17, %v4634_v5 }
 0x7c6   : > { %4694 = vst.msk [vmem:[%s7732_s23 + $0x98] sm:$0xff] %vm399_vm0, %v4662_v52  ;;  %v4639_v1 = vadd.f32 %v7700_v44, %v4604_v12  ;;  %v4667_v55 = vadd.f32 %v4905_v6, %v4635_v15  ;;  %v4640_v60 = vadd.f32 %v7700_v44, %v4605_v3  ;;  %v4668_v20 = vadd.f32 %v4906_v4, %v4636_v48 }
 0x7c7   : > { %4695 = vst.msk [vmem:[%s7732_s23 + $0xa0] sm:$0xff] %vm399_vm0, %v4663_v10  ;;  %v4641_v46 = vadd.f32 %v7700_v44, %v4606_v8  ;;  %v4669_v32 = vadd.f32 %v4907_v51, %v4637_v21  ;;  %v4642_v29 = vadd.f32 %v7700_v44, %v4607_v16  ;;  %v4670_v57 = vadd.f32 %v4908_v27, %v4638_v35  ;;  %v4912_v44 = vld [vmem:[%s5129_s27 + $0xf8] sm:$0xff] }
 0x7c8   : > { %4696 = vst.msk [vmem:[%s7732_s23 + $0xa8] sm:$0xff] %vm399_vm0, %v4664_v39  ;;  %v4671_v37 = vadd.f32 %v4909_v11, %v4639_v1  ;;  %v4672_v26 = vadd.f32 %v4910_v33, %v4640_v60 }
 0x7c9   : > { %4697 = vst.msk [vmem:[%s7732_s23 + $0xb0] sm:$0xff] %vm399_vm0, %v4665_v36  ;;  %v4673_v22 = vadd.f32 %v4911_v62, %v4641_v46  ;;  %v4674_v7 = vadd.f32 %v4912_v44, %v4642_v29 }
 0x7ca   : > { %4698 = vst.msk [vmem:[%s7732_s23 + $0xb8] sm:$0xff] %vm399_vm0, %v4666_v38 }
 0x7cb   : > { %4699 = vst.msk [vmem:[%s7732_s23 + $0xc0] sm:$0xff] %vm399_vm0, %v4667_v55 }
 0x7cc   : > { %4700 = vst.msk [vmem:[%s7732_s23 + $0xc8] sm:$0xff] %vm399_vm0, %v4668_v20 }
 0x7cd   : > { %4701 = vst.msk [vmem:[%s7732_s23 + $0xd0] sm:$0xff] %vm399_vm0, %v4669_v32 }
 0x7ce   : > { %4702 = vst.msk [vmem:[%s7732_s23 + $0xd8] sm:$0xff] %vm399_vm0, %v4670_v57 }
 0x7cf   : > { %4703 = vst.msk [vmem:[%s7732_s23 + $0xe0] sm:$0xff] %vm399_vm0, %v4671_v37 }
 0x7d0   : > { %4704 = vst.msk [vmem:[%s7732_s23 + $0xe8] sm:$0xff] %vm399_vm0, %v4672_v26 }
 0x7d1   : > { %4705 = vst.msk [vmem:[%s7732_s23 + $0xf0] sm:$0xff] %vm399_vm0, %v4673_v22 }
 0x7d2   : > { %4706 = vst.msk [vmem:[%s7732_s23 + $0xf8] sm:$0xff] %vm399_vm0, %v4674_v7 }
 0x7d3 PF: > { %s21_s30 = sadd.s32 1, %s5037_s30  }
 0x7d4   : > { %p18_p7 = scmp.ge.s32.totalorder %s21_s30, 4  }
 0x7d6   :  { %20 = sbr.rel (!%p18_p7) target bundleno = 2 (0x2), region = 115 }
 0x7db   :  { %4728 = vsyncpa [#allocation4], 1 }
 0x7dc   :  { %4730 = vsyncpa [#allocation4 + $0x1], 1 }
 0x7dd   :  { %4731 = vsyncpa [#allocation6], 1 }

</bundles_post_ra>
